<compile_context>
chip_gen: v7x
topology: tpu7x:2x2x1
jax: 0.10.0
libtpu: 0.0.40
codegen_flags: <defaults>
</compile_context>

<pallas_src>
import functools
import math

import jax
import jax.numpy as jnp
from jax.experimental import pallas as pl
from jax.experimental.pallas import tpu as pltpu


# ----------------------------------------------------------------------------
# Fused encoder-layer kernel (grid = (B,))
# ----------------------------------------------------------------------------
def _encoder_layer_kernel(x_ref, kv_valid_ref, wqkv_ref, bqkv_ref, wo_ref, bo_ref,
                          ln1_g_ref, ln1_b_ref, w1_ref, b1_ref, w2_ref, b2_ref,
                          ln2_g_ref, ln2_b_ref, o_ref, *, num_heads, eps):
    x = x_ref[0]                                   # (S, D) f32 (residual kept in f32)
    S, D = x.shape
    dh = D // num_heads
    xb = x.astype(jnp.bfloat16)

    # ---- Fused QKV projection: one full-width MXU matmul (scale folded into Q).
    qkv = jnp.dot(xb, wqkv_ref[...],
                  preferred_element_type=jnp.float32) + bqkv_ref[...]      # (S, 3D)

    # Key-padding mask: (1, S) valid flags broadcast over heads and queries.
    valid = kv_valid_ref[0] > 0.0                                          # (1, S)

    # ---- Per-head attention (scores / softmax / PV on lane slices of qkv).
    ctx_parts = []
    for h in range(num_heads):
        qh = qkv[:, h * dh:(h + 1) * dh].astype(jnp.bfloat16)              # (S, dh)
        kh = qkv[:, D + h * dh:D + (h + 1) * dh].astype(jnp.bfloat16)      # (S, dh)
        vh = qkv[:, 2 * D + h * dh:2 * D + (h + 1) * dh].astype(jnp.bfloat16)

        s = jax.lax.dot_general(qh, kh, (((1,), (1,)), ((), ())),
                                preferred_element_type=jnp.float32)        # (S, S)
        s = jnp.where(valid, s, -1e9)
        s = s - jnp.max(s, axis=-1, keepdims=True)
        p = jnp.exp(s)
        p = p * pl.reciprocal(jnp.sum(p, axis=-1, keepdims=True), approx=True)

        ctx_parts.append(jnp.dot(p.astype(jnp.bfloat16), vh,
                                 preferred_element_type=jnp.float32))      # (S, dh)
    ctx = jnp.concatenate(ctx_parts, axis=-1)                              # (S, D)

    # ---- Output projection (single full-width matmul) + residual + LayerNorm1.
    attn = jnp.dot(ctx.astype(jnp.bfloat16), wo_ref[...],
                   preferred_element_type=jnp.float32) + bo_ref[...]       # (S, D)
    z1 = x + attn                                    # TODO(synk): dropout = identity
    mu1 = jnp.mean(z1, axis=-1, keepdims=True)
    var1 = jnp.mean((z1 - mu1) ** 2, axis=-1, keepdims=True)
    x1 = (z1 - mu1) * jax.lax.rsqrt(var1 + eps) * ln1_g_ref[...] + ln1_b_ref[...]

    # ---- FFN (Linear -> ReLU -> Linear) + residual + LayerNorm2.
    x1b = x1.astype(jnp.bfloat16)
    hid = jnp.dot(x1b, w1_ref[...], preferred_element_type=jnp.float32) + b1_ref[...]
    hid = jnp.maximum(hid, 0.0)
    # TODO(synk): dropout between ReLU and second linear is identity (eval mode).
    y = jnp.dot(hid.astype(jnp.bfloat16), w2_ref[...],
                preferred_element_type=jnp.float32) + b2_ref[...]
    z2 = x1 + y
    mu2 = jnp.mean(z2, axis=-1, keepdims=True)
    var2 = jnp.mean((z2 - mu2) ** 2, axis=-1, keepdims=True)
    o_ref[0] = (z2 - mu2) * jax.lax.rsqrt(var2 + eps) * ln2_g_ref[...] + ln2_b_ref[...]


# ----------------------------------------------------------------------------
# pallas_call wrapper
# ----------------------------------------------------------------------------
def _vmem_limit_bytes():
    """Generation-aware scoped-VMEM limit (~60% of capacity), safe fallback."""
    default = 48 * 1024 * 1024
    try:
        info = pltpu.get_tpu_info()
        cap = getattr(info, "vmem_capacity_bytes", None)
        if cap:
            return int(cap * 0.6)
    except Exception:
        pass
    return default


def _const_spec(shape, single_buffer):
    """BlockSpec for a weight whose block index never changes across the grid."""
    zeros = (0,) * len(shape)
    if single_buffer:
        return pl.BlockSpec(shape, lambda b: zeros, pipeline_mode=pl.Buffered(1))
    return pl.BlockSpec(shape, lambda b: zeros)


def _make_call(B, S, D, F, num_heads, eps, single_buffer_weights):
    w = functools.partial(_const_spec, single_buffer=single_buffer_weights)
    return pl.pallas_call(
        functools.partial(_encoder_layer_kernel, num_heads=num_heads, eps=eps),
        out_shape=jax.ShapeDtypeStruct((B, S, D), jnp.float32),
        grid=(B,),
        in_specs=[
            pl.BlockSpec((1, S, D), lambda b: (b, 0, 0)),   # src
            pl.BlockSpec((1, 1, S), lambda b: (b, 0, 0)),   # key-valid vector
            w((D, 3 * D)),                                  # wqkv (bf16, fused)
            w((1, 3 * D)),                                  # bqkv
            w((D, D)),                                      # wo
            w((1, D)),                                      # bo
            w((1, D)), w((1, D)),                           # ln1 gamma / beta
            w((D, F)), w((1, F)),                           # w1 / b1
            w((F, D)), w((1, D)),                           # w2 / b2
            w((1, D)), w((1, D)),                           # ln2 gamma / beta
        ],
        out_specs=pl.BlockSpec((1, S, D), lambda b: (b, 0, 0)),
        compiler_params=pltpu.CompilerParams(
            dimension_semantics=("parallel",),
            vmem_limit_bytes=_vmem_limit_bytes(),
        ),
    )


def encoder_layer_pallas(src, key_valid, p, *, num_heads, eps=1e-5):
    B, S, D = src.shape
    F = p["w1"].shape[1]
    args = (src, key_valid, p["wqkv"], p["bqkv"], p["wo"], p["bo"],
            p["ln1_g"], p["ln1_b"], p["w1"], p["b1"], p["w2"], p["b2"],
            p["ln2_g"], p["ln2_b"])
    try:
        return _make_call(B, S, D, F, num_heads, eps, True)(*args)
    except Exception:
        # pipeline_mode=pl.Buffered(1) not supported on this jax version; fall back
        # to default double-buffered weight blocks (correctness is unchanged).
        return _make_call(B, S, D, F, num_heads, eps, False)(*args)


def transformer_encoder_forward(kparams, src, src_mask=None, *, num_heads):
    """Pallas forward pass for TransformerEncoder.forward(src, src_mask)."""
    B, S, D = src.shape
    if src_mask is None:
        key_valid = jnp.ones((B, 1, S), jnp.float32)
    else:
        m = src_mask
        if m.ndim == 4:                      # (B, 1, S, S) -> (B, S, S)
            m = m[:, 0]
        if m.ndim == 3:                      # (B, S, S) key-padding mask
            # TODO(synk): general per-query (S,S) masks collapse to key padding here.
            m = m[:, 0, :]
        key_valid = jnp.broadcast_to(m.astype(jnp.float32), (B, S)).reshape(B, 1, S)
    return encoder_layer_pallas(src, key_valid, kparams, num_heads=num_heads)


# ----------------------------------------------------------------------------
# Parameters: raw f32 (reference) and kernel-prepped (fused QKV, bf16 weights)
# ----------------------------------------------------------------------------
def init_raw_params(key, d_model, d_ff):
    ks = jax.random.split(key, 12)

    def w(k, i, o):
        return jax.random.normal(k, (i, o), jnp.float32) * 0.02

    def b(k, n):
        return jax.random.normal(k, (n,), jnp.float32) * 0.01

    return dict(
        wq=w(ks[0], d_model, d_model), bq=b(ks[1], d_model),
        wk=w(ks[2], d_model, d_model), bk=b(ks[3], d_model),
        wv=w(ks[4], d_model, d_model), bv=b(ks[5], d_model),
        wo=w(ks[6], d_model, d_model), bo=b(ks[7], d_model),
        ln1_g=jnp.ones((d_model,), jnp.float32),
        ln1_b=jnp.zeros((d_model,), jnp.float32),
        w1=w(ks[8], d_model, d_ff), b1=b(ks[9], d_ff),
        w2=w(ks[10], d_ff, d_model), b2=b(ks[11], d_model),
        ln2_g=jnp.ones((d_model,), jnp.float32),
        ln2_b=jnp.zeros((d_model,), jnp.float32),
    )


def prep_kernel_params(raw, num_heads):
    D = raw["wq"].shape[0]
    F = raw["w1"].shape[1]
    dh = D // num_heads
    scale = 1.0 / math.sqrt(dh)
    # Fused QKV weight (D, 3D) with 1/sqrt(dh) folded into the Q columns/bias.
    wqkv = jnp.concatenate([raw["wq"] * scale, raw["wk"], raw["wv"]], axis=1)
    bqkv = jnp.concatenate([raw["bq"] * scale, raw["bk"], raw["bv"]])
    return dict(
        wqkv=wqkv.astype(jnp.bfloat16),
        bqkv=bqkv.reshape(1, 3 * D),
        wo=raw["wo"].astype(jnp.bfloat16),
        bo=raw["bo"].reshape(1, D),
        ln1_g=raw["ln1_g"].reshape(1, D), ln1_b=raw["ln1_b"].reshape(1, D),
        w1=raw["w1"].astype(jnp.bfloat16), b1=raw["b1"].reshape(1, F),
        w2=raw["w2"].astype(jnp.bfloat16), b2=raw["b2"].reshape(1, D),
        ln2_g=raw["ln2_g"].reshape(1, D), ln2_b=raw["ln2_b"].reshape(1, D),
    )


# ----------------------------------------------------------------------------
# Pure-JAX f32 reference (mirrors the PyTorch module, eval mode)
# ----------------------------------------------------------------------------
def _layer_norm_ref(z, g, b, eps=1e-5):
    mu = jnp.mean(z, axis=-1, keepdims=True)
    var = jnp.mean((z - mu) ** 2, axis=-1, keepdims=True)
    return (z - mu) * jax.lax.rsqrt(var + eps) * g + b


def reference_encoder(raw, src, mask_bool, num_heads):
    B, S, D = src.shape
    H, dh = num_heads, D // num_heads
    q = (src @ raw["wq"] + raw["bq"]).reshape(B, S, H, dh).transpose(0, 2, 1, 3)
    k = (src @ raw["wk"] + raw["bk"]).reshape(B, S, H, dh).transpose(0, 2, 1, 3)
    v = (src @ raw["wv"] + raw["bv"]).reshape(B, S, H, dh).transpose(0, 2, 1, 3)
    s = jnp.einsum("bhqd,bhkd->bhqk", q, k) / math.sqrt(dh)
    if mask_bool is not None:
        s = s + jnp.where(mask_bool[:, None, :, :], 0.0, -1e9)
    p = jax.nn.softmax(s, axis=-1)
    ctx = jnp.einsum("bhqk,bhkd->bhqd", p, v).transpose(0, 2, 1, 3).reshape(B, S, D)
    attn = ctx @ raw["wo"] + raw["bo"]
    x = _layer_norm_ref(src + attn, raw["ln1_g"], raw["ln1_b"])
    h = jax.nn.relu(x @ raw["w1"] + raw["b1"])
    y = h @ raw["w2"] + raw["b2"]
    return _layer_norm_ref(x + y, raw["ln2_g"], raw["ln2_b"])


# ----------------------------------------------------------------------------
if __name__ == "__main__":
    d_model, num_heads, d_ff = 128, 4, 256   # lane-dense shapes (multiples of 128)
    B, S = 2, 128

    key = jax.random.PRNGKey(0)
    k_p, k_x = jax.random.split(key)

    raw = init_raw_params(k_p, d_model, d_ff)
    kparams = prep_kernel_params(raw, num_heads)

    src = jax.random.normal(k_x, (B, S, d_model), jnp.float32)

    # Padding mask: batch element 1 has its last 16 key positions masked out.
    valid = jnp.ones((B, S), bool).at[1, S - 16:].set(False)
    src_mask = jnp.broadcast_to(valid[:, None, :], (B, S, S))

    out = transformer_encoder_forward(kparams, src, src_mask, num_heads=num_heads)
    out = jax.block_until_ready(out)

    ref = reference_encoder(raw, src, src_mask, num_heads)

    assert out.shape == (B, S, d_model)
    assert bool(jnp.all(jnp.isfinite(out)))
    max_err = float(jnp.max(jnp.abs(out - ref)))
    assert max_err < 5e-2, f"max abs error {max_err}"
    print("KERNEL_OK")
</pallas_src>

<mosaic_0001>
module attributes {stable_mosaic.version = 11 : i64} {
  func.func @_encoder_layer_kernel(%arg0: i32, %arg1: memref<1x128x128xf32, #tpu.memory_space<vmem>>, %arg2: memref<1x1x128xf32, #tpu.memory_space<vmem>>, %arg3: memref<128x384xbf16, #tpu.memory_space<vmem>>, %arg4: memref<1x384xf32, #tpu.memory_space<vmem>>, %arg5: memref<128x128xbf16, #tpu.memory_space<vmem>>, %arg6: memref<1x128xf32, #tpu.memory_space<vmem>>, %arg7: memref<1x128xf32, #tpu.memory_space<vmem>>, %arg8: memref<1x128xf32, #tpu.memory_space<vmem>>, %arg9: memref<128x256xbf16, #tpu.memory_space<vmem>>, %arg10: memref<1x256xf32, #tpu.memory_space<vmem>>, %arg11: memref<256x128xbf16, #tpu.memory_space<vmem>>, %arg12: memref<1x128xf32, #tpu.memory_space<vmem>>, %arg13: memref<1x128xf32, #tpu.memory_space<vmem>>, %arg14: memref<1x128xf32, #tpu.memory_space<vmem>>, %arg15: memref<1x128x128xf32, #tpu.memory_space<vmem>>) attributes {dimension_semantics = [#tpu.dimension_semantics<parallel>], iteration_bounds = array<i64: 2>, scalar_prefetch = 0 : i64, scratch_operands = 0 : i64, tpu.core_type = #tpu.core_type<tc>, window_params = [{transform_indices = @transform_0, window_bounds = array<i64: 1, 128, 128>}, {transform_indices = @transform_1, window_bounds = array<i64: 1, 1, 128>}, {pipeline_mode = #tpu.pipeline_mode<synchronous>, transform_indices = @transform_2, window_bounds = array<i64: 128, 384>}, {pipeline_mode = #tpu.pipeline_mode<synchronous>, transform_indices = @transform_3, window_bounds = array<i64: 1, 384>}, {pipeline_mode = #tpu.pipeline_mode<synchronous>, transform_indices = @transform_4, window_bounds = array<i64: 128, 128>}, {pipeline_mode = #tpu.pipeline_mode<synchronous>, transform_indices = @transform_5, window_bounds = array<i64: 1, 128>}, {pipeline_mode = #tpu.pipeline_mode<synchronous>, transform_indices = @transform_6, window_bounds = array<i64: 1, 128>}, {pipeline_mode = #tpu.pipeline_mode<synchronous>, transform_indices = @transform_7, window_bounds = array<i64: 1, 128>}, {pipeline_mode = #tpu.pipeline_mode<synchronous>, transform_indices = @transform_8, window_bounds = array<i64: 128, 256>}, {pipeline_mode = #tpu.pipeline_mode<synchronous>, transform_indices = @transform_9, window_bounds = array<i64: 1, 256>}, {pipeline_mode = #tpu.pipeline_mode<synchronous>, transform_indices = @transform_10, window_bounds = array<i64: 256, 128>}, {pipeline_mode = #tpu.pipeline_mode<synchronous>, transform_indices = @transform_11, window_bounds = array<i64: 1, 128>}, {pipeline_mode = #tpu.pipeline_mode<synchronous>, transform_indices = @transform_12, window_bounds = array<i64: 1, 128>}, {pipeline_mode = #tpu.pipeline_mode<synchronous>, transform_indices = @transform_13, window_bounds = array<i64: 1, 128>}, {transform_indices = @transform_14, window_bounds = array<i64: 1, 128, 128>}]} {
    %c0 = arith.constant 0 : index
    %c0_0 = arith.constant 0 : index
    %c0_1 = arith.constant 0 : index
    %0 = vector.load %arg1[%c0, %c0_0, %c0_1] : memref<1x128x128xf32, #tpu.memory_space<vmem>>, vector<1x128x128xf32>
    %1 = vector.shape_cast %0 : vector<1x128x128xf32> to vector<128x128xf32>
    %2 = arith.truncf %1 : vector<128x128xf32> to vector<128x128xbf16>
    %c0_2 = arith.constant 0 : index
    %c0_3 = arith.constant 0 : index
    %3 = vector.load %arg3[%c0_2, %c0_3] : memref<128x384xbf16, #tpu.memory_space<vmem>>, vector<128x384xbf16>
    %cst = arith.constant dense<0.000000e+00> : vector<128x384xf32>
    %4 = tpu.matmul %2, %3, %cst {dimension_numbers = #tpu.dot_dimension_numbers<[1], [0], [0], [1], [0, 0, 1, 1], [], []>} : vector<128x128xbf16>, vector<128x384xbf16>, vector<128x384xf32> -> vector<128x384xf32>
    %c0_4 = arith.constant 0 : index
    %c0_5 = arith.constant 0 : index
    %5 = vector.load %arg4[%c0_4, %c0_5] : memref<1x384xf32, #tpu.memory_space<vmem>>, vector<1x384xf32>
    %6 = vector.broadcast %5 : vector<1x384xf32> to vector<128x384xf32>
    %7 = arith.addf %4, %6 : vector<128x384xf32>
    %c0_6 = arith.constant 0 : index
    %c0_7 = arith.constant 0 : index
    %c0_8 = arith.constant 0 : index
    %8 = vector.load %arg2[%c0_6, %c0_7, %c0_8] : memref<1x1x128xf32, #tpu.memory_space<vmem>>, vector<1x1x128xf32>
    %9 = vector.shape_cast %8 : vector<1x1x128xf32> to vector<1x128xf32>
    %cst_9 = arith.constant 0.000000e+00 : f32
    %10 = vector.broadcast %cst_9 : f32 to vector<1x128xf32>
    %11 = arith.cmpf ogt, %9, %10 : vector<1x128xf32>
    %12 = vector.extract_strided_slice %7 {offsets = [0, 0], sizes = [128, 32], strides = [1, 1]} : vector<128x384xf32> to vector<128x32xf32>
    %13 = arith.truncf %12 : vector<128x32xf32> to vector<128x32xbf16>
    %14 = vector.extract_strided_slice %7 {offsets = [0, 128], sizes = [128, 32], strides = [1, 1]} : vector<128x384xf32> to vector<128x32xf32>
    %15 = arith.truncf %14 : vector<128x32xf32> to vector<128x32xbf16>
    %16 = vector.extract_strided_slice %7 {offsets = [0, 256], sizes = [128, 32], strides = [1, 1]} : vector<128x384xf32> to vector<128x32xf32>
    %17 = arith.truncf %16 : vector<128x32xf32> to vector<128x32xbf16>
    %cst_10 = arith.constant dense<0.000000e+00> : vector<128x128xf32>
    %18 = tpu.matmul %13, %15, %cst_10 {dimension_numbers = #tpu.dot_dimension_numbers<[1], [1], [0], [0], [0, 0, 1, 0], [], []>} : vector<128x32xbf16>, vector<128x32xbf16>, vector<128x128xf32> -> vector<128x128xf32>
    %cst_11 = arith.constant -1.000000e+09 : f32
    %19 = vector.shape_cast %11 : vector<1x128xi1> to vector<1x128xi1>
    %20 = vector.broadcast %19 : vector<1x128xi1> to vector<128x128xi1>
    %21 = vector.broadcast %cst_11 : f32 to vector<128x128xf32>
    %22 = arith.select %20, %18, %21 : vector<128x128xi1>, vector<128x128xf32>
    %cst_12 = arith.constant dense<0xFF800000> : vector<128xf32>
    %23 = vector.multi_reduction <maximumf>, %22, %cst_12 [1] : vector<128x128xf32> to vector<128xf32>
    %24 = vector.shape_cast %23 : vector<128xf32> to vector<128x1xf32>
    %25 = vector.broadcast %24 : vector<128x1xf32> to vector<128x128xf32>
    %26 = arith.subf %22, %25 : vector<128x128xf32>
    %27 = math.exp %26 : vector<128x128xf32>
    %cst_13 = arith.constant dense<0.000000e+00> : vector<128xf32>
    %28 = vector.multi_reduction <add>, %27, %cst_13 [1] : vector<128x128xf32> to vector<128xf32>
    %29 = vector.shape_cast %28 : vector<128xf32> to vector<128x1xf32>
    %30 = tpu.reciprocal %29 {approx = true} : vector<128x1xf32> -> vector<128x1xf32>
    %31 = vector.broadcast %30 : vector<128x1xf32> to vector<128x128xf32>
    %32 = arith.mulf %27, %31 : vector<128x128xf32>
    %33 = arith.truncf %32 : vector<128x128xf32> to vector<128x128xbf16>
    %cst_14 = arith.constant dense<0.000000e+00> : vector<128x32xf32>
    %34 = tpu.matmul %33, %17, %cst_14 {dimension_numbers = #tpu.dot_dimension_numbers<[1], [0], [0], [1], [0, 0, 1, 1], [], []>} : vector<128x128xbf16>, vector<128x32xbf16>, vector<128x32xf32> -> vector<128x32xf32>
    %35 = vector.extract_strided_slice %7 {offsets = [0, 32], sizes = [128, 32], strides = [1, 1]} : vector<128x384xf32> to vector<128x32xf32>
    %36 = arith.truncf %35 : vector<128x32xf32> to vector<128x32xbf16>
    %37 = vector.extract_strided_slice %7 {offsets = [0, 160], sizes = [128, 32], strides = [1, 1]} : vector<128x384xf32> to vector<128x32xf32>
    %38 = arith.truncf %37 : vector<128x32xf32> to vector<128x32xbf16>
    %39 = vector.extract_strided_slice %7 {offsets = [0, 288], sizes = [128, 32], strides = [1, 1]} : vector<128x384xf32> to vector<128x32xf32>
    %40 = arith.truncf %39 : vector<128x32xf32> to vector<128x32xbf16>
    %cst_15 = arith.constant dense<0.000000e+00> : vector<128x128xf32>
    %41 = tpu.matmul %36, %38, %cst_15 {dimension_numbers = #tpu.dot_dimension_numbers<[1], [1], [0], [0], [0, 0, 1, 0], [], []>} : vector<128x32xbf16>, vector<128x32xbf16>, vector<128x128xf32> -> vector<128x128xf32>
    %cst_16 = arith.constant -1.000000e+09 : f32
    %42 = vector.shape_cast %11 : vector<1x128xi1> to vector<1x128xi1>
    %43 = vector.broadcast %42 : vector<1x128xi1> to vector<128x128xi1>
    %44 = vector.broadcast %cst_16 : f32 to vector<128x128xf32>
    %45 = arith.select %43, %41, %44 : vector<128x128xi1>, vector<128x128xf32>
    %cst_17 = arith.constant dense<0xFF800000> : vector<128xf32>
    %46 = vector.multi_reduction <maximumf>, %45, %cst_17 [1] : vector<128x128xf32> to vector<128xf32>
    %47 = vector.shape_cast %46 : vector<128xf32> to vector<128x1xf32>
    %48 = vector.broadcast %47 : vector<128x1xf32> to vector<128x128xf32>
    %49 = arith.subf %45, %48 : vector<128x128xf32>
    %50 = math.exp %49 : vector<128x128xf32>
    %cst_18 = arith.constant dense<0.000000e+00> : vector<128xf32>
    %51 = vector.multi_reduction <add>, %50, %cst_18 [1] : vector<128x128xf32> to vector<128xf32>
    %52 = vector.shape_cast %51 : vector<128xf32> to vector<128x1xf32>
    %53 = tpu.reciprocal %52 {approx = true} : vector<128x1xf32> -> vector<128x1xf32>
    %54 = vector.broadcast %53 : vector<128x1xf32> to vector<128x128xf32>
    %55 = arith.mulf %50, %54 : vector<128x128xf32>
    %56 = arith.truncf %55 : vector<128x128xf32> to vector<128x128xbf16>
    %cst_19 = arith.constant dense<0.000000e+00> : vector<128x32xf32>
    %57 = tpu.matmul %56, %40, %cst_19 {dimension_numbers = #tpu.dot_dimension_numbers<[1], [0], [0], [1], [0, 0, 1, 1], [], []>} : vector<128x128xbf16>, vector<128x32xbf16>, vector<128x32xf32> -> vector<128x32xf32>
    %58 = vector.extract_strided_slice %7 {offsets = [0, 64], sizes = [128, 32], strides = [1, 1]} : vector<128x384xf32> to vector<128x32xf32>
    %59 = arith.truncf %58 : vector<128x32xf32> to vector<128x32xbf16>
    %60 = vector.extract_strided_slice %7 {offsets = [0, 192], sizes = [128, 32], strides = [1, 1]} : vector<128x384xf32> to vector<128x32xf32>
    %61 = arith.truncf %60 : vector<128x32xf32> to vector<128x32xbf16>
    %62 = vector.extract_strided_slice %7 {offsets = [0, 320], sizes = [128, 32], strides = [1, 1]} : vector<128x384xf32> to vector<128x32xf32>
    %63 = arith.truncf %62 : vector<128x32xf32> to vector<128x32xbf16>
    %cst_20 = arith.constant dense<0.000000e+00> : vector<128x128xf32>
    %64 = tpu.matmul %59, %61, %cst_20 {dimension_numbers = #tpu.dot_dimension_numbers<[1], [1], [0], [0], [0, 0, 1, 0], [], []>} : vector<128x32xbf16>, vector<128x32xbf16>, vector<128x128xf32> -> vector<128x128xf32>
    %cst_21 = arith.constant -1.000000e+09 : f32
    %65 = vector.shape_cast %11 : vector<1x128xi1> to vector<1x128xi1>
    %66 = vector.broadcast %65 : vector<1x128xi1> to vector<128x128xi1>
    %67 = vector.broadcast %cst_21 : f32 to vector<128x128xf32>
    %68 = arith.select %66, %64, %67 : vector<128x128xi1>, vector<128x128xf32>
    %cst_22 = arith.constant dense<0xFF800000> : vector<128xf32>
    %69 = vector.multi_reduction <maximumf>, %68, %cst_22 [1] : vector<128x128xf32> to vector<128xf32>
    %70 = vector.shape_cast %69 : vector<128xf32> to vector<128x1xf32>
    %71 = vector.broadcast %70 : vector<128x1xf32> to vector<128x128xf32>
    %72 = arith.subf %68, %71 : vector<128x128xf32>
    %73 = math.exp %72 : vector<128x128xf32>
    %cst_23 = arith.constant dense<0.000000e+00> : vector<128xf32>
    %74 = vector.multi_reduction <add>, %73, %cst_23 [1] : vector<128x128xf32> to vector<128xf32>
    %75 = vector.shape_cast %74 : vector<128xf32> to vector<128x1xf32>
    %76 = tpu.reciprocal %75 {approx = true} : vector<128x1xf32> -> vector<128x1xf32>
    %77 = vector.broadcast %76 : vector<128x1xf32> to vector<128x128xf32>
    %78 = arith.mulf %73, %77 : vector<128x128xf32>
    %79 = arith.truncf %78 : vector<128x128xf32> to vector<128x128xbf16>
    %cst_24 = arith.constant dense<0.000000e+00> : vector<128x32xf32>
    %80 = tpu.matmul %79, %63, %cst_24 {dimension_numbers = #tpu.dot_dimension_numbers<[1], [0], [0], [1], [0, 0, 1, 1], [], []>} : vector<128x128xbf16>, vector<128x32xbf16>, vector<128x32xf32> -> vector<128x32xf32>
    %81 = vector.extract_strided_slice %7 {offsets = [0, 96], sizes = [128, 32], strides = [1, 1]} : vector<128x384xf32> to vector<128x32xf32>
    %82 = arith.truncf %81 : vector<128x32xf32> to vector<128x32xbf16>
    %83 = vector.extract_strided_slice %7 {offsets = [0, 224], sizes = [128, 32], strides = [1, 1]} : vector<128x384xf32> to vector<128x32xf32>
    %84 = arith.truncf %83 : vector<128x32xf32> to vector<128x32xbf16>
    %85 = vector.extract_strided_slice %7 {offsets = [0, 352], sizes = [128, 32], strides = [1, 1]} : vector<128x384xf32> to vector<128x32xf32>
    %86 = arith.truncf %85 : vector<128x32xf32> to vector<128x32xbf16>
    %cst_25 = arith.constant dense<0.000000e+00> : vector<128x128xf32>
    %87 = tpu.matmul %82, %84, %cst_25 {dimension_numbers = #tpu.dot_dimension_numbers<[1], [1], [0], [0], [0, 0, 1, 0], [], []>} : vector<128x32xbf16>, vector<128x32xbf16>, vector<128x128xf32> -> vector<128x128xf32>
    %cst_26 = arith.constant -1.000000e+09 : f32
    %88 = vector.shape_cast %11 : vector<1x128xi1> to vector<1x128xi1>
    %89 = vector.broadcast %88 : vector<1x128xi1> to vector<128x128xi1>
    %90 = vector.broadcast %cst_26 : f32 to vector<128x128xf32>
    %91 = arith.select %89, %87, %90 : vector<128x128xi1>, vector<128x128xf32>
    %cst_27 = arith.constant dense<0xFF800000> : vector<128xf32>
    %92 = vector.multi_reduction <maximumf>, %91, %cst_27 [1] : vector<128x128xf32> to vector<128xf32>
    %93 = vector.shape_cast %92 : vector<128xf32> to vector<128x1xf32>
    %94 = vector.broadcast %93 : vector<128x1xf32> to vector<128x128xf32>
    %95 = arith.subf %91, %94 : vector<128x128xf32>
    %96 = math.exp %95 : vector<128x128xf32>
    %cst_28 = arith.constant dense<0.000000e+00> : vector<128xf32>
    %97 = vector.multi_reduction <add>, %96, %cst_28 [1] : vector<128x128xf32> to vector<128xf32>
    %98 = vector.shape_cast %97 : vector<128xf32> to vector<128x1xf32>
    %99 = tpu.reciprocal %98 {approx = true} : vector<128x1xf32> -> vector<128x1xf32>
    %100 = vector.broadcast %99 : vector<128x1xf32> to vector<128x128xf32>
    %101 = arith.mulf %96, %100 : vector<128x128xf32>
    %102 = arith.truncf %101 : vector<128x128xf32> to vector<128x128xbf16>
    %cst_29 = arith.constant dense<0.000000e+00> : vector<128x32xf32>
    %103 = tpu.matmul %102, %86, %cst_29 {dimension_numbers = #tpu.dot_dimension_numbers<[1], [0], [0], [1], [0, 0, 1, 1], [], []>} : vector<128x128xbf16>, vector<128x32xbf16>, vector<128x32xf32> -> vector<128x32xf32>
    %104 = tpu.concatenate %34, %57, %80, %103 in 1 : vector<128x32xf32>, vector<128x32xf32>, vector<128x32xf32>, vector<128x32xf32> -> vector<128x128xf32>
    %105 = arith.truncf %104 : vector<128x128xf32> to vector<128x128xbf16>
    %c0_30 = arith.constant 0 : index
    %c0_31 = arith.constant 0 : index
    %106 = vector.load %arg5[%c0_30, %c0_31] : memref<128x128xbf16, #tpu.memory_space<vmem>>, vector<128x128xbf16>
    %cst_32 = arith.constant dense<0.000000e+00> : vector<128x128xf32>
    %107 = tpu.matmul %105, %106, %cst_32 {dimension_numbers = #tpu.dot_dimension_numbers<[1], [0], [0], [1], [0, 0, 1, 1], [], []>} : vector<128x128xbf16>, vector<128x128xbf16>, vector<128x128xf32> -> vector<128x128xf32>
    %c0_33 = arith.constant 0 : index
    %c0_34 = arith.constant 0 : index
    %108 = vector.load %arg6[%c0_33, %c0_34] : memref<1x128xf32, #tpu.memory_space<vmem>>, vector<1x128xf32>
    %109 = vector.broadcast %108 : vector<1x128xf32> to vector<128x128xf32>
    %110 = arith.addf %107, %109 : vector<128x128xf32>
    %111 = arith.addf %1, %110 : vector<128x128xf32>
    %cst_35 = arith.constant dense<0.000000e+00> : vector<128xf32>
    %112 = vector.multi_reduction <add>, %111, %cst_35 [1] : vector<128x128xf32> to vector<128xf32>
    %113 = vector.shape_cast %112 : vector<128xf32> to vector<128x1xf32>
    %cst_36 = arith.constant 1.280000e+02 : f32
    %114 = vector.broadcast %cst_36 : f32 to vector<128x1xf32>
    %115 = arith.divf %113, %114 : vector<128x1xf32>
    %116 = vector.broadcast %115 : vector<128x1xf32> to vector<128x128xf32>
    %117 = arith.subf %111, %116 : vector<128x128xf32>
    %118 = arith.mulf %117, %117 : vector<128x128xf32>
    %cst_37 = arith.constant dense<0.000000e+00> : vector<128xf32>
    %119 = vector.multi_reduction <add>, %118, %cst_37 [1] : vector<128x128xf32> to vector<128xf32>
    %120 = vector.shape_cast %119 : vector<128xf32> to vector<128x1xf32>
    %cst_38 = arith.constant 1.280000e+02 : f32
    %121 = vector.broadcast %cst_38 : f32 to vector<128x1xf32>
    %122 = arith.divf %120, %121 : vector<128x1xf32>
    %123 = vector.broadcast %115 : vector<128x1xf32> to vector<128x128xf32>
    %124 = arith.subf %111, %123 : vector<128x128xf32>
    %cst_39 = arith.constant 9.99999974E-6 : f32
    %125 = vector.broadcast %cst_39 : f32 to vector<128x1xf32>
    %126 = arith.addf %122, %125 : vector<128x1xf32>
    %127 = math.rsqrt %126 : vector<128x1xf32>
    %128 = vector.broadcast %127 : vector<128x1xf32> to vector<128x128xf32>
    %129 = arith.mulf %124, %128 : vector<128x128xf32>
    %c0_40 = arith.constant 0 : index
    %c0_41 = arith.constant 0 : index
    %130 = vector.load %arg7[%c0_40, %c0_41] : memref<1x128xf32, #tpu.memory_space<vmem>>, vector<1x128xf32>
    %131 = vector.broadcast %130 : vector<1x128xf32> to vector<128x128xf32>
    %132 = arith.mulf %129, %131 : vector<128x128xf32>
    %c0_42 = arith.constant 0 : index
    %c0_43 = arith.constant 0 : index
    %133 = vector.load %arg8[%c0_42, %c0_43] : memref<1x128xf32, #tpu.memory_space<vmem>>, vector<1x128xf32>
    %134 = vector.broadcast %133 : vector<1x128xf32> to vector<128x128xf32>
    %135 = arith.addf %132, %134 : vector<128x128xf32>
    %136 = arith.truncf %135 : vector<128x128xf32> to vector<128x128xbf16>
    %c0_44 = arith.constant 0 : index
    %c0_45 = arith.constant 0 : index
    %137 = vector.load %arg9[%c0_44, %c0_45] : memref<128x256xbf16, #tpu.memory_space<vmem>>, vector<128x256xbf16>
    %cst_46 = arith.constant dense<0.000000e+00> : vector<128x256xf32>
    %138 = tpu.matmul %136, %137, %cst_46 {dimension_numbers = #tpu.dot_dimension_numbers<[1], [0], [0], [1], [0, 0, 1, 1], [], []>} : vector<128x128xbf16>, vector<128x256xbf16>, vector<128x256xf32> -> vector<128x256xf32>
    %c0_47 = arith.constant 0 : index
    %c0_48 = arith.constant 0 : index
    %139 = vector.load %arg10[%c0_47, %c0_48] : memref<1x256xf32, #tpu.memory_space<vmem>>, vector<1x256xf32>
    %140 = vector.broadcast %139 : vector<1x256xf32> to vector<128x256xf32>
    %141 = arith.addf %138, %140 : vector<128x256xf32>
    %cst_49 = arith.constant 0.000000e+00 : f32
    %142 = vector.broadcast %cst_49 : f32 to vector<128x256xf32>
    %143 = arith.maximumf %141, %142 : vector<128x256xf32>
    %144 = arith.truncf %143 : vector<128x256xf32> to vector<128x256xbf16>
    %c0_50 = arith.constant 0 : index
    %c0_51 = arith.constant 0 : index
    %145 = vector.load %arg11[%c0_50, %c0_51] : memref<256x128xbf16, #tpu.memory_space<vmem>>, vector<256x128xbf16>
    %cst_52 = arith.constant dense<0.000000e+00> : vector<128x128xf32>
    %146 = tpu.matmul %144, %145, %cst_52 {dimension_numbers = #tpu.dot_dimension_numbers<[1], [0], [0], [1], [0, 0, 1, 1], [], []>} : vector<128x256xbf16>, vector<256x128xbf16>, vector<128x128xf32> -> vector<128x128xf32>
    %c0_53 = arith.constant 0 : index
    %c0_54 = arith.constant 0 : index
    %147 = vector.load %arg12[%c0_53, %c0_54] : memref<1x128xf32, #tpu.memory_space<vmem>>, vector<1x128xf32>
    %148 = vector.broadcast %147 : vector<1x128xf32> to vector<128x128xf32>
    %149 = arith.addf %146, %148 : vector<128x128xf32>
    %150 = arith.addf %135, %149 : vector<128x128xf32>
    %cst_55 = arith.constant dense<0.000000e+00> : vector<128xf32>
    %151 = vector.multi_reduction <add>, %150, %cst_55 [1] : vector<128x128xf32> to vector<128xf32>
    %152 = vector.shape_cast %151 : vector<128xf32> to vector<128x1xf32>
    %cst_56 = arith.constant 1.280000e+02 : f32
    %153 = vector.broadcast %cst_56 : f32 to vector<128x1xf32>
    %154 = arith.divf %152, %153 : vector<128x1xf32>
    %155 = vector.broadcast %154 : vector<128x1xf32> to vector<128x128xf32>
    %156 = arith.subf %150, %155 : vector<128x128xf32>
    %157 = arith.mulf %156, %156 : vector<128x128xf32>
    %cst_57 = arith.constant dense<0.000000e+00> : vector<128xf32>
    %158 = vector.multi_reduction <add>, %157, %cst_57 [1] : vector<128x128xf32> to vector<128xf32>
    %159 = vector.shape_cast %158 : vector<128xf32> to vector<128x1xf32>
    %cst_58 = arith.constant 1.280000e+02 : f32
    %160 = vector.broadcast %cst_58 : f32 to vector<128x1xf32>
    %161 = arith.divf %159, %160 : vector<128x1xf32>
    %162 = vector.broadcast %154 : vector<128x1xf32> to vector<128x128xf32>
    %163 = arith.subf %150, %162 : vector<128x128xf32>
    %cst_59 = arith.constant 9.99999974E-6 : f32
    %164 = vector.broadcast %cst_59 : f32 to vector<128x1xf32>
    %165 = arith.addf %161, %164 : vector<128x1xf32>
    %166 = math.rsqrt %165 : vector<128x1xf32>
    %167 = vector.broadcast %166 : vector<128x1xf32> to vector<128x128xf32>
    %168 = arith.mulf %163, %167 : vector<128x128xf32>
    %c0_60 = arith.constant 0 : index
    %c0_61 = arith.constant 0 : index
    %169 = vector.load %arg13[%c0_60, %c0_61] : memref<1x128xf32, #tpu.memory_space<vmem>>, vector<1x128xf32>
    %170 = vector.broadcast %169 : vector<1x128xf32> to vector<128x128xf32>
    %171 = arith.mulf %168, %170 : vector<128x128xf32>
    %c0_62 = arith.constant 0 : index
    %c0_63 = arith.constant 0 : index
    %172 = vector.load %arg14[%c0_62, %c0_63] : memref<1x128xf32, #tpu.memory_space<vmem>>, vector<1x128xf32>
    %173 = vector.broadcast %172 : vector<1x128xf32> to vector<128x128xf32>
    %174 = arith.addf %171, %173 : vector<128x128xf32>
    %c0_64 = arith.constant 0 : index
    %c0_65 = arith.constant 0 : index
    %c0_66 = arith.constant 0 : index
    %175 = vector.load %arg15[%c0_64, %c0_65, %c0_66] : memref<1x128x128xf32, #tpu.memory_space<vmem>>, vector<1x128x128xf32>
    %176 = vector.shape_cast %175 : vector<1x128x128xf32> to vector<128x128xf32>
    %177 = vector.shape_cast %174 : vector<128x128xf32> to vector<1x128x128xf32>
    tpu.vector_store %arg15[%c0_64, %c0_65, %c0_66], %177 {strides = array<i32>} : memref<1x128x128xf32, #tpu.memory_space<vmem>>, vector<1x128x128xf32>,
    return
  }
  func.func @transform_0(%arg0: i32) -> (i32, i32, i32) {
    %c0_i32 = arith.constant 0 : i32
    %c0_i32_0 = arith.constant 0 : i32
    %c0_i32_1 = arith.constant 0 : i32
    return %arg0, %c0_i32, %c0_i32_0 : i32, i32, i32
  }
  func.func @transform_1(%arg0: i32) -> (i32, i32, i32) {
    %c0_i32 = arith.constant 0 : i32
    %c0_i32_0 = arith.constant 0 : i32
    %c0_i32_1 = arith.constant 0 : i32
    return %arg0, %c0_i32, %c0_i32_0 : i32, i32, i32
  }
  func.func @transform_2(%arg0: i32) -> (i32, i32) {
    %c0_i32 = arith.constant 0 : i32
    %c0_i32_0 = arith.constant 0 : i32
    %c0_i32_1 = arith.constant 0 : i32
    return %c0_i32, %c0_i32_0 : i32, i32
  }
  func.func @transform_3(%arg0: i32) -> (i32, i32) {
    %c0_i32 = arith.constant 0 : i32
    %c0_i32_0 = arith.constant 0 : i32
    %c0_i32_1 = arith.constant 0 : i32
    return %c0_i32, %c0_i32_0 : i32, i32
  }
  func.func @transform_4(%arg0: i32) -> (i32, i32) {
    %c0_i32 = arith.constant 0 : i32
    %c0_i32_0 = arith.constant 0 : i32
    %c0_i32_1 = arith.constant 0 : i32
    return %c0_i32, %c0_i32_0 : i32, i32
  }
  func.func @transform_5(%arg0: i32) -> (i32, i32) {
    %c0_i32 = arith.constant 0 : i32
    %c0_i32_0 = arith.constant 0 : i32
    %c0_i32_1 = arith.constant 0 : i32
    return %c0_i32, %c0_i32_0 : i32, i32
  }
  func.func @transform_6(%arg0: i32) -> (i32, i32) {
    %c0_i32 = arith.constant 0 : i32
    %c0_i32_0 = arith.constant 0 : i32
    %c0_i32_1 = arith.constant 0 : i32
    return %c0_i32, %c0_i32_0 : i32, i32
  }
  func.func @transform_7(%arg0: i32) -> (i32, i32) {
    %c0_i32 = arith.constant 0 : i32
    %c0_i32_0 = arith.constant 0 : i32
    %c0_i32_1 = arith.constant 0 : i32
    return %c0_i32, %c0_i32_0 : i32, i32
  }
  func.func @transform_8(%arg0: i32) -> (i32, i32) {
    %c0_i32 = arith.constant 0 : i32
    %c0_i32_0 = arith.constant 0 : i32
    %c0_i32_1 = arith.constant 0 : i32
    return %c0_i32, %c0_i32_0 : i32, i32
  }
  func.func @transform_9(%arg0: i32) -> (i32, i32) {
    %c0_i32 = arith.constant 0 : i32
    %c0_i32_0 = arith.constant 0 : i32
    %c0_i32_1 = arith.constant 0 : i32
    return %c0_i32, %c0_i32_0 : i32, i32
  }
  func.func @transform_10(%arg0: i32) -> (i32, i32) {
    %c0_i32 = arith.constant 0 : i32
    %c0_i32_0 = arith.constant 0 : i32
    %c0_i32_1 = arith.constant 0 : i32
    return %c0_i32, %c0_i32_0 : i32, i32
  }
  func.func @transform_11(%arg0: i32) -> (i32, i32) {
    %c0_i32 = arith.constant 0 : i32
    %c0_i32_0 = arith.constant 0 : i32
    %c0_i32_1 = arith.constant 0 : i32
    return %c0_i32, %c0_i32_0 : i32, i32
  }
  func.func @transform_12(%arg0: i32) -> (i32, i32) {
    %c0_i32 = arith.constant 0 : i32
    %c0_i32_0 = arith.constant 0 : i32
    %c0_i32_1 = arith.constant 0 : i32
    return %c0_i32, %c0_i32_0 : i32, i32
  }
  func.func @transform_13(%arg0: i32) -> (i32, i32) {
    %c0_i32 = arith.constant 0 : i32
    %c0_i32_0 = arith.constant 0 : i32
    %c0_i32_1 = arith.constant 0 : i32
    return %c0_i32, %c0_i32_0 : i32, i32
  }
  func.func @transform_14(%arg0: i32) -> (i32, i32, i32) {
    %c0_i32 = arith.constant 0 : i32
    %c0_i32_0 = arith.constant 0 : i32
    %c0_i32_1 = arith.constant 0 : i32
    return %arg0, %c0_i32, %c0_i32_0 : i32, i32, i32
  }
}

module attributes {stable_mosaic.version = 11 : i64} {
  func.func @_encoder_layer_kernel(%arg0: i32, %arg1: memref<1x128x128xf32, #tpu.memory_space<vmem>>, %arg2: memref<1x1x128xf32, #tpu.memory_space<vmem>>, %arg3: memref<128x384xbf16, #tpu.memory_space<vmem>>, %arg4: memref<1x384xf32, #tpu.memory_space<vmem>>, %arg5: memref<128x128xbf16, #tpu.memory_space<vmem>>, %arg6: memref<1x128xf32, #tpu.memory_space<vmem>>, %arg7: memref<1x128xf32, #tpu.memory_space<vmem>>, %arg8: memref<1x128xf32, #tpu.memory_space<vmem>>, %arg9: memref<128x256xbf16, #tpu.memory_space<vmem>>, %arg10: memref<1x256xf32, #tpu.memory_space<vmem>>, %arg11: memref<256x128xbf16, #tpu.memory_space<vmem>>, %arg12: memref<1x128xf32, #tpu.memory_space<vmem>>, %arg13: memref<1x128xf32, #tpu.memory_space<vmem>>, %arg14: memref<1x128xf32, #tpu.memory_space<vmem>>, %arg15: memref<1x128x128xf32, #tpu.memory_space<vmem>>) attributes {dimension_semantics = [#tpu.dimension_semantics<parallel>], iteration_bounds = array<i64: 2>, scalar_prefetch = 0 : i64, scratch_operands = 0 : i64, tpu.core_type = #tpu.core_type<tc>, window_params = [{transform_indices = @transform_0, window_bounds = array<i64: 1, 128, 128>}, {transform_indices = @transform_1, window_bounds = array<i64: 1, 1, 128>}, {pipeline_mode = #tpu.pipeline_mode<synchronous>, transform_indices = @transform_2, window_bounds = array<i64: 128, 384>}, {pipeline_mode = #tpu.pipeline_mode<synchronous>, transform_indices = @transform_3, window_bounds = array<i64: 1, 384>}, {pipeline_mode = #tpu.pipeline_mode<synchronous>, transform_indices = @transform_4, window_bounds = array<i64: 128, 128>}, {pipeline_mode = #tpu.pipeline_mode<synchronous>, transform_indices = @transform_5, window_bounds = array<i64: 1, 128>}, {pipeline_mode = #tpu.pipeline_mode<synchronous>, transform_indices = @transform_6, window_bounds = array<i64: 1, 128>}, {pipeline_mode = #tpu.pipeline_mode<synchronous>, transform_indices = @transform_7, window_bounds = array<i64: 1, 128>}, {pipeline_mode = #tpu.pipeline_mode<synchronous>, transform_indices = @transform_8, window_bounds = array<i64: 128, 256>}, {pipeline_mode = #tpu.pipeline_mode<synchronous>, transform_indices = @transform_9, window_bounds = array<i64: 1, 256>}, {pipeline_mode = #tpu.pipeline_mode<synchronous>, transform_indices = @transform_10, window_bounds = array<i64: 256, 128>}, {pipeline_mode = #tpu.pipeline_mode<synchronous>, transform_indices = @transform_11, window_bounds = array<i64: 1, 128>}, {pipeline_mode = #tpu.pipeline_mode<synchronous>, transform_indices = @transform_12, window_bounds = array<i64: 1, 128>}, {pipeline_mode = #tpu.pipeline_mode<synchronous>, transform_indices = @transform_13, window_bounds = array<i64: 1, 128>}, {transform_indices = @transform_14, window_bounds = array<i64: 1, 128, 128>}]} {
    %c0 = arith.constant 0 : index
    %c0_0 = arith.constant 0 : index
    %c0_1 = arith.constant 0 : index
    %0 = vector.load %arg1[%c0, %c0_0, %c0_1] : memref<1x128x128xf32, #tpu.memory_space<vmem>>, vector<1x128x128xf32>
    %1 = vector.shape_cast %0 : vector<1x128x128xf32> to vector<128x128xf32>
    %2 = arith.truncf %1 : vector<128x128xf32> to vector<128x128xbf16>
    %c0_2 = arith.constant 0 : index
    %c0_3 = arith.constant 0 : index
    %3 = vector.load %arg3[%c0_2, %c0_3] : memref<128x384xbf16, #tpu.memory_space<vmem>>, vector<128x384xbf16>
    %cst = arith.constant dense<0.000000e+00> : vector<128x384xf32>
    %4 = tpu.matmul %2, %3, %cst {dimension_numbers = #tpu.dot_dimension_numbers<[1], [0], [0], [1], [0, 0, 1, 1], [], []>} : vector<128x128xbf16>, vector<128x384xbf16>, vector<128x384xf32> -> vector<128x384xf32>
    %c0_4 = arith.constant 0 : index
    %c0_5 = arith.constant 0 : index
    %5 = vector.load %arg4[%c0_4, %c0_5] : memref<1x384xf32, #tpu.memory_space<vmem>>, vector<1x384xf32>
    %6 = vector.broadcast %5 : vector<1x384xf32> to vector<128x384xf32>
    %7 = arith.addf %4, %6 : vector<128x384xf32>
    %c0_6 = arith.constant 0 : index
    %c0_7 = arith.constant 0 : index
    %c0_8 = arith.constant 0 : index
    %8 = vector.load %arg2[%c0_6, %c0_7, %c0_8] : memref<1x1x128xf32, #tpu.memory_space<vmem>>, vector<1x1x128xf32>
    %9 = vector.shape_cast %8 : vector<1x1x128xf32> to vector<1x128xf32>
    %cst_9 = arith.constant 0.000000e+00 : f32
    %10 = vector.broadcast %cst_9 : f32 to vector<1x128xf32>
    %11 = arith.cmpf ogt, %9, %10 : vector<1x128xf32>
    %12 = vector.extract_strided_slice %7 {offsets = [0, 0], sizes = [128, 32], strides = [1, 1]} : vector<128x384xf32> to vector<128x32xf32>
    %13 = arith.truncf %12 : vector<128x32xf32> to vector<128x32xbf16>
    %14 = vector.extract_strided_slice %7 {offsets = [0, 128], sizes = [128, 32], strides = [1, 1]} : vector<128x384xf32> to vector<128x32xf32>
    %15 = arith.truncf %14 : vector<128x32xf32> to vector<128x32xbf16>
    %16 = vector.extract_strided_slice %7 {offsets = [0, 256], sizes = [128, 32], strides = [1, 1]} : vector<128x384xf32> to vector<128x32xf32>
    %17 = arith.truncf %16 : vector<128x32xf32> to vector<128x32xbf16>
    %cst_10 = arith.constant dense<0.000000e+00> : vector<128x128xf32>
    %18 = tpu.matmul %13, %15, %cst_10 {dimension_numbers = #tpu.dot_dimension_numbers<[1], [1], [0], [0], [0, 0, 1, 0], [], []>} : vector<128x32xbf16>, vector<128x32xbf16>, vector<128x128xf32> -> vector<128x128xf32>
    %cst_11 = arith.constant -1.000000e+09 : f32
    %19 = vector.shape_cast %11 : vector<1x128xi1> to vector<1x128xi1>
    %20 = vector.broadcast %19 : vector<1x128xi1> to vector<128x128xi1>
    %21 = vector.broadcast %cst_11 : f32 to vector<128x128xf32>
    %22 = arith.select %20, %18, %21 : vector<128x128xi1>, vector<128x128xf32>
    %cst_12 = arith.constant dense<0xFF800000> : vector<128xf32>
    %23 = vector.multi_reduction <maximumf>, %22, %cst_12 [1] : vector<128x128xf32> to vector<128xf32>
    %24 = vector.shape_cast %23 : vector<128xf32> to vector<128x1xf32>
    %25 = vector.broadcast %24 : vector<128x1xf32> to vector<128x128xf32>
    %26 = arith.subf %22, %25 : vector<128x128xf32>
    %27 = math.exp %26 : vector<128x128xf32>
    %cst_13 = arith.constant dense<0.000000e+00> : vector<128xf32>
    %28 = vector.multi_reduction <add>, %27, %cst_13 [1] : vector<128x128xf32> to vector<128xf32>
    %29 = vector.shape_cast %28 : vector<128xf32> to vector<128x1xf32>
    %30 = tpu.reciprocal %29 {approx = true} : vector<128x1xf32> -> vector<128x1xf32>
    %31 = vector.broadcast %30 : vector<128x1xf32> to vector<128x128xf32>
    %32 = arith.mulf %27, %31 : vector<128x128xf32>
    %33 = arith.truncf %32 : vector<128x128xf32> to vector<128x128xbf16>
    %cst_14 = arith.constant dense<0.000000e+00> : vector<128x32xf32>
    %34 = tpu.matmul %33, %17, %cst_14 {dimension_numbers = #tpu.dot_dimension_numbers<[1], [0], [0], [1], [0, 0, 1, 1], [], []>} : vector<128x128xbf16>, vector<128x32xbf16>, vector<128x32xf32> -> vector<128x32xf32>
    %35 = vector.extract_strided_slice %7 {offsets = [0, 32], sizes = [128, 32], strides = [1, 1]} : vector<128x384xf32> to vector<128x32xf32>
    %36 = arith.truncf %35 : vector<128x32xf32> to vector<128x32xbf16>
    %37 = vector.extract_strided_slice %7 {offsets = [0, 160], sizes = [128, 32], strides = [1, 1]} : vector<128x384xf32> to vector<128x32xf32>
    %38 = arith.truncf %37 : vector<128x32xf32> to vector<128x32xbf16>
    %39 = vector.extract_strided_slice %7 {offsets = [0, 288], sizes = [128, 32], strides = [1, 1]} : vector<128x384xf32> to vector<128x32xf32>
    %40 = arith.truncf %39 : vector<128x32xf32> to vector<128x32xbf16>
    %cst_15 = arith.constant dense<0.000000e+00> : vector<128x128xf32>
    %41 = tpu.matmul %36, %38, %cst_15 {dimension_numbers = #tpu.dot_dimension_numbers<[1], [1], [0], [0], [0, 0, 1, 0], [], []>} : vector<128x32xbf16>, vector<128x32xbf16>, vector<128x128xf32> -> vector<128x128xf32>
    %cst_16 = arith.constant -1.000000e+09 : f32
    %42 = vector.shape_cast %11 : vector<1x128xi1> to vector<1x128xi1>
    %43 = vector.broadcast %42 : vector<1x128xi1> to vector<128x128xi1>
    %44 = vector.broadcast %cst_16 : f32 to vector<128x128xf32>
    %45 = arith.select %43, %41, %44 : vector<128x128xi1>, vector<128x128xf32>
    %cst_17 = arith.constant dense<0xFF800000> : vector<128xf32>
    %46 = vector.multi_reduction <maximumf>, %45, %cst_17 [1] : vector<128x128xf32> to vector<128xf32>
    %47 = vector.shape_cast %46 : vector<128xf32> to vector<128x1xf32>
    %48 = vector.broadcast %47 : vector<128x1xf32> to vector<128x128xf32>
    %49 = arith.subf %45, %48 : vector<128x128xf32>
    %50 = math.exp %49 : vector<128x128xf32>
    %cst_18 = arith.constant dense<0.000000e+00> : vector<128xf32>
    %51 = vector.multi_reduction <add>, %50, %cst_18 [1] : vector<128x128xf32> to vector<128xf32>
    %52 = vector.shape_cast %51 : vector<128xf32> to vector<128x1xf32>
    %53 = tpu.reciprocal %52 {approx = true} : vector<128x1xf32> -> vector<128x1xf32>
    %54 = vector.broadcast %53 : vector<128x1xf32> to vector<128x128xf32>
    %55 = arith.mulf %50, %54 : vector<128x128xf32>
    %56 = arith.truncf %55 : vector<128x128xf32> to vector<128x128xbf16>
    %cst_19 = arith.constant dense<0.000000e+00> : vector<128x32xf32>
    %57 = tpu.matmul %56, %40, %cst_19 {dimension_numbers = #tpu.dot_dimension_numbers<[1], [0], [0], [1], [0, 0, 1, 1], [], []>} : vector<128x128xbf16>, vector<128x32xbf16>, vector<128x32xf32> -> vector<128x32xf32>
    %58 = vector.extract_strided_slice %7 {offsets = [0, 64], sizes = [128, 32], strides = [1, 1]} : vector<128x384xf32> to vector<128x32xf32>
    %59 = arith.truncf %58 : vector<128x32xf32> to vector<128x32xbf16>
    %60 = vector.extract_strided_slice %7 {offsets = [0, 192], sizes = [128, 32], strides = [1, 1]} : vector<128x384xf32> to vector<128x32xf32>
    %61 = arith.truncf %60 : vector<128x32xf32> to vector<128x32xbf16>
    %62 = vector.extract_strided_slice %7 {offsets = [0, 320], sizes = [128, 32], strides = [1, 1]} : vector<128x384xf32> to vector<128x32xf32>
    %63 = arith.truncf %62 : vector<128x32xf32> to vector<128x32xbf16>
    %cst_20 = arith.constant dense<0.000000e+00> : vector<128x128xf32>
    %64 = tpu.matmul %59, %61, %cst_20 {dimension_numbers = #tpu.dot_dimension_numbers<[1], [1], [0], [0], [0, 0, 1, 0], [], []>} : vector<128x32xbf16>, vector<128x32xbf16>, vector<128x128xf32> -> vector<128x128xf32>
    %cst_21 = arith.constant -1.000000e+09 : f32
    %65 = vector.shape_cast %11 : vector<1x128xi1> to vector<1x128xi1>
    %66 = vector.broadcast %65 : vector<1x128xi1> to vector<128x128xi1>
    %67 = vector.broadcast %cst_21 : f32 to vector<128x128xf32>
    %68 = arith.select %66, %64, %67 : vector<128x128xi1>, vector<128x128xf32>
    %cst_22 = arith.constant dense<0xFF800000> : vector<128xf32>
    %69 = vector.multi_reduction <maximumf>, %68, %cst_22 [1] : vector<128x128xf32> to vector<128xf32>
    %70 = vector.shape_cast %69 : vector<128xf32> to vector<128x1xf32>
    %71 = vector.broadcast %70 : vector<128x1xf32> to vector<128x128xf32>
    %72 = arith.subf %68, %71 : vector<128x128xf32>
    %73 = math.exp %72 : vector<128x128xf32>
    %cst_23 = arith.constant dense<0.000000e+00> : vector<128xf32>
    %74 = vector.multi_reduction <add>, %73, %cst_23 [1] : vector<128x128xf32> to vector<128xf32>
    %75 = vector.shape_cast %74 : vector<128xf32> to vector<128x1xf32>
    %76 = tpu.reciprocal %75 {approx = true} : vector<128x1xf32> -> vector<128x1xf32>
    %77 = vector.broadcast %76 : vector<128x1xf32> to vector<128x128xf32>
    %78 = arith.mulf %73, %77 : vector<128x128xf32>
    %79 = arith.truncf %78 : vector<128x128xf32> to vector<128x128xbf16>
    %cst_24 = arith.constant dense<0.000000e+00> : vector<128x32xf32>
    %80 = tpu.matmul %79, %63, %cst_24 {dimension_numbers = #tpu.dot_dimension_numbers<[1], [0], [0], [1], [0, 0, 1, 1], [], []>} : vector<128x128xbf16>, vector<128x32xbf16>, vector<128x32xf32> -> vector<128x32xf32>
    %81 = vector.extract_strided_slice %7 {offsets = [0, 96], sizes = [128, 32], strides = [1, 1]} : vector<128x384xf32> to vector<128x32xf32>
    %82 = arith.truncf %81 : vector<128x32xf32> to vector<128x32xbf16>
    %83 = vector.extract_strided_slice %7 {offsets = [0, 224], sizes = [128, 32], strides = [1, 1]} : vector<128x384xf32> to vector<128x32xf32>
    %84 = arith.truncf %83 : vector<128x32xf32> to vector<128x32xbf16>
    %85 = vector.extract_strided_slice %7 {offsets = [0, 352], sizes = [128, 32], strides = [1, 1]} : vector<128x384xf32> to vector<128x32xf32>
    %86 = arith.truncf %85 : vector<128x32xf32> to vector<128x32xbf16>
    %cst_25 = arith.constant dense<0.000000e+00> : vector<128x128xf32>
    %87 = tpu.matmul %82, %84, %cst_25 {dimension_numbers = #tpu.dot_dimension_numbers<[1], [1], [0], [0], [0, 0, 1, 0], [], []>} : vector<128x32xbf16>, vector<128x32xbf16>, vector<128x128xf32> -> vector<128x128xf32>
    %cst_26 = arith.constant -1.000000e+09 : f32
    %88 = vector.shape_cast %11 : vector<1x128xi1> to vector<1x128xi1>
    %89 = vector.broadcast %88 : vector<1x128xi1> to vector<128x128xi1>
    %90 = vector.broadcast %cst_26 : f32 to vector<128x128xf32>
    %91 = arith.select %89, %87, %90 : vector<128x128xi1>, vector<128x128xf32>
    %cst_27 = arith.constant dense<0xFF800000> : vector<128xf32>
    %92 = vector.multi_reduction <maximumf>, %91, %cst_27 [1] : vector<128x128xf32> to vector<128xf32>
    %93 = vector.shape_cast %92 : vector<128xf32> to vector<128x1xf32>
    %94 = vector.broadcast %93 : vector<128x1xf32> to vector<128x128xf32>
    %95 = arith.subf %91, %94 : vector<128x128xf32>
    %96 = math.exp %95 : vector<128x128xf32>
    %cst_28 = arith.constant dense<0.000000e+00> : vector<128xf32>
    %97 = vector.multi_reduction <add>, %96, %cst_28 [1] : vector<128x128xf32> to vector<128xf32>
    %98 = vector.shape_cast %97 : vector<128xf32> to vector<128x1xf32>
    %99 = tpu.reciprocal %98 {approx = true} : vector<128x1xf32> -> vector<128x1xf32>
    %100 = vector.broadcast %99 : vector<128x1xf32> to vector<128x128xf32>
    %101 = arith.mulf %96, %100 : vector<128x128xf32>
    %102 = arith.truncf %101 : vector<128x128xf32> to vector<128x128xbf16>
    %cst_29 = arith.constant dense<0.000000e+00> : vector<128x32xf32>
    %103 = tpu.matmul %102, %86, %cst_29 {dimension_numbers = #tpu.dot_dimension_numbers<[1], [0], [0], [1], [0, 0, 1, 1], [], []>} : vector<128x128xbf16>, vector<128x32xbf16>, vector<128x32xf32> -> vector<128x32xf32>
    %104 = tpu.concatenate %34, %57, %80, %103 in 1 : vector<128x32xf32>, vector<128x32xf32>, vector<128x32xf32>, vector<128x32xf32> -> vector<128x128xf32>
    %105 = arith.truncf %104 : vector<128x128xf32> to vector<128x128xbf16>
    %c0_30 = arith.constant 0 : index
    %c0_31 = arith.constant 0 : index
    %106 = vector.load %arg5[%c0_30, %c0_31] : memref<128x128xbf16, #tpu.memory_space<vmem>>, vector<128x128xbf16>
    %cst_32 = arith.constant dense<0.000000e+00> : vector<128x128xf32>
    %107 = tpu.matmul %105, %106, %cst_32 {dimension_numbers = #tpu.dot_dimension_numbers<[1], [0], [0], [1], [0, 0, 1, 1], [], []>} : vector<128x128xbf16>, vector<128x128xbf16>, vector<128x128xf32> -> vector<128x128xf32>
    %c0_33 = arith.constant 0 : index
    %c0_34 = arith.constant 0 : index
    %108 = vector.load %arg6[%c0_33, %c0_34] : memref<1x128xf32, #tpu.memory_space<vmem>>, vector<1x128xf32>
    %109 = vector.broadcast %108 : vector<1x128xf32> to vector<128x128xf32>
    %110 = arith.addf %107, %109 : vector<128x128xf32>
    %111 = arith.addf %1, %110 : vector<128x128xf32>
    %cst_35 = arith.constant dense<0.000000e+00> : vector<128xf32>
    %112 = vector.multi_reduction <add>, %111, %cst_35 [1] : vector<128x128xf32> to vector<128xf32>
    %113 = vector.shape_cast %112 : vector<128xf32> to vector<128x1xf32>
    %cst_36 = arith.constant 1.280000e+02 : f32
    %114 = vector.broadcast %cst_36 : f32 to vector<128x1xf32>
    %115 = arith.divf %113, %114 : vector<128x1xf32>
    %116 = vector.broadcast %115 : vector<128x1xf32> to vector<128x128xf32>
    %117 = arith.subf %111, %116 : vector<128x128xf32>
    %118 = arith.mulf %117, %117 : vector<128x128xf32>
    %cst_37 = arith.constant dense<0.000000e+00> : vector<128xf32>
    %119 = vector.multi_reduction <add>, %118, %cst_37 [1] : vector<128x128xf32> to vector<128xf32>
    %120 = vector.shape_cast %119 : vector<128xf32> to vector<128x1xf32>
    %cst_38 = arith.constant 1.280000e+02 : f32
    %121 = vector.broadcast %cst_38 : f32 to vector<128x1xf32>
    %122 = arith.divf %120, %121 : vector<128x1xf32>
    %123 = vector.broadcast %115 : vector<128x1xf32> to vector<128x128xf32>
    %124 = arith.subf %111, %123 : vector<128x128xf32>
    %cst_39 = arith.constant 9.99999974E-6 : f32
    %125 = vector.broadcast %cst_39 : f32 to vector<128x1xf32>
    %126 = arith.addf %122, %125 : vector<128x1xf32>
    %127 = math.rsqrt %126 : vector<128x1xf32>
    %128 = vector.broadcast %127 : vector<128x1xf32> to vector<128x128xf32>
    %129 = arith.mulf %124, %128 : vector<128x128xf32>
    %c0_40 = arith.constant 0 : index
    %c0_41 = arith.constant 0 : index
    %130 = vector.load %arg7[%c0_40, %c0_41] : memref<1x128xf32, #tpu.memory_space<vmem>>, vector<1x128xf32>
    %131 = vector.broadcast %130 : vector<1x128xf32> to vector<128x128xf32>
    %132 = arith.mulf %129, %131 : vector<128x128xf32>
    %c0_42 = arith.constant 0 : index
    %c0_43 = arith.constant 0 : index
    %133 = vector.load %arg8[%c0_42, %c0_43] : memref<1x128xf32, #tpu.memory_space<vmem>>, vector<1x128xf32>
    %134 = vector.broadcast %133 : vector<1x128xf32> to vector<128x128xf32>
    %135 = arith.addf %132, %134 : vector<128x128xf32>
    %136 = arith.truncf %135 : vector<128x128xf32> to vector<128x128xbf16>
    %c0_44 = arith.constant 0 : index
    %c0_45 = arith.constant 0 : index
    %137 = vector.load %arg9[%c0_44, %c0_45] : memref<128x256xbf16, #tpu.memory_space<vmem>>, vector<128x256xbf16>
    %cst_46 = arith.constant dense<0.000000e+00> : vector<128x256xf32>
    %138 = tpu.matmul %136, %137, %cst_46 {dimension_numbers = #tpu.dot_dimension_numbers<[1], [0], [0], [1], [0, 0, 1, 1], [], []>} : vector<128x128xbf16>, vector<128x256xbf16>, vector<128x256xf32> -> vector<128x256xf32>
    %c0_47 = arith.constant 0 : index
    %c0_48 = arith.constant 0 : index
    %139 = vector.load %arg10[%c0_47, %c0_48] : memref<1x256xf32, #tpu.memory_space<vmem>>, vector<1x256xf32>
    %140 = vector.broadcast %139 : vector<1x256xf32> to vector<128x256xf32>
    %141 = arith.addf %138, %140 : vector<128x256xf32>
    %cst_49 = arith.constant 0.000000e+00 : f32
    %142 = vector.broadcast %cst_49 : f32 to vector<128x256xf32>
    %143 = arith.maximumf %141, %142 : vector<128x256xf32>
    %144 = arith.truncf %143 : vector<128x256xf32> to vector<128x256xbf16>
    %c0_50 = arith.constant 0 : index
    %c0_51 = arith.constant 0 : index
    %145 = vector.load %arg11[%c0_50, %c0_51] : memref<256x128xbf16, #tpu.memory_space<vmem>>, vector<256x128xbf16>
    %cst_52 = arith.constant dense<0.000000e+00> : vector<128x128xf32>
    %146 = tpu.matmul %144, %145, %cst_52 {dimension_numbers = #tpu.dot_dimension_numbers<[1], [0], [0], [1], [0, 0, 1, 1], [], []>} : vector<128x256xbf16>, vector<256x128xbf16>, vector<128x128xf32> -> vector<128x128xf32>
    %c0_53 = arith.constant 0 : index
    %c0_54 = arith.constant 0 : index
    %147 = vector.load %arg12[%c0_53, %c0_54] : memref<1x128xf32, #tpu.memory_space<vmem>>, vector<1x128xf32>
    %148 = vector.broadcast %147 : vector<1x128xf32> to vector<128x128xf32>
    %149 = arith.addf %146, %148 : vector<128x128xf32>
    %150 = arith.addf %135, %149 : vector<128x128xf32>
    %cst_55 = arith.constant dense<0.000000e+00> : vector<128xf32>
    %151 = vector.multi_reduction <add>, %150, %cst_55 [1] : vector<128x128xf32> to vector<128xf32>
    %152 = vector.shape_cast %151 : vector<128xf32> to vector<128x1xf32>
    %cst_56 = arith.constant 1.280000e+02 : f32
    %153 = vector.broadcast %cst_56 : f32 to vector<128x1xf32>
    %154 = arith.divf %152, %153 : vector<128x1xf32>
    %155 = vector.broadcast %154 : vector<128x1xf32> to vector<128x128xf32>
    %156 = arith.subf %150, %155 : vector<128x128xf32>
    %157 = arith.mulf %156, %156 : vector<128x128xf32>
    %cst_57 = arith.constant dense<0.000000e+00> : vector<128xf32>
    %158 = vector.multi_reduction <add>, %157, %cst_57 [1] : vector<128x128xf32> to vector<128xf32>
    %159 = vector.shape_cast %158 : vector<128xf32> to vector<128x1xf32>
    %cst_58 = arith.constant 1.280000e+02 : f32
    %160 = vector.broadcast %cst_58 : f32 to vector<128x1xf32>
    %161 = arith.divf %159, %160 : vector<128x1xf32>
    %162 = vector.broadcast %154 : vector<128x1xf32> to vector<128x128xf32>
    %163 = arith.subf %150, %162 : vector<128x128xf32>
    %cst_59 = arith.constant 9.99999974E-6 : f32
    %164 = vector.broadcast %cst_59 : f32 to vector<128x1xf32>
    %165 = arith.addf %161, %164 : vector<128x1xf32>
    %166 = math.rsqrt %165 : vector<128x1xf32>
    %167 = vector.broadcast %166 : vector<128x1xf32> to vector<128x128xf32>
    %168 = arith.mulf %163, %167 : vector<128x128xf32>
    %c0_60 = arith.constant 0 : index
    %c0_61 = arith.constant 0 : index
    %169 = vector.load %arg13[%c0_60, %c0_61] : memref<1x128xf32, #tpu.memory_space<vmem>>, vector<1x128xf32>
    %170 = vector.broadcast %169 : vector<1x128xf32> to vector<128x128xf32>
    %171 = arith.mulf %168, %170 : vector<128x128xf32>
    %c0_62 = arith.constant 0 : index
    %c0_63 = arith.constant 0 : index
    %172 = vector.load %arg14[%c0_62, %c0_63] : memref<1x128xf32, #tpu.memory_space<vmem>>, vector<1x128xf32>
    %173 = vector.broadcast %172 : vector<1x128xf32> to vector<128x128xf32>
    %174 = arith.addf %171, %173 : vector<128x128xf32>
    %c0_64 = arith.constant 0 : index
    %c0_65 = arith.constant 0 : index
    %c0_66 = arith.constant 0 : index
    %175 = vector.load %arg15[%c0_64, %c0_65, %c0_66] : memref<1x128x128xf32, #tpu.memory_space<vmem>>, vector<1x128x128xf32>
    %176 = vector.shape_cast %175 : vector<1x128x128xf32> to vector<128x128xf32>
    %177 = vector.shape_cast %174 : vector<128x128xf32> to vector<1x128x128xf32>
    tpu.vector_store %arg15[%c0_64, %c0_65, %c0_66], %177 {strides = array<i32>} : memref<1x128x128xf32, #tpu.memory_space<vmem>>, vector<1x128x128xf32>,
    return
  }
  func.func @transform_0(%arg0: i32) -> (i32, i32, i32) {
    %c0_i32 = arith.constant 0 : i32
    %c0_i32_0 = arith.constant 0 : i32
    %c0_i32_1 = arith.constant 0 : i32
    return %arg0, %c0_i32, %c0_i32_0 : i32, i32, i32
  }
  func.func @transform_1(%arg0: i32) -> (i32, i32, i32) {
    %c0_i32 = arith.constant 0 : i32
    %c0_i32_0 = arith.constant 0 : i32
    %c0_i32_1 = arith.constant 0 : i32
    return %arg0, %c0_i32, %c0_i32_0 : i32, i32, i32
  }
  func.func @transform_2(%arg0: i32) -> (i32, i32) {
    %c0_i32 = arith.constant 0 : i32
    %c0_i32_0 = arith.constant 0 : i32
    %c0_i32_1 = arith.constant 0 : i32
    return %c0_i32, %c0_i32_0 : i32, i32
  }
  func.func @transform_3(%arg0: i32) -> (i32, i32) {
    %c0_i32 = arith.constant 0 : i32
    %c0_i32_0 = arith.constant 0 : i32
    %c0_i32_1 = arith.constant 0 : i32
    return %c0_i32, %c0_i32_0 : i32, i32
  }
  func.func @transform_4(%arg0: i32) -> (i32, i32) {
    %c0_i32 = arith.constant 0 : i32
    %c0_i32_0 = arith.constant 0 : i32
    %c0_i32_1 = arith.constant 0 : i32
    return %c0_i32, %c0_i32_0 : i32, i32
  }
  func.func @transform_5(%arg0: i32) -> (i32, i32) {
    %c0_i32 = arith.constant 0 : i32
    %c0_i32_0 = arith.constant 0 : i32
    %c0_i32_1 = arith.constant 0 : i32
    return %c0_i32, %c0_i32_0 : i32, i32
  }
  func.func @transform_6(%arg0: i32) -> (i32, i32) {
    %c0_i32 = arith.constant 0 : i32
    %c0_i32_0 = arith.constant 0 : i32
    %c0_i32_1 = arith.constant 0 : i32
    return %c0_i32, %c0_i32_0 : i32, i32
  }
  func.func @transform_7(%arg0: i32) -> (i32, i32) {
    %c0_i32 = arith.constant 0 : i32
    %c0_i32_0 = arith.constant 0 : i32
    %c0_i32_1 = arith.constant 0 : i32
    return %c0_i32, %c0_i32_0 : i32, i32
  }
  func.func @transform_8(%arg0: i32) -> (i32, i32) {
    %c0_i32 = arith.constant 0 : i32
    %c0_i32_0 = arith.constant 0 : i32
    %c0_i32_1 = arith.constant 0 : i32
    return %c0_i32, %c0_i32_0 : i32, i32
  }
  func.func @transform_9(%arg0: i32) -> (i32, i32) {
    %c0_i32 = arith.constant 0 : i32
    %c0_i32_0 = arith.constant 0 : i32
    %c0_i32_1 = arith.constant 0 : i32
    return %c0_i32, %c0_i32_0 : i32, i32
  }
  func.func @transform_10(%arg0: i32) -> (i32, i32) {
    %c0_i32 = arith.constant 0 : i32
    %c0_i32_0 = arith.constant 0 : i32
    %c0_i32_1 = arith.constant 0 : i32
    return %c0_i32, %c0_i32_0 : i32, i32
  }
  func.func @transform_11(%arg0: i32) -> (i32, i32) {
    %c0_i32 = arith.constant 0 : i32
    %c0_i32_0 = arith.constant 0 : i32
    %c0_i32_1 = arith.constant 0 : i32
    return %c0_i32, %c0_i32_0 : i32, i32
  }
  func.func @transform_12(%arg0: i32) -> (i32, i32) {
    %c0_i32 = arith.constant 0 : i32
    %c0_i32_0 = arith.constant 0 : i32
    %c0_i32_1 = arith.constant 0 : i32
    return %c0_i32, %c0_i32_0 : i32, i32
  }
  func.func @transform_13(%arg0: i32) -> (i32, i32) {
    %c0_i32 = arith.constant 0 : i32
    %c0_i32_0 = arith.constant 0 : i32
    %c0_i32_1 = arith.constant 0 : i32
    return %c0_i32, %c0_i32_0 : i32, i32
  }
  func.func @transform_14(%arg0: i32) -> (i32, i32, i32) {
    %c0_i32 = arith.constant 0 : i32
    %c0_i32_0 = arith.constant 0 : i32
    %c0_i32_1 = arith.constant 0 : i32
    return %arg0, %c0_i32, %c0_i32_0 : i32, i32, i32
  }
}

</mosaic_0001>

<bundles_post_ra>
// kernel: tpu_custom_call.1
= control target key start
LH: loop header
LB: loop body
LE: loop exit
PB: predicated region body
PF: predicated region fallthrough
CT: control target
= control target key end

     0   :  { %s8232_s0 = inlined_call_operand.hbm [shape: f32[2,128,128], index: 0, kind: input, shape index: {}]   ;;  %s8233_s1 = inlined_call_operand.vmem [shape: f32[2,1,128], index: 1, kind: input, shape index: {}]   ;;  %s8234_s2 = inlined_call_operand.hbm [shape: bf16[128,384], index: 2, kind: input, shape index: {}]   ;;  %s8235_s3 = inlined_call_operand.vmem [shape: f32[1,384], index: 3, kind: input, shape index: {}]   ;;  %s8236_s4 = inlined_call_operand.hbm [shape: bf16[128,128], index: 4, kind: input, shape index: {}]   ;;  %s8237_s5 = inlined_call_operand.vmem [shape: f32[1,128], index: 5, kind: input, shape index: {}]   ;;  %s8238_s6 = inlined_call_operand.vmem [shape: f32[1,128], index: 6, kind: input, shape index: {}]   ;;  %s8239_s7 = inlined_call_operand.vmem [shape: f32[1,128], index: 7, kind: input, shape index: {}]   ;;  %s8240_s8 = inlined_call_operand.hbm [shape: bf16[128,256], index: 8, kind: input, shape index: {}]   ;;  %s8241_s9 = inlined_call_operand.vmem [shape: f32[1,256], index: 9, kind: input, shape index: {}]   ;;  %s8242_s10 = inlined_call_operand.hbm [shape: bf16[256,128], index: 10, kind: input, shape index: {}]   ;;  %s8243_s11 = inlined_call_operand.vmem [shape: f32[1,128], index: 11, kind: input, shape index: {}]   ;;  %s8244_s12 = inlined_call_operand.vmem [shape: f32[1,128], index: 12, kind: input, shape index: {}]   ;;  %s8245_s13 = inlined_call_operand.vmem [shape: f32[1,128], index: 13, kind: input, shape index: {}]   ;;  %s8246_s14 = inlined_call_operand.hbm [shape: f32[2,128,128], index: 14, kind: output, shape index: {}]  }
   0x1   :  { %8267 = sst [smem:[#allocation43_spill]] %s8234_s2 }
   0x2   :  { %8268 = sst [smem:[#allocation44_spill]] %s8241_s9 }
   0x3   :  { %8269 = sst [smem:[#allocation45_spill]] %s8243_s11 }
   0x4   :  { %8270 = sst [smem:[#allocation46_spill]] %s8244_s12 }
   0x5   :  { %8271 = sst [smem:[#allocation47_spill]] %s8245_s13 }
   0x6   :  { %8272 = sst [smem:[#allocation48_spill]] %s8246_s14 }
   0x7   :  { %19 = vsyncpa [#allocation3], 0 }
   0x8   :  { %21 = vsyncpa [#allocation3 + $0x1], 0 }
   0x9   :  { %22 = vsyncpa [#allocation6], 0 }
   0xa   :  { %23 = vsyncpa [#allocation9], 0 }
   0xb   :  { %24 = vsyncpa [#allocation4], 0 }
   0xc   :  { %26 = vsyncpa [#allocation4 + $0x1], 0  ;;  %s6053_s29 = smov 0   ;;  %s6055_s30 = smov 0  }
   0xd   :  { %s6057_s15 = smov 0   ;;  %s6059_s16 = smov 0  }
   0xe LB: > { %8273 = sst [smem:[#allocation16_spill]] %s5946_s29  ;;  %s6074_s17 = sadd.s32 4294967295, %s5958_s16   ;;  %s5958_s16 = sphi %s6059_s16, %s8373_s16   ;;  %s5954_s15 = sphi %s6057_s15, %s8372_s15   ;;  %s5950_s30 = sphi %s6055_s30, %s8371_s30   ;;  %s5946_s29 = sphi %s6053_s29, %s8370_s29  }
   0xf   : > { %s4389_s18 = sadd.s32 4294967294, %s5958_s16   ;;  %p52_p0 = scmp.ne.s32.totalorder %s5950_s30, %s5946_s29 }
  0x10   : > { %p8250_p1 = scmp.eq.s32.totalorder %s6074_s17, 0  ;;  %p360_p3 = scmp.eq.s32.totalorder %s4389_s18, 1 }
  0x11   : > { %p4390_p5 = scmp.ge.s32.totalorder %s5958_s16, 1  ;;  %p367_p7 = scmp.lt.s32.totalorder %s5958_s16, 3 }
  0x12   : > { %p6083_p4 = por %p8250_p1, %p52_p0  ;;  %p6088_p6 = por %p360_p3, %p52_p0 }
  0x13   : > { %p6093_p8 = pnand %p4390_p5, %p367_p7  ;;  %s5960_s22 = smov [#allocation5]  }
  0x14   : > { %s8274_s19 = scalar_select %p6083_p4, 1, 0 }
  0x15   : > { %s8275_s20 = scalar_select %p6088_p6, 1, 0 }
  0x16   : > { %s8277_s21 = scalar_select %p6093_p8, 1, 0 }
  0x17   : > { %8276 = sst [smem:[#allocation17_spill]] %s8275_s20  ;;  %s379_s23 = sshll.u32 %s5960_s22, 4  ;;  %s6097_s23 = int_to_ptr.vmem [resolvable:$true] %s379_s23 }
  0x18   : > { %p5127_p9 = pneg %p6093_p8  ;;  %s5961_s25 = smov [#allocation8]  }
  0x19   : > { %s417_s26 = sshll.u32 %s5961_s25, 4  ;;  %s8279_s2 = sld [smem:[#allocation43_spill]]  ;;  %s6108_s26 = int_to_ptr.vmem [resolvable:$true] %s417_s26 }
  0x1a   : > { %p6104_p11 = pnand %p5127_p9, %p8250_p1 }
  0x1c   : > { %p6118_p13 = pneg %p6104_p11 }
  0x1f   : > { %s5742_s18 = scalar_lea.hbm %s8279_s2, 3072 }
  0x20   : > { %p5743_p12 = scmp.ne.s32.totalorder %s8279_s2, %s5742_s18  ;;  %p5749_p5 = scmp.lt.u32.totalorder %s5742_s18, %s8279_s2 }
  0x22   : > { %p5745_p0 = pnand %p6118_p13, %p5743_p12 }
  0x24   : > { %p5746_p3 = pneg %p5745_p0 }
  0x26   : > { %p5751_p7 = pnand %p5749_p5, %p5746_p3 }
  0x28   : > { %5754 = shalt.err (!%p5751_p7)
}
  0x29   : > { %s5755_s20 = scalar_lea.vmem %s6097_s23, 3072  ;;  %p5763_p2 = scmp.lt.s32.totalorder %s6097_s23, %s6097_s23 }
  0x2a   : > { %p5756_p9 = scmp.ne.s32.totalorder %s6097_s23, %s5755_s20  ;;  %p5764_p6 = scmp.lt.s32.totalorder %s5755_s20, %s5755_s20 }
  0x2c   : > { %p5758_p10 = pnand %p5756_p9, %p6118_p13  ;;  %p5765_p12 = por %p5764_p6, %p5763_p2 }
  0x2e   : > { %p5759_p1 = pneg %p5758_p10 }
  0x30   : > { %p5766_p0 = pnand %p5765_p12, %p5759_p1 }
  0x32   : > { %5769 = shalt.err (!%p5766_p0)
}
  0x33   : > { %s5962_s27 = smov 192   ;;  %s5963_s14 = smov 12  }
  0x34   : > { %5130 = dma.hbm_to_vmem [thread:$0]  (!%p6104_p11), %s8279_s2, 3072, %s6097_s23, [#allocation6], %s5962_s27, %s5962_s27, %s5963_s14  }
  0x35   : > { %s5770_s13 = scalar_lea.hbm %s8240_s8, 2048 }
  0x36   : > { %p5771_p2 = scmp.ne.s32.totalorder %s8240_s8, %s5770_s13  ;;  %p5777_p10 = scmp.lt.u32.totalorder %s5770_s13, %s8240_s8 }
  0x38   : > { %p5773_p1 = pnand %p5771_p2, %p6118_p13 }
  0x3a   : > { %p5774_p6 = pneg %p5773_p1 }
  0x3c   : > { %p5779_p3 = pnand %p5777_p10, %p5774_p6 }
  0x3e   : > { %5782 = shalt.err (!%p5779_p3)
}
  0x3f   : > { %s5783_s23 = scalar_lea.vmem %s6108_s26, 2048  ;;  %p5791_p12 = scmp.lt.s32.totalorder %s6108_s26, %s6108_s26 }
  0x40   : > { %p5784_p5 = scmp.ne.s32.totalorder %s6108_s26, %s5783_s23  ;;  %p5792_p0 = scmp.lt.s32.totalorder %s5783_s23, %s5783_s23 }
  0x42   : > { %p5786_p7 = pnand %p5784_p5, %p6118_p13  ;;  %p5793_p2 = por %p5792_p0, %p5791_p12 }
  0x44   : > { %p5787_p9 = pneg %p5786_p7 }
  0x46   : > { %p5794_p1 = pnand %p5793_p2, %p5787_p9 }
  0x48   : > { %5797 = shalt.err (!%p5794_p1)
}
  0x49   : > { %s8253_s11 = smov 128   ;;  %s8254_s9 = smov 8  }
  0x4a   : > { %5136 = dma.hbm_to_vmem [thread:$0]  (!%p6104_p11), %s8240_s8, 2048, %s6108_s26, [#allocation9], %s8253_s11, %s8253_s11, %s8254_s9  }
  0x4b   : > { %s5966_s27 = smov [#allocation7]   ;;  %s5798_s22 = scalar_lea.hbm %s8236_s4, 1024 }
  0x4c   : > { %s395_s14 = sshll.u32 %s5966_s27, 4  ;;  %p5799_p6 = scmp.ne.s32.totalorder %s8236_s4, %s5798_s22  ;;  %s396_s14 = int_to_ptr.vmem [resolvable:$true] %s395_s14 }
  0x4d   : > { %p5805_p5 = scmp.lt.u32.totalorder %s5798_s22, %s8236_s4 }
  0x4e   : > { %p5801_p10 = pnand %p5799_p6, %p6118_p13 }
  0x50   : > { %p5802_p3 = pneg %p5801_p10 }
  0x52   : > { %p5807_p7 = pnand %p5805_p5, %p5802_p3 }
  0x54   : > { %5810 = shalt.err (!%p5807_p7)
}
  0x55   : > { %s5811_s26 = scalar_lea.vmem %s396_s14, 1024  ;;  %p5819_p2 = scmp.lt.s32.totalorder %s396_s14, %s396_s14 }
  0x56   : > { %p5812_p9 = scmp.ne.s32.totalorder %s396_s14, %s5811_s26  ;;  %p5820_p1 = scmp.lt.s32.totalorder %s5811_s26, %s5811_s26 }
  0x58   : > { %p5814_p12 = pnand %p5812_p9, %p6118_p13  ;;  %p5821_p4 = por %p5820_p1, %p5819_p2 }
  0x5a   : > { %p5815_p0 = pneg %p5814_p12 }
  0x5c   : > { %p5822_p8 = pnand %p5821_p4, %p5815_p0 }
  0x5e   : > { %5825 = shalt.err (!%p5822_p8)
}
  0x5f   : > { %s5967_s12 = smov 64   ;;  %s5968_s13 = smov 4  }
  0x60   : > { %5133 = dma.hbm_to_vmem [thread:$0]  (!%p6104_p11), %s8236_s4, 1024, %s396_s14, [#allocation6], %s5967_s12, %s5967_s12, %s5968_s13  }
  0x61   : > { %s5969_s28 = smov [#allocation10]   ;;  %s5826_s20 = scalar_lea.hbm %s8242_s10, 2048 }
  0x62   : > { %s433_s18 = sshll.u32 %s5969_s28, 4  ;;  %p5827_p4 = scmp.ne.s32.totalorder %s8242_s10, %s5826_s20  ;;  %s434_s18 = int_to_ptr.vmem [resolvable:$true] %s433_s18 }
  0x63   : > { %p5833_p10 = scmp.lt.u32.totalorder %s5826_s20, %s8242_s10 }
  0x64   : > { %p5829_p8 = pnand %p5827_p4, %p6118_p13 }
  0x66   : > { %p5830_p6 = pneg %p5829_p8 }
  0x68   : > { %p5835_p3 = pnand %p5833_p10, %p5830_p6 }
  0x6a   : > { %5838 = shalt.err (!%p5835_p3)
}
  0x6b   : > { %s5839_s14 = scalar_lea.vmem %s434_s18, 2048  ;;  %p5847_p12 = scmp.lt.s32.totalorder %s434_s18, %s434_s18 }
  0x6c   : > { %p5840_p5 = scmp.ne.s32.totalorder %s434_s18, %s5839_s14  ;;  %p5848_p0 = scmp.lt.s32.totalorder %s5839_s14, %s5839_s14 }
  0x6e   : > { %p5842_p7 = pnand %p5840_p5, %p6118_p13  ;;  %p5849_p2 = por %p5848_p0, %p5847_p12 }
  0x70   : > { %p5843_p9 = pneg %p5842_p7 }
  0x72   : > { %p5850_p1 = pnand %p5849_p2, %p5843_p9 }
  0x74   : > { %5853 = shalt.err (!%p5850_p1)
}
  0x75   : > { %5139 = dma.hbm_to_vmem [thread:$0]  (!%p6104_p11), %s8242_s10, 2048, %s434_s18, [#allocation9], %s5967_s12, %s5967_s12, %s5968_s13  }
  0x76   : > { %s6202_s29 = sadd.s32 1, %s5958_s16   ;;  %s39_s11 = sadd.s32 1, %s5954_s15 }
  0x77   : > { %s36_s24 = ssub.s32 %s5958_s16, %s6202_s29  ;;  %p46_p13 = scmp.ne.s32.totalorder %s5954_s15, %s5950_s30 }
  0x78   : > { %p37_p4 = scmp.eq.s32.totalorder %s36_s24, 0  ;;  %p47_p8 = scmp.eq.s32.totalorder %s5958_s16, 0 }
  0x79   : > { %p8281_p6 = scmp.eq.s32.totalorder %s6074_s17, 1  ;;  %p5152_p3 = scmp.lt.s32.totalorder %s5958_s16, 2 }
  0x7a   : > { %s6218_s28 = scalar_select %p37_p4, %s5954_s15, %s39_s11  }
  0x7b   : > { %p6212_p10 = por %p8281_p6, %p46_p13  ;;  %p48_p5 = por %p47_p8, %p46_p13 }
  0x7c   : > { %s456_s22 = sand.u32 1, %s5954_s15   ;;  %s4513_s12 = sshll.u32 %s5958_s16, 11 }
  0x7d   : > { %s4396_s25 = sshll.u32 %s456_s22, 7  ;;  %s6225_s20 = scalar_lea.hbm %s8232_s0, %s4513_s12 }
  0x7e   : > { %s460_s23 = scalar_lea.vmem [#allocation2], %s4396_s25  ;;  %p6229_p11 = pnand %p5152_p3, %p48_p5 }
  0x7f   : > { %s467_s26 = sshll.u32 %s460_s23, 4  ;;  %s6233_s2 = scalar_lea.sflag [#allocation3], %s456_s22  ;;  %s6227_s26 = int_to_ptr.vmem [resolvable:$true] %s467_s26 }
  0x80   : > { %s5854_s27 = scalar_lea.hbm %s6225_s20, 2048  ;;  %p5856_p9 = pneg %p6229_p11 }
  0x81   : > { %p5855_p7 = scmp.ne.s32.totalorder %s6225_s20, %s5854_s27  ;;  %s5859_s25 = scalar_lea.hbm %s8232_s0, 4096 }
  0x82   : > { %p5860_p2 = scmp.lt.u32.totalorder %s6225_s20, %s8232_s0  ;;  %p5861_p1 = scmp.lt.u32.totalorder %s5859_s25, %s5854_s27 }
  0x83   : > { %p5857_p12 = pnand %p5856_p9, %p5855_p7  ;;  %p5863_p4 = scmp.lt.u32.totalorder %s5854_s27, %s6225_s20 }
  0x84   : > { %p5862_p13 = por %p5861_p1, %p5860_p2 }
  0x85   : > { %p5858_p0 = pneg %p5857_p12 }
  0x86   : > { %p5864_p8 = por %p5863_p4, %p5862_p13 }
  0x88   : > { %p5865_p6 = pnand %p5864_p8, %p5858_p0 }
  0x8a   : > { %5868 = shalt.err (!%p5865_p6)
}
  0x8b   : > { %s5869_s22 = scalar_lea.vmem %s6227_s26, 2048  ;;  %s5970_s18 = smov [#allocation2]  }
  0x8c   : > { %p5870_p3 = scmp.ne.s32.totalorder %s6227_s26, %s5869_s22  ;;  %s5874_s23 = sshll.u32 %s5970_s18, 4  ;;  %s5875_s23 = int_to_ptr.vmem [resolvable:$false] %s5874_s23 }
  0x8d   : > { %s5876_s11 = scalar_lea.vmem %s5875_s23, 4096  ;;  %p5877_p12 = scmp.lt.s32.totalorder %s6227_s26, %s5875_s23 }
  0x8e   : > { %p5872_p5 = pnand %p5870_p3, %p5856_p9  ;;  %p5878_p2 = scmp.lt.s32.totalorder %s5876_s11, %s5869_s22 }
  0x90   : > { %p5873_p7 = pneg %p5872_p5  ;;  %p5879_p1 = por %p5878_p2, %p5877_p12 }
  0x92   : > { %p5880_p13 = pnand %p5879_p1, %p5873_p7 }
  0x94   : > { %5883 = shalt.err (!%p5880_p13)
}
  0x95   : > { %s8284_s27 = smov 8   ;;  %s8285_s24 = smov 128  }
  0x96   : > { %5143 = dma.hbm_to_vmem [thread:$0]  (!%p6229_p11), %s6225_s20, 2048, %s6227_s26, %s6233_s2, %s8285_s24, %s8285_s24, %s8284_s27  }
  0x97   : > { %p8286_p9 = scmp.ne.s32.totalorder %s8277_s21, 0 }
  0x99   : > { %485 = sbr.rel (%p8286_p9) target bundleno = 4621 (0x120d), region = 76 }
  0xa0   : > { %s6267_s25 = sand.u32 1, %s5950_s30   ;;  %p8287_p0 = scmp.ne.s32.totalorder %s8274_s19, 0 }
  0xa1   : > { %s4400_s12 = sshll.u32 %s6267_s25, 7  ;;  %s488_s13 = scalar_lea.sflag [#allocation3], %s6267_s25 }
  0xa2   : > { %s6273_s14 = scalar_lea.vmem [#allocation2], %s4400_s12 }
  0xa3   : > { %5929 = dma.done.wait (%p8287_p0), %s488_s13, 2048  }
  0xa4   : > { %5931 = vsyncadd (%p8287_p0), %s488_s13, 4294965248  ;;  %p8288_p11 = scmp.eq.s32.totalorder %s6074_s17, 0 }
  0xa6   : > { %5933 = dma.done.wait (%p8288_p11), [#allocation6], 4096   ;;  %p8289_p4 = pmov %p8288_p11 }
  0xa8   : > { %5935 = vsyncadd (%p8289_p4), [#allocation6], 4294963200  ;;  %p8290_p8 = pmov %p8289_p4 }
  0xa9   : > { %p8291_p6 = pmov %p8289_p4 }
  0xaa   : > { %5937 = dma.done.wait (%p8290_p8), [#allocation9], 4096  }
  0xab   : > { %5939 = vsyncadd (%p8291_p6), [#allocation9], 4294963200  ;;  %v8256_v0 = vmov 0   ;;  %v5326_v1 = vld [vmem:[#allocation5 + $0x4] ss:$12 sps:$4 sm:$0xff]   ;;  %v560_v10 = vld [vmem:[%s6273_s14 + $0x8] sm:$0xff]  ;;  %v617_v49 = vlaneseq }
  0xac   : > { %792 = vmatprep.mubr.bf16.mxu0 %v8256_v0  ;;  %v5328_v2 = vld [vmem:[#allocation5] ss:$12 sps:$4 sm:$0xff]   ;;  %760 = vmatprep.subr.bf16.mxu0 %v5326_v1  ;;  %v5329_v3 = vld [vmem:[#allocation5 + $0x1c] ss:$12 sps:$4 sm:$0xff]   ;;  %v5331_v4 = vld [vmem:[#allocation5 + $0x18] ss:$12 sps:$4 sm:$0xff]  }
  0xad   : > { %761 = vmatpush1.bf16.msra.mxu0 %v5328_v2  ;;  %v5332_v5 = vld [vmem:[#allocation5 + $0x34] ss:$12 sps:$4 sm:$0xff]   ;;  %v5334_v6 = vld [vmem:[#allocation5 + $0x30] ss:$12 sps:$4 sm:$0xff]   ;;  %v5335_v7 = vld [vmem:[#allocation5 + $0x4c] ss:$12 sps:$4 sm:$0xff]  }
  0xae   : > { %762 = vmatprep.subr.bf16.mxu0 %v5329_v3  ;;  %v559_v8 = vld [vmem:[%s6273_s14] sm:$0xff]  ;;  %v5337_v9 = vld [vmem:[#allocation5 + $0x48] ss:$12 sps:$4 sm:$0xff]   ;;  %v5346_v20 = vld [vmem:[#allocation5 + $0x90] ss:$12 sps:$4 sm:$0xff]   ;;  %v6311_v50 = vshrl.u32 %v617_v49, 7 }
  0xaf   : > { %v5338_v11 = vld [vmem:[#allocation5 + $0x64] ss:$12 sps:$4 sm:$0xff]   ;;  %v575_v12 = vpack.c.bf16 %v560_v10, %v559_v8  ;;  %v5340_v13 = vld [vmem:[#allocation5 + $0x60] ss:$12 sps:$4 sm:$0xff]   ;;  %v5341_v14 = vld [vmem:[#allocation5 + $0x7c] ss:$12 sps:$4 sm:$0xff]  }
  0xb0   : > { %v5350_v15 = vld [vmem:[#allocation5 + $0x8] ss:$12 sps:$4 sm:$0xff]   ;;  %v5351_v16 = vld [vmem:[#allocation5 + $0x20] ss:$12 sps:$4 sm:$0xff]   ;;  %v5343_v17 = vld [vmem:[#allocation5 + $0x78] ss:$12 sps:$4 sm:$0xff]  }
  0xb1   : > { %763 = vmatpush1.bf16.msra.mxu0 %v5331_v4  ;;  %4755 = vmatprep.mubr.bf16.mxu1 %v575_v12  ;;  %v5344_v18 = vld [vmem:[#allocation5 + $0x94] ss:$12 sps:$4 sm:$0xff]   ;;  %v5352_v19 = vld [vmem:[#allocation5 + $0x38] ss:$12 sps:$4 sm:$0xff]   ;;  %v5353_v22 = vld [vmem:[#allocation5 + $0x50] ss:$12 sps:$4 sm:$0xff]  }
  0xb2   : > { %764 = vmatprep.subr.bf16.mxu0 %v5332_v5  ;;  %4739 = vmatprep.subr.bf16.mxu1 %v5350_v15  ;;  %v5347_v21 = vld [vmem:[#allocation5 + $0xac] ss:$12 sps:$4 sm:$0xff]   ;;  %v5349_v23 = vld [vmem:[#allocation5 + $0xa8] ss:$12 sps:$4 sm:$0xff]   ;;  %v5357_v30 = vld [vmem:[#allocation5 + $0xb0] ss:$12 sps:$4 sm:$0xff]  }
  0xb3   : > { %4740 = vmatpush3.bf16.msra.mxu1 %v5350_v15  ;;  %v5354_v24 = vld [vmem:[#allocation5 + $0x68] ss:$12 sps:$4 sm:$0xff]   ;;  %v5355_v25 = vld [vmem:[#allocation5 + $0x80] ss:$12 sps:$4 sm:$0xff]   ;;  %v562_v27 = vld [vmem:[%s6273_s14 + $0x18] sm:$0xff]  ;;  %8292 = vst [vmem:[#allocation18_spill] sm:$0xff] %v6311_v50 }
  0xb4   : > { %4741 = vmatprep.subr.bf16.mxu1 %v5351_v16  ;;  %v561_v26 = vld [vmem:[%s6273_s14 + $0x10] sm:$0xff]  ;;  %v5356_v28 = vld [vmem:[#allocation5 + $0x98] ss:$12 sps:$4 sm:$0xff]   ;;  %v564_v32 = vld [vmem:[%s6273_s14 + $0x28] sm:$0xff]  ;;  %v6314_v51 = vsub.s32 0, %v6311_v50  ;;  %v8255_v53 = vsub.s32 1, %v6311_v50 }
  0xb5   : > { %765 = vmatpush1.bf16.msra.mxu0 %v5334_v6  ;;  %v576_v29 = vpack.c.bf16 %v562_v27, %v561_v26  ;;  %v563_v31 = vld [vmem:[%s6273_s14 + $0x20] sm:$0xff]  ;;  %v565_v34 = vld [vmem:[%s6273_s14 + $0x30] sm:$0xff]  ;;  %v566_v35 = vld [vmem:[%s6273_s14 + $0x38] sm:$0xff]  ;;  %vm996_vm0 = vcmask 261120   ;;  %s5972_s20 = smov 96   ;;  %v627_v8 = vsub.s32 2, %v6311_v50 }
  0xb6   : > { %766 = vmatprep.subr.bf16.mxu0 %v5335_v7  ;;  %v577_v33 = vpack.c.bf16 %v564_v32, %v563_v31  ;;  %v578_v36 = vpack.c.bf16 %v566_v35, %v565_v34  ;;  %v567_v37 = vld [vmem:[%s6273_s14 + $0x40] sm:$0xff]  ;;  %v568_v38 = vld [vmem:[%s6273_s14 + $0x48] sm:$0xff]  ;;  %v569_v40 = vld [vmem:[%s6273_s14 + $0x50] sm:$0xff]  ;;  %8293 = vst [vmem:[#allocation19_spill] sm:$0xff] %v6314_v51  ;;  %p555_p3 = scmp.lt.s32.totalorder %s6074_s17, 1  ;;  %s5973_s23 = smov 64  }
  0xb7   : > { %4742 = vmatpush3.bf16.msra.mxu1 %v5351_v16  ;;  %v579_v39 = vpack.c.bf16 %v568_v38, %v567_v37  ;;  %v570_v41 = vld [vmem:[%s6273_s14 + $0x58] sm:$0xff]  ;;  %v571_v42 = vld [vmem:[%s6273_s14 + $0x60] sm:$0xff]  ;;  %v572_v43 = vld [vmem:[%s6273_s14 + $0x68] sm:$0xff]  ;;  %s5974_s11 = smov 32   ;;  %vm3043_vm3 = vcmask 523264   ;;  %vm3060_vm4 = vcmask 785408  }
  0xb8   : > { %4743 = vmatprep.subr.bf16.mxu1 %v5352_v19  ;;  %v580_v44 = vpack.c.bf16 %v570_v41, %v569_v40  ;;  %v581_v45 = vpack.c.bf16 %v572_v43, %v571_v42  ;;  %v573_v46 = vld [vmem:[%s6273_s14 + $0x70] sm:$0xff]  ;;  %v574_v47 = vld [vmem:[%s6273_s14 + $0x78] sm:$0xff]  ;;  %v615_v52 = vld [vmem:[%s8235_s3] sm:$0x7]  ;;  %s556_s26 = scalar_select %p555_p3, %s6074_s17, 1 }
  0xb9   : > { %767 = vmatpush1.bf16.msra.mxu0 %v5337_v9  ;;  %v582_v48 = vpack.c.bf16 %v574_v47, %v573_v46  ;;  %v6321_v54 = vrot.slane %v615_v52, %v6314_v51  ;;  %v6325_v56 = vrot.slane %v615_v52, %v8255_v53  ;;  %v6352_v15 = vrot.slane %v615_v52, %v627_v8  ;;  %s8357_s2 = sld [smem:[#allocation44_spill]]  ;;  %s8362_s24 = sld [smem:[#allocation46_spill]] }
  0xba   : > { %768 = vmatprep.subr.bf16.mxu0 %v5338_v11  ;;  %s557_s18 = scalar_lea.vmem %s8233_s1, %s556_s26  ;;  %s8363_s19 = sld [smem:[#allocation47_spill]] }
  0xbb   : > { %4744 = vmatpush3.bf16.msra.mxu1 %v5352_v19  ;;  %s8120_s21 = scalar_lea.vmem [#allocation11], %s4400_s12  ;;  %s4514_s12 = sshll.u32 %s6074_s17, 11 }
  0xbc   : > { %4745 = vmatprep.subr.bf16.mxu1 %v5353_v22  ;;  %s8364_s22 = sld [smem:[#allocation48_spill]]  ;;  %s4256_s17 = scalar_lea.sflag [#allocation4], %s6267_s25 }
  0xbd   : > { %769 = vmatpush1.bf16.msra.mxu0 %v5340_v13 }
  0xbe   : > { %770 = vmatprep.subr.bf16.mxu0 %v5341_v14 }
  0xbf   : > { %4746 = vmatpush3.bf16.msra.mxu1 %v5353_v22 }
  0xc0   : > { %4747 = vmatprep.subr.bf16.mxu1 %v5354_v24 }
  0xc1   : > { %771 = vmatpush1.bf16.msra.mxu0 %v5343_v17 }
  0xc2   : > { %772 = vmatprep.subr.bf16.mxu0 %v5344_v18 }
  0xc3   : > { %4748 = vmatpush3.bf16.msra.mxu1 %v5354_v24 }
  0xc4   : > { %4749 = vmatprep.subr.bf16.mxu1 %v5355_v25 }
  0xc5   : > { %773 = vmatpush1.bf16.msra.mxu0 %v5346_v20 }
  0xc6   : > { %774 = vmatprep.subr.bf16.mxu0 %v5347_v21 }
  0xc7   : > { %4750 = vmatpush3.bf16.msra.mxu1 %v5355_v25 }
  0xc8   : > { %4751 = vmatprep.subr.bf16.mxu1 %v5356_v28 }
  0xc9   : > { %775 = vmatpush1.bf16.msra.mxu0 %v5349_v23 }
  0xcb   : > { %4752 = vmatpush3.bf16.msra.mxu1 %v5356_v28 }
  0xcc   : > { %793 = vmatmul.mubr.bf16.vlgmr.msra.gmra.mrb[0].mxu0 %v575_v12  ;;  %4753 = vmatprep.subr.bf16.mxu1 %v5357_v30 }
  0xcd   : > { %802 = vmatprep.mubr.bf16.mxu0 %v8256_v0 }
  0xcf   : > { %4754 = vmatpush3.bf16.msra.mxu1 %v5357_v30 }
  0xd2   : > { %4756 = vmatmul.mubr.bf16.vlgmr.msra.gmra.mrb[0].mxu1 %v576_v29 }
  0xd3   : > { %4759 = vmatprep.mubr.bf16.mxu1 %v577_v33 }
  0xd4   : > { %803 = vmatmul.mubr.bf16.gmra.mrb[4].mxu0 %v576_v29 }
  0xd5   : > { %812 = vmatprep.mubr.bf16.mxu0 %v8256_v0 }
  0xda   : > { %4760 = vmatmul.mubr.bf16.gmra.mrb[4].mxu1 %v578_v36 }
  0xdb   : > { %4763 = vmatprep.mubr.bf16.mxu1 %v579_v39 }
  0xdc   : > { %813 = vmatmul.mubr.bf16.gmra.mrb[8].mxu0 %v577_v33 }
  0xdd   : > { %822 = vmatprep.mubr.bf16.mxu0 %v8256_v0 }
  0xe2   : > { %4764 = vmatmul.mubr.bf16.gmra.mrb[8].mxu1 %v580_v44 }
  0xe3   : > { %4767 = vmatprep.mubr.bf16.mxu1 %v581_v45 }
  0xe4   : > { %823 = vmatmul.mubr.bf16.gmra.mrb[12].mxu0 %v578_v36 }
  0xe5   : > { %832 = vmatprep.mubr.bf16.mxu0 %v8256_v0 }
  0xea   : > { %4768 = vmatmul.mubr.bf16.gmra.mrb[12].mxu1 %v582_v48 }
  0xec   : > { %833 = vmatmul.mubr.bf16.gmra.mrb[16].mxu0 %v579_v39 }
  0xed   : > { %842 = vmatprep.mubr.bf16.mxu0 %v8256_v0 }
  0xf4   : > { %843 = vmatmul.mubr.bf16.gmra.mrb[20].mxu0 %v580_v44 }
  0xf5   : > { %852 = vmatprep.mubr.bf16.mxu0 %v8256_v0 }
  0xfc   : > { %853 = vmatmul.mubr.bf16.gmra.mrb[24].mxu0 %v581_v45 }
  0xfd   : > { %862 = vmatprep.mubr.bf16.mxu0 %v8256_v0 }
 0x104   : > { %863 = vmatmul.mubr.bf16.gmra.mrb[28].mxu0 %v582_v48 }
 0x19f   : > { %v794_v55 = vpop.f32.mrb[0].mxu0 }
 0x1a0   : > { %v796_v57 = vpop.f32.mrb[1].mxu0  ;;  %v795_v59 = vadd.f32 %v794_v55, %v6321_v54 }
 0x1a1   : > { %v798_v58 = vpop.f32.mrb[2].mxu0  ;;  %v797_v62 = vadd.f32 %v796_v57, %v6325_v56 }
 0x1a2   : > { %v799_v60 = vadd.f32 %v798_v58, %v6321_v54  ;;  %v800_v61 = vpop.f32.mrb[3].mxu0 }
 0x1a3   : > { %v801_v63 = vadd.f32 %v800_v61, %v6325_v56 }
 0x1a4   : > { %v6331_v1 = vpack.c.bf16 %v799_v60, %v795_v59 }
 0x1a5   : > { %v6333_v2 = vpack.c.bf16 %v801_v63, %v797_v62  ;;  %v4757_v18 = vpop.f32.mrb[0].mxu1 }
 0x1a6   : > { %4787 = vmatprep.mubr.msk.bf16.mxu0 %vm996_vm0, %v6331_v1  ;;  %v916_v21 = vadd.f32 %v4757_v18, %v6352_v15  ;;  %v907_v22 = vpop.f32.mrb[1].mxu1 }
 0x1a7   : > { %v804_v3 = vpop.f32.mrb[4].mxu0  ;;  %1445 = vrot.lane.b32.xlu0 %v6333_v2, %s5972_s20  ;;  %5075 = vmatprep.subr.msk.bf16.mxu0 %vm996_vm0, %v6333_v2  ;;  %v1022_v4 = vsel %vm996_vm0, %v6333_v2, 0  ;;  %v908_v24 = vadd.f32 %v907_v22, %v6352_v15  ;;  %v4758_v25 = vpop.f32.mrb[2].mxu1 }
 0x1a8   : > { %v805_v5 = vadd.f32 %v804_v3, %v6321_v54  ;;  %v806_v6 = vpop.f32.mrb[5].mxu0  ;;  %4772 = vmatpush3.bf16.xpose.msra.mxu0 %v1022_v4  ;;  %v919_v28 = vadd.f32 %v4758_v25, %v6352_v15  ;;  %v910_v29 = vpop.f32.mrb[3].mxu1 }
 0x1a9   : > { %v808_v7 = vpop.f32.mrb[6].mxu0  ;;  %v807_v11 = vadd.f32 %v806_v6, %v6325_v56  ;;  %v911_v32 = vadd.f32 %v910_v29, %v6352_v15 }
 0x1aa   : > { %v809_v9 = vadd.f32 %v808_v7, %v6321_v54  ;;  %v810_v10 = vpop.f32.mrb[7].mxu0  ;;  %v6370_v34 = vpack.c.bf16 %v919_v28, %v916_v21 }
 0x1ab   : > { %v811_v12 = vadd.f32 %v810_v10, %v6325_v56  ;;  %v6374_v36 = vpack.c.bf16 %v911_v32, %v908_v24 }
 0x1ac   : > { %v6348_v13 = vpack.c.bf16 %v809_v9, %v805_v5 }
 0x1ad   : > { %v6350_v14 = vpack.c.bf16 %v811_v12, %v807_v11  ;;  %v4761_v39 = vpop.f32.mrb[4].mxu1  ;;  %4803 = vmatprep.subr.bf16.mxu1 %v6374_v36 }
 0x1ae   : > { %v932_v42 = vadd.f32 %v4761_v39, %v6352_v15  ;;  %v923_v43 = vpop.f32.mrb[5].mxu1  ;;  %4804 = vmatpush3.bf16.msra.mxu1 %v6374_v36 }
 0x1af   : > { %v814_v16 = vpop.f32.mrb[8].mxu0  ;;  %1447 = vrot.lane.b32.xlu1 %v6350_v14, %s5972_s20  ;;  %5076 = vmatprep.subr.msk.bf16.mxu0 %vm996_vm0, %v6350_v14  ;;  %v1025_v17 = vsel %vm996_vm0, %v6350_v14, 0  ;;  %v924_v45 = vadd.f32 %v923_v43, %v6352_v15  ;;  %v4762_v46 = vpop.f32.mrb[6].mxu1 }
 0x1b0   : > { %v815_v19 = vadd.f32 %v814_v16, %v6321_v54  ;;  %v816_v20 = vpop.f32.mrb[9].mxu0  ;;  %4774 = vmatpush3.bf16.xpose.msra.mxu0 %v1025_v17  ;;  %4805 = vmatprep.subr.bf16.mxu1 %v6370_v34  ;;  %v935_v49 = vadd.f32 %v4762_v46, %v6352_v15  ;;  %v926_v52 = vpop.f32.mrb[7].mxu1 }
 0x1b1   : > { %v818_v23 = vpop.f32.mrb[10].mxu0  ;;  %v817_v30 = vadd.f32 %v816_v20, %v6325_v56  ;;  %v927_v58 = vadd.f32 %v926_v52, %v6352_v15 }
 0x1b2   : > { %v819_v26 = vadd.f32 %v818_v23, %v6321_v54  ;;  %v820_v27 = vpop.f32.mrb[11].mxu0  ;;  %v6393_v60 = vpack.c.bf16 %v935_v49, %v932_v42  ;;  %4806 = vmatpush3.bf16.msra.mxu1 %v6370_v34 }
 0x1b3   : > { %v821_v31 = vadd.f32 %v820_v27, %v6325_v56  ;;  %v6398_v62 = vpack.c.bf16 %v927_v58, %v924_v45 }
 0x1b4   : > { %v6368_v33 = vpack.c.bf16 %v819_v26, %v815_v19 }
 0x1b5   : > { %v6372_v35 = vpack.c.bf16 %v821_v31, %v817_v30  ;;  %v4765_v4 = vpop.f32.mrb[8].mxu1  ;;  %4807 = vmatprep.subr.bf16.mxu1 %v6398_v62 }
 0x1b6   : > { %v948_v7 = vadd.f32 %v4765_v4, %v6352_v15  ;;  %v939_v8 = vpop.f32.mrb[9].mxu1  ;;  %4808 = vmatpush3.bf16.msra.mxu1 %v6398_v62 }
 0x1b7   : > { %v824_v37 = vpop.f32.mrb[12].mxu0  ;;  %5077 = vmatprep.subr.msk.bf16.mxu0 %vm996_vm0, %v6372_v35  ;;  %v1028_v38 = vsel %vm996_vm0, %v6372_v35, 0  ;;  %v940_v10 = vadd.f32 %v939_v8, %v6352_v15  ;;  %v4766_v11 = vpop.f32.mrb[10].mxu1  ;;  %4809 = vmatprep.subr.bf16.mxu1 %v6393_v60 }
 0x1b8   : > { %v825_v40 = vadd.f32 %v824_v37, %v6321_v54  ;;  %v826_v41 = vpop.f32.mrb[13].mxu0  ;;  %4776 = vmatpush3.bf16.xpose.msra.mxu0 %v1028_v38  ;;  %v951_v17 = vadd.f32 %v4766_v11, %v6352_v15  ;;  %v942_v18 = vpop.f32.mrb[11].mxu1 }
 0x1b9   : > { %v828_v44 = vpop.f32.mrb[14].mxu0  ;;  %v827_v55 = vadd.f32 %v826_v41, %v6325_v56  ;;  %v943_v21 = vadd.f32 %v942_v18, %v6352_v15 }
 0x1ba   : > { %v829_v47 = vadd.f32 %v828_v44, %v6321_v54  ;;  %v830_v48 = vpop.f32.mrb[15].mxu0  ;;  %v6417_v23 = vpack.c.bf16 %v951_v17, %v948_v7  ;;  %4810 = vmatpush3.bf16.msra.mxu1 %v6393_v60 }
 0x1bb   : > { %v831_v57 = vadd.f32 %v830_v48, %v6325_v56  ;;  %v6422_v25 = vpack.c.bf16 %v943_v21, %v940_v10 }
 0x1bc   : > { %v6391_v59 = vpack.c.bf16 %v829_v47, %v825_v40 }
 0x1bd   : > { %v6396_v61 = vpack.c.bf16 %v831_v57, %v827_v55  ;;  %v4769_v28 = vpop.f32.mrb[12].mxu1  ;;  %4811 = vmatprep.subr.bf16.mxu1 %v6422_v25 }
 0x1be   : > { %v964_v31 = vadd.f32 %v4769_v28, %v6352_v15  ;;  %v955_v32 = vpop.f32.mrb[13].mxu1  ;;  %4812 = vmatpush3.bf16.msra.mxu1 %v6422_v25 }
 0x1bf   : > { %v834_v63 = vpop.f32.mrb[16].mxu0  ;;  %5078 = vmatprep.subr.msk.bf16.mxu0 %vm996_vm0, %v6396_v61  ;;  %v1031_v3 = vsel %vm996_vm0, %v6396_v61, 0  ;;  %v956_v38 = vadd.f32 %v955_v32, %v6352_v15  ;;  %v4770_v39 = vpop.f32.mrb[14].mxu1  ;;  %4813 = vmatprep.subr.bf16.mxu1 %v6417_v23 }
 0x1c0   : > { %v835_v5 = vadd.f32 %v834_v63, %v6321_v54  ;;  %v836_v6 = vpop.f32.mrb[17].mxu0  ;;  %4778 = vmatpush3.bf16.xpose.msra.mxu0 %v1031_v3  ;;  %v967_v42 = vadd.f32 %v4770_v39, %v6352_v15  ;;  %v958_v43 = vpop.f32.mrb[15].mxu1 }
 0x1c1   : > { %v838_v9 = vpop.f32.mrb[18].mxu0  ;;  %v837_v19 = vadd.f32 %v836_v6, %v6325_v56  ;;  %v959_v46 = vadd.f32 %v958_v43, %v6352_v15 }
 0x1c2   : > { %v839_v12 = vadd.f32 %v838_v9, %v6321_v54  ;;  %v840_v16 = vpop.f32.mrb[19].mxu0  ;;  %v6441_v48 = vpack.c.bf16 %v967_v42, %v964_v31  ;;  %4814 = vmatpush3.bf16.msra.mxu1 %v6417_v23 }
 0x1c3   : > { %v841_v20 = vadd.f32 %v840_v16, %v6325_v56  ;;  %v6446_v52 = vpack.c.bf16 %v959_v46, %v956_v38 }
 0x1c4   : > { %v6415_v22 = vpack.c.bf16 %v839_v12, %v835_v5 }
 0x1c5   : > { %v6420_v24 = vpack.c.bf16 %v841_v20, %v837_v19  ;;  %4815 = vmatprep.subr.bf16.mxu1 %v6446_v52 }
 0x1c6   : > { %4816 = vmatpush3.bf16.msra.mxu1 %v6446_v52 }
 0x1c7   : > { %v844_v26 = vpop.f32.mrb[20].mxu0  ;;  %5079 = vmatprep.subr.msk.bf16.mxu0 %vm996_vm0, %v6420_v24  ;;  %v1034_v27 = vsel %vm996_vm0, %v6420_v24, 0  ;;  %4817 = vmatprep.subr.bf16.mxu1 %v6441_v48 }
 0x1c8   : > { %v845_v29 = vadd.f32 %v844_v26, %v6321_v54  ;;  %v846_v30 = vpop.f32.mrb[21].mxu0  ;;  %4780 = vmatpush3.bf16.xpose.msra.mxu0 %v1034_v27 }
 0x1c9   : > { %v848_v37 = vpop.f32.mrb[22].mxu0  ;;  %v847_v44 = vadd.f32 %v846_v30, %v6325_v56 }
 0x1ca   : > { %v849_v40 = vadd.f32 %v848_v37, %v6321_v54  ;;  %v850_v41 = vpop.f32.mrb[23].mxu0  ;;  %4818 = vmatpush3.bf16.msra.mxu1 %v6441_v48 }
 0x1cb   : > { %v851_v45 = vadd.f32 %v850_v41, %v6325_v56 }
 0x1cc   : > { %v6439_v47 = vpack.c.bf16 %v849_v40, %v845_v29 }
 0x1cd   : > { %v6444_v49 = vpack.c.bf16 %v851_v45, %v847_v44 }
 0x1cf   : > { %v854_v55 = vpop.f32.mrb[24].mxu0  ;;  %5080 = vmatprep.subr.msk.bf16.mxu0 %vm996_vm0, %v6444_v49  ;;  %v1037_v57 = vsel %vm996_vm0, %v6444_v49, 0 }
 0x1d0   : > { %v855_v15 = vadd.f32 %v854_v55, %v6321_v54  ;;  %v856_v58 = vpop.f32.mrb[25].mxu0  ;;  %4782 = vmatpush3.bf16.xpose.msra.mxu0 %v1037_v57 }
 0x1d1   : > { %v858_v63 = vpop.f32.mrb[26].mxu0  ;;  %v857_v5 = vadd.f32 %v856_v58, %v6325_v56 }
 0x1d2   : > { %v859_v3 = vadd.f32 %v858_v63, %v6321_v54  ;;  %v860_v4 = vpop.f32.mrb[27].mxu0 }
 0x1d3   : > { %v861_v6 = vadd.f32 %v860_v4, %v6325_v56 }
 0x1d4   : > { %v6459_v7 = vpack.c.bf16 %v859_v3, %v855_v15 }
 0x1d5   : > { %v6462_v8 = vpack.c.bf16 %v861_v6, %v857_v5 }
 0x1d7   : > { %v864_v9 = vpop.f32.mrb[28].mxu0  ;;  %5081 = vmatprep.subr.msk.bf16.mxu0 %vm996_vm0, %v6462_v8  ;;  %v1040_v10 = vsel %vm996_vm0, %v6462_v8, 0 }
 0x1d8   : > { %v865_v11 = vadd.f32 %v864_v9, %v6321_v54  ;;  %v866_v12 = vpop.f32.mrb[29].mxu0  ;;  %4784 = vmatpush3.bf16.xpose.msra.mxu0 %v1040_v10 }
 0x1d9   : > { %v868_v16 = vpop.f32.mrb[30].mxu0  ;;  %v867_v19 = vadd.f32 %v866_v12, %v6325_v56 }
 0x1da   : > { %v869_v17 = vadd.f32 %v868_v16, %v6321_v54  ;;  %v870_v18 = vpop.f32.mrb[31].mxu0 }
 0x1db   : > { %v871_v20 = vadd.f32 %v870_v18, %v6325_v56  ;;  %v970_v56 = vld [vmem:[%s557_s18] sm:$0x1]  ;;  %s8183_s18 = scalar_lea.hbm %s8364_s22, %s4514_s12 }
 0x1dc   : > { %v6472_v21 = vpack.c.bf16 %v869_v17, %v865_v11  ;;  %vm971_vm1 = vcmp.gt.f32.partialorder %v970_v56, 0.0 }
 0x1dd   : > { %v6474_v26 = vpack.c.bf16 %v871_v20, %v867_v19  ;;  %v1142_v28 = vsel %vm971_vm1, 1, %v8256_v0 }
 0x1de   : > { %v1146_v29 = vrot.slane %v1142_v28, %v6314_v51 }
 0x1df   : > { %5082 = vmatprep.subr.msk.bf16.mxu0 %vm996_vm0, %v6474_v26  ;;  %v1043_v27 = vsel %vm996_vm0, %v6474_v26, 0 }
 0x1e0   : > { %4786 = vmatpush3.bf16.xpose.msra.mxu0 %v1043_v27  ;;  %vm6505_vm2 = vcmp.eq.s32.totalorder %v1146_v29, 1 }
 0x1e7   : > { %4788 = vmatmul.mubr.msk.bf16.vlgmr.msra.gmra.mrb[32].mxu0 %vm996_vm0, %v6348_v13 }
 0x1e8   : > { %4791 = vmatprep.mubr.msk.bf16.mxu0 %vm996_vm0, %v6368_v33 }
 0x1ef   : > { %4792 = vmatmul.mubr.msk.bf16.gmra.mrb[36].mxu0 %vm996_vm0, %v6391_v59 }
 0x1f0   : > { %4795 = vmatprep.mubr.msk.bf16.mxu0 %vm996_vm0, %v6415_v22 }
 0x1f7   : > { %4796 = vmatmul.mubr.msk.bf16.gmra.mrb[40].mxu0 %vm996_vm0, %v6439_v47 }
 0x1f8   : > { %4799 = vmatprep.mubr.msk.bf16.mxu0 %vm996_vm0, %v6459_v7 }
 0x1ff   : > { %4800 = vmatmul.mubr.msk.bf16.gmra.mrb[44].mxu0 %vm996_vm0, %v6472_v21 }
 0x219   : > { %v6494_v54 = vpop.permute.xlu0 %1445 }
 0x21a   : > { %5083 = vmatprep.subr.msk.bf16.mxu1 %vm996_vm0, %v6494_v54 }
 0x221   : > { %v6578_v28 = vpop.permute.xlu1 %1447 }
 0x2ba   : > { %v4789_v31 = vpop.f32.mrb[32].mxu0 }
 0x2bb   : > { %v1079_v32 = vpop.f32.mrb[33].mxu0  ;;  %v1150_v37 = vsel %vm6505_vm2, %v4789_v31, -1e+09 }
 0x2bc   : > { %1168 = vmax.xlane.f32.xlu1 %v1150_v37  ;;  %v4790_v38 = vpop.f32.mrb[34].mxu0  ;;  %v1148_v39 = vsel %vm6505_vm2, %v1079_v32, -1e+09 }
 0x2bd   : > { %1164 = vmax.xlane.f32.xlu0 %v1148_v39  ;;  %v1082_v40 = vpop.f32.mrb[35].mxu0  ;;  %v1151_v41 = vsel %vm6505_vm2, %v4790_v38, -1e+09 }
 0x2be   : > { %v1149_v42 = vsel %vm6505_vm2, %v1082_v40, -1e+09 }
 0x2c0   : > { %1170 = vmax.xlane.f32.xlu1 %v1151_v41 }
 0x2c1   : > { %1166 = vmax.xlane.f32.xlu0 %v1149_v42 }
 0x2c2   : > { %v4793_v43 = vpop.f32.mrb[36].mxu0 }
 0x2c3   : > { %v1095_v44 = vpop.f32.mrb[37].mxu0  ;;  %v6519_v45 = vsel %vm6505_vm2, %v4793_v43, -1e+09 }
 0x2c4   : > { %v4794_v46 = vpop.f32.mrb[38].mxu0  ;;  %v6529_v15 = vsel %vm6505_vm2, %v1095_v44, -1e+09 }
 0x2c5   : > { %1176 = vmax.xlane.f32.xlu0 %v6519_v45  ;;  %v1098_v55 = vpop.f32.mrb[39].mxu0  ;;  %v6524_v57 = vsel %vm6505_vm2, %v4794_v46, -1e+09 }
 0x2c6   : > { %1178 = vmax.xlane.f32.xlu1 %v6524_v57  ;;  %v6534_v58 = vsel %vm6505_vm2, %v1098_v55, -1e+09 }
 0x2c9   : > { %1172 = vmax.xlane.f32.xlu0 %v6529_v15 }
 0x2ca   : > { %1174 = vmax.xlane.f32.xlu1 %v6534_v58  ;;  %v4797_v63 = vpop.f32.mrb[40].mxu0 }
 0x2cb   : > { %v1111_v3 = vpop.f32.mrb[41].mxu0  ;;  %v6539_v4 = vsel %vm6505_vm2, %v4797_v63, -1e+09 }
 0x2cc   : > { %v4798_v5 = vpop.f32.mrb[42].mxu0  ;;  %v6549_v10 = vsel %vm6505_vm2, %v1111_v3, -1e+09 }
 0x2cd   : > { %1184 = vmax.xlane.f32.xlu0 %v6539_v4  ;;  %v1114_v6 = vpop.f32.mrb[43].mxu0  ;;  %v6544_v9 = vsel %vm6505_vm2, %v4798_v5, -1e+09 }
 0x2ce   : > { %1186 = vmax.xlane.f32.xlu1 %v6544_v9  ;;  %v6554_v11 = vsel %vm6505_vm2, %v1114_v6, -1e+09 }
 0x2d1   : > { %1180 = vmax.xlane.f32.xlu0 %v6549_v10 }
 0x2d2   : > { %1182 = vmax.xlane.f32.xlu1 %v6554_v11  ;;  %v4801_v12 = vpop.f32.mrb[44].mxu0 }
 0x2d3   : > { %v1127_v16 = vpop.f32.mrb[45].mxu0  ;;  %v1162_v17 = vsel %vm6505_vm2, %v4801_v12, -1e+09 }
 0x2d4   : > { %v4802_v18 = vpop.f32.mrb[46].mxu0  ;;  %v6561_v20 = vsel %vm6505_vm2, %v1127_v16, -1e+09 }
 0x2d5   : > { %1192 = vmax.xlane.f32.xlu0 %v1162_v17  ;;  %v1130_v19 = vpop.f32.mrb[47].mxu0  ;;  %v6570_v27 = vsel %vm6505_vm2, %v4802_v18, -1e+09 }
 0x2d6   : > { %v6575_v56 = vsel %vm6505_vm2, %v1130_v19, -1e+09 }
 0x2d9   : > { %1188 = vmax.xlane.f32.xlu0 %v6561_v20 }
 0x2e3   : > { %1451 = vrot.lane.b32.xlu1 %v6396_v61, %s5972_s20 }
 0x2ef   : > { %1449 = vrot.lane.b32.xlu0 %v6372_v35, %s5972_s20 }
 0x307   : > { %1194 = vmax.xlane.f32.xlu1 %v6570_v27 }
 0x30b   : > { %1190 = vmax.xlane.f32.xlu1 %v6575_v56 }
 0x349   : > { %v1169_v29 = vpop.xlane.xlu1 %1168 }
 0x34a   : > { %v1198_v31 = vsub.f32 %v1150_v37, %v1169_v29  ;;  %v1165_v32 = vpop.xlane.xlu0 %1164 }
 0x34b   : > { %v1196_v38 = vsub.f32 %v1148_v39, %v1165_v32 }
 0x34c   : > { %v1216_v40 = vmul.f32 1.442695, %v1198_v31 }
 0x34d   : > { %v1212_v43 = vmul.f32 1.442695, %v1196_v38  ;;  %v1171_v44 = vpop.xlane.xlu1 %1170 }
 0x34e   : > { %5406 = vpow2.f32 %v1216_v40  ;;  %v1199_v46 = vsub.f32 %v1151_v41, %v1171_v44  ;;  %v1167_v55 = vpop.xlane.xlu0 %1166 }
 0x34f   : > { %v1197_v63 = vsub.f32 %v1149_v42, %v1167_v55  ;;  %5408 = vpow2.f32 %v1212_v43 }
 0x350   : > { %v1218_v3 = vmul.f32 1.442695, %v1199_v46 }
 0x351   : > { %v1214_v5 = vmul.f32 1.442695, %v1197_v63 }
 0x352   : > { %5410 = vpow2.f32 %v1218_v3  ;;  %v1177_v41 = vpop.xlane.xlu0 %1176 }
 0x353   : > { %5412 = vpow2.f32 %v1214_v5  ;;  %v1179_v18 = vpop.xlane.xlu1 %1178  ;;  %v1202_v31 = vsub.f32 %v6519_v45, %v1177_v41 }
 0x354   : > { %v1203_v46 = vsub.f32 %v6524_v57, %v1179_v18 }
 0x355   : > { %v1224_v40 = vmul.f32 1.442695, %v1202_v31 }
 0x356   : > { %v1173_v42 = vpop.xlane.xlu0 %1172  ;;  %v1226_v53 = vmul.f32 1.442695, %v1203_v46 }
 0x357   : > { %v1175_v29 = vpop.xlane.xlu1 %1174  ;;  %v1200_v32 = vsub.f32 %v6529_v15, %v1173_v42  ;;  %5414 = vpow2.f32 %v1224_v40 }
 0x358   : > { %v6580_v6 = vpop.eup %5406  ;;  %v1201_v43 = vsub.f32 %v6534_v58, %v1175_v29 }
 0x359   : > { %1248 = vadd.xlane.f32.xlu0 %v6580_v6  ;;  %v6583_v12 = vpop.eup %5408  ;;  %v1220_v55 = vmul.f32 1.442695, %v1200_v32 }
 0x35a   : > { %v1185_v16 = vpop.xlane.xlu0 %1184  ;;  %v1222_v63 = vmul.f32 1.442695, %v1201_v43 }
 0x35b   : > { %v1187_v44 = vpop.xlane.xlu1 %1186  ;;  %5416 = vpow2.f32 %v1220_v55  ;;  %v1206_v0 = vsub.f32 %v6539_v4, %v1185_v16 }
 0x35c   : > { %v6585_v37 = vpop.eup %5410  ;;  %5418 = vpow2.f32 %v1222_v63  ;;  %v1207_v4 = vsub.f32 %v6544_v9, %v1187_v44 }
 0x35d   : > { %1244 = vadd.xlane.f32.xlu0 %v6583_v12  ;;  %1250 = vadd.xlane.f32.xlu1 %v6585_v37  ;;  %v6589_v39 = vpop.eup %5412  ;;  %5420 = vpow2.f32 %v1226_v53  ;;  %v1232_v41 = vmul.f32 1.442695, %v1206_v0 }
 0x35e   : > { %v1181_v19 = vpop.xlane.xlu0 %1180 }
 0x35f   : > { %v1183_v50 = vpop.xlane.xlu1 %1182  ;;  %v1204_v58 = vsub.f32 %v6549_v10, %v1181_v19  ;;  %v1234_v10 = vmul.f32 1.442695, %v1207_v4 }
 0x360   : > { %v1205_v19 = vsub.f32 %v6554_v11, %v1183_v50 }
 0x361   : > { %1246 = vadd.xlane.f32.xlu1 %v6589_v39  ;;  %v6605_v18 = vpop.eup %5414 }
 0x362   : > { %v1193_v38 = vpop.xlane.xlu0 %1192 }
 0x363   : > { %v1210_v3 = vsub.f32 %v1162_v17, %v1193_v38  ;;  %v6603_v42 = vpop.permute.xlu1 %1451  ;;  %v1228_v17 = vmul.f32 1.442695, %v1204_v58 }
 0x365   : > { %v1240_v45 = vmul.f32 1.442695, %v1210_v3  ;;  %v6609_v16 = vpop.eup %5416 }
 0x366   : > { %v1189_v5 = vpop.xlane.xlu0 %1188  ;;  %v6611_v53 = vpop.eup %5418 }
 0x367   : > { %v1208_v15 = vsub.f32 %v6561_v20, %v1189_v5  ;;  %5422 = vpow2.f32 %v1240_v45  ;;  %v6617_v31 = vpop.eup %5420 }
 0x368   : > { %5424 = vpow2.f32 %v1232_v41 }
 0x369   : > { %v1236_v57 = vmul.f32 1.442695, %v1208_v15 }
 0x36a   : > { %v1450_v63 = vpop.permute.xlu0 %1449 }
 0x36b   : > { %5426 = vpow2.f32 %v1236_v57 }
 0x36c   : > { %5428 = vpow2.f32 %v1228_v17 }
 0x371   : > { %v6619_v32 = vpop.eup %5422 }
 0x372   : > { %1455 = vrot.lane.b32.xlu1 %v6444_v49, %s5972_s20  ;;  %v6624_v40 = vpop.eup %5424 }
 0x373   : > { %1453 = vrot.lane.b32.xlu0 %v6420_v24, %s5972_s20 }
 0x375   : > { %v6626_v43 = vpop.eup %5426 }
 0x376   : > { %v6630_v11 = vpop.eup %5428 }
 0x392   : > { %1256 = vadd.xlane.f32.xlu0 %v6605_v18 }
 0x394   : > { %v1195_v20 = vpop.xlane.xlu1 %1194 }
 0x395   : > { %v1211_v0 = vsub.f32 %v6570_v27, %v1195_v20  ;;  %v1230_v27 = vmul.f32 1.442695, %v1205_v19 }
 0x396   : > { %1254 = vadd.xlane.f32.xlu0 %v6611_v53  ;;  %1252 = vadd.xlane.f32.xlu1 %v6609_v16 }
 0x397   : > { %v1242_v29 = vmul.f32 1.442695, %v1211_v0 }
 0x398   : > { %v1191_v9 = vpop.xlane.xlu1 %1190 }
 0x399   : > { %5430 = vpow2.f32 %v1242_v29  ;;  %v1209_v38 = vsub.f32 %v6575_v56, %v1191_v9  ;;  %v1486_v9 = vsel %vm996_vm0, %v6494_v54, 0 }
 0x39a   : > { %1272 = vadd.xlane.f32.xlu0 %v6619_v32  ;;  %1258 = vadd.xlane.f32.xlu1 %v6617_v31  ;;  %5432 = vpow2.f32 %v1234_v10 }
 0x39b   : > { %5434 = vpow2.f32 %v1230_v27  ;;  %v1238_v50 = vmul.f32 1.442695, %v1209_v38 }
 0x39d   : > { %5436 = vpow2.f32 %v1238_v50 }
 0x39e   : > { %1268 = vadd.xlane.f32.xlu0 %v6626_v43  ;;  %1264 = vadd.xlane.f32.xlu1 %v6624_v40 }
 0x3a2   : > { %1260 = vadd.xlane.f32.xlu1 %v6630_v11 }
 0x3a3   : > { %v6633_v44 = vpop.eup %5430 }
 0x3a4   : > { %1274 = vadd.xlane.f32.xlu0 %v6633_v44  ;;  %v6636_v56 = vpop.eup %5432 }
 0x3a5   : > { %v6639_v46 = vpop.eup %5434 }
 0x3a6   : > { %1266 = vadd.xlane.f32.xlu1 %v6636_v56 }
 0x3a7   : > { %v6642_v55 = vpop.eup %5436 }
 0x3aa   : > { %1262 = vadd.xlane.f32.xlu1 %v6639_v46 }
 0x3ae   : > { %1270 = vadd.xlane.f32.xlu1 %v6642_v55 }
 0x3ba   : > { %1457 = vrot.lane.b32.xlu0 %v6462_v8, %s5972_s20 }
 0x3be   : > { %1421 = vrot.lane.b32.xlu0 %v6331_v1, %s5972_s20 }
 0x3bf   : > { %1459 = vrot.lane.b32.xlu1 %v6474_v26, %s5972_s20 }
 0x3c2   : > { %1425 = vrot.lane.b32.xlu0 %v6368_v33, %s5972_s20 }
 0x3c3   : > { %1423 = vrot.lane.b32.xlu1 %v6348_v13, %s5972_s20 }
 0x3c6   : > { %1429 = vrot.lane.b32.xlu0 %v6415_v22, %s5972_s20 }
 0x3c7   : > { %1427 = vrot.lane.b32.xlu1 %v6391_v59, %s5972_s20 }
 0x3ca   : > { %1433 = vrot.lane.b32.xlu0 %v6459_v7, %s5972_s20 }
 0x3cb   : > { %1431 = vrot.lane.b32.xlu1 %v6439_v47, %s5972_s20 }
 0x3ce   : > { %1782 = vrot.lane.b32.xlu0 %v6374_v36, %s5972_s20 }
 0x3cf   : > { %1435 = vrot.lane.b32.xlu1 %v6472_v21, %s5972_s20 }
 0x3d2   : > { %1786 = vrot.lane.b32.xlu0 %v6398_v62, %s5972_s20 }
 0x3d3   : > { %1784 = vrot.lane.b32.xlu1 %v6370_v34, %s5972_s20 }
 0x3d6   : > { %1790 = vrot.lane.b32.xlu0 %v6422_v25, %s5972_s20 }
 0x3d7   : > { %1788 = vrot.lane.b32.xlu1 %v6393_v60, %s5972_s20 }
 0x3da   : > { %1794 = vrot.lane.b32.xlu0 %v6446_v52, %s5972_s20 }
 0x3db   : > { %1792 = vrot.lane.b32.xlu1 %v6417_v23, %s5972_s20 }
 0x3de   : > { %1919 = vrot.lane.b32.xlu0 %v6333_v2, %s5973_s23 }
 0x3df   : > { %1796 = vrot.lane.b32.xlu1 %v6441_v48, %s5972_s20 }
 0x3e3   : > { %1921 = vrot.lane.b32.xlu1 %v6350_v14, %s5973_s23 }
 0x3e6   : > { %v1249_v3 = vpop.xlane.xlu0 %1248 }
 0x3ea   : > { %v1245_v5 = vpop.xlane.xlu0 %1244  ;;  %v1251_v45 = vpop.xlane.xlu1 %1250 }
 0x3eb   : > { %5438 = vrcp.f32 %v1251_v45 }
 0x3ec   : > { %5440 = vrcp.f32 %v1245_v5 }
 0x3ed   : > { %5442 = vrcp.f32 %v1249_v3 }
 0x3ee   : > { %v1247_v15 = vpop.xlane.xlu1 %1246  ;;  %v1454_v54 = vpop.permute.xlu0 %1453 }
 0x3ef   : > { %5444 = vrcp.f32 %v1247_v15 }
 0x3f5   : > { %v5439_v41 = vpop.eup %5438 }
 0x3f6   : > { %v5441_v58 = vpop.eup %5440  ;;  %v1295_v17 = vmul.f32 %v5439_v41, %v6585_v37  ;;  %v1489_v37 = vsel %vm996_vm0, %v6578_v28, 0 }
 0x3f7   : > { %v5443_v57 = vpop.eup %5442  ;;  %v1292_v20 = vmul.f32 %v5441_v58, %v6583_v12  ;;  %v1492_v12 = vsel %vm996_vm0, %v1450_v63, 0 }
 0x3f8   : > { %v1294_v10 = vmul.f32 %v5443_v57, %v6580_v6  ;;  %v1495_v6 = vsel %vm996_vm0, %v6603_v42, 0 }
 0x3f9   : > { %v5445_v4 = vpop.eup %5444 }
 0x3fa   : > { %v1293_v0 = vmul.f32 %v5445_v4, %v6589_v39  ;;  %v1309_v29 = vpack.c.bf16 %v1295_v17, %v1294_v10  ;;  %v1456_v39 = vpop.permute.xlu1 %1455 }
 0x3fb   : > { %v1501_v3 = vsel %vm996_vm0, %v1456_v39, 0 }
 0x3fc   : > { %v1308_v19 = vpack.c.bf16 %v1293_v0, %v1292_v20 }
 0x3fe   : > { %4819 = vmatprep.mubr.bf16.mxu1 %v1308_v19 }
 0x3ff   : > { %4820 = vmatmul.mubr.bf16.vlgmr.msra.gmra.mrb[16].mxu1 %v1309_v29 }
 0x400   : > { %4836 = vmatpush3.bf16.xpose.msra.mxu1 %v1486_v9 }
 0x401   : > { %5084 = vmatprep.subr.msk.bf16.mxu1 %vm996_vm0, %v6578_v28  ;;  %v1498_v28 = vsel %vm996_vm0, %v1454_v54, 0 }
 0x408   : > { %4838 = vmatpush3.bf16.xpose.msra.mxu1 %v1489_v37 }
 0x409   : > { %5085 = vmatprep.subr.msk.bf16.mxu1 %vm996_vm0, %v1450_v63 }
 0x410   : > { %4840 = vmatpush3.bf16.xpose.msra.mxu1 %v1492_v12 }
 0x411   : > { %5086 = vmatprep.subr.msk.bf16.mxu1 %vm996_vm0, %v6603_v42 }
 0x418   : > { %4842 = vmatpush3.bf16.xpose.msra.mxu1 %v1495_v6 }
 0x419   : > { %5087 = vmatprep.subr.msk.bf16.mxu1 %vm996_vm0, %v1454_v54 }
 0x41f   : > { %v1257_v27 = vpop.xlane.xlu0 %1256 }
 0x420   : > { %4844 = vmatpush3.bf16.xpose.msra.mxu1 %v1498_v28 }
 0x421   : > { %5088 = vmatprep.subr.msk.bf16.mxu1 %vm996_vm0, %v1456_v39 }
 0x423   : > { %v1255_v38 = vpop.xlane.xlu0 %1254  ;;  %v1253_v50 = vpop.xlane.xlu1 %1252 }
 0x424   : > { %5446 = vrcp.f32 %v1255_v38 }
 0x425   : > { %5448 = vrcp.f32 %v1253_v50 }
 0x426   : > { %5450 = vrcp.f32 %v1257_v27 }
 0x427   : > { %v1273_v63 = vpop.xlane.xlu0 %1272  ;;  %v1259_v42 = vpop.xlane.xlu1 %1258 }
 0x428   : > { %4846 = vmatpush3.bf16.xpose.msra.mxu1 %v1501_v3  ;;  %5452 = vrcp.f32 %v1259_v42 }
 0x42b   : > { %v1265_v5 = vpop.xlane.xlu1 %1264  ;;  %v1269_v45 = vpop.xlane.xlu0 %1268 }
 0x42e   : > { %v5447_v15 = vpop.eup %5446 }
 0x42f   : > { %v5449_v41 = vpop.eup %5448  ;;  %v1261_v58 = vpop.xlane.xlu1 %1260  ;;  %v1297_v57 = vmul.f32 %v5447_v15, %v6611_v53 }
 0x430   : > { %v1296_v4 = vmul.f32 %v5449_v41, %v6609_v16  ;;  %v5451_v17 = vpop.eup %5450 }
 0x431   : > { %v1275_v20 = vpop.xlane.xlu0 %1274  ;;  %v1298_v29 = vmul.f32 %v5451_v17, %v6605_v18 }
 0x432   : > { %v1310_v0 = vpack.c.bf16 %v1297_v57, %v1296_v4  ;;  %v5453_v10 = vpop.eup %5452 }
 0x433   : > { %v1267_v19 = vpop.xlane.xlu1 %1266  ;;  %v1299_v9 = vmul.f32 %v5453_v10, %v6617_v31 }
 0x434   : > { %4823 = vmatprep.mubr.bf16.mxu1 %v1310_v0  ;;  %5454 = vrcp.f32 %v1267_v19 }
 0x435   : > { %v1458_v37 = vpop.permute.xlu0 %1457  ;;  %5456 = vrcp.f32 %v1261_v58  ;;  %v1311_v12 = vpack.c.bf16 %v1299_v9, %v1298_v29 }
 0x436   : > { %5089 = vmatprep.subr.msk.bf16.mxu1 %vm996_vm0, %v1458_v37  ;;  %v1504_v53 = vsel %vm996_vm0, %v1458_v37, 0  ;;  %5458 = vrcp.f32 %v1265_v5 }
 0x437   : > { %4848 = vmatpush3.bf16.xpose.msra.mxu1 %v1504_v53  ;;  %v1263_v16 = vpop.xlane.xlu1 %1262 }
 0x438   : > { %4824 = vmatmul.mubr.bf16.gmra.mrb[20].mxu1 %v1311_v12  ;;  %5460 = vrcp.f32 %v1263_v16 }
 0x439   : > { %v1422_v6 = vpop.permute.xlu0 %1421  ;;  %5462 = vrcp.f32 %v1269_v45 }
 0x43b   : > { %v1271_v54 = vpop.xlane.xlu1 %1270 }
 0x43c   : > { %5464 = vrcp.f32 %v1271_v54 }
 0x43d   : > { %5466 = vrcp.f32 %v1275_v20  ;;  %v1426_v18 = vpop.permute.xlu0 %1425 }
 0x43e   : > { %v5455_v31 = vpop.eup %5454  ;;  %5468 = vrcp.f32 %v1273_v63 }
 0x43f   : > { %v1460_v39 = vpop.permute.xlu1 %1459  ;;  %v5457_v27 = vpop.eup %5456  ;;  %v1303_v42 = vmul.f32 %v5455_v31, %v6636_v56 }
 0x440   : > { %5090 = vmatprep.subr.msk.bf16.mxu1 %vm996_vm0, %v1460_v39  ;;  %v1507_v28 = vsel %vm996_vm0, %v1460_v39, 0  ;;  %v5459_v38 = vpop.eup %5458  ;;  %v1300_v45 = vmul.f32 %v5457_v27, %v6630_v11 }
 0x441   : > { %v1430_v50 = vpop.permute.xlu0 %1429  ;;  %4850 = vmatpush3.bf16.xpose.msra.mxu1 %v1507_v28  ;;  %v1302_v63 = vmul.f32 %v5459_v38, %v6624_v40 }
 0x442   : > { %v5461_v3 = vpop.eup %5460 }
 0x443   : > { %v1424_v5 = vpop.permute.xlu1 %1423  ;;  %v1301_v15 = vmul.f32 %v5461_v3, %v6639_v46  ;;  %v5463_v41 = vpop.eup %5462  ;;  %v1313_v17 = vpack.c.bf16 %v1303_v42, %v1302_v63 }
 0x444   : > { %v1304_v10 = vmul.f32 %v5463_v41, %v6626_v43 }
 0x445   : > { %v1434_v58 = vpop.permute.xlu0 %1433  ;;  %v1312_v57 = vpack.c.bf16 %v1301_v15, %v1300_v45 }
 0x446   : > { %v5465_v4 = vpop.eup %5464 }
 0x447   : > { %v5467_v20 = vpop.eup %5466  ;;  %4827 = vmatprep.mubr.bf16.mxu1 %v1312_v57  ;;  %v1428_v0 = vpop.permute.xlu1 %1427  ;;  %v1305_v19 = vmul.f32 %v5465_v4, %v6642_v55 }
 0x448   : > { %4828 = vmatmul.mubr.bf16.gmra.mrb[24].mxu1 %v1313_v17  ;;  %v5469_v56 = vpop.eup %5468  ;;  %v1307_v46 = vmul.f32 %v5467_v20, %v6633_v44 }
 0x449   : > { %v1783_v29 = vpop.permute.xlu0 %1782  ;;  %v1314_v11 = vpack.c.bf16 %v1305_v19, %v1304_v10  ;;  %v1306_v9 = vmul.f32 %v5469_v56, %v6619_v32 }
 0x44a   : > { %4867 = vmatprep.subr.bf16.mxu0 %v1783_v29 }
 0x44b   : > { %4831 = vmatprep.mubr.bf16.mxu1 %v1314_v11  ;;  %v1432_v40 = vpop.permute.xlu1 %1431  ;;  %4868 = vmatpush3.bf16.msra.mxu0 %v1783_v29  ;;  %v1315_v37 = vpack.c.bf16 %v1307_v46, %v1306_v9 }
 0x44d   : > { %v1787_v55 = vpop.permute.xlu0 %1786 }
 0x44f   : > { %v1436_v12 = vpop.permute.xlu1 %1435 }
 0x450   : > { %4832 = vmatmul.mubr.bf16.gmra.mrb[28].mxu1 %v1315_v37 }
 0x451   : > { %4851 = vmatprep.mubr.msk.bf16.mxu1 %vm996_vm0, %v1422_v6  ;;  %v1791_v44 = vpop.permute.xlu0 %1790 }
 0x453   : > { %v1785_v43 = vpop.permute.xlu1 %1784 }
 0x454   : > { %4869 = vmatprep.subr.bf16.mxu0 %v1785_v43 }
 0x455   : > { %4870 = vmatpush3.bf16.msra.mxu0 %v1785_v43  ;;  %v1795_v16 = vpop.permute.xlu0 %1794 }
 0x456   : > { %4871 = vmatprep.subr.bf16.mxu0 %v1787_v55 }
 0x457   : > { %v1789_v53 = vpop.permute.xlu1 %1788 }
 0x458   : > { %4852 = vmatmul.mubr.msk.bf16.vlgmr.msra.gmra.mrb[32].mxu1 %vm996_vm0, %v1424_v5 }
 0x459   : > { %4855 = vmatprep.mubr.msk.bf16.mxu1 %vm996_vm0, %v1426_v18  ;;  %4872 = vmatpush3.bf16.msra.mxu0 %v1787_v55  ;;  %v6728_v54 = vpop.permute.xlu0 %1919 }
 0x45a   : > { %4873 = vmatprep.subr.bf16.mxu0 %v1789_v53 }
 0x45b   : > { %v1793_v32 = vpop.permute.xlu1 %1792 }
 0x45d   : > { %4874 = vmatpush3.bf16.msra.mxu0 %v1789_v53 }
 0x45e   : > { %4875 = vmatprep.subr.bf16.mxu0 %v1791_v44 }
 0x45f   : > { %v1797_v6 = vpop.permute.xlu1 %1796 }
 0x460   : > { %4856 = vmatmul.mubr.msk.bf16.gmra.mrb[36].mxu1 %vm996_vm0, %v1428_v0 }
 0x461   : > { %4859 = vmatprep.mubr.msk.bf16.mxu1 %vm996_vm0, %v1430_v50  ;;  %4876 = vmatpush3.bf16.msra.mxu0 %v1791_v44 }
 0x462   : > { %4877 = vmatprep.subr.bf16.mxu0 %v1793_v32 }
 0x465   : > { %4878 = vmatpush3.bf16.msra.mxu0 %v1793_v32 }
 0x466   : > { %4879 = vmatprep.subr.bf16.mxu0 %v1795_v16 }
 0x468   : > { %4860 = vmatmul.mubr.msk.bf16.gmra.mrb[40].mxu1 %vm996_vm0, %v1432_v40 }
 0x469   : > { %4863 = vmatprep.mubr.msk.bf16.mxu1 %vm996_vm0, %v1434_v58  ;;  %4880 = vmatpush3.bf16.msra.mxu0 %v1795_v16 }
 0x46a   : > { %4881 = vmatprep.subr.bf16.mxu0 %v1797_v6 }
 0x46d   : > { %4882 = vmatpush3.bf16.msra.mxu0 %v1797_v6 }
 0x46e   : > { %5091 = vmatprep.subr.msk.bf16.mxu0 %vm996_vm0, %v6728_v54 }
 0x470   : > { %4864 = vmatmul.mubr.msk.bf16.gmra.mrb[44].mxu1 %vm996_vm0, %v1436_v12 }
 0x4d2   : > { %v6733_v18 = vpop.f32.mrb[16].mxu1 }
 0x4d3   : > { %8296 = vst [vmem:[#allocation20_spill] sm:$0xff] %v6733_v18  ;;  %v6735_v31 = vpop.f32.mrb[17].mxu1 }
 0x4d4   : > { %8297 = vst [vmem:[#allocation21_spill] sm:$0xff] %v6735_v31  ;;  %v6737_v39 = vpop.f32.mrb[18].mxu1 }
 0x4d5   : > { %8298 = vst [vmem:[#allocation22_spill] sm:$0xff] %v6737_v39  ;;  %v6739_v27 = vpop.f32.mrb[19].mxu1 }
 0x4d6   : > { %8299 = vst [vmem:[#allocation23_spill] sm:$0xff] %v6739_v27 }
 0x50b   : > { %v6741_v28 = vpop.f32.mrb[20].mxu1 }
 0x50c   : > { %8300 = vst [vmem:[#allocation24_spill] sm:$0xff] %v6741_v28  ;;  %v6743_v38 = vpop.f32.mrb[21].mxu1 }
 0x50d   : > { %8301 = vst [vmem:[#allocation25_spill] sm:$0xff] %v6743_v38  ;;  %v6745_v50 = vpop.f32.mrb[22].mxu1 }
 0x50e   : > { %8302 = vst [vmem:[#allocation26_spill] sm:$0xff] %v6745_v50  ;;  %v6747_v3 = vpop.f32.mrb[23].mxu1 }
 0x50f   : > { %8303 = vst [vmem:[#allocation27_spill] sm:$0xff] %v6747_v3 }
 0x51b   : > { %v6749_v42 = vpop.f32.mrb[24].mxu1 }
 0x51c   : > { %8304 = vst [vmem:[#allocation28_spill] sm:$0xff] %v6749_v42  ;;  %v6751_v5 = vpop.f32.mrb[25].mxu1 }
 0x51d   : > { %8305 = vst [vmem:[#allocation29_spill] sm:$0xff] %v6751_v5  ;;  %v6753_v45 = vpop.f32.mrb[26].mxu1 }
 0x51e   : > { %8306 = vst [vmem:[#allocation30_spill] sm:$0xff] %v6753_v45  ;;  %v6755_v15 = vpop.f32.mrb[27].mxu1 }
 0x51f   : > { %8307 = vst [vmem:[#allocation31_spill] sm:$0xff] %v6755_v15 }
 0x523   : > { %v6757_v41 = vpop.f32.mrb[28].mxu1 }
 0x524   : > { %8308 = vst [vmem:[#allocation32_spill] sm:$0xff] %v6757_v41  ;;  %v6759_v63 = vpop.f32.mrb[29].mxu1 }
 0x525   : > { %8309 = vst [vmem:[#allocation33_spill] sm:$0xff] %v6759_v63  ;;  %v6761_v58 = vpop.f32.mrb[30].mxu1 }
 0x526   : > { %8310 = vst [vmem:[#allocation34_spill] sm:$0xff] %v6761_v58  ;;  %v6763_v57 = vpop.f32.mrb[31].mxu1 }
 0x527   : > { %8311 = vst [vmem:[#allocation35_spill] sm:$0xff] %v6763_v57 }
 0x52b   : > { %v4853_v4 = vpop.f32.mrb[32].mxu1 }
 0x52c   : > { %v1543_v17 = vpop.f32.mrb[33].mxu1  ;;  %v1608_v20 = vsel %vm6505_vm2, %v4853_v4, -1e+09 }
 0x52d   : > { %1626 = vmax.xlane.f32.xlu0 %v1608_v20  ;;  %v4854_v0 = vpop.f32.mrb[34].mxu1  ;;  %v1606_v56 = vsel %vm6505_vm2, %v1543_v17, -1e+09 }
 0x52e   : > { %v1546_v10 = vpop.f32.mrb[35].mxu1  ;;  %v1609_v46 = vsel %vm6505_vm2, %v4854_v0, -1e+09 }
 0x52f   : > { %v1607_v19 = vsel %vm6505_vm2, %v1546_v10, -1e+09 }
 0x530   : > { %1624 = vmax.xlane.f32.xlu1 %v1607_v19 }
 0x531   : > { %1622 = vmax.xlane.f32.xlu0 %v1606_v56 }
 0x533   : > { %v4857_v29 = vpop.f32.mrb[36].mxu1 }
 0x534   : > { %v1559_v11 = vpop.f32.mrb[37].mxu1  ;;  %v6780_v12 = vsel %vm6505_vm2, %v4857_v29, -1e+09 }
 0x535   : > { %1628 = vmax.xlane.f32.xlu0 %v1609_v46  ;;  %v4858_v40 = vpop.f32.mrb[38].mxu1  ;;  %v6790_v44 = vsel %vm6505_vm2, %v1559_v11, -1e+09 }
 0x536   : > { %v1562_v9 = vpop.f32.mrb[39].mxu1  ;;  %v6775_v37 = vsel %vm6505_vm2, %v4858_v40, -1e+09 }
 0x537   : > { %1636 = vmax.xlane.f32.xlu1 %v6775_v37  ;;  %v6785_v43 = vsel %vm6505_vm2, %v1562_v9, -1e+09 }
 0x539   : > { %1634 = vmax.xlane.f32.xlu0 %v6780_v12 }
 0x53b   : > { %1632 = vmax.xlane.f32.xlu1 %v6785_v43  ;;  %v4861_v55 = vpop.f32.mrb[40].mxu1 }
 0x53c   : > { %v1575_v53 = vpop.f32.mrb[41].mxu1  ;;  %v6800_v4 = vsel %vm6505_vm2, %v4861_v55, -1e+09 }
 0x53d   : > { %1630 = vmax.xlane.f32.xlu0 %v6790_v44  ;;  %v4862_v32 = vpop.f32.mrb[42].mxu1  ;;  %v6810_v29 = vsel %vm6505_vm2, %v1575_v53, -1e+09 }
 0x53e   : > { %v1578_v16 = vpop.f32.mrb[43].mxu1  ;;  %v6795_v6 = vsel %vm6505_vm2, %v4862_v32, -1e+09 }
 0x53f   : > { %1644 = vmax.xlane.f32.xlu1 %v6795_v6  ;;  %v6805_v17 = vsel %vm6505_vm2, %v1578_v16, -1e+09  ;;  %v6837_v16 = vpop.permute.xlu1 %1921 }
 0x541   : > { %1642 = vmax.xlane.f32.xlu0 %v6800_v4 }
 0x543   : > { %1640 = vmax.xlane.f32.xlu1 %v6805_v17  ;;  %v4865_v0 = vpop.f32.mrb[44].mxu1 }
 0x544   : > { %v1591_v10 = vpop.f32.mrb[45].mxu1  ;;  %v6815_v9 = vsel %vm6505_vm2, %v4865_v0, -1e+09 }
 0x545   : > { %1638 = vmax.xlane.f32.xlu0 %v6810_v29  ;;  %v4866_v11 = vpop.f32.mrb[46].mxu1  ;;  %v6820_v55 = vsel %vm6505_vm2, %v1591_v10, -1e+09 }
 0x546   : > { %v1594_v40 = vpop.f32.mrb[47].mxu1  ;;  %v6829_v53 = vsel %vm6505_vm2, %v4866_v11, -1e+09 }
 0x547   : > { %v6834_v32 = vsel %vm6505_vm2, %v1594_v40, -1e+09 }
 0x549   : > { %1650 = vmax.xlane.f32.xlu0 %v6815_v9 }
 0x54d   : > { %1646 = vmax.xlane.f32.xlu0 %v6820_v55 }
 0x554   : > { %1925 = vrot.lane.b32.xlu1 %v6396_v61, %s5973_s23 }
 0x563   : > { %1923 = vrot.lane.b32.xlu0 %v6372_v35, %s5973_s23 }
 0x578   : > { %1652 = vmax.xlane.f32.xlu1 %v6829_v53 }
 0x57c   : > { %1648 = vmax.xlane.f32.xlu1 %v6834_v32 }
 0x5ba   : > { %v1627_v0 = vpop.xlane.xlu0 %1626 }
 0x5bb   : > { %v1656_v10 = vsub.f32 %v1608_v20, %v1627_v0 }
 0x5bd   : > { %v1674_v51 = vmul.f32 1.442695, %v1656_v10  ;;  %v1625_v63 = vpop.xlane.xlu1 %1624 }
 0x5be   : > { %v1655_v57 = vsub.f32 %v1607_v19, %v1625_v63  ;;  %v1623_v41 = vpop.xlane.xlu0 %1622 }
 0x5bf   : > { %5470 = vpow2.f32 %v1674_v51  ;;  %v1654_v58 = vsub.f32 %v1606_v56, %v1623_v41 }
 0x5c0   : > { %v1672_v11 = vmul.f32 1.442695, %v1655_v57 }
 0x5c1   : > { %v1670_v5 = vmul.f32 1.442695, %v1654_v58 }
 0x5c2   : > { %5472 = vpow2.f32 %v1672_v11  ;;  %v1629_v15 = vpop.xlane.xlu0 %1628 }
 0x5c3   : > { %5474 = vpow2.f32 %v1670_v5  ;;  %v1657_v42 = vsub.f32 %v1609_v46, %v1629_v15 }
 0x5c4   : > { %v1637_v15 = vpop.xlane.xlu1 %1636 }
 0x5c5   : > { %v1676_v40 = vmul.f32 1.442695, %v1657_v42  ;;  %v1661_v11 = vsub.f32 %v6775_v37, %v1637_v15 }
 0x5c6   : > { %v1635_v5 = vpop.xlane.xlu0 %1634 }
 0x5c7   : > { %5476 = vpow2.f32 %v1676_v40  ;;  %v1660_v63 = vsub.f32 %v6780_v12, %v1635_v5  ;;  %v1684_v50 = vmul.f32 1.442695, %v1661_v11 }
 0x5c8   : > { %v1633_v58 = vpop.xlane.xlu1 %1632 }
 0x5c9   : > { %v6839_v45 = vpop.eup %5470  ;;  %v1682_v19 = vmul.f32 1.442695, %v1660_v63  ;;  %v1659_v46 = vsub.f32 %v6785_v43, %v1633_v58 }
 0x5ca   : > { %1706 = vadd.xlane.f32.xlu1 %v6839_v45  ;;  %v1631_v42 = vpop.xlane.xlu0 %1630 }
 0x5cb   : > { %v1658_v56 = vsub.f32 %v6790_v44, %v1631_v42  ;;  %5478 = vpow2.f32 %v1682_v19  ;;  %v1680_v3 = vmul.f32 1.442695, %v1659_v46 }
 0x5cc   : > { %v6842_v38 = vpop.eup %5472  ;;  %v1645_v0 = vpop.xlane.xlu1 %1644 }
 0x5cd   : > { %v6844_v20 = vpop.eup %5474  ;;  %1704 = vadd.xlane.f32.xlu0 %v6842_v38  ;;  %v1678_v40 = vmul.f32 1.442695, %v1658_v56  ;;  %v1665_v37 = vsub.f32 %v6795_v6, %v1645_v0 }
 0x5ce   : > { %1702 = vadd.xlane.f32.xlu1 %v6844_v20  ;;  %v1643_v41 = vpop.xlane.xlu0 %1642 }
 0x5cf   : > { %v1664_v28 = vsub.f32 %v6800_v4, %v1643_v41  ;;  %5480 = vpow2.f32 %v1678_v40 }
 0x5d0   : > { %v1641_v18 = vpop.xlane.xlu1 %1640  ;;  %5482 = vpow2.f32 %v1680_v3 }
 0x5d1   : > { %v6848_v51 = vpop.eup %5476  ;;  %v1690_v5 = vmul.f32 1.442695, %v1664_v28  ;;  %5484 = vpow2.f32 %v1684_v50  ;;  %v1692_v28 = vmul.f32 1.442695, %v1665_v37 }
 0x5d2   : > { %1708 = vadd.xlane.f32.xlu1 %v6848_v51  ;;  %v1639_v57 = vpop.xlane.xlu0 %1638 }
 0x5d3   : > { %v1662_v44 = vsub.f32 %v6810_v29, %v1639_v57  ;;  %5486 = vpow2.f32 %v1690_v5  ;;  %v1663_v29 = vsub.f32 %v6805_v17, %v1641_v18 }
 0x5d4   : > { %v6866_v4 = vpop.permute.xlu1 %1925 }
 0x5d5   : > { %v1686_v15 = vmul.f32 1.442695, %v1662_v44  ;;  %v6864_v58 = vpop.eup %5478  ;;  %v1688_v41 = vmul.f32 1.442695, %v1663_v29 }
 0x5d6   : > { %v1651_v10 = vpop.xlane.xlu0 %1650 }
 0x5d7   : > { %v1668_v12 = vsub.f32 %v6815_v9, %v1651_v10 }
 0x5d9   : > { %v1698_v43 = vmul.f32 1.442695, %v1668_v12  ;;  %v6870_v50 = vpop.eup %5480 }
 0x5da   : > { %v1647_v42 = vpop.xlane.xlu0 %1646 }
 0x5db   : > { %v1666_v63 = vsub.f32 %v6820_v55, %v1647_v42  ;;  %5488 = vpow2.f32 %v1698_v43  ;;  %v6872_v55 = vpop.eup %5482 }
 0x5dc   : > { %5490 = vpow2.f32 %v1686_v15  ;;  %v6877_v19 = vpop.eup %5484 }
 0x5dd   : > { %v1694_v3 = vmul.f32 1.442695, %v1666_v63  ;;  %v6879_v18 = vpop.eup %5486 }
 0x5de   : > { %v1924_v5 = vpop.permute.xlu0 %1923 }
 0x5df   : > { %5492 = vpow2.f32 %v1694_v3 }
 0x5e0   : > { %5494 = vpow2.f32 %v1692_v28 }
 0x5e3   : > { %1929 = vrot.lane.b32.xlu1 %v6444_v49, %s5973_s23  ;;  %1927 = vrot.lane.b32.xlu0 %v6420_v24, %s5973_s23 }
 0x5e5   : > { %v6884_v46 = vpop.eup %5488 }
 0x5e6   : > { %v6886_v0 = vpop.eup %5490 }
 0x5e9   : > { %v6890_v10 = vpop.eup %5492 }
 0x5ea   : > { %v6892_v11 = vpop.eup %5494 }
 0x602   : > { %1714 = vadd.xlane.f32.xlu0 %v6864_v58 }
 0x605   : > { %v1653_v9 = vpop.xlane.xlu1 %1652 }
 0x606   : > { %v1669_v6 = vsub.f32 %v6829_v53, %v1653_v9  ;;  %1710 = vadd.xlane.f32.xlu0 %v6870_v50 }
 0x607   : > { %1712 = vadd.xlane.f32.xlu1 %v6872_v55 }
 0x608   : > { %v1700_v57 = vmul.f32 1.442695, %v1669_v6 }
 0x609   : > { %v1649_v56 = vpop.xlane.xlu1 %1648 }
 0x60a   : > { %5496 = vpow2.f32 %v1700_v57  ;;  %v1667_v17 = vsub.f32 %v6834_v32, %v1649_v56  ;;  %1716 = vadd.xlane.f32.xlu0 %v6877_v19  ;;  %v1960_v57 = vsel %vm996_vm0, %v6728_v54, 0 }
 0x60b   : > { %1722 = vadd.xlane.f32.xlu1 %v6879_v18  ;;  %5498 = vpow2.f32 %v1688_v41 }
 0x60c   : > { %v1696_v53 = vmul.f32 1.442695, %v1667_v17 }
 0x60e   : > { %1730 = vadd.xlane.f32.xlu0 %v6884_v46  ;;  %5500 = vpow2.f32 %v1696_v53 }
 0x60f   : > { %1718 = vadd.xlane.f32.xlu1 %v6886_v0 }
 0x612   : > { %1726 = vadd.xlane.f32.xlu0 %v6890_v10 }
 0x613   : > { %1724 = vadd.xlane.f32.xlu1 %v6892_v11 }
 0x614   : > { %v6896_v32 = vpop.eup %5496 }
 0x615   : > { %v6898_v40 = vpop.eup %5498 }
 0x616   : > { %1732 = vadd.xlane.f32.xlu0 %v6896_v32 }
 0x617   : > { %1720 = vadd.xlane.f32.xlu1 %v6898_v40 }
 0x618   : > { %v6902_v12 = vpop.eup %5500 }
 0x61b   : > { %1728 = vadd.xlane.f32.xlu1 %v6902_v12 }
 0x62c   : > { %1931 = vrot.lane.b32.xlu0 %v6462_v8, %s5973_s23  ;;  %1933 = vrot.lane.b32.xlu1 %v6474_v26, %s5973_s23 }
 0x630   : > { %1903 = vrot.lane.b32.xlu0 %v6331_v1, %s5973_s23  ;;  %1905 = vrot.lane.b32.xlu1 %v6348_v13, %s5973_s23 }
 0x634   : > { %1907 = vrot.lane.b32.xlu0 %v6368_v33, %s5973_s23  ;;  %1909 = vrot.lane.b32.xlu1 %v6391_v59, %s5973_s23 }
 0x638   : > { %1911 = vrot.lane.b32.xlu0 %v6415_v22, %s5973_s23  ;;  %1913 = vrot.lane.b32.xlu1 %v6439_v47, %s5973_s23 }
 0x63c   : > { %1915 = vrot.lane.b32.xlu0 %v6459_v7, %s5973_s23  ;;  %1917 = vrot.lane.b32.xlu1 %v6472_v21, %s5973_s23 }
 0x640   : > { %2248 = vrot.lane.b32.xlu0 %v6374_v36, %s5973_s23  ;;  %2250 = vrot.lane.b32.xlu1 %v6370_v34, %s5973_s23 }
 0x644   : > { %2252 = vrot.lane.b32.xlu0 %v6398_v62, %s5973_s23  ;;  %2254 = vrot.lane.b32.xlu1 %v6393_v60, %s5973_s23 }
 0x648   : > { %2256 = vrot.lane.b32.xlu0 %v6422_v25, %s5973_s23  ;;  %2258 = vrot.lane.b32.xlu1 %v6417_v23, %s5973_s23 }
 0x64c   : > { %2260 = vrot.lane.b32.xlu0 %v6446_v52, %s5973_s23  ;;  %2262 = vrot.lane.b32.xlu1 %v6441_v48, %s5973_s23 }
 0x650   : > { %2385 = vrot.lane.b32.xlu0 %v6333_v2, %s5974_s11  ;;  %2387 = vrot.lane.b32.xlu1 %v6350_v14, %s5974_s11 }
 0x657   : > { %v1707_v44 = vpop.xlane.xlu1 %1706 }
 0x65a   : > { %v1705_v42 = vpop.xlane.xlu0 %1704 }
 0x65b   : > { %5502 = vrcp.f32 %v1705_v42  ;;  %v1703_v43 = vpop.xlane.xlu1 %1702 }
 0x65c   : > { %5504 = vrcp.f32 %v1703_v43 }
 0x65d   : > { %5506 = vrcp.f32 %v1707_v44 }
 0x65e   : > { %v1928_v54 = vpop.permute.xlu0 %1927 }
 0x65f   : > { %v1709_v63 = vpop.xlane.xlu1 %1708  ;;  %v1972_v56 = vsel %vm996_vm0, %v1928_v54, 0 }
 0x660   : > { %5508 = vrcp.f32 %v1709_v63 }
 0x665   : > { %v5503_v37 = vpop.eup %5502 }
 0x666   : > { %v5505_v15 = vpop.eup %5504  ;;  %v1751_v3 = vmul.f32 %v5503_v37, %v6842_v38  ;;  %v1963_v38 = vsel %vm996_vm0, %v6837_v16, 0 }
 0x667   : > { %v1750_v28 = vmul.f32 %v5505_v15, %v6844_v20  ;;  %v5507_v29 = vpop.eup %5506  ;;  %v1969_v20 = vsel %vm996_vm0, %v6866_v4, 0 }
 0x668   : > { %v1752_v14 = vmul.f32 %v5507_v29, %v6839_v45  ;;  %v1966_v45 = vsel %vm996_vm0, %v1924_v5, 0 }
 0x669   : > { %v1766_v2 = vpack.c.bf16 %v1751_v3, %v1750_v28 }
 0x66a   : > { %v5509_v9 = vpop.eup %5508 }
 0x66b   : > { %v1753_v6 = vmul.f32 %v5509_v9, %v6848_v51  ;;  %4883 = vmatprep.mubr.bf16.mxu0 %v1766_v2 }
 0x66d   : > { %v1767_v41 = vpack.c.bf16 %v1753_v6, %v1752_v14 }
 0x66f   : > { %4884 = vmatmul.mubr.bf16.vlgmr.msra.gmra.mrb[48].mxu0 %v1767_v41 }
 0x670   : > { %4900 = vmatpush3.bf16.xpose.msra.mxu0 %v1960_v57 }
 0x671   : > { %5092 = vmatprep.subr.msk.bf16.mxu0 %vm996_vm0, %v6837_v16  ;;  %v1930_v16 = vpop.permute.xlu1 %1929 }
 0x672   : > { %v1975_v44 = vsel %vm996_vm0, %v1930_v16, 0 }
 0x678   : > { %4902 = vmatpush3.bf16.xpose.msra.mxu0 %v1963_v38 }
 0x679   : > { %5093 = vmatprep.subr.msk.bf16.mxu0 %vm996_vm0, %v1924_v5 }
 0x680   : > { %4904 = vmatpush3.bf16.xpose.msra.mxu0 %v1966_v45 }
 0x681   : > { %5094 = vmatprep.subr.msk.bf16.mxu0 %vm996_vm0, %v6866_v4 }
 0x688   : > { %4906 = vmatpush3.bf16.xpose.msra.mxu0 %v1969_v20 }
 0x689   : > { %5095 = vmatprep.subr.msk.bf16.mxu0 %vm996_vm0, %v1928_v54 }
 0x68f   : > { %v1715_v51 = vpop.xlane.xlu0 %1714 }
 0x690   : > { %4908 = vmatpush3.bf16.xpose.msra.mxu0 %v1972_v56 }
 0x691   : > { %5096 = vmatprep.subr.msk.bf16.mxu0 %vm996_vm0, %v1930_v16 }
 0x693   : > { %v1711_v17 = vpop.xlane.xlu0 %1710 }
 0x694   : > { %5510 = vrcp.f32 %v1711_v17  ;;  %v1713_v53 = vpop.xlane.xlu1 %1712 }
 0x695   : > { %5512 = vrcp.f32 %v1713_v53 }
 0x696   : > { %5514 = vrcp.f32 %v1715_v51 }
 0x697   : > { %v1717_v5 = vpop.xlane.xlu0 %1716 }
 0x698   : > { %5516 = vrcp.f32 %v1717_v5  ;;  %4910 = vmatpush3.bf16.xpose.msra.mxu0 %v1975_v44  ;;  %v1723_v4 = vpop.xlane.xlu1 %1722 }
 0x69b   : > { %v1731_v42 = vpop.xlane.xlu0 %1730 }
 0x69c   : > { %v1719_v43 = vpop.xlane.xlu1 %1718 }
 0x69e   : > { %v5511_v63 = vpop.eup %5510 }
 0x69f   : > { %v5513_v37 = vpop.eup %5512  ;;  %v1727_v15 = vpop.xlane.xlu0 %1726  ;;  %v1754_v3 = vmul.f32 %v5511_v63, %v6870_v50 }
 0x6a0   : > { %v5515_v28 = vpop.eup %5514  ;;  %v1725_v29 = vpop.xlane.xlu1 %1724  ;;  %v1755_v2 = vmul.f32 %v5513_v37, %v6872_v55 }
 0x6a1   : > { %5518 = vrcp.f32 %v1725_v29  ;;  %v1756_v41 = vmul.f32 %v5515_v28, %v6864_v58 }
 0x6a2   : > { %v5517_v9 = vpop.eup %5516  ;;  %v1768_v14 = vpack.c.bf16 %v1755_v2, %v1754_v3  ;;  %5520 = vrcp.f32 %v1719_v43 }
 0x6a3   : > { %v1733_v6 = vpop.xlane.xlu0 %1732  ;;  %v1757_v57 = vmul.f32 %v5517_v9, %v6877_v19  ;;  %5522 = vrcp.f32 %v1723_v4 }
 0x6a4   : > { %4887 = vmatprep.mubr.bf16.mxu0 %v1768_v14  ;;  %v1721_v38 = vpop.xlane.xlu1 %1720 }
 0x6a5   : > { %5524 = vrcp.f32 %v1721_v38  ;;  %v1769_v45 = vpack.c.bf16 %v1757_v57, %v1756_v41 }
 0x6a6   : > { %5526 = vrcp.f32 %v1727_v15 }
 0x6a7   : > { %v1932_v50 = vpop.permute.xlu0 %1931  ;;  %4888 = vmatmul.mubr.bf16.gmra.mrb[52].mxu0 %v1769_v45 }
 0x6a8   : > { %5097 = vmatprep.subr.msk.bf16.mxu0 %vm996_vm0, %v1932_v50  ;;  %v1729_v55 = vpop.xlane.xlu1 %1728  ;;  %v1978_v20 = vsel %vm996_vm0, %v1932_v50, 0 }
 0x6a9   : > { %5528 = vrcp.f32 %v1729_v55  ;;  %4912 = vmatpush3.bf16.xpose.msra.mxu0 %v1978_v20 }
 0x6aa   : > { %5530 = vrcp.f32 %v1733_v6 }
 0x6ab   : > { %v1904_v54 = vpop.permute.xlu0 %1903  ;;  %v5519_v58 = vpop.eup %5518  ;;  %5532 = vrcp.f32 %v1731_v42 }
 0x6ac   : > { %v1934_v19 = vpop.permute.xlu1 %1933  ;;  %v5521_v51 = vpop.eup %5520  ;;  %v1761_v53 = vmul.f32 %v5519_v58, %v6892_v11 }
 0x6ad   : > { %5098 = vmatprep.subr.msk.bf16.mxu0 %vm996_vm0, %v1934_v19  ;;  %v5523_v56 = vpop.eup %5522  ;;  %v1981_v44 = vsel %vm996_vm0, %v1934_v19, 0  ;;  %v1758_v4 = vmul.f32 %v5521_v51, %v6886_v0 }
 0x6ae   : > { %v1760_v42 = vmul.f32 %v5523_v56, %v6879_v18 }
 0x6af   : > { %v5525_v16 = vpop.eup %5524  ;;  %v1908_v17 = vpop.permute.xlu0 %1907 }
 0x6b0   : > { %v1906_v5 = vpop.permute.xlu1 %1905  ;;  %v1759_v43 = vmul.f32 %v5525_v16, %v6898_v40  ;;  %v5527_v63 = vpop.eup %5526  ;;  %v1771_v28 = vpack.c.bf16 %v1761_v53, %v1760_v42 }
 0x6b1   : > { %4914 = vmatpush3.bf16.xpose.msra.mxu0 %v1981_v44  ;;  %v1762_v11 = vmul.f32 %v5527_v63, %v6890_v10 }
 0x6b2   : > { %v1770_v37 = vpack.c.bf16 %v1759_v43, %v1758_v4 }
 0x6b3   : > { %v5529_v15 = vpop.eup %5528  ;;  %v1912_v3 = vpop.permute.xlu0 %1911 }
 0x6b4   : > { %v5531_v29 = vpop.eup %5530  ;;  %4891 = vmatprep.mubr.bf16.mxu0 %v1770_v37  ;;  %v1910_v2 = vpop.permute.xlu1 %1909  ;;  %v1763_v9 = vmul.f32 %v5529_v15, %v6902_v12 }
 0x6b5   : > { %4892 = vmatmul.mubr.bf16.gmra.mrb[56].mxu0 %v1771_v28  ;;  %v5533_v14 = vpop.eup %5532  ;;  %v1765_v40 = vmul.f32 %v5531_v29, %v6896_v32 }
 0x6b6   : > { %v1772_v0 = vpack.c.bf16 %v1763_v9, %v1762_v11  ;;  %v1764_v18 = vmul.f32 %v5533_v14, %v6884_v46 }
 0x6b7   : > { %v1916_v6 = vpop.permute.xlu0 %1915 }
 0x6b8   : > { %4895 = vmatprep.mubr.bf16.mxu0 %v1772_v0  ;;  %v1914_v41 = vpop.permute.xlu1 %1913  ;;  %v1773_v38 = vpack.c.bf16 %v1765_v40, %v1764_v18 }
 0x6bb   : > { %v2249_v57 = vpop.permute.xlu0 %2248 }
 0x6bc   : > { %4931 = vmatprep.subr.bf16.mxu1 %v2249_v57  ;;  %v1918_v45 = vpop.permute.xlu1 %1917 }
 0x6bd   : > { %4896 = vmatmul.mubr.bf16.gmra.mrb[60].mxu0 %v1773_v38  ;;  %4932 = vmatpush3.bf16.msra.mxu1 %v2249_v57 }
 0x6be   : > { %4915 = vmatprep.mubr.msk.bf16.mxu0 %vm996_vm0, %v1904_v54 }
 0x6bf   : > { %v2253_v12 = vpop.permute.xlu0 %2252 }
 0x6c0   : > { %v2251_v10 = vpop.permute.xlu1 %2250 }
 0x6c1   : > { %4933 = vmatprep.subr.bf16.mxu1 %v2251_v10 }
 0x6c2   : > { %4934 = vmatpush3.bf16.msra.mxu1 %v2251_v10 }
 0x6c3   : > { %4935 = vmatprep.subr.bf16.mxu1 %v2253_v12  ;;  %v2257_v46 = vpop.permute.xlu0 %2256 }
 0x6c4   : > { %v2255_v32 = vpop.permute.xlu1 %2254 }
 0x6c5   : > { %4916 = vmatmul.mubr.msk.bf16.vlgmr.msra.gmra.mrb[64].mxu0 %vm996_vm0, %v1906_v5 }
 0x6c6   : > { %4919 = vmatprep.mubr.msk.bf16.mxu0 %vm996_vm0, %v1908_v17  ;;  %4936 = vmatpush3.bf16.msra.mxu1 %v2253_v12 }
 0x6c7   : > { %4937 = vmatprep.subr.bf16.mxu1 %v2255_v32  ;;  %v2261_v55 = vpop.permute.xlu0 %2260 }
 0x6c8   : > { %v2259_v50 = vpop.permute.xlu1 %2258 }
 0x6ca   : > { %4938 = vmatpush3.bf16.msra.mxu1 %v2255_v32 }
 0x6cb   : > { %4939 = vmatprep.subr.bf16.mxu1 %v2257_v46  ;;  %v6988_v54 = vpop.permute.xlu0 %2385 }
 0x6cc   : > { %v2263_v20 = vpop.permute.xlu1 %2262 }
 0x6cd   : > { %4920 = vmatmul.mubr.msk.bf16.gmra.mrb[68].mxu0 %vm996_vm0, %v1910_v2 }
 0x6ce   : > { %4923 = vmatprep.mubr.msk.bf16.mxu0 %vm996_vm0, %v1912_v3  ;;  %4940 = vmatpush3.bf16.msra.mxu1 %v2257_v46 }
 0x6cf   : > { %4941 = vmatprep.subr.bf16.mxu1 %v2259_v50 }
 0x6d2   : > { %4942 = vmatpush3.bf16.msra.mxu1 %v2259_v50 }
 0x6d3   : > { %4943 = vmatprep.subr.bf16.mxu1 %v2261_v55 }
 0x6d5   : > { %4924 = vmatmul.mubr.msk.bf16.gmra.mrb[72].mxu0 %vm996_vm0, %v1914_v41 }
 0x6d6   : > { %4927 = vmatprep.mubr.msk.bf16.mxu0 %vm996_vm0, %v1916_v6  ;;  %4944 = vmatpush3.bf16.msra.mxu1 %v2261_v55 }
 0x6d7   : > { %4945 = vmatprep.subr.bf16.mxu1 %v2263_v20 }
 0x6da   : > { %4946 = vmatpush3.bf16.msra.mxu1 %v2263_v20 }
 0x6db   : > { %5099 = vmatprep.subr.msk.bf16.mxu1 %vm996_vm0, %v6988_v54 }
 0x6dd   : > { %4928 = vmatmul.mubr.msk.bf16.gmra.mrb[76].mxu0 %vm996_vm0, %v1918_v45 }
 0x742   : > { %v6993_v58 = vpop.f32.mrb[48].mxu0 }
 0x743   : > { %v6995_v19 = vpop.f32.mrb[49].mxu0 }
 0x744   : > { %v6997_v51 = vpop.f32.mrb[50].mxu0 }
 0x745   : > { %v7001_v16 = vpop.f32.mrb[51].mxu0 }
 0x77a   : > { %v7005_v53 = vpop.f32.mrb[52].mxu0 }
 0x77b   : > { %v7007_v5 = vpop.f32.mrb[53].mxu0 }
 0x77c   : > { %v7009_v44 = vpop.f32.mrb[54].mxu0 }
 0x77d   : > { %v7013_v43 = vpop.f32.mrb[55].mxu0 }
 0x788   : > { %v7017_v42 = vpop.f32.mrb[56].mxu0 }
 0x789   : > { %8312 = vst [vmem:[#allocation36_spill] sm:$0xff] %v7017_v42  ;;  %v7019_v37 = vpop.f32.mrb[57].mxu0 }
 0x78a   : > { %8313 = vst [vmem:[#allocation37_spill] sm:$0xff] %v7019_v37  ;;  %v7021_v15 = vpop.f32.mrb[58].mxu0 }
 0x78b   : > { %v7025_v28 = vpop.f32.mrb[59].mxu0 }
 0x78c   : > { %8314 = vst [vmem:[#allocation38_spill] sm:$0xff] %v7025_v28 }
 0x790   : > { %v7029_v2 = vpop.f32.mrb[60].mxu0 }
 0x791   : > { %8315 = vst [vmem:[#allocation39_spill] sm:$0xff] %v7029_v2  ;;  %v7031_v11 = vpop.f32.mrb[61].mxu0 }
 0x792   : > { %8316 = vst [vmem:[#allocation40_spill] sm:$0xff] %v7031_v11  ;;  %v7033_v9 = vpop.f32.mrb[62].mxu0 }
 0x793   : > { %8317 = vst [vmem:[#allocation41_spill] sm:$0xff] %v7033_v9  ;;  %v7037_v0 = vpop.f32.mrb[63].mxu0 }
 0x794   : > { %8318 = vst [vmem:[#allocation42_spill] sm:$0xff] %v7037_v0 }
 0x798   : > { %v4917_v40 = vpop.f32.mrb[64].mxu0 }
 0x799   : > { %v2082_v41 = vsel %vm6505_vm2, %v4917_v40, -1e+09  ;;  %v2017_v18 = vpop.f32.mrb[65].mxu0 }
 0x79a   : > { %2100 = vmax.xlane.f32.xlu0 %v2082_v41  ;;  %v4918_v57 = vpop.f32.mrb[66].mxu0  ;;  %v2080_v10 = vsel %vm6505_vm2, %v2017_v18, -1e+09 }
 0x79b   : > { %v2020_v38 = vpop.f32.mrb[67].mxu0  ;;  %v2083_v32 = vsel %vm6505_vm2, %v4918_v57, -1e+09 }
 0x79c   : > { %v2081_v45 = vsel %vm6505_vm2, %v2020_v38, -1e+09 }
 0x79d   : > { %2098 = vmax.xlane.f32.xlu1 %v2081_v45 }
 0x79e   : > { %2096 = vmax.xlane.f32.xlu0 %v2080_v10 }
 0x7a0   : > { %v4921_v12 = vpop.f32.mrb[68].mxu0 }
 0x7a1   : > { %v2033_v46 = vpop.f32.mrb[69].mxu0  ;;  %v7056_v40 = vsel %vm6505_vm2, %v4921_v12, -1e+09 }
 0x7a2   : > { %2102 = vmax.xlane.f32.xlu0 %v2083_v32  ;;  %v4922_v50 = vpop.f32.mrb[70].mxu0  ;;  %v7066_v38 = vsel %vm6505_vm2, %v2033_v46, -1e+09 }
 0x7a3   : > { %v7051_v55 = vsel %vm6505_vm2, %v4922_v50, -1e+09  ;;  %v2036_v20 = vpop.f32.mrb[71].mxu0 }
 0x7a4   : > { %2110 = vmax.xlane.f32.xlu1 %v7051_v55  ;;  %v7061_v18 = vsel %vm6505_vm2, %v2036_v20, -1e+09 }
 0x7a6   : > { %2108 = vmax.xlane.f32.xlu0 %v7056_v40 }
 0x7a8   : > { %2106 = vmax.xlane.f32.xlu1 %v7061_v18  ;;  %v4925_v57 = vpop.f32.mrb[72].mxu0 }
 0x7a9   : > { %v2049_v50 = vpop.f32.mrb[73].mxu0  ;;  %v7076_v20 = vsel %vm6505_vm2, %v4925_v57, -1e+09 }
 0x7aa   : > { %2104 = vmax.xlane.f32.xlu0 %v7066_v38  ;;  %v4926_v6 = vpop.f32.mrb[74].mxu0 }
 0x7ab   : > { %v7071_v12 = vsel %vm6505_vm2, %v4926_v6, -1e+09  ;;  %v2052_v14 = vpop.f32.mrb[75].mxu0  ;;  %v7086_v6 = vsel %vm6505_vm2, %v2049_v50, -1e+09 }
 0x7ac   : > { %2118 = vmax.xlane.f32.xlu1 %v7071_v12  ;;  %v7081_v46 = vsel %vm6505_vm2, %v2052_v14, -1e+09 }
 0x7ae   : > { %2116 = vmax.xlane.f32.xlu0 %v7076_v20 }
 0x7b0   : > { %2114 = vmax.xlane.f32.xlu1 %v7081_v46  ;;  %v4929_v29 = vpop.f32.mrb[76].mxu0 }
 0x7b1   : > { %v2065_v3 = vpop.f32.mrb[77].mxu0  ;;  %v7091_v57 = vsel %vm6505_vm2, %v4929_v29, -1e+09 }
 0x7b2   : > { %2112 = vmax.xlane.f32.xlu0 %v7086_v6  ;;  %v4930_v63 = vpop.f32.mrb[78].mxu0  ;;  %v7096_v14 = vsel %vm6505_vm2, %v2065_v3, -1e+09  ;;  %v7113_v3 = vpop.permute.xlu1 %2387 }
 0x7b3   : > { %v2068_v4 = vpop.f32.mrb[79].mxu0  ;;  %v7105_v50 = vsel %vm6505_vm2, %v4930_v63, -1e+09 }
 0x7b4   : > { %v7110_v29 = vsel %vm6505_vm2, %v2068_v4, -1e+09 }
 0x7b6   : > { %2124 = vmax.xlane.f32.xlu0 %v7091_v57 }
 0x7ba   : > { %2120 = vmax.xlane.f32.xlu0 %v7096_v14 }
 0x7c1   : > { %2391 = vrot.lane.b32.xlu1 %v6396_v61, %s5974_s11 }
 0x7d0   : > { %2389 = vrot.lane.b32.xlu0 %v6372_v35, %s5974_s11 }
 0x7e5   : > { %2126 = vmax.xlane.f32.xlu1 %v7105_v50 }
 0x7e9   : > { %2122 = vmax.xlane.f32.xlu1 %v7110_v29 }
 0x827   : > { %v2101_v17 = vpop.xlane.xlu0 %2100 }
 0x828   : > { %v2130_v56 = vsub.f32 %v2082_v41, %v2101_v17 }
 0x82a   : > { %v2148_v61 = vmul.f32 1.442695, %v2130_v56  ;;  %v2099_v39 = vpop.xlane.xlu1 %2098 }
 0x82b   : > { %v2129_v31 = vsub.f32 %v2081_v45, %v2099_v39  ;;  %v2097_v35 = vpop.xlane.xlu0 %2096 }
 0x82c   : > { %5534 = vpow2.f32 %v2148_v61  ;;  %v2128_v27 = vsub.f32 %v2080_v10, %v2097_v35 }
 0x82d   : > { %v2146_v63 = vmul.f32 1.442695, %v2129_v31 }
 0x82e   : > { %v2144_v11 = vmul.f32 1.442695, %v2128_v27 }
 0x82f   : > { %5536 = vpow2.f32 %v2146_v63  ;;  %v2103_v0 = vpop.xlane.xlu0 %2102 }
 0x830   : > { %5538 = vpow2.f32 %v2144_v11  ;;  %v2131_v2 = vsub.f32 %v2083_v32, %v2103_v0 }
 0x831   : > { %v2111_v17 = vpop.xlane.xlu1 %2110 }
 0x832   : > { %v2150_v4 = vmul.f32 1.442695, %v2131_v2  ;;  %v2135_v63 = vsub.f32 %v7051_v55, %v2111_v17 }
 0x833   : > { %v2109_v39 = vpop.xlane.xlu0 %2108 }
 0x834   : > { %5540 = vpow2.f32 %v2150_v4  ;;  %v2134_v11 = vsub.f32 %v7056_v40, %v2109_v39  ;;  %v2158_v28 = vmul.f32 1.442695, %v2135_v63 }
 0x835   : > { %v2107_v0 = vpop.xlane.xlu1 %2106 }
 0x836   : > { %v7115_v9 = vpop.eup %5534  ;;  %v2156_v45 = vmul.f32 1.442695, %v2134_v11  ;;  %v2133_v32 = vsub.f32 %v7061_v18, %v2107_v0 }
 0x837   : > { %2180 = vadd.xlane.f32.xlu1 %v7115_v9  ;;  %v2105_v27 = vpop.xlane.xlu0 %2104 }
 0x838   : > { %v2132_v10 = vsub.f32 %v7066_v38, %v2105_v27  ;;  %5542 = vpow2.f32 %v2156_v45  ;;  %v2154_v4 = vmul.f32 1.442695, %v2133_v32 }
 0x839   : > { %v7118_v37 = vpop.eup %5536  ;;  %v2119_v61 = vpop.xlane.xlu1 %2118 }
 0x83a   : > { %v7120_v56 = vpop.eup %5538  ;;  %2178 = vadd.xlane.f32.xlu0 %v7118_v37  ;;  %v2139_v55 = vsub.f32 %v7071_v12, %v2119_v61 }
 0x83b   : > { %2176 = vadd.xlane.f32.xlu1 %v7120_v56  ;;  %v2117_v2 = vpop.xlane.xlu0 %2116 }
 0x83d   : > { %v2115_v42 = vpop.xlane.xlu1 %2114 }
 0x83e   : > { %v7124_v31 = vpop.eup %5540 }
 0x83f   : > { %2182 = vadd.xlane.f32.xlu1 %v7124_v31  ;;  %v2113_v41 = vpop.xlane.xlu0 %2112 }
 0x840   : > { %v2136_v38 = vsub.f32 %v7086_v6, %v2113_v41  ;;  %v2137_v6 = vsub.f32 %v7081_v46, %v2115_v42 }
 0x842   : > { %v2160_v17 = vmul.f32 1.442695, %v2136_v38  ;;  %v7140_v0 = vpop.eup %5542  ;;  %v2162_v45 = vmul.f32 1.442695, %v2137_v6  ;;  %v2426_v38 = vsel %vm996_vm0, %v6988_v54, 0 }
 0x843   : > { %v2125_v35 = vpop.xlane.xlu0 %2124 }
 0x844   : > { %v2142_v40 = vsub.f32 %v7091_v57, %v2125_v35 }
 0x846   : > { %v2172_v18 = vmul.f32 1.442695, %v2142_v40 }
 0x847   : > { %v2121_v27 = vpop.xlane.xlu0 %2120 }
 0x848   : > { %v2140_v11 = vsub.f32 %v7096_v14, %v2121_v27 }
 0x84a   : > { %v2168_v57 = vmul.f32 1.442695, %v2140_v11 }
 0x850   : > { %2395 = vrot.lane.b32.xlu1 %v6444_v49, %s5974_s11  ;;  %2393 = vrot.lane.b32.xlu0 %v6420_v24, %s5974_s11  ;;  %v2152_v49 = vmul.f32 1.442695, %v2132_v10  ;;  %v2138_v24 = vsub.f32 %v7076_v20, %v2117_v2  ;;  %v7142_v20 = vpop.permute.xlu1 %2391  ;;  %v2166_v2 = vmul.f32 1.442695, %v2139_v55 }
 0x852   : > { %5544 = vpow2.f32 %v2152_v49  ;;  %v2164_v39 = vmul.f32 1.442695, %v2138_v24 }
 0x853   : > { %5546 = vpow2.f32 %v2154_v4 }
 0x854   : > { %5548 = vpow2.f32 %v2158_v28 }
 0x855   : > { %5550 = vpow2.f32 %v2164_v39 }
 0x856   : > { %5552 = vpow2.f32 %v2172_v18 }
 0x857   : > { %5554 = vpow2.f32 %v2160_v17 }
 0x858   : > { %5556 = vpow2.f32 %v2168_v57 }
 0x859   : > { %5558 = vpow2.f32 %v2166_v2 }
 0x85c   : > { %v7146_v28 = vpop.eup %5544 }
 0x85d   : > { %v7148_v14 = vpop.eup %5546 }
 0x85e   : > { %v7153_v32 = vpop.eup %5548 }
 0x85f   : > { %v7155_v42 = vpop.eup %5550 }
 0x860   : > { %v7160_v35 = vpop.eup %5552 }
 0x861   : > { %v7162_v63 = vpop.eup %5554 }
 0x862   : > { %v7166_v49 = vpop.eup %5556 }
 0x863   : > { %v7168_v4 = vpop.eup %5558 }
 0x86f   : > { %2188 = vadd.xlane.f32.xlu0 %v7140_v0 }
 0x872   : > { %v2127_v41 = vpop.xlane.xlu1 %2126 }
 0x873   : > { %v2143_v12 = vsub.f32 %v7105_v50, %v2127_v41  ;;  %2184 = vadd.xlane.f32.xlu0 %v7146_v28 }
 0x874   : > { %2186 = vadd.xlane.f32.xlu1 %v7148_v14 }
 0x875   : > { %v2174_v10 = vmul.f32 1.442695, %v2143_v12 }
 0x876   : > { %v2123_v61 = vpop.xlane.xlu1 %2122 }
 0x877   : > { %5560 = vpow2.f32 %v2174_v10  ;;  %v2141_v46 = vsub.f32 %v7110_v29, %v2123_v61  ;;  %2190 = vadd.xlane.f32.xlu0 %v7153_v32 }
 0x878   : > { %2196 = vadd.xlane.f32.xlu1 %v7155_v42  ;;  %5562 = vpow2.f32 %v2162_v45 }
 0x879   : > { %v2170_v50 = vmul.f32 1.442695, %v2141_v46 }
 0x87b   : > { %2204 = vadd.xlane.f32.xlu0 %v7160_v35  ;;  %5564 = vpow2.f32 %v2170_v50 }
 0x87c   : > { %2192 = vadd.xlane.f32.xlu1 %v7162_v63 }
 0x87f   : > { %2200 = vadd.xlane.f32.xlu0 %v7166_v49 }
 0x880   : > { %2198 = vadd.xlane.f32.xlu1 %v7168_v4 }
 0x881   : > { %v7172_v29 = vpop.eup %5560 }
 0x882   : > { %v7174_v24 = vpop.eup %5562 }
 0x883   : > { %2206 = vadd.xlane.f32.xlu0 %v7172_v29 }
 0x884   : > { %2194 = vadd.xlane.f32.xlu1 %v7174_v24 }
 0x885   : > { %v7178_v40 = vpop.eup %5564 }
 0x888   : > { %2202 = vadd.xlane.f32.xlu1 %v7178_v40 }
 0x899   : > { %2397 = vrot.lane.b32.xlu0 %v6462_v8, %s5974_s11  ;;  %2399 = vrot.lane.b32.xlu1 %v6474_v26, %s5974_s11 }
 0x89d   : > { %2369 = vrot.lane.b32.xlu0 %v6331_v1, %s5974_s11  ;;  %2371 = vrot.lane.b32.xlu1 %v6348_v13, %s5974_s11  ;;  %v2390_v1 = vpop.permute.xlu0 %2389 }
 0x8a1   : > { %2373 = vrot.lane.b32.xlu0 %v6368_v33, %s5974_s11  ;;  %2375 = vrot.lane.b32.xlu1 %v6391_v59, %s5974_s11 }
 0x8a5   : > { %2377 = vrot.lane.b32.xlu0 %v6415_v22, %s5974_s11  ;;  %2379 = vrot.lane.b32.xlu1 %v6439_v47, %s5974_s11 }
 0x8a9   : > { %2381 = vrot.lane.b32.xlu0 %v6459_v7, %s5974_s11  ;;  %2383 = vrot.lane.b32.xlu1 %v6472_v21, %s5974_s11 }
 0x8ad   : > { %2714 = vrot.lane.b32.xlu0 %v6374_v36, %s5974_s11  ;;  %2716 = vrot.lane.b32.xlu1 %v6370_v34, %s5974_s11 }
 0x8b1   : > { %2718 = vrot.lane.b32.xlu0 %v6398_v62, %s5974_s11 }
 0x8b5   : > { %2720 = vrot.lane.b32.xlu0 %v6393_v60, %s5974_s11 }
 0x8c4   : > { %v2181_v13 = vpop.xlane.xlu1 %2180 }
 0x8c7   : > { %v2179_v33 = vpop.xlane.xlu0 %2178 }
 0x8c8   : > { %5566 = vrcp.f32 %v2179_v33  ;;  %v2177_v59 = vpop.xlane.xlu1 %2176 }
 0x8c9   : > { %5568 = vrcp.f32 %v2177_v59 }
 0x8ca   : > { %5570 = vrcp.f32 %v2181_v13 }
 0x8cb   : > { %v2394_v54 = vpop.permute.xlu0 %2393 }
 0x8cc   : > { %v2183_v22 = vpop.xlane.xlu1 %2182  ;;  %v2438_v27 = vsel %vm996_vm0, %v2394_v54, 0 }
 0x8cd   : > { %5572 = vrcp.f32 %v2183_v22 }
 0x8d2   : > { %v5567_v47 = vpop.eup %5566 }
 0x8d3   : > { %v5569_v36 = vpop.eup %5568  ;;  %v2225_v7 = vmul.f32 %v5567_v47, %v7118_v37  ;;  %v2429_v37 = vsel %vm996_vm0, %v7113_v3, 0 }
 0x8d4   : > { %v2224_v34 = vmul.f32 %v5569_v36, %v7120_v56  ;;  %v5571_v8 = vpop.eup %5570  ;;  %v2435_v56 = vsel %vm996_vm0, %v7142_v20, 0 }
 0x8d5   : > { %v2226_v60 = vmul.f32 %v5571_v8, %v7115_v9  ;;  %v2432_v9 = vsel %vm996_vm0, %v2390_v1, 0 }
 0x8d6   : > { %v2240_v62 = vpack.c.bf16 %v2225_v7, %v2224_v34 }
 0x8d7   : > { %v5573_v21 = vpop.eup %5572 }
 0x8d8   : > { %v2227_v26 = vmul.f32 %v5573_v21, %v7124_v31  ;;  %4947 = vmatprep.mubr.bf16.mxu1 %v2240_v62 }
 0x8da   : > { %v2241_v39 = vpack.c.bf16 %v2227_v26, %v2226_v60 }
 0x8dc   : > { %4948 = vmatmul.mubr.bf16.vlgmr.msra.gmra.mrb[48].mxu1 %v2241_v39 }
 0x8dd   : > { %4964 = vmatpush3.bf16.xpose.msra.mxu1 %v2426_v38 }
 0x8de   : > { %5100 = vmatprep.subr.msk.bf16.mxu1 %vm996_vm0, %v7113_v3  ;;  %v2396_v3 = vpop.permute.xlu1 %2395 }
 0x8df   : > { %v2441_v17 = vsel %vm996_vm0, %v2396_v3, 0 }
 0x8e5   : > { %4966 = vmatpush3.bf16.xpose.msra.mxu1 %v2429_v37 }
 0x8e6   : > { %5101 = vmatprep.subr.msk.bf16.mxu1 %vm996_vm0, %v2390_v1 }
 0x8ed   : > { %4968 = vmatpush3.bf16.xpose.msra.mxu1 %v2432_v9 }
 0x8ee   : > { %5102 = vmatprep.subr.msk.bf16.mxu1 %vm996_vm0, %v7142_v20 }
 0x8f5   : > { %4970 = vmatpush3.bf16.xpose.msra.mxu1 %v2435_v56 }
 0x8f6   : > { %5103 = vmatprep.subr.msk.bf16.mxu1 %vm996_vm0, %v2394_v54 }
 0x8fc   : > { %v2189_v31 = vpop.xlane.xlu0 %2188 }
 0x8fd   : > { %4972 = vmatpush3.bf16.xpose.msra.mxu1 %v2438_v27 }
 0x8fe   : > { %5104 = vmatprep.subr.msk.bf16.mxu1 %vm996_vm0, %v2396_v3 }
 0x900   : > { %v2185_v18 = vpop.xlane.xlu0 %2184 }
 0x901   : > { %5574 = vrcp.f32 %v2185_v18  ;;  %v2187_v11 = vpop.xlane.xlu1 %2186 }
 0x902   : > { %5576 = vrcp.f32 %v2187_v11 }
 0x903   : > { %5578 = vrcp.f32 %v2189_v31 }
 0x904   : > { %v2191_v55 = vpop.xlane.xlu0 %2190 }
 0x905   : > { %5580 = vrcp.f32 %v2191_v55  ;;  %4974 = vmatpush3.bf16.xpose.msra.mxu1 %v2441_v17  ;;  %v2197_v20 = vpop.xlane.xlu1 %2196 }
 0x908   : > { %v2205_v57 = vpop.xlane.xlu0 %2204 }
 0x909   : > { %v2193_v2 = vpop.xlane.xlu1 %2192 }
 0x90b   : > { %v5575_v6 = vpop.eup %5574 }
 0x90c   : > { %v5577_v41 = vpop.eup %5576  ;;  %v2201_v12 = vpop.xlane.xlu0 %2200  ;;  %v2228_v45 = vmul.f32 %v5575_v6, %v7146_v28 }
 0x90d   : > { %v5579_v10 = vpop.eup %5578  ;;  %v2199_v61 = vpop.xlane.xlu1 %2198  ;;  %v2229_v46 = vmul.f32 %v5577_v41, %v7148_v14 }
 0x90e   : > { %5582 = vrcp.f32 %v2199_v61  ;;  %v2230_v33 = vmul.f32 %v5579_v10, %v7140_v0 }
 0x90f   : > { %v5581_v50 = vpop.eup %5580  ;;  %v2242_v1 = vpack.c.bf16 %v2229_v46, %v2228_v45  ;;  %5584 = vrcp.f32 %v2193_v2 }
 0x910   : > { %v2207_v13 = vpop.xlane.xlu0 %2206  ;;  %v2231_v59 = vmul.f32 %v5581_v50, %v7153_v32  ;;  %5586 = vrcp.f32 %v2197_v20 }
 0x911   : > { %4951 = vmatprep.mubr.bf16.mxu1 %v2242_v1  ;;  %v2195_v22 = vpop.xlane.xlu1 %2194 }
 0x912   : > { %5588 = vrcp.f32 %v2195_v22  ;;  %v2243_v47 = vpack.c.bf16 %v2231_v59, %v2230_v33 }
 0x913   : > { %5590 = vrcp.f32 %v2201_v12 }
 0x914   : > { %v2398_v28 = vpop.permute.xlu0 %2397  ;;  %4952 = vmatmul.mubr.bf16.gmra.mrb[52].mxu1 %v2243_v47 }
 0x915   : > { %5105 = vmatprep.subr.msk.bf16.mxu1 %vm996_vm0, %v2398_v28  ;;  %v2203_v14 = vpop.xlane.xlu1 %2202  ;;  %v2444_v36 = vsel %vm996_vm0, %v2398_v28, 0 }
 0x916   : > { %5592 = vrcp.f32 %v2203_v14  ;;  %4976 = vmatpush3.bf16.xpose.msra.mxu1 %v2444_v36 }
 0x917   : > { %5594 = vrcp.f32 %v2207_v13 }
 0x918   : > { %v2370_v7 = vpop.permute.xlu0 %2369  ;;  %v5583_v0 = vpop.eup %5582  ;;  %5596 = vrcp.f32 %v2205_v57 }
 0x919   : > { %v2400_v32 = vpop.permute.xlu1 %2399  ;;  %v5585_v34 = vpop.eup %5584  ;;  %v2235_v60 = vmul.f32 %v5583_v0, %v7168_v4 }
 0x91a   : > { %5106 = vmatprep.subr.msk.bf16.mxu1 %vm996_vm0, %v2400_v32  ;;  %v5587_v8 = vpop.eup %5586  ;;  %v2447_v39 = vsel %vm996_vm0, %v2400_v32, 0  ;;  %v2232_v38 = vmul.f32 %v5585_v34, %v7162_v63 }
 0x91b   : > { %v2234_v56 = vmul.f32 %v5587_v8, %v7155_v42 }
 0x91c   : > { %v5589_v62 = vpop.eup %5588  ;;  %v2374_v21 = vpop.permute.xlu0 %2373 }
 0x91d   : > { %v2372_v26 = vpop.permute.xlu1 %2371  ;;  %v2233_v37 = vmul.f32 %v5589_v62, %v7174_v24  ;;  %v5591_v9 = vpop.eup %5590  ;;  %v2245_v3 = vpack.c.bf16 %v2235_v60, %v2234_v56 }
 0x91e   : > { %4978 = vmatpush3.bf16.xpose.msra.mxu1 %v2447_v39  ;;  %v2236_v4 = vmul.f32 %v5591_v9, %v7166_v49 }
 0x91f   : > { %v2244_v54 = vpack.c.bf16 %v2233_v37, %v2232_v38 }
 0x920   : > { %v5593_v31 = vpop.eup %5592  ;;  %v2378_v27 = vpop.permute.xlu0 %2377 }
 0x921   : > { %v5595_v18 = vpop.eup %5594  ;;  %4955 = vmatprep.mubr.bf16.mxu1 %v2244_v54  ;;  %v2376_v11 = vpop.permute.xlu1 %2375  ;;  %v2237_v55 = vmul.f32 %v5593_v31, %v7178_v40 }
 0x922   : > { %4956 = vmatmul.mubr.bf16.gmra.mrb[56].mxu1 %v2245_v3  ;;  %v5597_v17 = vpop.eup %5596  ;;  %v2239_v24 = vmul.f32 %v5595_v18, %v7172_v29 }
 0x923   : > { %v2246_v63 = vpack.c.bf16 %v2237_v55, %v2236_v4  ;;  %v2238_v42 = vmul.f32 %v5597_v17, %v7160_v35  ;;  %v8319_v35 = vmov 0  }
 0x924   : > { %v2382_v20 = vpop.permute.xlu0 %2381 }
 0x925   : > { %4959 = vmatprep.mubr.bf16.mxu1 %v2246_v63  ;;  %v2380_v57 = vpop.permute.xlu1 %2379  ;;  %v2247_v6 = vpack.c.bf16 %v2239_v24, %v2238_v42 }
 0x928   : > { %v2715_v2 = vpop.permute.xlu0 %2714 }
 0x929   : > { %4995 = vmatprep.subr.bf16.mxu0 %v2715_v2  ;;  %v2384_v41 = vpop.permute.xlu1 %2383 }
 0x92a   : > { %4960 = vmatmul.mubr.bf16.gmra.mrb[60].mxu1 %v2247_v6  ;;  %4996 = vmatpush3.bf16.msra.mxu0 %v2715_v2 }
 0x92b   : > { %4979 = vmatprep.mubr.msk.bf16.mxu1 %vm996_vm0, %v2370_v7 }
 0x92c   : > { %v2719_v49 = vpop.permute.xlu0 %2718 }
 0x92d   : > { %v2717_v40 = vpop.permute.xlu1 %2716 }
 0x92e   : > { %4997 = vmatprep.subr.bf16.mxu0 %v2717_v40 }
 0x92f   : > { %4998 = vmatpush3.bf16.msra.mxu0 %v2717_v40 }
 0x930   : > { %4999 = vmatprep.subr.bf16.mxu0 %v2719_v49  ;;  %v2721_v29 = vpop.permute.xlu0 %2720 }
 0x932   : > { %4980 = vmatmul.mubr.msk.bf16.vlgmr.msra.gmra.mrb[64].mxu1 %vm996_vm0, %v2372_v26 }
 0x933   : > { %4983 = vmatprep.mubr.msk.bf16.mxu1 %vm996_vm0, %v2374_v21  ;;  %5000 = vmatpush3.bf16.msra.mxu0 %v2719_v49 }
 0x934   : > { %5001 = vmatprep.subr.bf16.mxu0 %v2721_v29 }
 0x937   : > { %5002 = vmatpush3.bf16.msra.mxu0 %v2721_v29 }
 0x93a   : > { %4984 = vmatmul.mubr.msk.bf16.gmra.mrb[68].mxu1 %vm996_vm0, %v2376_v11 }
 0x93b   : > { %4987 = vmatprep.mubr.msk.bf16.mxu1 %vm996_vm0, %v2378_v27 }
 0x942   : > { %4988 = vmatmul.mubr.msk.bf16.gmra.mrb[72].mxu1 %vm996_vm0, %v2380_v57 }
 0x943   : > { %4991 = vmatprep.mubr.msk.bf16.mxu1 %vm996_vm0, %v2382_v20 }
 0x94a   : > { %4992 = vmatmul.mubr.msk.bf16.gmra.mrb[76].mxu1 %vm996_vm0, %v2384_v41 }
 0x94b   : > { %3640 = vmatprep.mubr.bf16.mxu1 %v8319_v35 }
 0x9af   : > { %v7254_v12 = vpop.f32.mrb[48].mxu1 }
 0x9b0   : > { %v7256_v45 = vpop.f32.mrb[49].mxu1 }
 0x9b1   : > { %v7258_v10 = vpop.f32.mrb[50].mxu1 }
 0x9b2   : > { %v5221_v61 = vpack.i.bf16 %v7258_v10, %v7254_v12  ;;  %v7262_v46 = vpop.f32.mrb[51].mxu1 }
 0x9b3   : > { %v5216_v50 = vpack.i.bf16 %v7262_v46, %v7256_v45 }
 0x9e7   : > { %v7266_v1 = vpop.f32.mrb[52].mxu1 }
 0x9e8   : > { %v7268_v13 = vpop.f32.mrb[53].mxu1 }
 0x9e9   : > { %v7270_v33 = vpop.f32.mrb[54].mxu1 }
 0x9ea   : > { %v7274_v22 = vpop.f32.mrb[55].mxu1 }
 0x9f5   : > { %v7278_v28 = vpop.f32.mrb[56].mxu1 }
 0x9f6   : > { %v7280_v14 = vpop.f32.mrb[57].mxu1 }
 0x9f7   : > { %v7282_v36 = vpop.f32.mrb[58].mxu1 }
 0x9f8   : > { %v7286_v0 = vpop.f32.mrb[59].mxu1 }
 0x9fd   : > { %v7290_v34 = vpop.f32.mrb[60].mxu1 }
 0x9fe   : > { %v7292_v8 = vpop.f32.mrb[61].mxu1 }
 0x9ff   : > { %v7294_v62 = vpop.f32.mrb[62].mxu1 }
 0xa00   : > { %v7298_v60 = vpop.f32.mrb[63].mxu1 }
 0xa05   : > { %v4981_v39 = vpop.f32.mrb[64].mxu1 }
 0xa06   : > { %v2548_v38 = vsel %vm6505_vm2, %v4981_v39, -1e+09  ;;  %v2483_v37 = vpop.f32.mrb[65].mxu1 }
 0xa07   : > { %2566 = vmax.xlane.f32.xlu0 %v2548_v38  ;;  %v4982_v9 = vpop.f32.mrb[66].mxu1  ;;  %v2546_v31 = vsel %vm6505_vm2, %v2483_v37, -1e+09 }
 0xa08   : > { %v2486_v56 = vpop.f32.mrb[67].mxu1  ;;  %v2549_v3 = vsel %vm6505_vm2, %v4982_v9, -1e+09 }
 0xa09   : > { %v2547_v54 = vsel %vm6505_vm2, %v2486_v56, -1e+09 }
 0xa0a   : > { %2564 = vmax.xlane.f32.xlu1 %v2547_v54 }
 0xa0b   : > { %2562 = vmax.xlane.f32.xlu0 %v2546_v31 }
 0xa0d   : > { %v4985_v27 = vpop.f32.mrb[68].mxu1 }
 0xa0e   : > { %v2499_v18 = vpop.f32.mrb[69].mxu1  ;;  %v2552_v17 = vsel %vm6505_vm2, %v4985_v27, -1e+09 }
 0xa0f   : > { %2568 = vmax.xlane.f32.xlu0 %v2549_v3  ;;  %v4986_v11 = vpop.f32.mrb[70].mxu1  ;;  %v2550_v24 = vsel %vm6505_vm2, %v2499_v18, -1e+09 }
 0xa10   : > { %v2553_v4 = vsel %vm6505_vm2, %v4986_v11, -1e+09  ;;  %v2502_v55 = vpop.f32.mrb[71].mxu1 }
 0xa11   : > { %2576 = vmax.xlane.f32.xlu1 %v2553_v4  ;;  %v7316_v63 = vsel %vm6505_vm2, %v2502_v55, -1e+09 }
 0xa13   : > { %2574 = vmax.xlane.f32.xlu0 %v2552_v17 }
 0xa15   : > { %2572 = vmax.xlane.f32.xlu1 %v7316_v63  ;;  %v4989_v20 = vpop.f32.mrb[72].mxu1 }
 0xa16   : > { %v2515_v57 = vpop.f32.mrb[73].mxu1  ;;  %v7328_v41 = vsel %vm6505_vm2, %v4989_v20, -1e+09 }
 0xa17   : > { %2570 = vmax.xlane.f32.xlu0 %v2550_v24  ;;  %v4990_v42 = vpop.f32.mrb[74].mxu1  ;;  %v7338_v29 = vsel %vm6505_vm2, %v2515_v57, -1e+09 }
 0xa18   : > { %v7323_v2 = vsel %vm6505_vm2, %v4990_v42, -1e+09  ;;  %v2518_v6 = vpop.f32.mrb[75].mxu1 }
 0xa19   : > { %2584 = vmax.xlane.f32.xlu1 %v7323_v2  ;;  %v7333_v49 = vsel %vm6505_vm2, %v2518_v6, -1e+09 }
 0xa1b   : > { %2582 = vmax.xlane.f32.xlu0 %v7328_v41 }
 0xa1d   : > { %2580 = vmax.xlane.f32.xlu1 %v7333_v49  ;;  %v4993_v40 = vpop.f32.mrb[76].mxu1 }
 0xa1e   : > { %v2531_v39 = vpop.f32.mrb[77].mxu1  ;;  %v7343_v56 = vsel %vm6505_vm2, %v4993_v40, -1e+09 }
 0xa1f   : > { %2578 = vmax.xlane.f32.xlu0 %v7338_v29  ;;  %v4994_v37 = vpop.f32.mrb[78].mxu1  ;;  %v7348_v27 = vsel %vm6505_vm2, %v2531_v39, -1e+09 }
 0xa20   : > { %v2534_v9 = vpop.f32.mrb[79].mxu1  ;;  %v7357_v18 = vsel %vm6505_vm2, %v4994_v37, -1e+09 }
 0xa21   : > { %v7362_v11 = vsel %vm6505_vm2, %v2534_v9, -1e+09 }
 0xa23   : > { %2590 = vmax.xlane.f32.xlu0 %v7343_v56 }
 0xa27   : > { %2586 = vmax.xlane.f32.xlu0 %v7348_v27 }
 0xa2e   : > { %2724 = vrot.lane.b32.xlu1 %v6417_v23, %s5974_s11 }
 0xa3d   : > { %2722 = vrot.lane.b32.xlu0 %v6422_v25, %s5974_s11 }
 0xa52   : > { %2592 = vmax.xlane.f32.xlu1 %v7357_v18 }
 0xa56   : > { %2588 = vmax.xlane.f32.xlu1 %v7362_v11 }
 0xa94   : > { %v2567_v55 = vpop.xlane.xlu0 %2566 }
 0xa95   : > { %v2596_v20 = vsub.f32 %v2548_v38, %v2567_v55 }
 0xa97   : > { %v2614_v57 = vmul.f32 1.442695, %v2596_v20  ;;  %v2565_v23 = vpop.xlane.xlu1 %2564 }
 0xa98   : > { %v2563_v42 = vpop.xlane.xlu0 %2562  ;;  %v2595_v40 = vsub.f32 %v2547_v54, %v2565_v23 }
 0xa99   : > { %5598 = vpow2.f32 %v2614_v57  ;;  %v2594_v6 = vsub.f32 %v2546_v31, %v2563_v42 }
 0xa9a   : > { %v2612_v32 = vmul.f32 1.442695, %v2595_v40 }
 0xa9b   : > { %v2610_v25 = vmul.f32 1.442695, %v2594_v6 }
 0xa9c   : > { %v2569_v39 = vpop.xlane.xlu0 %2568 }
 0xa9d   : > { %5600 = vpow2.f32 %v2610_v25  ;;  %v2597_v37 = vsub.f32 %v2549_v3, %v2569_v39 }
 0xa9e   : > { %v2577_v26 = vpop.xlane.xlu1 %2576 }
 0xa9f   : > { %v2616_v21 = vmul.f32 1.442695, %v2597_v37  ;;  %v2601_v30 = vsub.f32 %v2553_v4, %v2577_v26 }
 0xaa0   : > { %v2575_v9 = vpop.xlane.xlu0 %2574 }
 0xaa1   : > { %5602 = vpow2.f32 %v2616_v21  ;;  %v2600_v7 = vsub.f32 %v2552_v17, %v2575_v9  ;;  %v2624_v55 = vmul.f32 1.442695, %v2601_v30 }
 0xaa2   : > { %v2573_v47 = vpop.xlane.xlu1 %2572  ;;  %5604 = vpow2.f32 %v2612_v32 }
 0xaa3   : > { %v7365_v59 = vpop.eup %5598  ;;  %v2622_v38 = vmul.f32 1.442695, %v2600_v7  ;;  %v2599_v54 = vsub.f32 %v7316_v63, %v2573_v47 }
 0xaa4   : > { %v2571_v20 = vpop.xlane.xlu0 %2570  ;;  %2646 = vadd.xlane.f32.xlu1 %v7365_v59 }
 0xaa5   : > { %5606 = vpow2.f32 %v2622_v38  ;;  %v2598_v31 = vsub.f32 %v2550_v24, %v2571_v20  ;;  %v2620_v21 = vmul.f32 1.442695, %v2599_v54 }
 0xaa6   : > { %5608 = vpow2.f32 %v2624_v55  ;;  %v2585_v17 = vpop.xlane.xlu1 %2584 }
 0xaa7   : > { %v7369_v3 = vpop.eup %5600  ;;  %v2618_v57 = vmul.f32 1.442695, %v2598_v31  ;;  %v2605_v30 = vsub.f32 %v7323_v2, %v2585_v17 }
 0xaa8   : > { %v2583_v26 = vpop.xlane.xlu0 %2582  ;;  %2642 = vadd.xlane.f32.xlu1 %v7369_v3 }
 0xaa9   : > { %5610 = vpow2.f32 %v2618_v57  ;;  %v2632_v55 = vmul.f32 1.442695, %v2605_v30  ;;  %v2604_v20 = vsub.f32 %v7328_v41, %v2583_v26 }
 0xaaa   : > { %5612 = vpow2.f32 %v2620_v21  ;;  %v2581_v23 = vpop.xlane.xlu1 %2580 }
 0xaab   : > { %v7372_v4 = vpop.eup %5602  ;;  %v2603_v9 = vsub.f32 %v7333_v49, %v2581_v23  ;;  %v2630_v57 = vmul.f32 1.442695, %v2604_v20 }
 0xaac   : > { %v2579_v7 = vpop.xlane.xlu0 %2578  ;;  %2648 = vadd.xlane.f32.xlu1 %v7372_v4  ;;  %v7375_v32 = vpop.eup %5604 }
 0xaad   : > { %v2602_v37 = vsub.f32 %v7338_v29, %v2579_v7  ;;  %v2628_v54 = vmul.f32 1.442695, %v2603_v9 }
 0xaae   : > { %v2725_v39 = vpop.permute.xlu1 %2724 }
 0xaaf   : > { %v7377_v47 = vpop.eup %5606  ;;  %v2626_v38 = vmul.f32 1.442695, %v2602_v37 }
 0xab0   : > { %v2591_v63 = vpop.xlane.xlu0 %2590  ;;  %2654 = vadd.xlane.f32.xlu0 %v7377_v47  ;;  %2644 = vadd.xlane.f32.xlu1 %v7375_v32  ;;  %v7381_v24 = vpop.eup %5608 }
 0xab1   : > { %5614 = vpow2.f32 %v2626_v38  ;;  %v2608_v2 = vsub.f32 %v7343_v56, %v2591_v63 }
 0xab2   : > { %5616 = vpow2.f32 %v2632_v55 }
 0xab3   : > { %v7383_v42 = vpop.eup %5610  ;;  %5618 = vpow2.f32 %v2628_v54  ;;  %v2638_v26 = vmul.f32 1.442695, %v2608_v2 }
 0xab4   : > { %v2587_v6 = vpop.xlane.xlu0 %2586  ;;  %2650 = vadd.xlane.f32.xlu1 %v7383_v42  ;;  %2656 = vadd.xlane.f32.xlu0 %v7381_v24  ;;  %v7387_v25 = vpop.eup %5612  ;;  %5620 = vpow2.f32 %v2630_v57 }
 0xab8   : > { %v2723_v40 = vpop.permute.xlu0 %2722  ;;  %2652 = vadd.xlane.f32.xlu0 %v7387_v25 }
 0xab9   : > { %5003 = vmatprep.subr.bf16.mxu0 %v2723_v40 }
 0xaba   : > { %5004 = vmatpush3.bf16.msra.mxu0 %v2723_v40  ;;  %v8320_v40 = vpack.i.bf16 %v6997_v51, %v6993_v58 }
 0xabb   : > { %5005 = vmatprep.subr.bf16.mxu0 %v2725_v39  ;;  %v7402_v17 = vpop.eup %5614 }
 0xabc   : > { %v7405_v23 = vpop.eup %5616 }
 0xabe   : > { %5006 = vmatpush3.bf16.msra.mxu0 %v2725_v39  ;;  %v8321_v39 = vpack.i.bf16 %v7001_v16, %v6995_v19 }
 0xac5   : > { %2728 = vrot.lane.b32.xlu1 %v6441_v48, %s5974_s11  ;;  %v2606_v48 = vsub.f32 %v7348_v27, %v2587_v6  ;;  %v7407_v27 = vpop.eup %5618 }
 0xac6   : > { %v7411_v56 = vpop.eup %5620 }
 0xac7   : > { %v2634_v49 = vmul.f32 1.442695, %v2606_v48 }
 0xace   : > { %2726 = vrot.lane.b32.xlu0 %v6446_v52, %s5974_s11 }
 0xadf   : > { %v2593_v31 = vpop.xlane.xlu1 %2592 }
 0xae0   : > { %v2609_v52 = vsub.f32 %v7357_v18, %v2593_v31 }
 0xae2   : > { %v2640_v41 = vmul.f32 1.442695, %v2609_v52 }
 0xae3   : > { %v2589_v21 = vpop.xlane.xlu1 %2588 }
 0xae4   : > { %v2607_v29 = vsub.f32 %v7362_v11, %v2589_v21 }
 0xae6   : > { %v2636_v7 = vmul.f32 1.442695, %v2607_v29 }
 0xae8   : > { %5622 = vpow2.f32 %v2636_v7 }
 0xae9   : > { %2658 = vadd.xlane.f32.xlu1 %v7402_v17  ;;  %5624 = vpow2.f32 %v2634_v49 }
 0xaea   : > { %5626 = vpow2.f32 %v2640_v41 }
 0xaeb   : > { %5628 = vpow2.f32 %v2638_v26 }
 0xaed   : > { %2664 = vadd.xlane.f32.xlu1 %v7405_v23  ;;  %2660 = vadd.xlane.f32.xlu0 %v7407_v27 }
 0xaf1   : > { %2662 = vadd.xlane.f32.xlu0 %v7411_v56 }
 0xaf2   : > { %v7414_v18 = vpop.eup %5622 }
 0xaf3   : > { %2668 = vadd.xlane.f32.xlu1 %v7414_v18  ;;  %v7417_v11 = vpop.eup %5624 }
 0xaf4   : > { %v7420_v63 = vpop.eup %5626 }
 0xaf5   : > { %2666 = vadd.xlane.f32.xlu0 %v7417_v11  ;;  %v7423_v6 = vpop.eup %5628 }
 0xaf7   : > { %2672 = vadd.xlane.f32.xlu1 %v7420_v63 }
 0xaf9   : > { %2670 = vadd.xlane.f32.xlu0 %v7423_v6 }
 0xb08   : > { %5212 = vrot.lane.b32.xlu1 %v8320_v40, %s5974_s11 }
 0xb0c   : > { %5217 = vrot.lane.b32.xlu1 %v5216_v50, %s5973_s23 }
 0xb0f   : > { %5207 = vrot.lane.b32.xlu0 %v8321_v39, %s5974_s11 }
 0xb10   : > { %5222 = vrot.lane.b32.xlu1 %v5221_v61, %s5973_s23 }
 0xb31   : > { %v2647_v37 = vpop.xlane.xlu1 %2646 }
 0xb35   : > { %v2643_v30 = vpop.xlane.xlu1 %2642 }
 0xb36   : > { %5630 = vrcp.f32 %v2643_v30 }
 0xb39   : > { %v2649_v9 = vpop.xlane.xlu1 %2648 }
 0xb3a   : > { %5632 = vrcp.f32 %v2649_v9 }
 0xb3d   : > { %v2655_v58 = vpop.xlane.xlu0 %2654  ;;  %v2645_v51 = vpop.xlane.xlu1 %2644 }
 0xb3e   : > { %5634 = vrcp.f32 %v2645_v51 }
 0xb3f   : > { %5636 = vrcp.f32 %v2647_v37 }
 0xb40   : > { %v5631_v19 = vpop.eup %5630 }
 0xb41   : > { %v2657_v45 = vpop.xlane.xlu0 %2656  ;;  %v2651_v46 = vpop.xlane.xlu1 %2650  ;;  %v2690_v10 = vmul.f32 %v5631_v19, %v7369_v3 }
 0xb42   : > { %5638 = vrcp.f32 %v2651_v46 }
 0xb44   : > { %v5633_v16 = vpop.eup %5632 }
 0xb45   : > { %v2653_v50 = vpop.xlane.xlu0 %2652  ;;  %v2729_v20 = vpop.permute.xlu1 %2728  ;;  %v2693_v54 = vmul.f32 %v5633_v16, %v7372_v4 }
 0xb46   : > { %5640 = vrcp.f32 %v2653_v50 }
 0xb47   : > { %5642 = vrcp.f32 %v2657_v45 }
 0xb48   : > { %v5635_v38 = vpop.eup %5634  ;;  %5644 = vrcp.f32 %v2655_v58 }
 0xb49   : > { %v2727_v12 = vpop.permute.xlu0 %2726  ;;  %v2691_v61 = vmul.f32 %v5635_v38, %v7375_v32  ;;  %v5637_v55 = vpop.eup %5636 }
 0xb4a   : > { %5007 = vmatprep.subr.bf16.mxu0 %v2727_v12  ;;  %v2692_v48 = vmul.f32 %v5637_v55, %v7365_v59 }
 0xb4b   : > { %5008 = vmatpush3.bf16.msra.mxu0 %v2727_v12  ;;  %v2706_v31 = vpack.c.bf16 %v2691_v61, %v2690_v10 }
 0xb4c   : > { %5009 = vmatprep.subr.bf16.mxu0 %v2729_v20  ;;  %v5639_v57 = vpop.eup %5638  ;;  %v2707_v52 = vpack.c.bf16 %v2693_v54, %v2692_v48  ;;  %v5363_v48 = vld [vmem:[#allocation7 + $0x28] sm:$0xff]  }
 0xb4d   : > { %5011 = vmatprep.mubr.bf16.mxu0 %v2706_v31  ;;  %v2694_v2 = vmul.f32 %v5639_v57, %v7383_v42  ;;  %v5360_v57 = vld [vmem:[#allocation7 + $0x10] sm:$0xff]  }
 0xb4f   : > { %5010 = vmatpush3.bf16.msra.mxu0 %v2729_v20 }
 0xb50   : > { %v5641_v21 = vpop.eup %5640 }
 0xb51   : > { %v5643_v29 = vpop.eup %5642  ;;  %v2695_v3 = vmul.f32 %v5641_v21, %v7387_v25 }
 0xb52   : > { %5012 = vmatmul.mubr.bf16.vlgmr.msra.gmra.mrb[80].mxu0 %v2707_v52  ;;  %v5645_v32 = vpop.eup %5644  ;;  %v2697_v7 = vmul.f32 %v5643_v29, %v7381_v24 }
 0xb53   : > { %v2708_v49 = vpack.c.bf16 %v2695_v3, %v2694_v2  ;;  %v2696_v4 = vmul.f32 %v5645_v32, %v7377_v47 }
 0xb55   : > { %5015 = vmatprep.mubr.bf16.mxu0 %v2708_v49  ;;  %v2709_v41 = vpack.c.bf16 %v2697_v7, %v2696_v4  ;;  %v8322_v7 = vpack.i.bf16 %v7009_v44, %v7005_v53  ;;  %v8325_v53 = vpack.i.bf16 %v7274_v22, %v7268_v13  ;;  %v8332_v13 = vpack.i.bf16 %v7286_v0, %v7280_v14  ;;  %v8336_v14 = vld [vmem:[#allocation42_spill] sm:$0xff]  ;;  %v8337_v0 = vld [vmem:[#allocation40_spill] sm:$0xff] }
 0xb5a   : > { %5016 = vmatmul.mubr.bf16.gmra.mrb[84].mxu0 %v2709_v41  ;;  %v8323_v41 = vpack.i.bf16 %v7013_v43, %v7007_v5  ;;  %v8326_v5 = vld [vmem:[#allocation36_spill] sm:$0xff]  ;;  %v8328_v43 = vld [vmem:[#allocation38_spill] sm:$0xff] }
 0xb5b   : > { %v8327_v44 = vpack.i.bf16 %v7021_v15, %v8326_v5 }
 0xb76   : > { %v2659_v59 = vpop.xlane.xlu1 %2658 }
 0xb77   : > { %5646 = vrcp.f32 %v2659_v59 }
 0xb7a   : > { %v2661_v26 = vpop.xlane.xlu0 %2660  ;;  %v2665_v40 = vpop.xlane.xlu1 %2664 }
 0xb7b   : > { %5648 = vrcp.f32 %v2661_v26 }
 0xb7c   : > { %5650 = vrcp.f32 %v2665_v40 }
 0xb7e   : > { %v2663_v39 = vpop.xlane.xlu0 %2662 }
 0xb7f   : > { %5652 = vrcp.f32 %v2663_v39 }
 0xb80   : > { %v2669_v42 = vpop.xlane.xlu1 %2668 }
 0xb81   : > { %5654 = vrcp.f32 %v2669_v42  ;;  %v5647_v37 = vpop.eup %5646  ;;  %v8324_v42 = vpack.i.bf16 %v7270_v33, %v7266_v1  ;;  %v8331_v1 = vpack.i.bf16 %v7282_v36, %v7278_v28  ;;  %v8334_v28 = vld [vmem:[#allocation39_spill] sm:$0xff] }
 0xb82   : > { %v2667_v25 = vpop.xlane.xlu0 %2666  ;;  %v2698_v47 = vmul.f32 %v5647_v37, %v7402_v17 }
 0xb83   : > { %5656 = vrcp.f32 %v2667_v25  ;;  %v8329_v25 = vld [vmem:[#allocation37_spill] sm:$0xff] }
 0xb84   : > { %v2673_v30 = vpop.xlane.xlu1 %2672  ;;  %v8330_v37 = vpack.i.bf16 %v8328_v43, %v8329_v25 }
 0xb85   : > { %v5649_v24 = vpop.eup %5648  ;;  %5658 = vrcp.f32 %v2673_v30 }
 0xb86   : > { %v2671_v9 = vpop.xlane.xlu0 %2670  ;;  %v2699_v58 = vmul.f32 %v5649_v24, %v7407_v27  ;;  %v5651_v51 = vpop.eup %5650 }
 0xb87   : > { %5660 = vrcp.f32 %v2671_v9  ;;  %v2701_v19 = vmul.f32 %v5651_v51, %v7405_v23  ;;  %v5359_v23 = vld [vmem:[#allocation7 + $0x8] sm:$0xff]  }
 0xb88   : > { %v2710_v45 = vpack.c.bf16 %v2699_v58, %v2698_v47  ;;  %v8333_v58 = vld [vmem:[#allocation41_spill] sm:$0xff] }
 0xb89   : > { %v5653_v46 = vpop.eup %5652  ;;  %v8335_v36 = vpack.i.bf16 %v8333_v58, %v8334_v28  ;;  %v8346_v58 = vld [vmem:[#allocation24_spill] sm:$0xff] }
 0xb8a   : > { %5019 = vmatprep.mubr.bf16.mxu0 %v2710_v45  ;;  %v2700_v50 = vmul.f32 %v5653_v46, %v7411_v56  ;;  %v5358_v56 = vld [vmem:[#allocation7] sm:$0xff]   ;;  %v8338_v45 = vpack.i.bf16 %v8336_v14, %v8337_v0  ;;  %v8348_v0 = vld [vmem:[#allocation25_spill] sm:$0xff] }
 0xb8b   : > { %v5655_v16 = vpop.eup %5654  ;;  %5027 = vmatprep.subr.bf16.mxu0 %v5358_v56 }
 0xb8c   : > { %v2711_v38 = vpack.c.bf16 %v2701_v19, %v2700_v50  ;;  %v2703_v61 = vmul.f32 %v5655_v16, %v7414_v18  ;;  %5028 = vmatpush3.bf16.msra.mxu0 %v5358_v56  ;;  %v5362_v18 = vld [vmem:[#allocation7 + $0x20] sm:$0xff]  }
 0xb8d   : > { %v5657_v12 = vpop.eup %5656  ;;  %5029 = vmatprep.subr.bf16.mxu0 %v5359_v23 }
 0xb8e   : > { %5020 = vmatmul.mubr.bf16.gmra.mrb[88].mxu0 %v2711_v38  ;;  %v2702_v10 = vmul.f32 %v5657_v12, %v7417_v11  ;;  %v5361_v11 = vld [vmem:[#allocation7 + $0x18] sm:$0xff]   ;;  %v8339_v38 = vpack.i.bf16 %v7294_v62, %v7290_v34  ;;  %v8340_v12 = vpack.i.bf16 %v7298_v60, %v7292_v8 }
 0xb8f   : > { %v5659_v17 = vpop.eup %5658  ;;  %v8342_v60 = vld [vmem:[#allocation21_spill] sm:$0xff] }
 0xb90   : > { %v2712_v55 = vpack.c.bf16 %v2703_v61, %v2702_v10  ;;  %v2705_v54 = vmul.f32 %v5659_v17, %v7420_v63  ;;  %5030 = vmatpush3.bf16.msra.mxu0 %v5359_v23  ;;  %v5364_v63 = vld [vmem:[#allocation7 + $0x30] sm:$0xff]   ;;  %v5213_v10 = vpop.permute.xlu1 %5212  ;;  %v5208_v17 = vpop.permute.xlu0 %5207 }
 0xb91   : > { %v5661_v27 = vpop.eup %5660  ;;  %5031 = vmatprep.subr.bf16.mxu0 %v5360_v57 }
 0xb92   : > { %5023 = vmatprep.mubr.bf16.mxu0 %v2712_v55  ;;  %v2704_v20 = vmul.f32 %v5661_v27, %v7423_v6  ;;  %v5365_v6 = vld [vmem:[#allocation7 + $0x38] sm:$0xff]   ;;  %v5210_v27 = vunpack.i.h.bf16 %v5208_v17 }
 0xb94   : > { %v2713_v31 = vpack.c.bf16 %v2705_v54, %v2704_v20  ;;  %5032 = vmatpush3.bf16.msra.mxu0 %v5360_v57  ;;  %v5218_v61 = vpop.permute.xlu1 %5217  ;;  %v5209_v20 = vunpack.i.l.bf16 %v5208_v17  ;;  %v5215_v54 = vunpack.i.h.bf16 %v5213_v10  ;;  %v8341_v57 = vld [vmem:[#allocation23_spill] sm:$0xff] }
 0xb95   : > { %5033 = vmatprep.subr.bf16.mxu0 %v5361_v11  ;;  %v5220_v62 = vunpack.i.h.bf16 %v5218_v61  ;;  %v5219_v23 = vunpack.i.l.bf16 %v5218_v61  ;;  %v3028_v8 = vsel %vm996_vm0, %v8341_v57, %v5210_v27 }
 0xb96   : > { %5024 = vmatmul.mubr.bf16.gmra.mrb[92].mxu0 %v2713_v31  ;;  %v5214_v31 = vunpack.i.l.bf16 %v5213_v10 }
 0xb98   : > { %5034 = vmatpush3.bf16.msra.mxu0 %v5361_v11  ;;  %v5223_v55 = vpop.permute.xlu1 %5222  ;;  %v3027_v11 = vsel %vm996_vm0, %v8342_v60, %v5209_v20 }
 0xb99   : > { %5035 = vmatprep.subr.bf16.mxu0 %v5362_v18  ;;  %v5225_v56 = vunpack.i.h.bf16 %v5223_v55  ;;  %v5224_v34 = vunpack.i.l.bf16 %v5223_v55 }
 0xb9c   : > { %5036 = vmatpush3.bf16.msra.mxu0 %v5362_v18 }
 0xb9d   : > { %5037 = vmatprep.subr.bf16.mxu0 %v5363_v48 }
 0xba0   : > { %5038 = vmatpush3.bf16.msra.mxu0 %v5363_v48  ;;  %v8343_v48 = vld [vmem:[#allocation22_spill] sm:$0xff] }
 0xba1   : > { %5039 = vmatprep.subr.bf16.mxu0 %v5364_v63 }
 0xba4   : > { %5040 = vmatpush3.bf16.msra.mxu0 %v5364_v63  ;;  %v3030_v63 = vsel %vm996_vm0, %v8343_v48, %v5215_v54 }
 0xba5   : > { %5041 = vmatprep.subr.bf16.mxu0 %v5365_v6 }
 0xba8   : > { %5042 = vmatpush3.bf16.msra.mxu0 %v5365_v6  ;;  %v8344_v6 = vld [vmem:[#allocation20_spill] sm:$0xff] }
 0xc25   : > { %v5013_v21 = vpop.f32.mrb[80].mxu0 }
 0xc26   : > { %v2772_v52 = vpop.f32.mrb[81].mxu0 }
 0xc27   : > { %v5014_v29 = vpop.f32.mrb[82].mxu0 }
 0xc28   : > { %v5231_v2 = vpack.i.bf16 %v5014_v29, %v5013_v21  ;;  %v2775_v3 = vpop.f32.mrb[83].mxu0  ;;  %v3029_v21 = vsel %vm996_vm0, %v8344_v6, %v5214_v31 }
 0xc29   : > { %v5226_v32 = vpack.i.bf16 %v2775_v3, %v2772_v52  ;;  %v3046_v3 = vsel %vm3043_vm3, %v3029_v21, %v5224_v34 }
 0xc2a   : > { %5232 = vrot.lane.b32.xlu1 %v5231_v2, %s5972_s20 }
 0xc2b   : > { %5227 = vrot.lane.b32.xlu0 %v5226_v32, %s5972_s20  ;;  %v3047_v32 = vsel %vm3043_vm3, %v3030_v63, %v5225_v56 }
 0xc2d   : > { %v5017_v49 = vpop.f32.mrb[84].mxu0 }
 0xc2e   : > { %5242 = vrot.lane.b32.xlu1 %v8322_v7, %s5974_s11  ;;  %v2788_v4 = vpop.f32.mrb[85].mxu0 }
 0xc2f   : > { %5237 = vrot.lane.b32.xlu0 %v8323_v41, %s5974_s11  ;;  %v5018_v59 = vpop.f32.mrb[86].mxu0  ;;  %v3044_v41 = vsel %vm3043_vm3, %v3027_v11, %v5219_v23 }
 0xc30   : > { %v5261_v26 = vpack.i.bf16 %v5018_v59, %v5017_v49  ;;  %v2791_v40 = vpop.f32.mrb[87].mxu0 }
 0xc31   : > { %v5256_v39 = vpack.i.bf16 %v2791_v40, %v2788_v4  ;;  %v3045_v4 = vsel %vm3043_vm3, %v3028_v8, %v5220_v62 }
 0xc32   : > { %5252 = vrot.lane.b32.xlu1 %v8324_v42, %s5973_s23 }
 0xc33   : > { %5247 = vrot.lane.b32.xlu0 %v8325_v53, %s5973_s23 }
 0xc36   : > { %5262 = vrot.lane.b32.xlu1 %v5261_v26, %s5972_s20 }
 0xc37   : > { %5257 = vrot.lane.b32.xlu0 %v5256_v39, %s5972_s20 }
 0xc3a   : > { %5272 = vrot.lane.b32.xlu1 %v8327_v44, %s5974_s11 }
 0xc3b   : > { %5267 = vrot.lane.b32.xlu0 %v8330_v37, %s5974_s11 }
 0xc3e   : > { %5282 = vrot.lane.b32.xlu1 %v8331_v1, %s5973_s23 }
 0xc3f   : > { %5277 = vrot.lane.b32.xlu0 %v8332_v13, %s5973_s23 }
 0xc61   : > { %v5021_v33 = vpop.f32.mrb[88].mxu0 }
 0xc62   : > { %v2804_v22 = vpop.f32.mrb[89].mxu0 }
 0xc63   : > { %v5022_v30 = vpop.f32.mrb[90].mxu0 }
 0xc64   : > { %v5291_v15 = vpack.i.bf16 %v5022_v30, %v5021_v33  ;;  %v2807_v24 = vpop.f32.mrb[91].mxu0 }
 0xc65   : > { %v5286_v9 = vpack.i.bf16 %v2807_v24, %v2804_v22 }
 0xc66   : > { %5292 = vrot.lane.b32.xlu1 %v5291_v15, %s5972_s20 }
 0xc67   : > { %5287 = vrot.lane.b32.xlu0 %v5286_v9, %s5972_s20  ;;  %v8345_v9 = vld [vmem:[#allocation26_spill] sm:$0xff] }
 0xc69   : > { %v5025_v47 = vpop.f32.mrb[92].mxu0 }
 0xc6a   : > { %5302 = vrot.lane.b32.xlu1 %v8335_v36, %s5974_s11  ;;  %v2820_v51 = vpop.f32.mrb[93].mxu0 }
 0xc6b   : > { %5297 = vrot.lane.b32.xlu0 %v8338_v45, %s5974_s11  ;;  %v5026_v46 = vpop.f32.mrb[94].mxu0  ;;  %s5975_s11 = smov [#allocation11]  }
 0xc6c   : > { %v5321_v50 = vpack.i.bf16 %v5026_v46, %v5025_v47  ;;  %v2823_v19 = vpop.f32.mrb[95].mxu0  ;;  %s5888_s27 = sshll.u32 %s5975_s11, 4  ;;  %s5889_s27 = int_to_ptr.vmem [resolvable:$false] %s5888_s27 }
 0xc6d   : > { %v5316_v16 = vpack.i.bf16 %v2823_v19, %v2820_v51  ;;  %v8347_v51 = vld [vmem:[#allocation27_spill] sm:$0xff] }
 0xc6e   : > { %5312 = vrot.lane.b32.xlu1 %v8339_v38, %s5973_s23 }
 0xc6f   : > { %5307 = vrot.lane.b32.xlu0 %v8340_v12, %s5973_s23  ;;  %s8361_s23 = sld [smem:[#allocation45_spill]] }
 0xc72   : > { %5322 = vrot.lane.b32.xlu1 %v5321_v50, %s5972_s20 }
 0xc73   : > { %5317 = vrot.lane.b32.xlu0 %v5316_v16, %s5972_s20  ;;  %s4269_s20 = sshll.u32 %s8120_s21, 4  ;;  %s8185_s20 = int_to_ptr.vmem [resolvable:$true] %s4269_s20 }
 0xc74   : > { %p5891_p2 = scmp.lt.s32.totalorder %s8185_s20, %s5889_s27 }
 0xc9c   : > { %v5233_v18 = vpop.permute.xlu1 %5232 }
 0xc9d   : > { %v5235_v52 = vunpack.i.h.bf16 %v5233_v18  ;;  %v5234_v29 = vunpack.i.l.bf16 %v5233_v18  ;;  %v5228_v2 = vpop.permute.xlu0 %5227 }
 0xc9e   : > { %v5230_v49 = vunpack.i.h.bf16 %v5228_v2  ;;  %v5229_v7 = vunpack.i.l.bf16 %v5228_v2  ;;  %v8350_v2 = vld [vmem:[#allocation28_spill] sm:$0xff] }
 0xc9f   : > { %v3063_v59 = vsel %vm3060_vm4, %v3046_v3, %v5234_v29  ;;  %v3064_v26 = vsel %vm3060_vm4, %v3047_v32, %v5235_v52  ;;  %v8349_v52 = vld [vmem:[#allocation30_spill] sm:$0xff] }
 0xca0   : > { %v3078_v40 = vpack.c.bf16 %v3064_v26, %v3063_v59  ;;  %v5243_v39 = vpop.permute.xlu1 %5242  ;;  %v3061_v42 = vsel %vm3060_vm4, %v3044_v41, %v5229_v7  ;;  %v3062_v53 = vsel %vm3060_vm4, %v3045_v4, %v5230_v49  ;;  %v8351_v49 = vld [vmem:[#allocation31_spill] sm:$0xff]  ;;  %v8352_v4 = vld [vmem:[#allocation29_spill] sm:$0xff] }
 0xca1   : > { %v5238_v5 = vpop.permute.xlu0 %5237  ;;  %v3077_v44 = vpack.c.bf16 %v3062_v53, %v3061_v42  ;;  %v5245_v43 = vunpack.i.h.bf16 %v5243_v39  ;;  %v5244_v25 = vunpack.i.l.bf16 %v5243_v39 }
 0xca2   : > { %v5240_v1 = vunpack.i.h.bf16 %v5238_v5  ;;  %v5239_v13 = vunpack.i.l.bf16 %v5238_v5 }
 0xca3   : > { %5043 = vmatprep.mubr.bf16.mxu0 %v3077_v44  ;;  %v3034_v47 = vsel %vm996_vm0, %v8345_v9, %v5245_v43  ;;  %v3033_v28 = vsel %vm996_vm0, %v8346_v58, %v5244_v25 }
 0xca4   : > { %v5253_v37 = vpop.permute.xlu1 %5252  ;;  %5044 = vmatmul.mubr.bf16.vlgmr.msra.gmra.mrb[96].mxu0 %v3078_v40  ;;  %v3032_v14 = vsel %vm996_vm0, %v8347_v51, %v5240_v1  ;;  %v3031_v45 = vsel %vm996_vm0, %v8348_v0, %v5239_v13 }
 0xca5   : > { %v5248_v33 = vpop.permute.xlu0 %5247  ;;  %v5255_v22 = vunpack.i.h.bf16 %v5253_v37  ;;  %v5254_v30 = vunpack.i.l.bf16 %v5253_v37 }
 0xca6   : > { %v5250_v15 = vunpack.i.h.bf16 %v5248_v33  ;;  %v5249_v24 = vunpack.i.l.bf16 %v5248_v33 }
 0xca7   : > { %v3050_v16 = vsel %vm3043_vm3, %v3033_v28, %v5254_v30  ;;  %v3051_v38 = vsel %vm3043_vm3, %v3034_v47, %v5255_v22 }
 0xca8   : > { %v5263_v36 = vpop.permute.xlu1 %5262  ;;  %v3048_v61 = vsel %vm3043_vm3, %v3031_v45, %v5249_v24  ;;  %v3049_v17 = vsel %vm3043_vm3, %v3032_v14, %v5250_v15 }
 0xca9   : > { %v5265_v46 = vunpack.i.h.bf16 %v5263_v36  ;;  %v5264_v50 = vunpack.i.l.bf16 %v5263_v36  ;;  %v5258_v19 = vpop.permute.xlu0 %5257 }
 0xcaa   : > { %v5260_v12 = vunpack.i.h.bf16 %v5258_v19  ;;  %v5259_v10 = vunpack.i.l.bf16 %v5258_v19  ;;  %v8354_v19 = vld [vmem:[#allocation32_spill] sm:$0xff] }
 0xcab   : > { %v3067_v55 = vsel %vm3060_vm4, %v3050_v16, %v5264_v50  ;;  %v3068_v27 = vsel %vm3060_vm4, %v3051_v38, %v5265_v46  ;;  %v8353_v46 = vld [vmem:[#allocation34_spill] sm:$0xff] }
 0xcac   : > { %v3065_v20 = vsel %vm3060_vm4, %v3048_v61, %v5259_v10  ;;  %v3066_v54 = vsel %vm3060_vm4, %v3049_v17, %v5260_v12  ;;  %v3080_v31 = vpack.c.bf16 %v3068_v27, %v3067_v55  ;;  %v5273_v34 = vpop.permute.xlu1 %5272  ;;  %v8355_v12 = vld [vmem:[#allocation35_spill] sm:$0xff]  ;;  %v8356_v61 = vld [vmem:[#allocation33_spill] sm:$0xff] }
 0xcad   : > { %v3079_v56 = vpack.c.bf16 %v3066_v54, %v3065_v20  ;;  %v5268_v62 = vpop.permute.xlu0 %5267  ;;  %v5275_v57 = vunpack.i.h.bf16 %v5273_v34  ;;  %v5274_v8 = vunpack.i.l.bf16 %v5273_v34 }
 0xcae   : > { %v5270_v11 = vunpack.i.h.bf16 %v5268_v62  ;;  %v5269_v18 = vunpack.i.l.bf16 %v5268_v62 }
 0xcaf   : > { %5047 = vmatprep.mubr.bf16.mxu0 %v3079_v56  ;;  %v3038_v29 = vsel %vm996_vm0, %v8349_v52, %v5275_v57  ;;  %v3037_v3 = vsel %vm996_vm0, %v8350_v2, %v5274_v8 }
 0xcb0   : > { %5048 = vmatmul.mubr.bf16.gmra.mrb[100].mxu0 %v3080_v31  ;;  %v5283_v23 = vpop.permute.xlu1 %5282  ;;  %v3036_v7 = vsel %vm996_vm0, %v8351_v49, %v5270_v11  ;;  %v3035_v41 = vsel %vm996_vm0, %v8352_v4, %v5269_v18  ;;  %v5727_v4 = vld [vmem:[%s6273_s14 + $0x8] sm:$0xff] }
 0xcb1   : > { %v5278_v60 = vpop.permute.xlu0 %5277  ;;  %v5285_v48 = vunpack.i.h.bf16 %v5283_v23  ;;  %v5284_v63 = vunpack.i.l.bf16 %v5283_v23 }
 0xcb2   : > { %v5280_v6 = vunpack.i.h.bf16 %v5278_v60  ;;  %v5279_v21 = vunpack.i.l.bf16 %v5278_v60 }
 0xcb3   : > { %v3054_v39 = vsel %vm3043_vm3, %v3037_v3, %v5284_v63  ;;  %v3055_v42 = vsel %vm3043_vm3, %v3038_v29, %v5285_v48  ;;  %v7581_v63 = vld [vmem:[%s8237_s5] ss:$0 sm:$0xff] }
 0xcb4   : > { %v3052_v44 = vsel %vm3043_vm3, %v3035_v41, %v5279_v21  ;;  %v3053_v43 = vsel %vm3043_vm3, %v3036_v7, %v5280_v6 }
 0xcd8   : > { %v5293_v32 = vpop.permute.xlu1 %5292 }
 0xcd9   : > { %v5295_v59 = vunpack.i.h.bf16 %v5293_v32  ;;  %v5294_v26 = vunpack.i.l.bf16 %v5293_v32  ;;  %v5288_v40 = vpop.permute.xlu0 %5287  ;;  %v5726_v32 = vld [vmem:[%s6273_s14] sm:$0xff] }
 0xcda   : > { %v5290_v53 = vunpack.i.h.bf16 %v5288_v40  ;;  %v5289_v5 = vunpack.i.l.bf16 %v5288_v40 }
 0xcdb   : > { %v3071_v25 = vsel %vm3060_vm4, %v3054_v39, %v5294_v26  ;;  %v3072_v37 = vsel %vm3060_vm4, %v3055_v42, %v5295_v59  ;;  %v5728_v59 = vld [vmem:[%s6273_s14 + $0x10] sm:$0xff]  ;;  %v5729_v39 = vld [vmem:[%s6273_s14 + $0x18] sm:$0xff] }
 0xcdc   : > { %v5303_v1 = vpop.permute.xlu1 %5302  ;;  %v3069_v13 = vsel %vm3060_vm4, %v3052_v44, %v5289_v5  ;;  %v3070_v33 = vsel %vm3060_vm4, %v3053_v43, %v5290_v53  ;;  %v3082_v22 = vpack.c.bf16 %v3072_v37, %v3071_v25 }
 0xcdd   : > { %v5298_v30 = vpop.permute.xlu0 %5297  ;;  %v3081_v15 = vpack.c.bf16 %v3070_v33, %v3069_v13  ;;  %v5305_v24 = vunpack.i.h.bf16 %v5303_v1  ;;  %v5304_v9 = vunpack.i.l.bf16 %v5303_v1  ;;  %v5730_v1 = vld [vmem:[%s6273_s14 + $0x20] sm:$0xff] }
 0xcde   : > { %v5300_v58 = vunpack.i.h.bf16 %v5298_v30  ;;  %v5299_v28 = vunpack.i.l.bf16 %v5298_v30  ;;  %v5731_v30 = vld [vmem:[%s6273_s14 + $0x28] sm:$0xff] }
 0xcdf   : > { %5051 = vmatprep.mubr.bf16.mxu0 %v3081_v15  ;;  %v3042_v50 = vsel %vm996_vm0, %v8353_v46, %v5305_v24  ;;  %v3041_v16 = vsel %vm996_vm0, %v8354_v19, %v5304_v9  ;;  %v5732_v24 = vld [vmem:[%s6273_s14 + $0x30] sm:$0xff]  ;;  %v5734_v46 = vld [vmem:[%s6273_s14 + $0x40] sm:$0xff] }
 0xce0   : > { %v5313_v47 = vpop.permute.xlu1 %5312  ;;  %5052 = vmatmul.mubr.bf16.gmra.mrb[104].mxu0 %v3082_v22  ;;  %v3040_v10 = vsel %vm996_vm0, %v8355_v12, %v5300_v58  ;;  %v3039_v17 = vsel %vm996_vm0, %v8356_v61, %v5299_v28 }
 0xce1   : > { %v5308_v36 = vpop.permute.xlu0 %5307  ;;  %v5315_v51 = vunpack.i.h.bf16 %v5313_v47  ;;  %v5314_v14 = vunpack.i.l.bf16 %v5313_v47  ;;  %v5733_v47 = vld [vmem:[%s6273_s14 + $0x38] sm:$0xff] }
 0xce2   : > { %v5310_v0 = vunpack.i.h.bf16 %v5308_v36  ;;  %v5309_v45 = vunpack.i.l.bf16 %v5308_v36 }
 0xce3   : > { %v3058_v54 = vsel %vm3043_vm3, %v3041_v16, %v5314_v14  ;;  %v3059_v31 = vsel %vm3043_vm3, %v3042_v50, %v5315_v51 }
 0xce4   : > { %v5323_v38 = vpop.permute.xlu1 %5322  ;;  %v3056_v62 = vsel %vm3043_vm3, %v3039_v17, %v5309_v45  ;;  %v3057_v23 = vsel %vm3043_vm3, %v3040_v10, %v5310_v0  ;;  %v5736_v10 = vld [vmem:[%s6273_s14 + $0x50] sm:$0xff]  ;;  %v5737_v17 = vld [vmem:[%s6273_s14 + $0x58] sm:$0xff] }
 0xce5   : > { %v5325_v55 = vunpack.i.h.bf16 %v5323_v38  ;;  %v5324_v27 = vunpack.i.l.bf16 %v5323_v38  ;;  %v5318_v20 = vpop.permute.xlu0 %5317  ;;  %v5735_v38 = vld [vmem:[%s6273_s14 + $0x48] sm:$0xff] }
 0xce6   : > { %v5320_v56 = vunpack.i.h.bf16 %v5318_v20  ;;  %v5319_v34 = vunpack.i.l.bf16 %v5318_v20 }
 0xce7   : > { %v3075_v57 = vsel %vm3060_vm4, %v3058_v54, %v5324_v27  ;;  %v3076_v8 = vsel %vm3060_vm4, %v3059_v31, %v5325_v55 }
 0xce8   : > { %v3073_v60 = vsel %vm3060_vm4, %v3056_v62, %v5319_v34  ;;  %v3074_v11 = vsel %vm3060_vm4, %v3057_v23, %v5320_v56  ;;  %v3084_v18 = vpack.c.bf16 %v3076_v8, %v3075_v57  ;;  %v5738_v62 = vld [vmem:[%s6273_s14 + $0x60] sm:$0xff] }
 0xce9   : > { %v3083_v48 = vpack.c.bf16 %v3074_v11, %v3073_v60  ;;  %v5739_v60 = vld [vmem:[%s6273_s14 + $0x68] sm:$0xff] }
 0xceb   : > { %5055 = vmatprep.mubr.bf16.mxu0 %v3083_v48 }
 0xcec   : > { %5056 = vmatmul.mubr.bf16.gmra.mrb[108].mxu0 %v3084_v18  ;;  %v5740_v18 = vld [vmem:[%s6273_s14 + $0x70] sm:$0xff] }
 0xd77   : > { %v5045_v6 = vpop.f32.mrb[96].mxu0 }
 0xd78   : > { %v3190_v21 = vpop.f32.mrb[97].mxu0  ;;  %v3199_v3 = vadd.f32 %v5045_v6, %v7581_v63  ;;  %v5741_v6 = vld [vmem:[%s6273_s14 + $0x78] sm:$0xff] }
 0xd79   : > { %v3191_v52 = vadd.f32 %v7581_v63, %v3190_v21  ;;  %v5046_v29 = vpop.f32.mrb[98].mxu0 }
 0xd7a   : > { %v3193_v2 = vpop.f32.mrb[99].mxu0  ;;  %v7594_v26 = vadd.f32 %v5728_v59, %v3199_v3  ;;  %v3202_v40 = vadd.f32 %v5046_v29, %v7581_v63  ;;  %v5368_v29 = vld [vmem:[#allocation8 + $0x4] ss:$8 sps:$4 sm:$0xff]  }
 0xd7b   : > { %v7586_v49 = vadd.f32 %v5726_v32, %v3191_v52  ;;  %v3194_v7 = vadd.f32 %v7581_v63, %v3193_v2  ;;  %v5366_v52 = vld [vmem:[#allocation8] ss:$8 sps:$4 sm:$0xff]   ;;  %3608 = vmatprep.subr.bf16.mxu1 %v5368_v29  ;;  %v5369_v2 = vld [vmem:[#allocation8 + $0x10] ss:$8 sps:$4 sm:$0xff]  }
 0xd7c   : > { %v7600_v42 = vadd.f32 %v5729_v39, %v3202_v40  ;;  %3609 = vmatpush1.bf16.msra.mxu1 %v5366_v52 }
 0xd7d   : > { %v7590_v41 = vadd.f32 %v5727_v4, %v3194_v7  ;;  %3269 = vadd.xlane.f32.xlu0 %v7586_v49 }
 0xd7f   : > { %3271 = vadd.xlane.f32.xlu1 %v7590_v41 }
 0xd81   : > { %3273 = vadd.xlane.f32.xlu0 %v7594_v26 }
 0xd83   : > { %v5049_v53 = vpop.f32.mrb[100].mxu0 }
 0xd84   : > { %v3206_v5 = vpop.f32.mrb[101].mxu0  ;;  %v3215_v37 = vadd.f32 %v5049_v53, %v7581_v63 }
 0xd85   : > { %v3207_v44 = vadd.f32 %v7581_v63, %v3206_v5  ;;  %v5050_v43 = vpop.f32.mrb[102].mxu0  ;;  %3275 = vadd.xlane.f32.xlu0 %v7600_v42 }
 0xd86   : > { %v3209_v25 = vpop.f32.mrb[103].mxu0  ;;  %v3218_v22 = vadd.f32 %v5050_v43, %v7581_v63  ;;  %v7615_v9 = vadd.f32 %v5732_v24, %v3215_v37 }
 0xd87   : > { %v7606_v13 = vadd.f32 %v5730_v1, %v3207_v44  ;;  %v3210_v33 = vadd.f32 %v7581_v63, %v3209_v25 }
 0xd88   : > { %v7619_v58 = vadd.f32 %v5733_v47, %v3218_v22 }
 0xd89   : > { %v7611_v15 = vadd.f32 %v5731_v30, %v3210_v33  ;;  %3277 = vadd.xlane.f32.xlu0 %v7606_v13 }
 0xd8b   : > { %3279 = vadd.xlane.f32.xlu1 %v7611_v15 }
 0xd8d   : > { %3281 = vadd.xlane.f32.xlu0 %v7615_v9 }
 0xd8f   : > { %3283 = vadd.xlane.f32.xlu1 %v7619_v58 }
 0xdb3   : > { %v5053_v28 = vpop.f32.mrb[104].mxu0 }
 0xdb4   : > { %v3222_v36 = vpop.f32.mrb[105].mxu0  ;;  %v3231_v45 = vadd.f32 %v5053_v28, %v7581_v63 }
 0xdb5   : > { %v3223_v51 = vadd.f32 %v7581_v63, %v3222_v36  ;;  %v5054_v14 = vpop.f32.mrb[106].mxu0 }
 0xdb6   : > { %v3225_v0 = vpop.f32.mrb[107].mxu0  ;;  %v3234_v16 = vadd.f32 %v5054_v14, %v7581_v63  ;;  %v7635_v61 = vadd.f32 %v5736_v10, %v3231_v45  ;;  %v5380_v10 = vld [vmem:[#allocation8 + $0x44] ss:$8 sps:$4 sm:$0xff]  }
 0xdb7   : > { %v7626_v50 = vadd.f32 %v5734_v46, %v3223_v51  ;;  %v3226_v19 = vadd.f32 %v7581_v63, %v3225_v0  ;;  %v5374_v46 = vld [vmem:[#allocation8 + $0x24] ss:$8 sps:$4 sm:$0xff]  }
 0xdb8   : > { %v7639_v55 = vadd.f32 %v5737_v17, %v3234_v16  ;;  %v5383_v17 = vld [vmem:[#allocation8 + $0x54] ss:$8 sps:$4 sm:$0xff]  }
 0xdb9   : > { %v7631_v12 = vadd.f32 %v5735_v38, %v3226_v19  ;;  %3285 = vadd.xlane.f32.xlu0 %v7626_v50  ;;  %v5372_v19 = vld [vmem:[#allocation8 + $0x20] ss:$8 sps:$4 sm:$0xff]   ;;  %v5375_v38 = vld [vmem:[#allocation8 + $0x30] ss:$8 sps:$4 sm:$0xff]  }
 0xdbb   : > { %3287 = vadd.xlane.f32.xlu1 %v7631_v12 }
 0xdbd   : > { %3289 = vadd.xlane.f32.xlu0 %v7635_v61 }
 0xdbf   : > { %v5057_v27 = vpop.f32.mrb[108].mxu0  ;;  %3291 = vadd.xlane.f32.xlu1 %v7639_v55 }
 0xdc0   : > { %v3238_v20 = vpop.f32.mrb[109].mxu0  ;;  %v3247_v34 = vadd.f32 %v5057_v27, %v7581_v63  ;;  %v5381_v27 = vld [vmem:[#allocation8 + $0x50] ss:$8 sps:$4 sm:$0xff]  }
 0xdc1   : > { %v3239_v54 = vadd.f32 %v7581_v63, %v3238_v20  ;;  %v5058_v31 = vpop.f32.mrb[110].mxu0  ;;  %v5386_v20 = vld [vmem:[#allocation8 + $0x64] ss:$8 sps:$4 sm:$0xff]  }
 0xdc2   : > { %v3241_v56 = vpop.f32.mrb[111].mxu0  ;;  %v3250_v8 = vadd.f32 %v5058_v31, %v7581_v63  ;;  %v7655_v48 = vadd.f32 %v5740_v18, %v3247_v34  ;;  %v5389_v31 = vld [vmem:[#allocation8 + $0x74] ss:$8 sps:$4 sm:$0xff]  }
 0xdc3   : > { %v7646_v23 = vadd.f32 %v5738_v62, %v3239_v54  ;;  %v3242_v57 = vadd.f32 %v7581_v63, %v3241_v56  ;;  %v5371_v63 = vld [vmem:[#allocation8 + $0x14] ss:$8 sps:$4 sm:$0xff]   ;;  %v5384_v54 = vld [vmem:[#allocation8 + $0x60] ss:$8 sps:$4 sm:$0xff]   ;;  %v5387_v56 = vld [vmem:[#allocation8 + $0x70] ss:$8 sps:$4 sm:$0xff]  }
 0xdc4   : > { %v7659_v21 = vadd.f32 %v5741_v6, %v3250_v8  ;;  %3610 = vmatprep.subr.bf16.mxu1 %v5371_v63 }
 0xdc5   : > { %v7651_v11 = vadd.f32 %v5739_v60, %v3242_v57  ;;  %3293 = vadd.xlane.f32.xlu0 %v7646_v23  ;;  %3611 = vmatpush1.bf16.msra.mxu1 %v5369_v2 }
 0xdc6   : > { %3612 = vmatprep.subr.bf16.mxu1 %v5374_v46  ;;  %v7769_v46 = vld [vmem:[#allocation10 + $0x68] sm:$0xff]  }
 0xdc7   : > { %3295 = vadd.xlane.f32.xlu1 %v7651_v11 }
 0xdc9   : > { %3297 = vadd.xlane.f32.xlu0 %v7655_v48  ;;  %3613 = vmatpush1.bf16.msra.mxu1 %v5372_v19 }
 0xdcb   : > { %3299 = vadd.xlane.f32.xlu1 %v7659_v21 }
 0xe0a   : > { %v3270_v3 = vpop.xlane.xlu0 %3269 }
 0xe0b   : > { %v3302_v32 = vmul.f32 0.0078125, %v3270_v3 }
 0xe0c   : > { %v3272_v7 = vpop.xlane.xlu1 %3271 }
 0xe0d   : > { %v7664_v4 = vsub.f32 %v7586_v49, %v3302_v32  ;;  %v3303_v59 = vmul.f32 0.0078125, %v3272_v7 }
 0xe0e   : > { %v3274_v40 = vpop.xlane.xlu0 %3273 }
 0xe0f   : > { %v7667_v39 = vsub.f32 %v7590_v41, %v3303_v59  ;;  %v3304_v53 = vmul.f32 0.0078125, %v3274_v40  ;;  %v3334_v5 = vmul.f32 %v7664_v4, %v7664_v4 }
 0xe11   : > { %v7672_v44 = vsub.f32 %v7594_v26, %v3304_v53  ;;  %3350 = vadd.xlane.f32.xlu0 %v3334_v5  ;;  %v3335_v43 = vmul.f32 %v7667_v39, %v7667_v39 }
 0xe12   : > { %v3276_v25 = vpop.xlane.xlu0 %3275 }
 0xe13   : > { %v3305_v37 = vmul.f32 0.0078125, %v3276_v25  ;;  %3352 = vadd.xlane.f32.xlu1 %v3335_v43  ;;  %v3336_v49 = vmul.f32 %v7672_v44, %v7672_v44 }
 0xe15   : > { %v7679_v41 = vsub.f32 %v7600_v42, %v3305_v37  ;;  %3354 = vadd.xlane.f32.xlu0 %v3336_v49 }
 0xe16   : > { %v3278_v1 = vpop.xlane.xlu0 %3277 }
 0xe17   : > { %v3306_v33 = vmul.f32 0.0078125, %v3278_v1  ;;  %v3337_v26 = vmul.f32 %v7679_v41, %v7679_v41 }
 0xe18   : > { %v3280_v22 = vpop.xlane.xlu1 %3279 }
 0xe19   : > { %v7684_v30 = vsub.f32 %v7606_v13, %v3306_v33  ;;  %v3307_v24 = vmul.f32 0.0078125, %v3280_v22  ;;  %3356 = vadd.xlane.f32.xlu1 %v3337_v26 }
 0xe1a   : > { %v3282_v47 = vpop.xlane.xlu0 %3281 }
 0xe1b   : > { %v7687_v28 = vsub.f32 %v7611_v15, %v3307_v24  ;;  %v3308_v36 = vmul.f32 0.0078125, %v3282_v47  ;;  %v3338_v42 = vmul.f32 %v7684_v30, %v7684_v30  ;;  %v5390_v24 = vld [vmem:[#allocation10 + $0x40] sm:$0xff]   ;;  %v7745_v47 = vld [vmem:[#allocation10 + $0x48] sm:$0xff]  }
 0xe1c   : > { %v3284_v51 = vpop.xlane.xlu1 %3283  ;;  %4675 = vmatprep.subr.bf16.mxu0 %v5390_v24 }
 0xe1d   : > { %v7692_v14 = vsub.f32 %v7615_v9, %v3308_v36  ;;  %v3309_v0 = vmul.f32 0.0078125, %v3284_v51  ;;  %3358 = vadd.xlane.f32.xlu0 %v3338_v42  ;;  %v3339_v13 = vmul.f32 %v7687_v28, %v7687_v28  ;;  %v5377_v9 = vld [vmem:[#allocation8 + $0x34] ss:$8 sps:$4 sm:$0xff]  }
 0xe1e   : > { %3614 = vmatprep.subr.bf16.mxu1 %v5377_v9  ;;  %v7751_v36 = vld [vmem:[#allocation10 + $0x50] sm:$0xff]   ;;  %v7757_v51 = vld [vmem:[#allocation10 + $0x58] sm:$0xff]  }
 0xe1f   : > { %v7697_v45 = vsub.f32 %v7619_v58, %v3309_v0  ;;  %3360 = vadd.xlane.f32.xlu1 %v3339_v13  ;;  %v3340_v15 = vmul.f32 %v7692_v14, %v7692_v14  ;;  %3615 = vmatpush1.bf16.msra.mxu1 %v5375_v38  ;;  %v5378_v58 = vld [vmem:[#allocation8 + $0x40] ss:$8 sps:$4 sm:$0xff]   ;;  %v7754_v42 = vld [vmem:[#allocation10 + $0x10] sm:$0xff]   ;;  %v7760_v0 = vld [vmem:[#allocation10 + $0x18] sm:$0xff]  }
 0xe20   : > { %3616 = vmatprep.subr.bf16.mxu1 %v5380_v10  ;;  %v7763_v13 = vld [vmem:[#allocation10 + $0x60] sm:$0xff]  }
 0xe21   : > { %3362 = vadd.xlane.f32.xlu0 %v3340_v15  ;;  %v3341_v16 = vmul.f32 %v7697_v45, %v7697_v45  ;;  %v7766_v15 = vld [vmem:[#allocation10 + $0x20] sm:$0xff]  }
 0xe23   : > { %3364 = vadd.xlane.f32.xlu1 %v3341_v16  ;;  %3617 = vmatpush1.bf16.msra.mxu1 %v5378_v58 }
 0xe24   : > { %3618 = vmatprep.subr.bf16.mxu1 %v5383_v17 }
 0xe27   : > { %3619 = vmatpush1.bf16.msra.mxu1 %v5381_v27 }
 0xe28   : > { %3620 = vmatprep.subr.bf16.mxu1 %v5386_v20 }
 0xe2b   : > { %3621 = vmatpush1.bf16.msra.mxu1 %v5384_v54 }
 0xe2c   : > { %3622 = vmatprep.subr.bf16.mxu1 %v5389_v31 }
 0xe2f   : > { %3623 = vmatpush1.bf16.msra.mxu1 %v5387_v56 }
 0xe30   : > { %5059 = vmatprep.subr.bf16.mxu1 %v5390_v24 }
 0xe46   : > { %v3286_v34 = vpop.xlane.xlu0 %3285 }
 0xe47   : > { %v3310_v62 = vmul.f32 0.0078125, %v3286_v34 }
 0xe48   : > { %v3288_v57 = vpop.xlane.xlu1 %3287 }
 0xe49   : > { %v7704_v8 = vsub.f32 %v7626_v50, %v3310_v62  ;;  %v3311_v60 = vmul.f32 0.0078125, %v3288_v57 }
 0xe4a   : > { %v3290_v18 = vpop.xlane.xlu0 %3289 }
 0xe4b   : > { %v7707_v6 = vsub.f32 %v7631_v12, %v3311_v60  ;;  %v3312_v52 = vmul.f32 0.0078125, %v3290_v18  ;;  %v3342_v29 = vmul.f32 %v7704_v8, %v7704_v8  ;;  %v7776_v18 = vld [vmem:[%s8238_s6] ss:$0 sm:$0xff] }
 0xe4c   : > { %v3292_v63 = vpop.xlane.xlu1 %3291 }
 0xe4d   : > { %v7712_v2 = vsub.f32 %v7635_v61, %v3312_v52  ;;  %v3313_v3 = vmul.f32 0.0078125, %v3292_v63  ;;  %3366 = vadd.xlane.f32.xlu0 %v3342_v29  ;;  %v3343_v32 = vmul.f32 %v7707_v6, %v7707_v6 }
 0xe4f   : > { %v7717_v50 = vsub.f32 %v7639_v55, %v3313_v3  ;;  %3368 = vadd.xlane.f32.xlu1 %v3343_v32  ;;  %v3344_v12 = vmul.f32 %v7712_v2, %v7712_v2 }
 0xe51   : > { %3370 = vadd.xlane.f32.xlu0 %v3344_v12  ;;  %v3345_v7 = vmul.f32 %v7717_v50, %v7717_v50 }
 0xe52   : > { %v3294_v59 = vpop.xlane.xlu0 %3293 }
 0xe53   : > { %v3314_v40 = vmul.f32 0.0078125, %v3294_v59  ;;  %3372 = vadd.xlane.f32.xlu1 %v3345_v7 }
 0xe54   : > { %v3296_v61 = vpop.xlane.xlu1 %3295 }
 0xe55   : > { %v7724_v53 = vsub.f32 %v7646_v23, %v3314_v40  ;;  %v3315_v5 = vmul.f32 0.0078125, %v3296_v61 }
 0xe56   : > { %v3298_v43 = vpop.xlane.xlu0 %3297 }
 0xe57   : > { %v7727_v55 = vsub.f32 %v7651_v11, %v3315_v5  ;;  %v3316_v25 = vmul.f32 0.0078125, %v3298_v43  ;;  %v3346_v37 = vmul.f32 %v7724_v53, %v7724_v53 }
 0xe58   : > { %v3300_v49 = vpop.xlane.xlu1 %3299 }
 0xe59   : > { %v7732_v1 = vsub.f32 %v7655_v48, %v3316_v25  ;;  %v3317_v33 = vmul.f32 0.0078125, %v3300_v49  ;;  %3374 = vadd.xlane.f32.xlu0 %v3346_v37  ;;  %v3347_v26 = vmul.f32 %v7727_v55, %v7727_v55  ;;  %v7743_v48 = vld [vmem:[#allocation10] sm:$0xff]  }
 0xe5a   : > { %4676 = vmatpush3.bf16.msra.mxu0 %v7743_v48  ;;  %v7784_v25 = vld [vmem:[%s8239_s7] ss:$0 sm:$0xff] }
 0xe5b   : > { %v7737_v23 = vsub.f32 %v7659_v21, %v3317_v33  ;;  %3376 = vadd.xlane.f32.xlu1 %v3347_v26  ;;  %v3348_v11 = vmul.f32 %v7732_v1, %v7732_v1  ;;  %v7748_v21 = vld [vmem:[#allocation10 + $0x8] sm:$0xff]   ;;  %4677 = vmatprep.subr.bf16.mxu0 %v7745_v47 }
 0xe5d   : > { %3378 = vadd.xlane.f32.xlu0 %v3348_v11  ;;  %v3349_v22 = vmul.f32 %v7737_v23, %v7737_v23 }
 0xe5e   : > { %4678 = vmatpush3.bf16.msra.mxu0 %v7748_v21 }
 0xe5f   : > { %3380 = vadd.xlane.f32.xlu1 %v3349_v22  ;;  %4679 = vmatprep.subr.bf16.mxu0 %v7751_v36 }
 0xe62   : > { %4680 = vmatpush3.bf16.msra.mxu0 %v7754_v42 }
 0xe63   : > { %4681 = vmatprep.subr.bf16.mxu0 %v7757_v51 }
 0xe66   : > { %4682 = vmatpush3.bf16.msra.mxu0 %v7760_v0 }
 0xe67   : > { %4683 = vmatprep.subr.bf16.mxu0 %v7763_v13 }
 0xe6a   : > { %4684 = vmatpush3.bf16.msra.mxu0 %v7766_v15 }
 0xe6b   : > { %4685 = vmatprep.subr.bf16.mxu0 %v7769_v46 }
 0xe9e   : > { %v3351_v19 = vpop.xlane.xlu0 %3350 }
 0xe9f   : > { %v3382_v16 = vmul.f32 0.0078125, %v3351_v19 }
 0xea0   : > { %v3353_v9 = vpop.xlane.xlu1 %3352 }
 0xea1   : > { %v3398_v38 = vadd.f32 1e-05, %v3382_v16  ;;  %v3383_v10 = vmul.f32 0.0078125, %v3353_v9 }
 0xea2   : > { %v3355_v58 = vpop.xlane.xlu0 %3354 }
 0xea3   : > { %5662 = vrsqrt.f32 %v3398_v38  ;;  %v3399_v17 = vadd.f32 1e-05, %v3383_v10  ;;  %v3384_v27 = vmul.f32 0.0078125, %v3355_v58 }
 0xea5   : > { %5664 = vrsqrt.f32 %v3399_v17  ;;  %v3400_v20 = vadd.f32 1e-05, %v3384_v27 }
 0xea6   : > { %v3357_v54 = vpop.xlane.xlu1 %3356 }
 0xea7   : > { %5666 = vrsqrt.f32 %v3400_v20  ;;  %v3385_v31 = vmul.f32 0.0078125, %v3357_v54 }
 0xea9   : > { %v3401_v56 = vadd.f32 1e-05, %v3385_v31 }
 0xeaa   : > { %v3359_v34 = vpop.xlane.xlu0 %3358 }
 0xeab   : > { %5668 = vrsqrt.f32 %v3401_v56  ;;  %v3386_v62 = vmul.f32 0.0078125, %v3359_v34 }
 0xeac   : > { %v3361_v57 = vpop.xlane.xlu1 %3360 }
 0xead   : > { %v5663_v60 = vpop.eup %5662  ;;  %v3402_v52 = vadd.f32 1e-05, %v3386_v62  ;;  %v3387_v29 = vmul.f32 0.0078125, %v3361_v57 }
 0xeae   : > { %v3430_v63 = vmul.f32 %v5663_v60, %v7664_v4  ;;  %v3363_v3 = vpop.xlane.xlu0 %3362 }
 0xeaf   : > { %v5665_v32 = vpop.eup %5664  ;;  %5670 = vrsqrt.f32 %v3402_v52  ;;  %v3403_v12 = vadd.f32 1e-05, %v3387_v29  ;;  %v3388_v7 = vmul.f32 0.0078125, %v3363_v3 }
 0xeb0   : > { %v3453_v59 = vmul.f32 %v7776_v18, %v3430_v63  ;;  %v3431_v40 = vmul.f32 %v5665_v32, %v7667_v39  ;;  %v3365_v61 = vpop.xlane.xlu1 %3364 }
 0xeb1   : > { %v5667_v5 = vpop.eup %5666  ;;  %5672 = vrsqrt.f32 %v3403_v12  ;;  %v3389_v43 = vmul.f32 0.0078125, %v3365_v61  ;;  %v3404_v37 = vadd.f32 1e-05, %v3388_v7 }
 0xeb2   : > { %v3454_v4 = vmul.f32 %v7776_v18, %v3431_v40  ;;  %v7788_v33 = vadd.f32 %v7784_v25, %v3453_v59  ;;  %v3432_v39 = vmul.f32 %v5667_v5, %v7672_v44 }
 0xeb3   : > { %v3405_v49 = vadd.f32 1e-05, %v3389_v43 }
 0xeb4   : > { %v7791_v26 = vadd.f32 %v7784_v25, %v3454_v4  ;;  %v3455_v19 = vmul.f32 %v7776_v18, %v3432_v39 }
 0xeb5   : > { %v5669_v11 = vpop.eup %5668  ;;  %5674 = vrsqrt.f32 %v3405_v49 }
 0xeb6   : > { %v3492_v22 = vpack.c.bf16 %v7791_v26, %v7788_v33  ;;  %v3433_v24 = vmul.f32 %v5669_v11, %v7679_v41  ;;  %5676 = vrsqrt.f32 %v3404_v37  ;;  %v7806_v10 = vadd.f32 %v7784_v25, %v3455_v19 }
 0xeb8   : > { %3641 = vmatmul.mubr.bf16.vlgmr.msra.gmra.mrb[80].mxu1 %v3492_v22  ;;  %v3456_v16 = vmul.f32 %v7776_v18, %v3433_v24 }
 0xeb9   : > { %v5671_v9 = vpop.eup %5670  ;;  %3650 = vmatprep.mubr.bf16.mxu1 %v8319_v35  ;;  %5067 = vmatpush3.bf16.msra.mxu1 %v7743_v48 }
 0xeba   : > { %v7802_v44 = vadd.f32 %v7784_v25, %v3456_v16  ;;  %5060 = vmatprep.subr.bf16.mxu1 %v7745_v47  ;;  %v3434_v41 = vmul.f32 %v5671_v9, %v7684_v30 }
 0xebb   : > { %v5673_v38 = vpop.eup %5672 }
 0xebc   : > { %v3435_v58 = vmul.f32 %v5673_v38, %v7687_v28  ;;  %v3493_v17 = vpack.c.bf16 %v7802_v44, %v7806_v10  ;;  %v3457_v47 = vmul.f32 %v7776_v18, %v3434_v41 }
 0xebd   : > { %5068 = vmatpush3.bf16.msra.mxu1 %v7748_v21 }
 0xebe   : > { %v3458_v48 = vmul.f32 %v7776_v18, %v3435_v58  ;;  %5061 = vmatprep.subr.bf16.mxu1 %v7751_v36  ;;  %v7824_v21 = vadd.f32 %v7784_v25, %v3457_v47 }
 0xebf   : > { %v5675_v27 = vpop.eup %5674 }
 0xec0   : > { %3651 = vmatmul.mubr.bf16.gmra.mrb[84].mxu1 %v3493_v17  ;;  %v5677_v20 = vpop.eup %5676  ;;  %v7819_v30 = vadd.f32 %v7784_v25, %v3458_v48  ;;  %v3437_v28 = vmul.f32 %v5675_v27, %v7697_v45 }
 0xec1   : > { %3660 = vmatprep.mubr.bf16.mxu1 %v8319_v35  ;;  %5069 = vmatpush3.bf16.msra.mxu1 %v7754_v42  ;;  %v3436_v36 = vmul.f32 %v5677_v20, %v7692_v14 }
 0xec2   : > { %5062 = vmatprep.subr.bf16.mxu1 %v7757_v51  ;;  %v3494_v54 = vpack.c.bf16 %v7819_v30, %v7824_v21  ;;  %v3460_v31 = vmul.f32 %v7776_v18, %v3437_v28 }
 0xec3   : > { %v3459_v42 = vmul.f32 %v7776_v18, %v3436_v36 }
 0xec4   : > { %v7836_v45 = vadd.f32 %v7784_v25, %v3460_v31 }
 0xec5   : > { %5070 = vmatpush3.bf16.msra.mxu1 %v7760_v0  ;;  %v7840_v14 = vadd.f32 %v7784_v25, %v3459_v42 }
 0xec6   : > { %5063 = vmatprep.subr.bf16.mxu1 %v7763_v13 }
 0xec7   : > { %v3495_v51 = vpack.c.bf16 %v7836_v45, %v7840_v14 }
 0xec8   : > { %3661 = vmatmul.mubr.bf16.gmra.mrb[88].mxu1 %v3494_v54 }
 0xec9   : > { %3670 = vmatprep.mubr.bf16.mxu1 %v8319_v35  ;;  %5071 = vmatpush3.bf16.msra.mxu1 %v7766_v15 }
 0xeca   : > { %5064 = vmatprep.subr.bf16.mxu1 %v7769_v46 }
 0xed0   : > { %3671 = vmatmul.mubr.bf16.gmra.mrb[92].mxu1 %v3495_v51 }
 0xed1   : > { %3680 = vmatprep.mubr.bf16.mxu1 %v8319_v35 }
 0xeda   : > { %v3367_v0 = vpop.xlane.xlu0 %3366 }
 0xedb   : > { %v3390_v13 = vmul.f32 0.0078125, %v3367_v0 }
 0xedc   : > { %v3369_v56 = vpop.xlane.xlu1 %3368 }
 0xedd   : > { %v3406_v34 = vadd.f32 1e-05, %v3390_v13  ;;  %v3391_v62 = vmul.f32 0.0078125, %v3369_v56 }
 0xede   : > { %v3371_v15 = vpop.xlane.xlu0 %3370 }
 0xedf   : > { %5678 = vrsqrt.f32 %v3406_v34  ;;  %v3407_v57 = vadd.f32 1e-05, %v3391_v62  ;;  %v3392_v60 = vmul.f32 0.0078125, %v3371_v15 }
 0xee0   : > { %v3373_v52 = vpop.xlane.xlu1 %3372 }
 0xee1   : > { %5680 = vrsqrt.f32 %v3407_v57  ;;  %v3408_v46 = vadd.f32 1e-05, %v3392_v60  ;;  %v3393_v29 = vmul.f32 0.0078125, %v3373_v52  ;;  %v5402_v52 = vld [vmem:[#allocation10 + $0x70] sm:$0xff]  }
 0xee3   : > { %5682 = vrsqrt.f32 %v3408_v46  ;;  %v3409_v63 = vadd.f32 1e-05, %v3393_v29  ;;  %v5403_v46 = vld [vmem:[#allocation10 + $0x30] sm:$0xff]   ;;  %v8358_v29 = vld [vmem:[#allocation19_spill] sm:$0xff] }
 0xee5   : > { %5684 = vrsqrt.f32 %v3409_v63 }
 0xee6   : > { %v3375_v3 = vpop.xlane.xlu0 %3374 }
 0xee7   : > { %v3394_v32 = vmul.f32 0.0078125, %v3375_v3  ;;  %v8359_v3 = vld [vmem:[#allocation18_spill] sm:$0xff] }
 0xee8   : > { %v3377_v12 = vpop.xlane.xlu1 %3376 }
 0xee9   : > { %v5679_v7 = vpop.eup %5678  ;;  %v3410_v59 = vadd.f32 1e-05, %v3394_v32  ;;  %v3395_v40 = vmul.f32 0.0078125, %v3377_v12  ;;  %v8360_v32 = vsub.s32 1, %v8359_v3 }
 0xeea   : > { %v3379_v61 = vpop.xlane.xlu0 %3378  ;;  %v3438_v5 = vmul.f32 %v5679_v7, %v7704_v8 }
 0xeeb   : > { %v5681_v43 = vpop.eup %5680  ;;  %5686 = vrsqrt.f32 %v3410_v59  ;;  %v3411_v4 = vadd.f32 1e-05, %v3395_v40  ;;  %v3396_v37 = vmul.f32 0.0078125, %v3379_v61 }
 0xeec   : > { %v3381_v49 = vpop.xlane.xlu1 %3380  ;;  %v3439_v39 = vmul.f32 %v5681_v43, %v7707_v6  ;;  %v3461_v11 = vmul.f32 %v7776_v18, %v3438_v5 }
 0xeed   : > { %v5683_v22 = vpop.eup %5682  ;;  %5688 = vrsqrt.f32 %v3411_v4  ;;  %v3397_v24 = vmul.f32 0.0078125, %v3381_v49  ;;  %v3412_v9 = vadd.f32 1e-05, %v3396_v37 }
 0xeee   : > { %v3462_v19 = vmul.f32 %v7776_v18, %v3439_v39  ;;  %v7850_v41 = vadd.f32 %v7784_v25, %v3461_v11  ;;  %v3440_v58 = vmul.f32 %v5683_v22, %v7712_v2 }
 0xeef   : > { %v5685_v16 = vpop.eup %5684  ;;  %v3413_v38 = vadd.f32 1e-05, %v3397_v24 }
 0xef0   : > { %v7853_v8 = vadd.f32 %v7784_v25, %v3462_v19  ;;  %v3441_v6 = vmul.f32 %v5685_v16, %v7717_v50  ;;  %v3463_v27 = vmul.f32 %v7776_v18, %v3440_v58 }
 0xef1   : > { %5690 = vrsqrt.f32 %v3413_v38 }
 0xef2   : > { %v3496_v17 = vpack.c.bf16 %v7853_v8, %v7850_v41  ;;  %v3464_v48 = vmul.f32 %v7776_v18, %v3441_v6  ;;  %5692 = vrsqrt.f32 %v3412_v9  ;;  %v7866_v2 = vadd.f32 %v7784_v25, %v3463_v27 }
 0xef4   : > { %3681 = vmatmul.mubr.bf16.gmra.mrb[96].mxu1 %v3496_v17  ;;  %v7863_v20 = vadd.f32 %v7784_v25, %v3464_v48 }
 0xef5   : > { %v5687_v47 = vpop.eup %5686  ;;  %3690 = vmatprep.mubr.bf16.mxu1 %v8319_v35 }
 0xef6   : > { %v3442_v50 = vmul.f32 %v5687_v47, %v7724_v53  ;;  %v3497_v54 = vpack.c.bf16 %v7863_v20, %v7866_v2 }
 0xef7   : > { %v5689_v28 = vpop.eup %5688 }
 0xef8   : > { %v3443_v36 = vmul.f32 %v5689_v28, %v7727_v55  ;;  %v3465_v51 = vmul.f32 %v7776_v18, %v3442_v50 }
 0xefa   : > { %v3466_v31 = vmul.f32 %v7776_v18, %v3443_v36  ;;  %v7880_v53 = vadd.f32 %v7784_v25, %v3465_v51 }
 0xefb   : > { %v5691_v42 = vpop.eup %5690 }
 0xefc   : > { %3691 = vmatmul.mubr.bf16.gmra.mrb[100].mxu1 %v3497_v54  ;;  %v5693_v0 = vpop.eup %5692  ;;  %v7876_v13 = vadd.f32 %v7784_v25, %v3466_v31  ;;  %v3445_v56 = vmul.f32 %v5691_v42, %v7737_v23 }
 0xefd   : > { %3700 = vmatprep.mubr.bf16.mxu1 %v8319_v35  ;;  %v3444_v55 = vmul.f32 %v5693_v0, %v7732_v1  ;;  %v5401_v1 = vld [vmem:[#allocation10 + $0x28] sm:$0xff]  }
 0xefe   : > { %v3498_v34 = vpack.c.bf16 %v7876_v13, %v7880_v53  ;;  %v3468_v62 = vmul.f32 %v7776_v18, %v3445_v56  ;;  %4686 = vmatpush3.bf16.msra.mxu0 %v5401_v1  ;;  %5072 = vmatpush3.bf16.msra.mxu1 %v5401_v1 }
 0xeff   : > { %v3467_v15 = vmul.f32 %v7776_v18, %v3444_v55  ;;  %4687 = vmatprep.subr.bf16.mxu0 %v5402_v52  ;;  %5065 = vmatprep.subr.bf16.mxu1 %v5402_v52  ;;  %v5404_v18 = vld [vmem:[#allocation10 + $0x78] sm:$0xff]  }
 0xf00   : > { %v7889_v57 = vadd.f32 %v7784_v25, %v3468_v62 }
 0xf01   : > { %v7892_v23 = vadd.f32 %v7784_v25, %v3467_v15  ;;  %v3516_v25 = vld [vmem:[%s8357_s2] sm:$0x3] }
 0xf02   : > { %4688 = vmatpush3.bf16.msra.mxu0 %v5403_v46  ;;  %5073 = vmatpush3.bf16.msra.mxu1 %v5403_v46  ;;  %v7900_v63 = vrot.slane %v3516_v25, %v8358_v29  ;;  %v7904_v12 = vrot.slane %v3516_v25, %v8360_v32 }
 0xf03   : > { %v3499_v60 = vpack.c.bf16 %v7889_v57, %v7892_v23  ;;  %4689 = vmatprep.subr.bf16.mxu0 %v5404_v18  ;;  %5066 = vmatprep.subr.bf16.mxu1 %v5404_v18 }
 0xf04   : > { %3701 = vmatmul.mubr.bf16.gmra.mrb[104].mxu1 %v3498_v34 }
 0xf05   : > { %3710 = vmatprep.mubr.bf16.mxu1 %v8319_v35  ;;  %v5405_v35 = vld [vmem:[#allocation10 + $0x38] sm:$0xff]  }
 0xf06   : > { %4690 = vmatpush3.bf16.msra.mxu0 %v5405_v35  ;;  %5074 = vmatpush3.bf16.msra.mxu1 %v5405_v35 }
 0xf0c   : > { %3711 = vmatmul.mubr.bf16.gmra.mrb[108].mxu1 %v3499_v60 }
 0xf8b   : > { %v3642_v7 = vpop.f32.mrb[80].mxu1 }
 0xf8c   : > { %v3643_v59 = vadd.f32 %v3642_v7, %v7900_v63  ;;  %v3644_v40 = vpop.f32.mrb[81].mxu1 }
 0xf8d   : > { %v3645_v61 = vadd.f32 %v3644_v40, %v7904_v12  ;;  %v3646_v5 = vpop.f32.mrb[82].mxu1 }
 0xf8e   : > { %v3647_v43 = vadd.f32 %v3646_v5, %v7900_v63  ;;  %v3648_v4 = vpop.f32.mrb[83].mxu1  ;;  %v3721_v49 = vmax.f32 %v3643_v59, 0.0 }
 0xf8f   : > { %v3649_v37 = vadd.f32 %v3648_v4, %v7904_v12  ;;  %v3722_v11 = vmax.f32 %v3645_v61, 0.0 }
 0xf90   : > { %v3723_v39 = vmax.f32 %v3647_v43, 0.0 }
 0xf91   : > { %v3724_v22 = vmax.f32 %v3649_v37, 0.0 }
 0xf92   : > { %v3753_v24 = vpack.c.bf16 %v3723_v39, %v3721_v49 }
 0xf93   : > { %v3754_v19 = vpack.c.bf16 %v3724_v22, %v3722_v11  ;;  %v3652_v16 = vpop.f32.mrb[84].mxu1 }
 0xf94   : > { %v3653_v9 = vadd.f32 %v3652_v16, %v7900_v63  ;;  %v3654_v38 = vpop.f32.mrb[85].mxu1 }
 0xf95   : > { %v3655_v58 = vadd.f32 %v3654_v38, %v7904_v12  ;;  %v3656_v6 = vpop.f32.mrb[86].mxu1  ;;  %3936 = vmatprep.mubr.bf16.mxu0 %v3754_v19 }
 0xf96   : > { %v3657_v17 = vadd.f32 %v3656_v6, %v7900_v63  ;;  %v3658_v48 = vpop.f32.mrb[87].mxu1  ;;  %3937 = vmatmul.mubr.bf16.vlgmr.msra.gmra.mrb[112].mxu0 %v3753_v24  ;;  %v3725_v47 = vmax.f32 %v3653_v9, 0.0 }
 0xf97   : > { %v3659_v27 = vadd.f32 %v3658_v48, %v7904_v12  ;;  %v3726_v50 = vmax.f32 %v3655_v58, 0.0 }
 0xf98   : > { %v3727_v28 = vmax.f32 %v3657_v17, 0.0 }
 0xf99   : > { %v3728_v36 = vmax.f32 %v3659_v27, 0.0 }
 0xf9a   : > { %v3755_v54 = vpack.c.bf16 %v3727_v28, %v3725_v47 }
 0xf9b   : > { %v3756_v31 = vpack.c.bf16 %v3728_v36, %v3726_v50  ;;  %v3662_v42 = vpop.f32.mrb[88].mxu1 }
 0xf9c   : > { %v3663_v51 = vadd.f32 %v3662_v42, %v7900_v63  ;;  %v3664_v0 = vpop.f32.mrb[89].mxu1 }
 0xf9d   : > { %v3665_v56 = vadd.f32 %v3664_v0, %v7904_v12  ;;  %v3666_v55 = vpop.f32.mrb[90].mxu1  ;;  %3944 = vmatprep.mubr.bf16.mxu0 %v3756_v31 }
 0xf9e   : > { %v3667_v34 = vadd.f32 %v3666_v55, %v7900_v63  ;;  %v3668_v62 = vpop.f32.mrb[91].mxu1  ;;  %3945 = vmatmul.mubr.bf16.gmra.mrb[116].mxu0 %v3755_v54  ;;  %v3729_v60 = vmax.f32 %v3663_v51, 0.0 }
 0xf9f   : > { %v3669_v15 = vadd.f32 %v3668_v62, %v7904_v12  ;;  %v3730_v52 = vmax.f32 %v3665_v56, 0.0 }
 0xfa0   : > { %v3731_v1 = vmax.f32 %v3667_v34, 0.0 }
 0xfa1   : > { %v3732_v46 = vmax.f32 %v3669_v15, 0.0 }
 0xfa2   : > { %v3757_v18 = vpack.c.bf16 %v3731_v1, %v3729_v60 }
 0xfa3   : > { %v3758_v35 = vpack.c.bf16 %v3732_v46, %v3730_v52  ;;  %v3672_v25 = vpop.f32.mrb[92].mxu1 }
 0xfa4   : > { %v3673_v29 = vadd.f32 %v3672_v25, %v7900_v63  ;;  %v3674_v3 = vpop.f32.mrb[93].mxu1 }
 0xfa5   : > { %v3675_v32 = vadd.f32 %v3674_v3, %v7904_v12  ;;  %v3676_v7 = vpop.f32.mrb[94].mxu1  ;;  %3952 = vmatprep.mubr.bf16.mxu0 %v3758_v35 }
 0xfa6   : > { %v3677_v59 = vadd.f32 %v3676_v7, %v7900_v63  ;;  %v3678_v40 = vpop.f32.mrb[95].mxu1  ;;  %3953 = vmatmul.mubr.bf16.gmra.mrb[120].mxu0 %v3757_v18  ;;  %v3733_v5 = vmax.f32 %v3673_v29, 0.0 }
 0xfa7   : > { %v3679_v61 = vadd.f32 %v3678_v40, %v7904_v12  ;;  %v3734_v4 = vmax.f32 %v3675_v32, 0.0 }
 0xfa8   : > { %v3735_v43 = vmax.f32 %v3677_v59, 0.0 }
 0xfa9   : > { %v3736_v37 = vmax.f32 %v3679_v61, 0.0 }
 0xfaa   : > { %v3759_v49 = vpack.c.bf16 %v3735_v43, %v3733_v5 }
 0xfab   : > { %v3760_v39 = vpack.c.bf16 %v3736_v37, %v3734_v4 }
 0xfad   : > { %3960 = vmatprep.mubr.bf16.mxu0 %v3760_v39 }
 0xfae   : > { %3961 = vmatmul.mubr.bf16.gmra.mrb[124].mxu0 %v3759_v49 }
 0xfc7   : > { %v3682_v11 = vpop.f32.mrb[96].mxu1 }
 0xfc8   : > { %v3683_v22 = vadd.f32 %v3682_v11, %v7900_v63  ;;  %v3684_v24 = vpop.f32.mrb[97].mxu1 }
 0xfc9   : > { %v3685_v19 = vadd.f32 %v3684_v24, %v7904_v12  ;;  %v3686_v16 = vpop.f32.mrb[98].mxu1 }
 0xfca   : > { %v3687_v9 = vadd.f32 %v3686_v16, %v7900_v63  ;;  %v3688_v38 = vpop.f32.mrb[99].mxu1  ;;  %v3737_v6 = vmax.f32 %v3683_v22, 0.0 }
 0xfcb   : > { %v3689_v58 = vadd.f32 %v3688_v38, %v7904_v12  ;;  %v3738_v48 = vmax.f32 %v3685_v19, 0.0 }
 0xfcc   : > { %v3739_v17 = vmax.f32 %v3687_v9, 0.0 }
 0xfcd   : > { %v3740_v27 = vmax.f32 %v3689_v58, 0.0 }
 0xfce   : > { %v3761_v47 = vpack.c.bf16 %v3739_v17, %v3737_v6 }
 0xfcf   : > { %v3762_v28 = vpack.c.bf16 %v3740_v27, %v3738_v48  ;;  %v3692_v50 = vpop.f32.mrb[100].mxu1  ;;  %v7941_v27 = vld [vmem:[%s8361_s23] ss:$0 sm:$0xff]  ;;  %s5884_s23 = scalar_lea.vmem %s8185_s20, 2048 }
 0xfd0   : > { %v3693_v36 = vadd.f32 %v3692_v50, %v7900_v63  ;;  %v3694_v54 = vpop.f32.mrb[101].mxu1  ;;  %p5885_p5 = scmp.ne.s32.totalorder %s8185_s20, %s5884_s23 }
 0xfd1   : > { %v3695_v31 = vadd.f32 %v3694_v54, %v7904_v12  ;;  %v3696_v42 = vpop.f32.mrb[102].mxu1  ;;  %3968 = vmatprep.mubr.bf16.mxu0 %v3762_v28 }
 0xfd2   : > { %v3697_v51 = vadd.f32 %v3696_v42, %v7900_v63  ;;  %v3698_v0 = vpop.f32.mrb[103].mxu1  ;;  %3969 = vmatmul.mubr.bf16.gmra.mrb[128].mxu0 %v3761_v47  ;;  %v3741_v55 = vmax.f32 %v3693_v36, 0.0  ;;  %p5886_p7 = pnand %p5885_p5, %p6212_p10 }
 0xfd3   : > { %v3699_v56 = vadd.f32 %v3698_v0, %v7904_v12  ;;  %v3742_v62 = vmax.f32 %v3695_v31, 0.0 }
 0xfd4   : > { %v3743_v34 = vmax.f32 %v3697_v51, 0.0  ;;  %p5887_p12 = pneg %p5886_p7 }
 0xfd5   : > { %v3744_v15 = vmax.f32 %v3699_v56, 0.0 }
 0xfd6   : > { %v3763_v60 = vpack.c.bf16 %v3743_v34, %v3741_v55 }
 0xfd7   : > { %v3764_v1 = vpack.c.bf16 %v3744_v15, %v3742_v62  ;;  %v3702_v52 = vpop.f32.mrb[104].mxu1 }
 0xfd8   : > { %v3703_v46 = vadd.f32 %v3702_v52, %v7900_v63  ;;  %v3704_v18 = vpop.f32.mrb[105].mxu1 }
 0xfd9   : > { %v3705_v35 = vadd.f32 %v3704_v18, %v7904_v12  ;;  %v3706_v25 = vpop.f32.mrb[106].mxu1  ;;  %3976 = vmatprep.mubr.bf16.mxu0 %v3764_v1 }
 0xfda   : > { %v3707_v29 = vadd.f32 %v3706_v25, %v7900_v63  ;;  %v3708_v3 = vpop.f32.mrb[107].mxu1  ;;  %3977 = vmatmul.mubr.bf16.gmra.mrb[132].mxu0 %v3763_v60  ;;  %v3745_v7 = vmax.f32 %v3703_v46, 0.0 }
 0xfdb   : > { %v3709_v32 = vadd.f32 %v3708_v3, %v7904_v12  ;;  %v3746_v40 = vmax.f32 %v3705_v35, 0.0 }
 0xfdc   : > { %v3747_v59 = vmax.f32 %v3707_v29, 0.0 }
 0xfdd   : > { %v3748_v61 = vmax.f32 %v3709_v32, 0.0 }
 0xfde   : > { %v3765_v5 = vpack.c.bf16 %v3747_v59, %v3745_v7 }
 0xfdf   : > { %v3766_v43 = vpack.c.bf16 %v3748_v61, %v3746_v40  ;;  %v3712_v4 = vpop.f32.mrb[108].mxu1 }
 0xfe0   : > { %v3713_v37 = vadd.f32 %v3712_v4, %v7900_v63  ;;  %v3714_v49 = vpop.f32.mrb[109].mxu1 }
 0xfe1   : > { %v3715_v39 = vadd.f32 %v3714_v49, %v7904_v12  ;;  %v3716_v11 = vpop.f32.mrb[110].mxu1  ;;  %3984 = vmatprep.mubr.bf16.mxu1 %v3766_v43 }
 0xfe2   : > { %v3717_v22 = vadd.f32 %v3716_v11, %v7900_v63  ;;  %v3718_v24 = vpop.f32.mrb[111].mxu1  ;;  %3985 = vmatmul.mubr.bf16.vlgmr.msra.gmra.mrb[112].mxu1 %v3765_v5  ;;  %v3749_v16 = vmax.f32 %v3713_v37, 0.0 }
 0xfe3   : > { %v3719_v19 = vadd.f32 %v3718_v24, %v7904_v12  ;;  %v3750_v38 = vmax.f32 %v3715_v39, 0.0 }
 0xfe4   : > { %v3751_v9 = vmax.f32 %v3717_v22, 0.0 }
 0xfe5   : > { %v3752_v58 = vmax.f32 %v3719_v19, 0.0 }
 0xfe6   : > { %v3767_v6 = vpack.c.bf16 %v3751_v9, %v3749_v16 }
 0xfe7   : > { %v3768_v17 = vpack.c.bf16 %v3752_v58, %v3750_v38 }
 0xfe9   : > { %3992 = vmatprep.mubr.bf16.mxu1 %v3768_v17 }
 0xfea   : > { %3993 = vmatmul.mubr.bf16.gmra.mrb[116].mxu1 %v3767_v6 }
0x1069   : > { %v4691_v48 = vpop.f32.mrb[112].mxu0 }
0x106a   : > { %v4692_v47 = vpop.f32.mrb[113].mxu0 }
0x106b   : > { %v4693_v63 = vadd.f32 %v4692_v47, %v4691_v48  ;;  %v4694_v28 = vpop.f32.mrb[114].mxu0 }
0x106c   : > { %v4695_v50 = vpop.f32.mrb[115].mxu0 }
0x106d   : > { %v3939_v12 = vadd.f32 %v4693_v63, %v7941_v27  ;;  %v4696_v36 = vadd.f32 %v4695_v50, %v4694_v28 }
0x106f   : > { %v3942_v54 = vadd.f32 %v4696_v36, %v7941_v27  ;;  %v7946_v31 = vadd.f32 %v3939_v12, %v7788_v33 }
0x1071   : > { %4017 = vadd.xlane.f32.xlu0 %v7946_v31  ;;  %v4697_v42 = vpop.f32.mrb[116].mxu0  ;;  %v7950_v51 = vadd.f32 %v3942_v54, %v7791_v26 }
0x1072   : > { %v4698_v0 = vpop.f32.mrb[117].mxu0 }
0x1073   : > { %v4699_v56 = vadd.f32 %v4698_v0, %v4697_v42  ;;  %4019 = vadd.xlane.f32.xlu1 %v7950_v51  ;;  %v4700_v55 = vpop.f32.mrb[118].mxu0 }
0x1074   : > { %v4701_v34 = vpop.f32.mrb[119].mxu0 }
0x1075   : > { %v3947_v62 = vadd.f32 %v4699_v56, %v7941_v27  ;;  %v4702_v15 = vadd.f32 %v4701_v34, %v4700_v55 }
0x1077   : > { %v3950_v60 = vadd.f32 %v4702_v15, %v7941_v27  ;;  %v7956_v33 = vadd.f32 %v3947_v62, %v7806_v10 }
0x1079   : > { %4021 = vadd.xlane.f32.xlu0 %v7956_v33  ;;  %v4703_v1 = vpop.f32.mrb[120].mxu0  ;;  %v7960_v26 = vadd.f32 %v3950_v60, %v7802_v44 }
0x107a   : > { %v4704_v52 = vpop.f32.mrb[121].mxu0 }
0x107b   : > { %v4705_v46 = vadd.f32 %v4704_v52, %v4703_v1  ;;  %4023 = vadd.xlane.f32.xlu1 %v7960_v26  ;;  %v4706_v18 = vpop.f32.mrb[122].mxu0 }
0x107c   : > { %v4707_v35 = vpop.f32.mrb[123].mxu0 }
0x107d   : > { %v3955_v25 = vadd.f32 %v4705_v46, %v7941_v27  ;;  %v4708_v29 = vadd.f32 %v4707_v35, %v4706_v18 }
0x107f   : > { %v3958_v3 = vadd.f32 %v4708_v29, %v7941_v27  ;;  %v7966_v10 = vadd.f32 %v3955_v25, %v7824_v21 }
0x1081   : > { %4025 = vadd.xlane.f32.xlu0 %v7966_v10  ;;  %v4709_v32 = vpop.f32.mrb[124].mxu0  ;;  %v7970_v44 = vadd.f32 %v3958_v3, %v7819_v30 }
0x1082   : > { %v4710_v7 = vpop.f32.mrb[125].mxu0 }
0x1083   : > { %v4711_v59 = vadd.f32 %v4710_v7, %v4709_v32  ;;  %4027 = vadd.xlane.f32.xlu1 %v7970_v44  ;;  %v4712_v40 = vpop.f32.mrb[126].mxu0 }
0x1084   : > { %v4713_v61 = vpop.f32.mrb[127].mxu0 }
0x1085   : > { %v3963_v5 = vadd.f32 %v4711_v59, %v7941_v27  ;;  %v4714_v43 = vadd.f32 %v4713_v61, %v4712_v40 }
0x1087   : > { %v3966_v4 = vadd.f32 %v4714_v43, %v7941_v27  ;;  %v7976_v21 = vadd.f32 %v3963_v5, %v7840_v14 }
0x1089   : > { %4029 = vadd.xlane.f32.xlu0 %v7976_v21  ;;  %v7980_v37 = vadd.f32 %v3966_v4, %v7836_v45 }
0x108b   : > { %4031 = vadd.xlane.f32.xlu1 %v7980_v37 }
0x10a5   : > { %v4715_v30 = vpop.f32.mrb[128].mxu0 }
0x10a6   : > { %v4716_v49 = vpop.f32.mrb[129].mxu0 }
0x10a7   : > { %v4717_v39 = vadd.f32 %v4716_v49, %v4715_v30  ;;  %v4718_v11 = vpop.f32.mrb[130].mxu0 }
0x10a8   : > { %v4719_v22 = vpop.f32.mrb[131].mxu0 }
0x10a9   : > { %v3971_v24 = vadd.f32 %v4717_v39, %v7941_v27  ;;  %v4720_v19 = vadd.f32 %v4719_v22, %v4718_v11 }
0x10ab   : > { %v3974_v16 = vadd.f32 %v4720_v19, %v7941_v27  ;;  %v7986_v14 = vadd.f32 %v3971_v24, %v7850_v41 }
0x10ad   : > { %4033 = vadd.xlane.f32.xlu0 %v7986_v14  ;;  %v4721_v9 = vpop.f32.mrb[132].mxu0  ;;  %v7990_v45 = vadd.f32 %v3974_v16, %v7853_v8 }
0x10ae   : > { %v4722_v38 = vpop.f32.mrb[133].mxu0 }
0x10af   : > { %v4723_v58 = vadd.f32 %v4722_v38, %v4721_v9  ;;  %4035 = vadd.xlane.f32.xlu1 %v7990_v45  ;;  %v4724_v6 = vpop.f32.mrb[134].mxu0 }
0x10b0   : > { %v4725_v17 = vpop.f32.mrb[135].mxu0 }
0x10b1   : > { %v3979_v48 = vadd.f32 %v4723_v58, %v7941_v27  ;;  %v4726_v47 = vadd.f32 %v4725_v17, %v4724_v6 }
0x10b3   : > { %v3982_v63 = vadd.f32 %v4726_v47, %v7941_v27  ;;  %v7996_v41 = vadd.f32 %v3979_v48, %v7866_v2 }
0x10b5   : > { %4037 = vadd.xlane.f32.xlu0 %v7996_v41  ;;  %v4727_v28 = vpop.f32.mrb[112].mxu1  ;;  %v8000_v8 = vadd.f32 %v3982_v63, %v7863_v20 }
0x10b6   : > { %v4728_v50 = vpop.f32.mrb[113].mxu1 }
0x10b7   : > { %v4729_v12 = vadd.f32 %v4728_v50, %v4727_v28  ;;  %4039 = vadd.xlane.f32.xlu1 %v8000_v8  ;;  %v4730_v36 = vpop.f32.mrb[114].mxu1 }
0x10b8   : > { %v4731_v54 = vpop.f32.mrb[115].mxu1 }
0x10b9   : > { %v3987_v42 = vadd.f32 %v4729_v12, %v7941_v27  ;;  %v4732_v0 = vadd.f32 %v4731_v54, %v4730_v36 }
0x10bb   : > { %v3990_v56 = vadd.f32 %v4732_v0, %v7941_v27  ;;  %v8006_v2 = vadd.f32 %v3987_v42, %v7880_v53 }
0x10bd   : > { %4041 = vadd.xlane.f32.xlu0 %v8006_v2  ;;  %v4733_v55 = vpop.f32.mrb[116].mxu1  ;;  %v8010_v20 = vadd.f32 %v3990_v56, %v7876_v13 }
0x10be   : > { %v4734_v34 = vpop.f32.mrb[117].mxu1 }
0x10bf   : > { %v4735_v62 = vadd.f32 %v4734_v34, %v4733_v55  ;;  %4043 = vadd.xlane.f32.xlu1 %v8010_v20  ;;  %v4736_v15 = vpop.f32.mrb[118].mxu1 }
0x10c0   : > { %v4737_v60 = vpop.f32.mrb[119].mxu1 }
0x10c1   : > { %v3995_v1 = vadd.f32 %v4735_v62, %v7941_v27  ;;  %v4738_v52 = vadd.f32 %v4737_v60, %v4736_v15 }
0x10c3   : > { %v3998_v46 = vadd.f32 %v4738_v52, %v7941_v27  ;;  %v8016_v53 = vadd.f32 %v3995_v1, %v7892_v23 }
0x10c5   : > { %4045 = vadd.xlane.f32.xlu0 %v8016_v53  ;;  %v8020_v18 = vadd.f32 %v3998_v46, %v7889_v57 }
0x10c7   : > { %4047 = vadd.xlane.f32.xlu1 %v8020_v18 }
0x10fe   : > { %v4018_v13 = vpop.xlane.xlu0 %4017 }
0x10ff   : > { %v4049_v35 = vmul.f32 0.0078125, %v4018_v13 }
0x1100   : > { %v4020_v25 = vpop.xlane.xlu1 %4019 }
0x1101   : > { %v8024_v29 = vsub.f32 %v7946_v31, %v4049_v35  ;;  %v4050_v3 = vmul.f32 0.0078125, %v4020_v25 }
0x1103   : > { %v8027_v32 = vsub.f32 %v7950_v51, %v4050_v3  ;;  %v4081_v23 = vmul.f32 %v8024_v29, %v8024_v29 }
0x1105   : > { %4097 = vadd.xlane.f32.xlu0 %v4081_v23  ;;  %v4082_v57 = vmul.f32 %v8027_v32, %v8027_v32 }
0x1106   : > { %v4022_v27 = vpop.xlane.xlu0 %4021 }
0x1107   : > { %v4051_v7 = vmul.f32 0.0078125, %v4022_v27  ;;  %4099 = vadd.xlane.f32.xlu1 %v4082_v57 }
0x1108   : > { %v4024_v59 = vpop.xlane.xlu1 %4023 }
0x1109   : > { %v8034_v40 = vsub.f32 %v7956_v33, %v4051_v7  ;;  %v4052_v31 = vmul.f32 0.0078125, %v4024_v59 }
0x110b   : > { %v8037_v61 = vsub.f32 %v7960_v26, %v4052_v31  ;;  %v4083_v51 = vmul.f32 %v8034_v40, %v8034_v40 }
0x110d   : > { %4101 = vadd.xlane.f32.xlu0 %v4083_v51  ;;  %v4084_v5 = vmul.f32 %v8037_v61, %v8037_v61 }
0x110e   : > { %v4026_v43 = vpop.xlane.xlu0 %4025 }
0x110f   : > { %v4053_v4 = vmul.f32 0.0078125, %v4026_v43  ;;  %4103 = vadd.xlane.f32.xlu1 %v4084_v5 }
0x1110   : > { %v4028_v30 = vpop.xlane.xlu1 %4027 }
0x1111   : > { %v8044_v49 = vsub.f32 %v7966_v10, %v4053_v4  ;;  %v4054_v33 = vmul.f32 0.0078125, %v4028_v30  ;;  %v8106_v4 = vld [vmem:[%s8362_s24] ss:$0 sm:$0xff]  ;;  %s5890_s24 = scalar_lea.vmem %s5889_s27, 4096 }
0x1112   : > { %p5892_p1 = scmp.lt.s32.totalorder %s5890_s24, %s5884_s23 }
0x1113   : > { %v8047_v39 = vsub.f32 %v7970_v44, %v4054_v33  ;;  %v4085_v26 = vmul.f32 %v8044_v49, %v8044_v49 }
0x1114   : > { %p5893_p13 = por %p5892_p1, %p5891_p2 }
0x1115   : > { %4105 = vadd.xlane.f32.xlu0 %v4085_v26  ;;  %v4086_v11 = vmul.f32 %v8047_v39, %v8047_v39 }
0x1116   : > { %v4030_v22 = vpop.xlane.xlu0 %4029  ;;  %p5894_p9 = pnand %p5893_p13, %p5887_p12 }
0x1117   : > { %v4055_v24 = vmul.f32 0.0078125, %v4030_v22  ;;  %4107 = vadd.xlane.f32.xlu1 %v4086_v11  ;;  %v8112_v11 = vld [vmem:[%s8363_s19] ss:$0 sm:$0xff] }
0x1118   : > { %v4032_v19 = vpop.xlane.xlu1 %4031 }
0x1119   : > { %v8054_v16 = vsub.f32 %v7976_v21, %v4055_v24  ;;  %v4056_v10 = vmul.f32 0.0078125, %v4032_v19 }
0x111b   : > { %v8057_v9 = vsub.f32 %v7980_v37, %v4056_v10  ;;  %v4087_v44 = vmul.f32 %v8054_v16, %v8054_v16 }
0x111d   : > { %4109 = vadd.xlane.f32.xlu0 %v4087_v44  ;;  %v4088_v38 = vmul.f32 %v8057_v9, %v8057_v9 }
0x111f   : > { %4111 = vadd.xlane.f32.xlu1 %v4088_v38 }
0x113a   : > { %v4034_v58 = vpop.xlane.xlu0 %4033 }
0x113b   : > { %v4057_v6 = vmul.f32 0.0078125, %v4034_v58 }
0x113c   : > { %v4036_v17 = vpop.xlane.xlu1 %4035 }
0x113d   : > { %v8064_v48 = vsub.f32 %v7986_v14, %v4057_v6  ;;  %v4058_v21 = vmul.f32 0.0078125, %v4036_v17 }
0x113f   : > { %v8067_v47 = vsub.f32 %v7990_v45, %v4058_v21  ;;  %v4089_v37 = vmul.f32 %v8064_v48, %v8064_v48 }
0x1141   : > { %4113 = vadd.xlane.f32.xlu0 %v4089_v37  ;;  %v4090_v63 = vmul.f32 %v8067_v47, %v8067_v47 }
0x1142   : > { %v4038_v28 = vpop.xlane.xlu0 %4037 }
0x1143   : > { %v4059_v50 = vmul.f32 0.0078125, %v4038_v28  ;;  %4115 = vadd.xlane.f32.xlu1 %v4090_v63 }
0x1144   : > { %v4040_v12 = vpop.xlane.xlu1 %4039 }
0x1145   : > { %v8074_v36 = vsub.f32 %v7996_v41, %v4059_v50  ;;  %v4060_v14 = vmul.f32 0.0078125, %v4040_v12 }
0x1147   : > { %v8077_v54 = vsub.f32 %v8000_v8, %v4060_v14  ;;  %v4091_v45 = vmul.f32 %v8074_v36, %v8074_v36 }
0x1149   : > { %4117 = vadd.xlane.f32.xlu0 %v4091_v45  ;;  %v4092_v42 = vmul.f32 %v8077_v54, %v8077_v54 }
0x114a   : > { %v4042_v0 = vpop.xlane.xlu0 %4041 }
0x114b   : > { %v4061_v56 = vmul.f32 0.0078125, %v4042_v0  ;;  %4119 = vadd.xlane.f32.xlu1 %v4092_v42 }
0x114c   : > { %v4044_v55 = vpop.xlane.xlu1 %4043 }
0x114d   : > { %v8084_v34 = vsub.f32 %v8006_v2, %v4061_v56  ;;  %v4062_v41 = vmul.f32 0.0078125, %v4044_v55 }
0x114f   : > { %v8087_v62 = vsub.f32 %v8010_v20, %v4062_v41  ;;  %v4093_v8 = vmul.f32 %v8084_v34, %v8084_v34 }
0x1151   : > { %4121 = vadd.xlane.f32.xlu0 %v4093_v8  ;;  %v4094_v15 = vmul.f32 %v8087_v62, %v8087_v62 }
0x1152   : > { %v4046_v60 = vpop.xlane.xlu0 %4045 }
0x1153   : > { %v4063_v1 = vmul.f32 0.0078125, %v4046_v60  ;;  %4123 = vadd.xlane.f32.xlu1 %v4094_v15 }
0x1154   : > { %v4048_v52 = vpop.xlane.xlu1 %4047 }
0x1155   : > { %v8094_v46 = vsub.f32 %v8016_v53, %v4063_v1  ;;  %v4064_v2 = vmul.f32 0.0078125, %v4048_v52 }
0x1157   : > { %v8097_v13 = vsub.f32 %v8020_v18, %v4064_v2  ;;  %v4095_v20 = vmul.f32 %v8094_v46, %v8094_v46 }
0x1159   : > { %4125 = vadd.xlane.f32.xlu0 %v4095_v20  ;;  %v4096_v35 = vmul.f32 %v8097_v13, %v8097_v13 }
0x115b   : > { %4127 = vadd.xlane.f32.xlu1 %v4096_v35 }
0x1192   : > { %v4098_v25 = vpop.xlane.xlu0 %4097 }
0x1193   : > { %v4129_v3 = vmul.f32 0.0078125, %v4098_v25 }
0x1194   : > { %v4100_v23 = vpop.xlane.xlu1 %4099 }
0x1195   : > { %v4145_v57 = vadd.f32 1e-05, %v4129_v3  ;;  %v4130_v27 = vmul.f32 0.0078125, %v4100_v23 }
0x1197   : > { %5694 = vrsqrt.f32 %v4145_v57  ;;  %v4146_v53 = vadd.f32 1e-05, %v4130_v27 }
0x1199   : > { %5696 = vrsqrt.f32 %v4146_v53 }
0x119a   : > { %v4102_v7 = vpop.xlane.xlu0 %4101 }
0x119b   : > { %v4131_v59 = vmul.f32 0.0078125, %v4102_v7 }
0x119c   : > { %v4104_v18 = vpop.xlane.xlu1 %4103 }
0x119d   : > { %v4147_v31 = vadd.f32 1e-05, %v4131_v59  ;;  %v4132_v51 = vmul.f32 0.0078125, %v4104_v18 }
0x119f   : > { %5698 = vrsqrt.f32 %v4147_v31  ;;  %v4148_v5 = vadd.f32 1e-05, %v4132_v51 }
0x11a1   : > { %v5695_v43 = vpop.eup %5694  ;;  %5700 = vrsqrt.f32 %v4148_v5 }
0x11a2   : > { %v4177_v30 = vmul.f32 %v5695_v43, %v8024_v29  ;;  %v4106_v33 = vpop.xlane.xlu0 %4105 }
0x11a3   : > { %v5697_v26 = vpop.eup %5696  ;;  %v4133_v22 = vmul.f32 0.0078125, %v4106_v33 }
0x11a4   : > { %v4200_v24 = vmul.f32 %v8106_v4, %v4177_v30  ;;  %v4178_v19 = vmul.f32 %v5697_v26, %v8027_v32  ;;  %v4108_v10 = vpop.xlane.xlu1 %4107 }
0x11a5   : > { %v4149_v44 = vadd.f32 1e-05, %v4133_v22  ;;  %v4134_v38 = vmul.f32 0.0078125, %v4108_v10 }
0x11a6   : > { %v4223_v58 = vadd.f32 %v8112_v11, %v4200_v24  ;;  %v4201_v6 = vmul.f32 %v8106_v4, %v4178_v19 }
0x11a7   : > { %5702 = vrsqrt.f32 %v4149_v44  ;;  %v4150_v29 = vadd.f32 1e-05, %v4134_v38 }
0x11a8   : > { %4239 = vst [vmem:[%s8120_s21] sm:$0xff] %v4223_v58  ;;  %v4224_v17 = vadd.f32 %v8112_v11, %v4201_v6 }
0x11a9   : > { %v5699_v21 = vpop.eup %5698  ;;  %5704 = vrsqrt.f32 %v4150_v29 }
0x11aa   : > { %4240 = vst [vmem:[%s8120_s21 + $0x8] sm:$0xff] %v4224_v17  ;;  %v4179_v32 = vmul.f32 %v5699_v21, %v8034_v40  ;;  %v4110_v37 = vpop.xlane.xlu0 %4109 }
0x11ab   : > { %v5701_v63 = vpop.eup %5700  ;;  %v4135_v28 = vmul.f32 0.0078125, %v4110_v37 }
0x11ac   : > { %v4202_v50 = vmul.f32 %v8106_v4, %v4179_v32  ;;  %v4180_v12 = vmul.f32 %v5701_v63, %v8037_v61  ;;  %v4112_v14 = vpop.xlane.xlu1 %4111 }
0x11ad   : > { %v4151_v45 = vadd.f32 1e-05, %v4135_v28  ;;  %v4136_v42 = vmul.f32 0.0078125, %v4112_v14 }
0x11ae   : > { %v4225_v0 = vadd.f32 %v8112_v11, %v4202_v50  ;;  %v4203_v56 = vmul.f32 %v8106_v4, %v4180_v12 }
0x11af   : > { %5706 = vrsqrt.f32 %v4151_v45  ;;  %v4152_v55 = vadd.f32 1e-05, %v4136_v42 }
0x11b0   : > { %4241 = vst [vmem:[%s8120_s21 + $0x10] sm:$0xff] %v4225_v0  ;;  %v4226_v40 = vadd.f32 %v8112_v11, %v4203_v56 }
0x11b1   : > { %v5703_v41 = vpop.eup %5702  ;;  %5708 = vrsqrt.f32 %v4152_v55 }
0x11b2   : > { %4242 = vst [vmem:[%s8120_s21 + $0x18] sm:$0xff] %v4226_v40  ;;  %v4181_v8 = vmul.f32 %v5703_v41, %v8044_v49 }
0x11b3   : > { %v5705_v61 = vpop.eup %5704 }
0x11b4   : > { %v4204_v15 = vmul.f32 %v8106_v4, %v4181_v8  ;;  %v4182_v60 = vmul.f32 %v5705_v61, %v8047_v39 }
0x11b6   : > { %v4227_v1 = vadd.f32 %v8112_v11, %v4204_v15  ;;  %v4205_v52 = vmul.f32 %v8106_v4, %v4182_v60 }
0x11b8   : > { %4243 = vst [vmem:[%s8120_s21 + $0x20] sm:$0xff] %v4227_v1  ;;  %v4228_v2 = vadd.f32 %v8112_v11, %v4205_v52 }
0x11b9   : > { %v5707_v20 = vpop.eup %5706 }
0x11ba   : > { %4244 = vst [vmem:[%s8120_s21 + $0x28] sm:$0xff] %v4228_v2  ;;  %v4183_v35 = vmul.f32 %v5707_v20, %v8054_v16 }
0x11bb   : > { %v5709_v25 = vpop.eup %5708 }
0x11bc   : > { %v4206_v49 = vmul.f32 %v8106_v4, %v4183_v35  ;;  %v4184_v3 = vmul.f32 %v5709_v25, %v8057_v9 }
0x11be   : > { %v4229_v23 = vadd.f32 %v8112_v11, %v4206_v49  ;;  %v4207_v39 = vmul.f32 %v8106_v4, %v4184_v3 }
0x11c0   : > { %4245 = vst [vmem:[%s8120_s21 + $0x30] sm:$0xff] %v4229_v23  ;;  %v4230_v57 = vadd.f32 %v8112_v11, %v4207_v39 }
0x11c2   : > { %4246 = vst [vmem:[%s8120_s21 + $0x38] sm:$0xff] %v4230_v57 }
0x11ce   : > { %v4114_v27 = vpop.xlane.xlu0 %4113 }
0x11cf   : > { %v4137_v53 = vmul.f32 0.0078125, %v4114_v27 }
0x11d0   : > { %v4116_v7 = vpop.xlane.xlu1 %4115 }
0x11d1   : > { %v4153_v59 = vadd.f32 1e-05, %v4137_v53  ;;  %v4138_v18 = vmul.f32 0.0078125, %v4116_v7 }
0x11d3   : > { %5710 = vrsqrt.f32 %v4153_v59  ;;  %v4154_v16 = vadd.f32 1e-05, %v4138_v18 }
0x11d5   : > { %5712 = vrsqrt.f32 %v4154_v16 }
0x11d6   : > { %v4118_v31 = vpop.xlane.xlu0 %4117 }
0x11d7   : > { %v4139_v51 = vmul.f32 0.0078125, %v4118_v31 }
0x11d8   : > { %v4120_v5 = vpop.xlane.xlu1 %4119 }
0x11d9   : > { %v4155_v9 = vadd.f32 1e-05, %v4139_v51  ;;  %v4140_v43 = vmul.f32 0.0078125, %v4120_v5 }
0x11db   : > { %5714 = vrsqrt.f32 %v4155_v9  ;;  %v4156_v30 = vadd.f32 1e-05, %v4140_v43 }
0x11dd   : > { %v5711_v33 = vpop.eup %5710  ;;  %5716 = vrsqrt.f32 %v4156_v30 }
0x11de   : > { %v4185_v26 = vmul.f32 %v5711_v33, %v8064_v48  ;;  %v4122_v22 = vpop.xlane.xlu0 %4121 }
0x11df   : > { %v5713_v24 = vpop.eup %5712  ;;  %v4141_v19 = vmul.f32 0.0078125, %v4122_v22 }
0x11e0   : > { %v4208_v10 = vmul.f32 %v8106_v4, %v4185_v26  ;;  %v4186_v44 = vmul.f32 %v5713_v24, %v8067_v47  ;;  %v4124_v38 = vpop.xlane.xlu1 %4123 }
0x11e1   : > { %v4157_v58 = vadd.f32 1e-05, %v4141_v19  ;;  %v4142_v6 = vmul.f32 0.0078125, %v4124_v38 }
0x11e2   : > { %v4231_v29 = vadd.f32 %v8112_v11, %v4208_v10  ;;  %v4209_v17 = vmul.f32 %v8106_v4, %v4186_v44 }
0x11e3   : > { %5718 = vrsqrt.f32 %v4157_v58  ;;  %v4158_v21 = vadd.f32 1e-05, %v4142_v6 }
0x11e4   : > { %4247 = vst [vmem:[%s8120_s21 + $0x40] sm:$0xff] %v4231_v29  ;;  %v4232_v48 = vadd.f32 %v8112_v11, %v4209_v17 }
0x11e5   : > { %v5715_v32 = vpop.eup %5714  ;;  %5720 = vrsqrt.f32 %v4158_v21 }
0x11e6   : > { %4248 = vst [vmem:[%s8120_s21 + $0x48] sm:$0xff] %v4232_v48  ;;  %v4187_v37 = vmul.f32 %v5715_v32, %v8074_v36  ;;  %v4126_v63 = vpop.xlane.xlu0 %4125 }
0x11e7   : > { %v5717_v47 = vpop.eup %5716  ;;  %v4143_v28 = vmul.f32 0.0078125, %v4126_v63 }
0x11e8   : > { %v4210_v50 = vmul.f32 %v8106_v4, %v4187_v37  ;;  %v4188_v12 = vmul.f32 %v5717_v47, %v8077_v54  ;;  %v4128_v14 = vpop.xlane.xlu1 %4127 }
0x11e9   : > { %v4159_v45 = vadd.f32 1e-05, %v4143_v28  ;;  %v4144_v42 = vmul.f32 0.0078125, %v4128_v14 }
0x11ea   : > { %v4233_v0 = vadd.f32 %v8112_v11, %v4210_v50  ;;  %v4211_v56 = vmul.f32 %v8106_v4, %v4188_v12 }
0x11eb   : > { %5722 = vrsqrt.f32 %v4159_v45  ;;  %v4160_v55 = vadd.f32 1e-05, %v4144_v42 }
0x11ec   : > { %4249 = vst [vmem:[%s8120_s21 + $0x50] sm:$0xff] %v4233_v0  ;;  %v4234_v36 = vadd.f32 %v8112_v11, %v4211_v56 }
0x11ed   : > { %v5719_v40 = vpop.eup %5718  ;;  %5724 = vrsqrt.f32 %v4160_v55 }
0x11ee   : > { %4250 = vst [vmem:[%s8120_s21 + $0x58] sm:$0xff] %v4234_v36  ;;  %v4189_v54 = vmul.f32 %v5719_v40, %v8084_v34 }
0x11ef   : > { %v5721_v41 = vpop.eup %5720 }
0x11f0   : > { %v4212_v8 = vmul.f32 %v8106_v4, %v4189_v54  ;;  %v4190_v61 = vmul.f32 %v5721_v41, %v8087_v62 }
0x11f2   : > { %v4235_v15 = vadd.f32 %v8112_v11, %v4212_v8  ;;  %v4213_v60 = vmul.f32 %v8106_v4, %v4190_v61 }
0x11f4   : > { %4251 = vst [vmem:[%s8120_s21 + $0x60] sm:$0xff] %v4235_v15  ;;  %v4236_v1 = vadd.f32 %v8112_v11, %v4213_v60 }
0x11f5   : > { %v5723_v52 = vpop.eup %5722 }
0x11f6   : > { %4252 = vst [vmem:[%s8120_s21 + $0x68] sm:$0xff] %v4236_v1  ;;  %v4191_v2 = vmul.f32 %v5723_v52, %v8094_v46 }
0x11f7   : > { %v5725_v34 = vpop.eup %5724 }
0x11f8   : > { %v4214_v20 = vmul.f32 %v8106_v4, %v4191_v2  ;;  %v4192_v62 = vmul.f32 %v5725_v34, %v8097_v13 }
0x11fa   : > { %v4237_v35 = vadd.f32 %v8112_v11, %v4214_v20  ;;  %v4215_v25 = vmul.f32 %v8106_v4, %v4192_v62 }
0x11fc   : > { %4253 = vst [vmem:[%s8120_s21 + $0x70] sm:$0xff] %v4237_v35  ;;  %v4238_v46 = vadd.f32 %v8112_v11, %v4215_v25 }
0x11fe   : > { %4254 = vst [vmem:[%s8120_s21 + $0x78] sm:$0xff] %v4238_v46 }
0x11ff   : > { %5897 = shalt.err (!%p5894_p9)
}
0x1200   : > { %s5898_s13 = scalar_lea.hbm %s8183_s18, 2048  ;;  %s5902_s21 = scalar_lea.hbm %s8364_s22, 4096 }
0x1201   : > { %p5899_p0 = scmp.ne.s32.totalorder %s8183_s18, %s5898_s13  ;;  %p5903_p8 = scmp.lt.u32.totalorder %s8183_s18, %s8364_s22 }
0x1202   : > { %p5904_p6 = scmp.lt.u32.totalorder %s5902_s21, %s5898_s13  ;;  %p5906_p5 = scmp.lt.u32.totalorder %s5898_s13, %s8183_s18 }
0x1203   : > { %p5900_p11 = pnand %p5899_p0, %p6212_p10 }
0x1204   : > { %p5905_p3 = por %p5904_p6, %p5903_p8 }
0x1205   : > { %p5901_p4 = pneg %p5900_p11 }
0x1206   : > { %p5907_p7 = por %p5906_p5, %p5905_p3 }
0x1208   : > { %p5908_p12 = pnand %p5907_p7, %p5901_p4 }
0x120a   : > { %5911 = shalt.err (!%p5908_p12)
}
0x120b   : > { %s5976_s2 = smov 128   ;;  %s5977_s23 = smov 8  }
0x120c   : > { %5125 = dma.vmem_to_hbm [thread:$0]  (%p6212_p10), %s8185_s20, 2048, %s8183_s18, %s4256_s17, %s5976_s2, %s5976_s2, %s5977_s23  }
0x120d PF: > { %s8365_s11 = sld [smem:[#allocation16_spill]]  ;;  %s8366_s27 = sld [smem:[#allocation17_spill]] }
0x120e   : > { %p8368_p1 = scmp.ge.s32.totalorder %s5958_s16, 2 }
0x1213   : > { %s4284_s24 = sand.u32 1, %s8365_s11   ;;  %p8367_p2 = scmp.ne.s32.totalorder %s8366_s27, 0 }
0x1214   : > { %s4285_s13 = scalar_lea.sflag [#allocation4], %s4284_s24 }
0x1215   : > { %p5145_p13 = pnand %p8368_p1, %p8367_p2 }
0x1217   : > { %5941 = dma.done.wait (!%p5145_p13), %s4285_s13, 2048  }
0x1218   : > { %5943 = vsyncadd (!%p5145_p13), %s4285_s13, 4294965248  ;;  %s8369_s14 = smov %s6202_s29  ;;  %p29_p9 = scmp.ge.s32.totalorder %s6202_s29, 4  }
0x1219   : > { %s8370_s29 = smov %s5950_s30  ;;  %s8371_s30 = smov %s5954_s15 }
0x121a   : > { %s8372_s15 = smov %s6218_s28  ;;  %s8373_s16 = smov %s8369_s14 }
0x121b   :  { %31 = sbr.rel (!%p29_p9) target bundleno = 14 (0xe), region = 140 }
0x1222   :  { %4290 = vsyncpa [#allocation3], 1 }
0x1223   :  { %4292 = vsyncpa [#allocation3 + $0x1], 1 }
0x1224   :  { %4293 = vsyncpa [#allocation6], 1 }
0x1225   :  { %4294 = vsyncpa [#allocation9], 1 }
0x1226   :  { %4295 = vsyncpa [#allocation4], 1 }
0x1227   :  { %4297 = vsyncpa [#allocation4 + $0x1], 1 }

// kernel: tpu_custom_call.1
= control target key start
LH: loop header
LB: loop body
LE: loop exit
PB: predicated region body
PF: predicated region fallthrough
CT: control target
= control target key end

     0   :  { %s8232_s0 = inlined_call_operand.hbm [shape: f32[2,128,128], index: 0, kind: input, shape index: {}]   ;;  %s8233_s1 = inlined_call_operand.vmem [shape: f32[2,1,128], index: 1, kind: input, shape index: {}]   ;;  %s8234_s2 = inlined_call_operand.hbm [shape: bf16[128,384], index: 2, kind: input, shape index: {}]   ;;  %s8235_s3 = inlined_call_operand.vmem [shape: f32[1,384], index: 3, kind: input, shape index: {}]   ;;  %s8236_s4 = inlined_call_operand.hbm [shape: bf16[128,128], index: 4, kind: input, shape index: {}]   ;;  %s8237_s5 = inlined_call_operand.vmem [shape: f32[1,128], index: 5, kind: input, shape index: {}]   ;;  %s8238_s6 = inlined_call_operand.vmem [shape: f32[1,128], index: 6, kind: input, shape index: {}]   ;;  %s8239_s7 = inlined_call_operand.vmem [shape: f32[1,128], index: 7, kind: input, shape index: {}]   ;;  %s8240_s8 = inlined_call_operand.hbm [shape: bf16[128,256], index: 8, kind: input, shape index: {}]   ;;  %s8241_s9 = inlined_call_operand.vmem [shape: f32[1,256], index: 9, kind: input, shape index: {}]   ;;  %s8242_s10 = inlined_call_operand.hbm [shape: bf16[256,128], index: 10, kind: input, shape index: {}]   ;;  %s8243_s11 = inlined_call_operand.vmem [shape: f32[1,128], index: 11, kind: input, shape index: {}]   ;;  %s8244_s12 = inlined_call_operand.vmem [shape: f32[1,128], index: 12, kind: input, shape index: {}]   ;;  %s8245_s13 = inlined_call_operand.vmem [shape: f32[1,128], index: 13, kind: input, shape index: {}]   ;;  %s8246_s14 = inlined_call_operand.hbm [shape: f32[2,128,128], index: 14, kind: output, shape index: {}]  }
   0x1   :  { %8267 = sst [smem:[#allocation43_spill]] %s8234_s2 }
   0x2   :  { %8268 = sst [smem:[#allocation44_spill]] %s8241_s9 }
   0x3   :  { %8269 = sst [smem:[#allocation45_spill]] %s8243_s11 }
   0x4   :  { %8270 = sst [smem:[#allocation46_spill]] %s8244_s12 }
   0x5   :  { %8271 = sst [smem:[#allocation47_spill]] %s8245_s13 }
   0x6   :  { %8272 = sst [smem:[#allocation48_spill]] %s8246_s14 }
   0x7   :  { %19 = vsyncpa [#allocation3], 0 }
   0x8   :  { %21 = vsyncpa [#allocation3 + $0x1], 0 }
   0x9   :  { %22 = vsyncpa [#allocation6], 0 }
   0xa   :  { %23 = vsyncpa [#allocation9], 0 }
   0xb   :  { %24 = vsyncpa [#allocation4], 0 }
   0xc   :  { %26 = vsyncpa [#allocation4 + $0x1], 0  ;;  %s6053_s29 = smov 0   ;;  %s6055_s30 = smov 0  }
   0xd   :  { %s6057_s15 = smov 0   ;;  %s6059_s16 = smov 0  }
   0xe LB: > { %8273 = sst [smem:[#allocation16_spill]] %s5946_s29  ;;  %s6074_s17 = sadd.s32 4294967295, %s5958_s16   ;;  %s5958_s16 = sphi %s6059_s16, %s8373_s16   ;;  %s5954_s15 = sphi %s6057_s15, %s8372_s15   ;;  %s5950_s30 = sphi %s6055_s30, %s8371_s30   ;;  %s5946_s29 = sphi %s6053_s29, %s8370_s29  }
   0xf   : > { %s4389_s18 = sadd.s32 4294967294, %s5958_s16   ;;  %p52_p0 = scmp.ne.s32.totalorder %s5950_s30, %s5946_s29 }
  0x10   : > { %p8250_p1 = scmp.eq.s32.totalorder %s6074_s17, 0  ;;  %p360_p3 = scmp.eq.s32.totalorder %s4389_s18, 1 }
  0x11   : > { %p4390_p5 = scmp.ge.s32.totalorder %s5958_s16, 1  ;;  %p367_p7 = scmp.lt.s32.totalorder %s5958_s16, 3 }
  0x12   : > { %p6083_p4 = por %p8250_p1, %p52_p0  ;;  %p6088_p6 = por %p360_p3, %p52_p0 }
  0x13   : > { %p6093_p8 = pnand %p4390_p5, %p367_p7  ;;  %s5960_s22 = smov [#allocation5]  }
  0x14   : > { %s8274_s19 = scalar_select %p6083_p4, 1, 0 }
  0x15   : > { %s8275_s20 = scalar_select %p6088_p6, 1, 0 }
  0x16   : > { %s8277_s21 = scalar_select %p6093_p8, 1, 0 }
  0x17   : > { %8276 = sst [smem:[#allocation17_spill]] %s8275_s20  ;;  %s379_s23 = sshll.u32 %s5960_s22, 4  ;;  %s6097_s23 = int_to_ptr.vmem [resolvable:$true] %s379_s23 }
  0x18   : > { %p5127_p9 = pneg %p6093_p8  ;;  %s5961_s25 = smov [#allocation8]  }
  0x19   : > { %s417_s26 = sshll.u32 %s5961_s25, 4  ;;  %s8279_s2 = sld [smem:[#allocation43_spill]]  ;;  %s6108_s26 = int_to_ptr.vmem [resolvable:$true] %s417_s26 }
  0x1a   : > { %p6104_p11 = pnand %p5127_p9, %p8250_p1 }
  0x1c   : > { %p6118_p13 = pneg %p6104_p11 }
  0x1f   : > { %s5742_s18 = scalar_lea.hbm %s8279_s2, 3072 }
  0x20   : > { %p5743_p12 = scmp.ne.s32.totalorder %s8279_s2, %s5742_s18  ;;  %p5749_p5 = scmp.lt.u32.totalorder %s5742_s18, %s8279_s2 }
  0x22   : > { %p5745_p0 = pnand %p6118_p13, %p5743_p12 }
  0x24   : > { %p5746_p3 = pneg %p5745_p0 }
  0x26   : > { %p5751_p7 = pnand %p5749_p5, %p5746_p3 }
  0x28   : > { %5754 = shalt.err (!%p5751_p7)
}
  0x29   : > { %s5755_s20 = scalar_lea.vmem %s6097_s23, 3072  ;;  %p5763_p2 = scmp.lt.s32.totalorder %s6097_s23, %s6097_s23 }
  0x2a   : > { %p5756_p9 = scmp.ne.s32.totalorder %s6097_s23, %s5755_s20  ;;  %p5764_p6 = scmp.lt.s32.totalorder %s5755_s20, %s5755_s20 }
  0x2c   : > { %p5758_p10 = pnand %p5756_p9, %p6118_p13  ;;  %p5765_p12 = por %p5764_p6, %p5763_p2 }
  0x2e   : > { %p5759_p1 = pneg %p5758_p10 }
  0x30   : > { %p5766_p0 = pnand %p5765_p12, %p5759_p1 }
  0x32   : > { %5769 = shalt.err (!%p5766_p0)
}
  0x33   : > { %s5962_s27 = smov 192   ;;  %s5963_s14 = smov 12  }
  0x34   : > { %5130 = dma.hbm_to_vmem [thread:$0]  (!%p6104_p11), %s8279_s2, 3072, %s6097_s23, [#allocation6], %s5962_s27, %s5962_s27, %s5963_s14  }
  0x35   : > { %s5770_s13 = scalar_lea.hbm %s8240_s8, 2048 }
  0x36   : > { %p5771_p2 = scmp.ne.s32.totalorder %s8240_s8, %s5770_s13  ;;  %p5777_p10 = scmp.lt.u32.totalorder %s5770_s13, %s8240_s8 }
  0x38   : > { %p5773_p1 = pnand %p5771_p2, %p6118_p13 }
  0x3a   : > { %p5774_p6 = pneg %p5773_p1 }
  0x3c   : > { %p5779_p3 = pnand %p5777_p10, %p5774_p6 }
  0x3e   : > { %5782 = shalt.err (!%p5779_p3)
}
  0x3f   : > { %s5783_s23 = scalar_lea.vmem %s6108_s26, 2048  ;;  %p5791_p12 = scmp.lt.s32.totalorder %s6108_s26, %s6108_s26 }
  0x40   : > { %p5784_p5 = scmp.ne.s32.totalorder %s6108_s26, %s5783_s23  ;;  %p5792_p0 = scmp.lt.s32.totalorder %s5783_s23, %s5783_s23 }
  0x42   : > { %p5786_p7 = pnand %p5784_p5, %p6118_p13  ;;  %p5793_p2 = por %p5792_p0, %p5791_p12 }
  0x44   : > { %p5787_p9 = pneg %p5786_p7 }
  0x46   : > { %p5794_p1 = pnand %p5793_p2, %p5787_p9 }
  0x48   : > { %5797 = shalt.err (!%p5794_p1)
}
  0x49   : > { %s8253_s11 = smov 128   ;;  %s8254_s9 = smov 8  }
  0x4a   : > { %5136 = dma.hbm_to_vmem [thread:$0]  (!%p6104_p11), %s8240_s8, 2048, %s6108_s26, [#allocation9], %s8253_s11, %s8253_s11, %s8254_s9  }
  0x4b   : > { %s5966_s27 = smov [#allocation7]   ;;  %s5798_s22 = scalar_lea.hbm %s8236_s4, 1024 }
  0x4c   : > { %s395_s14 = sshll.u32 %s5966_s27, 4  ;;  %p5799_p6 = scmp.ne.s32.totalorder %s8236_s4, %s5798_s22  ;;  %s396_s14 = int_to_ptr.vmem [resolvable:$true] %s395_s14 }
  0x4d   : > { %p5805_p5 = scmp.lt.u32.totalorder %s5798_s22, %s8236_s4 }
  0x4e   : > { %p5801_p10 = pnand %p5799_p6, %p6118_p13 }
  0x50   : > { %p5802_p3 = pneg %p5801_p10 }
  0x52   : > { %p5807_p7 = pnand %p5805_p5, %p5802_p3 }
  0x54   : > { %5810 = shalt.err (!%p5807_p7)
}
  0x55   : > { %s5811_s26 = scalar_lea.vmem %s396_s14, 1024  ;;  %p5819_p2 = scmp.lt.s32.totalorder %s396_s14, %s396_s14 }
  0x56   : > { %p5812_p9 = scmp.ne.s32.totalorder %s396_s14, %s5811_s26  ;;  %p5820_p1 = scmp.lt.s32.totalorder %s5811_s26, %s5811_s26 }
  0x58   : > { %p5814_p12 = pnand %p5812_p9, %p6118_p13  ;;  %p5821_p4 = por %p5820_p1, %p5819_p2 }
  0x5a   : > { %p5815_p0 = pneg %p5814_p12 }
  0x5c   : > { %p5822_p8 = pnand %p5821_p4, %p5815_p0 }
  0x5e   : > { %5825 = shalt.err (!%p5822_p8)
}
  0x5f   : > { %s5967_s12 = smov 64   ;;  %s5968_s13 = smov 4  }
  0x60   : > { %5133 = dma.hbm_to_vmem [thread:$0]  (!%p6104_p11), %s8236_s4, 1024, %s396_s14, [#allocation6], %s5967_s12, %s5967_s12, %s5968_s13  }
  0x61   : > { %s5969_s28 = smov [#allocation10]   ;;  %s5826_s20 = scalar_lea.hbm %s8242_s10, 2048 }
  0x62   : > { %s433_s18 = sshll.u32 %s5969_s28, 4  ;;  %p5827_p4 = scmp.ne.s32.totalorder %s8242_s10, %s5826_s20  ;;  %s434_s18 = int_to_ptr.vmem [resolvable:$true] %s433_s18 }
  0x63   : > { %p5833_p10 = scmp.lt.u32.totalorder %s5826_s20, %s8242_s10 }
  0x64   : > { %p5829_p8 = pnand %p5827_p4, %p6118_p13 }
  0x66   : > { %p5830_p6 = pneg %p5829_p8 }
  0x68   : > { %p5835_p3 = pnand %p5833_p10, %p5830_p6 }
  0x6a   : > { %5838 = shalt.err (!%p5835_p3)
}
  0x6b   : > { %s5839_s14 = scalar_lea.vmem %s434_s18, 2048  ;;  %p5847_p12 = scmp.lt.s32.totalorder %s434_s18, %s434_s18 }
  0x6c   : > { %p5840_p5 = scmp.ne.s32.totalorder %s434_s18, %s5839_s14  ;;  %p5848_p0 = scmp.lt.s32.totalorder %s5839_s14, %s5839_s14 }
  0x6e   : > { %p5842_p7 = pnand %p5840_p5, %p6118_p13  ;;  %p5849_p2 = por %p5848_p0, %p5847_p12 }
  0x70   : > { %p5843_p9 = pneg %p5842_p7 }
  0x72   : > { %p5850_p1 = pnand %p5849_p2, %p5843_p9 }
  0x74   : > { %5853 = shalt.err (!%p5850_p1)
}
  0x75   : > { %5139 = dma.hbm_to_vmem [thread:$0]  (!%p6104_p11), %s8242_s10, 2048, %s434_s18, [#allocation9], %s5967_s12, %s5967_s12, %s5968_s13  }
  0x76   : > { %s6202_s29 = sadd.s32 1, %s5958_s16   ;;  %s39_s11 = sadd.s32 1, %s5954_s15 }
  0x77   : > { %s36_s24 = ssub.s32 %s5958_s16, %s6202_s29  ;;  %p46_p13 = scmp.ne.s32.totalorder %s5954_s15, %s5950_s30 }
  0x78   : > { %p37_p4 = scmp.eq.s32.totalorder %s36_s24, 0  ;;  %p47_p8 = scmp.eq.s32.totalorder %s5958_s16, 0 }
  0x79   : > { %p8281_p6 = scmp.eq.s32.totalorder %s6074_s17, 1  ;;  %p5152_p3 = scmp.lt.s32.totalorder %s5958_s16, 2 }
  0x7a   : > { %s6218_s28 = scalar_select %p37_p4, %s5954_s15, %s39_s11  }
  0x7b   : > { %p6212_p10 = por %p8281_p6, %p46_p13  ;;  %p48_p5 = por %p47_p8, %p46_p13 }
  0x7c   : > { %s456_s22 = sand.u32 1, %s5954_s15   ;;  %s4513_s12 = sshll.u32 %s5958_s16, 11 }
  0x7d   : > { %s4396_s25 = sshll.u32 %s456_s22, 7  ;;  %s6225_s20 = scalar_lea.hbm %s8232_s0, %s4513_s12 }
  0x7e   : > { %s460_s23 = scalar_lea.vmem [#allocation2], %s4396_s25  ;;  %p6229_p11 = pnand %p5152_p3, %p48_p5 }
  0x7f   : > { %s467_s26 = sshll.u32 %s460_s23, 4  ;;  %s6233_s2 = scalar_lea.sflag [#allocation3], %s456_s22  ;;  %s6227_s26 = int_to_ptr.vmem [resolvable:$true] %s467_s26 }
  0x80   : > { %s5854_s27 = scalar_lea.hbm %s6225_s20, 2048  ;;  %p5856_p9 = pneg %p6229_p11 }
  0x81   : > { %p5855_p7 = scmp.ne.s32.totalorder %s6225_s20, %s5854_s27  ;;  %s5859_s25 = scalar_lea.hbm %s8232_s0, 4096 }
  0x82   : > { %p5860_p2 = scmp.lt.u32.totalorder %s6225_s20, %s8232_s0  ;;  %p5861_p1 = scmp.lt.u32.totalorder %s5859_s25, %s5854_s27 }
  0x83   : > { %p5857_p12 = pnand %p5856_p9, %p5855_p7  ;;  %p5863_p4 = scmp.lt.u32.totalorder %s5854_s27, %s6225_s20 }
  0x84   : > { %p5862_p13 = por %p5861_p1, %p5860_p2 }
  0x85   : > { %p5858_p0 = pneg %p5857_p12 }
  0x86   : > { %p5864_p8 = por %p5863_p4, %p5862_p13 }
  0x88   : > { %p5865_p6 = pnand %p5864_p8, %p5858_p0 }
  0x8a   : > { %5868 = shalt.err (!%p5865_p6)
}
  0x8b   : > { %s5869_s22 = scalar_lea.vmem %s6227_s26, 2048  ;;  %s5970_s18 = smov [#allocation2]  }
  0x8c   : > { %p5870_p3 = scmp.ne.s32.totalorder %s6227_s26, %s5869_s22  ;;  %s5874_s23 = sshll.u32 %s5970_s18, 4  ;;  %s5875_s23 = int_to_ptr.vmem [resolvable:$false] %s5874_s23 }
  0x8d   : > { %s5876_s11 = scalar_lea.vmem %s5875_s23, 4096  ;;  %p5877_p12 = scmp.lt.s32.totalorder %s6227_s26, %s5875_s23 }
  0x8e   : > { %p5872_p5 = pnand %p5870_p3, %p5856_p9  ;;  %p5878_p2 = scmp.lt.s32.totalorder %s5876_s11, %s5869_s22 }
  0x90   : > { %p5873_p7 = pneg %p5872_p5  ;;  %p5879_p1 = por %p5878_p2, %p5877_p12 }
  0x92   : > { %p5880_p13 = pnand %p5879_p1, %p5873_p7 }
  0x94   : > { %5883 = shalt.err (!%p5880_p13)
}
  0x95   : > { %s8284_s27 = smov 8   ;;  %s8285_s24 = smov 128  }
  0x96   : > { %5143 = dma.hbm_to_vmem [thread:$0]  (!%p6229_p11), %s6225_s20, 2048, %s6227_s26, %s6233_s2, %s8285_s24, %s8285_s24, %s8284_s27  }
  0x97   : > { %p8286_p9 = scmp.ne.s32.totalorder %s8277_s21, 0 }
  0x99   : > { %485 = sbr.rel (%p8286_p9) target bundleno = 4621 (0x120d), region = 76 }
  0xa0   : > { %s6267_s25 = sand.u32 1, %s5950_s30   ;;  %p8287_p0 = scmp.ne.s32.totalorder %s8274_s19, 0 }
  0xa1   : > { %s4400_s12 = sshll.u32 %s6267_s25, 7  ;;  %s488_s13 = scalar_lea.sflag [#allocation3], %s6267_s25 }
  0xa2   : > { %s6273_s14 = scalar_lea.vmem [#allocation2], %s4400_s12 }
  0xa3   : > { %5929 = dma.done.wait (%p8287_p0), %s488_s13, 2048  }
  0xa4   : > { %5931 = vsyncadd (%p8287_p0), %s488_s13, 4294965248  ;;  %p8288_p11 = scmp.eq.s32.totalorder %s6074_s17, 0 }
  0xa6   : > { %5933 = dma.done.wait (%p8288_p11), [#allocation6], 4096   ;;  %p8289_p4 = pmov %p8288_p11 }
  0xa8   : > { %5935 = vsyncadd (%p8289_p4), [#allocation6], 4294963200  ;;  %p8290_p8 = pmov %p8289_p4 }
  0xa9   : > { %p8291_p6 = pmov %p8289_p4 }
  0xaa   : > { %5937 = dma.done.wait (%p8290_p8), [#allocation9], 4096  }
  0xab   : > { %5939 = vsyncadd (%p8291_p6), [#allocation9], 4294963200  ;;  %v8256_v0 = vmov 0   ;;  %v5326_v1 = vld [vmem:[#allocation5 + $0x4] ss:$12 sps:$4 sm:$0xff]   ;;  %v560_v10 = vld [vmem:[%s6273_s14 + $0x8] sm:$0xff]  ;;  %v617_v49 = vlaneseq }
  0xac   : > { %792 = vmatprep.mubr.bf16.mxu0 %v8256_v0  ;;  %v5328_v2 = vld [vmem:[#allocation5] ss:$12 sps:$4 sm:$0xff]   ;;  %760 = vmatprep.subr.bf16.mxu0 %v5326_v1  ;;  %v5329_v3 = vld [vmem:[#allocation5 + $0x1c] ss:$12 sps:$4 sm:$0xff]   ;;  %v5331_v4 = vld [vmem:[#allocation5 + $0x18] ss:$12 sps:$4 sm:$0xff]  }
  0xad   : > { %761 = vmatpush1.bf16.msra.mxu0 %v5328_v2  ;;  %v5332_v5 = vld [vmem:[#allocation5 + $0x34] ss:$12 sps:$4 sm:$0xff]   ;;  %v5334_v6 = vld [vmem:[#allocation5 + $0x30] ss:$12 sps:$4 sm:$0xff]   ;;  %v5335_v7 = vld [vmem:[#allocation5 + $0x4c] ss:$12 sps:$4 sm:$0xff]  }
  0xae   : > { %762 = vmatprep.subr.bf16.mxu0 %v5329_v3  ;;  %v559_v8 = vld [vmem:[%s6273_s14] sm:$0xff]  ;;  %v5337_v9 = vld [vmem:[#allocation5 + $0x48] ss:$12 sps:$4 sm:$0xff]   ;;  %v5346_v20 = vld [vmem:[#allocation5 + $0x90] ss:$12 sps:$4 sm:$0xff]   ;;  %v6311_v50 = vshrl.u32 %v617_v49, 7 }
  0xaf   : > { %v5338_v11 = vld [vmem:[#allocation5 + $0x64] ss:$12 sps:$4 sm:$0xff]   ;;  %v575_v12 = vpack.c.bf16 %v560_v10, %v559_v8  ;;  %v5340_v13 = vld [vmem:[#allocation5 + $0x60] ss:$12 sps:$4 sm:$0xff]   ;;  %v5341_v14 = vld [vmem:[#allocation5 + $0x7c] ss:$12 sps:$4 sm:$0xff]  }
  0xb0   : > { %v5350_v15 = vld [vmem:[#allocation5 + $0x8] ss:$12 sps:$4 sm:$0xff]   ;;  %v5351_v16 = vld [vmem:[#allocation5 + $0x20] ss:$12 sps:$4 sm:$0xff]   ;;  %v5343_v17 = vld [vmem:[#allocation5 + $0x78] ss:$12 sps:$4 sm:$0xff]  }
  0xb1   : > { %763 = vmatpush1.bf16.msra.mxu0 %v5331_v4  ;;  %4755 = vmatprep.mubr.bf16.mxu1 %v575_v12  ;;  %v5344_v18 = vld [vmem:[#allocation5 + $0x94] ss:$12 sps:$4 sm:$0xff]   ;;  %v5352_v19 = vld [vmem:[#allocation5 + $0x38] ss:$12 sps:$4 sm:$0xff]   ;;  %v5353_v22 = vld [vmem:[#allocation5 + $0x50] ss:$12 sps:$4 sm:$0xff]  }
  0xb2   : > { %764 = vmatprep.subr.bf16.mxu0 %v5332_v5  ;;  %4739 = vmatprep.subr.bf16.mxu1 %v5350_v15  ;;  %v5347_v21 = vld [vmem:[#allocation5 + $0xac] ss:$12 sps:$4 sm:$0xff]   ;;  %v5349_v23 = vld [vmem:[#allocation5 + $0xa8] ss:$12 sps:$4 sm:$0xff]   ;;  %v5357_v30 = vld [vmem:[#allocation5 + $0xb0] ss:$12 sps:$4 sm:$0xff]  }
  0xb3   : > { %4740 = vmatpush3.bf16.msra.mxu1 %v5350_v15  ;;  %v5354_v24 = vld [vmem:[#allocation5 + $0x68] ss:$12 sps:$4 sm:$0xff]   ;;  %v5355_v25 = vld [vmem:[#allocation5 + $0x80] ss:$12 sps:$4 sm:$0xff]   ;;  %v562_v27 = vld [vmem:[%s6273_s14 + $0x18] sm:$0xff]  ;;  %8292 = vst [vmem:[#allocation18_spill] sm:$0xff] %v6311_v50 }
  0xb4   : > { %4741 = vmatprep.subr.bf16.mxu1 %v5351_v16  ;;  %v561_v26 = vld [vmem:[%s6273_s14 + $0x10] sm:$0xff]  ;;  %v5356_v28 = vld [vmem:[#allocation5 + $0x98] ss:$12 sps:$4 sm:$0xff]   ;;  %v564_v32 = vld [vmem:[%s6273_s14 + $0x28] sm:$0xff]  ;;  %v6314_v51 = vsub.s32 0, %v6311_v50  ;;  %v8255_v53 = vsub.s32 1, %v6311_v50 }
  0xb5   : > { %765 = vmatpush1.bf16.msra.mxu0 %v5334_v6  ;;  %v576_v29 = vpack.c.bf16 %v562_v27, %v561_v26  ;;  %v563_v31 = vld [vmem:[%s6273_s14 + $0x20] sm:$0xff]  ;;  %v565_v34 = vld [vmem:[%s6273_s14 + $0x30] sm:$0xff]  ;;  %v566_v35 = vld [vmem:[%s6273_s14 + $0x38] sm:$0xff]  ;;  %vm996_vm0 = vcmask 261120   ;;  %s5972_s20 = smov 96   ;;  %v627_v8 = vsub.s32 2, %v6311_v50 }
  0xb6   : > { %766 = vmatprep.subr.bf16.mxu0 %v5335_v7  ;;  %v577_v33 = vpack.c.bf16 %v564_v32, %v563_v31  ;;  %v578_v36 = vpack.c.bf16 %v566_v35, %v565_v34  ;;  %v567_v37 = vld [vmem:[%s6273_s14 + $0x40] sm:$0xff]  ;;  %v568_v38 = vld [vmem:[%s6273_s14 + $0x48] sm:$0xff]  ;;  %v569_v40 = vld [vmem:[%s6273_s14 + $0x50] sm:$0xff]  ;;  %8293 = vst [vmem:[#allocation19_spill] sm:$0xff] %v6314_v51  ;;  %p555_p3 = scmp.lt.s32.totalorder %s6074_s17, 1  ;;  %s5973_s23 = smov 64  }
  0xb7   : > { %4742 = vmatpush3.bf16.msra.mxu1 %v5351_v16  ;;  %v579_v39 = vpack.c.bf16 %v568_v38, %v567_v37  ;;  %v570_v41 = vld [vmem:[%s6273_s14 + $0x58] sm:$0xff]  ;;  %v571_v42 = vld [vmem:[%s6273_s14 + $0x60] sm:$0xff]  ;;  %v572_v43 = vld [vmem:[%s6273_s14 + $0x68] sm:$0xff]  ;;  %s5974_s11 = smov 32   ;;  %vm3043_vm3 = vcmask 523264   ;;  %vm3060_vm4 = vcmask 785408  }
  0xb8   : > { %4743 = vmatprep.subr.bf16.mxu1 %v5352_v19  ;;  %v580_v44 = vpack.c.bf16 %v570_v41, %v569_v40  ;;  %v581_v45 = vpack.c.bf16 %v572_v43, %v571_v42  ;;  %v573_v46 = vld [vmem:[%s6273_s14 + $0x70] sm:$0xff]  ;;  %v574_v47 = vld [vmem:[%s6273_s14 + $0x78] sm:$0xff]  ;;  %v615_v52 = vld [vmem:[%s8235_s3] sm:$0x7]  ;;  %s556_s26 = scalar_select %p555_p3, %s6074_s17, 1 }
  0xb9   : > { %767 = vmatpush1.bf16.msra.mxu0 %v5337_v9  ;;  %v582_v48 = vpack.c.bf16 %v574_v47, %v573_v46  ;;  %v6321_v54 = vrot.slane %v615_v52, %v6314_v51  ;;  %v6325_v56 = vrot.slane %v615_v52, %v8255_v53  ;;  %v6352_v15 = vrot.slane %v615_v52, %v627_v8  ;;  %s8357_s2 = sld [smem:[#allocation44_spill]]  ;;  %s8362_s24 = sld [smem:[#allocation46_spill]] }
  0xba   : > { %768 = vmatprep.subr.bf16.mxu0 %v5338_v11  ;;  %s557_s18 = scalar_lea.vmem %s8233_s1, %s556_s26  ;;  %s8363_s19 = sld [smem:[#allocation47_spill]] }
  0xbb   : > { %4744 = vmatpush3.bf16.msra.mxu1 %v5352_v19  ;;  %s8120_s21 = scalar_lea.vmem [#allocation11], %s4400_s12  ;;  %s4514_s12 = sshll.u32 %s6074_s17, 11 }
  0xbc   : > { %4745 = vmatprep.subr.bf16.mxu1 %v5353_v22  ;;  %s8364_s22 = sld [smem:[#allocation48_spill]]  ;;  %s4256_s17 = scalar_lea.sflag [#allocation4], %s6267_s25 }
  0xbd   : > { %769 = vmatpush1.bf16.msra.mxu0 %v5340_v13 }
  0xbe   : > { %770 = vmatprep.subr.bf16.mxu0 %v5341_v14 }
  0xbf   : > { %4746 = vmatpush3.bf16.msra.mxu1 %v5353_v22 }
  0xc0   : > { %4747 = vmatprep.subr.bf16.mxu1 %v5354_v24 }
  0xc1   : > { %771 = vmatpush1.bf16.msra.mxu0 %v5343_v17 }
  0xc2   : > { %772 = vmatprep.subr.bf16.mxu0 %v5344_v18 }
  0xc3   : > { %4748 = vmatpush3.bf16.msra.mxu1 %v5354_v24 }
  0xc4   : > { %4749 = vmatprep.subr.bf16.mxu1 %v5355_v25 }
  0xc5   : > { %773 = vmatpush1.bf16.msra.mxu0 %v5346_v20 }
  0xc6   : > { %774 = vmatprep.subr.bf16.mxu0 %v5347_v21 }
  0xc7   : > { %4750 = vmatpush3.bf16.msra.mxu1 %v5355_v25 }
  0xc8   : > { %4751 = vmatprep.subr.bf16.mxu1 %v5356_v28 }
  0xc9   : > { %775 = vmatpush1.bf16.msra.mxu0 %v5349_v23 }
  0xcb   : > { %4752 = vmatpush3.bf16.msra.mxu1 %v5356_v28 }
  0xcc   : > { %793 = vmatmul.mubr.bf16.vlgmr.msra.gmra.mrb[0].mxu0 %v575_v12  ;;  %4753 = vmatprep.subr.bf16.mxu1 %v5357_v30 }
  0xcd   : > { %802 = vmatprep.mubr.bf16.mxu0 %v8256_v0 }
  0xcf   : > { %4754 = vmatpush3.bf16.msra.mxu1 %v5357_v30 }
  0xd2   : > { %4756 = vmatmul.mubr.bf16.vlgmr.msra.gmra.mrb[0].mxu1 %v576_v29 }
  0xd3   : > { %4759 = vmatprep.mubr.bf16.mxu1 %v577_v33 }
  0xd4   : > { %803 = vmatmul.mubr.bf16.gmra.mrb[4].mxu0 %v576_v29 }
  0xd5   : > { %812 = vmatprep.mubr.bf16.mxu0 %v8256_v0 }
  0xda   : > { %4760 = vmatmul.mubr.bf16.gmra.mrb[4].mxu1 %v578_v36 }
  0xdb   : > { %4763 = vmatprep.mubr.bf16.mxu1 %v579_v39 }
  0xdc   : > { %813 = vmatmul.mubr.bf16.gmra.mrb[8].mxu0 %v577_v33 }
  0xdd   : > { %822 = vmatprep.mubr.bf16.mxu0 %v8256_v0 }
  0xe2   : > { %4764 = vmatmul.mubr.bf16.gmra.mrb[8].mxu1 %v580_v44 }
  0xe3   : > { %4767 = vmatprep.mubr.bf16.mxu1 %v581_v45 }
  0xe4   : > { %823 = vmatmul.mubr.bf16.gmra.mrb[12].mxu0 %v578_v36 }
  0xe5   : > { %832 = vmatprep.mubr.bf16.mxu0 %v8256_v0 }
  0xea   : > { %4768 = vmatmul.mubr.bf16.gmra.mrb[12].mxu1 %v582_v48 }
  0xec   : > { %833 = vmatmul.mubr.bf16.gmra.mrb[16].mxu0 %v579_v39 }
  0xed   : > { %842 = vmatprep.mubr.bf16.mxu0 %v8256_v0 }
  0xf4   : > { %843 = vmatmul.mubr.bf16.gmra.mrb[20].mxu0 %v580_v44 }
  0xf5   : > { %852 = vmatprep.mubr.bf16.mxu0 %v8256_v0 }
  0xfc   : > { %853 = vmatmul.mubr.bf16.gmra.mrb[24].mxu0 %v581_v45 }
  0xfd   : > { %862 = vmatprep.mubr.bf16.mxu0 %v8256_v0 }
 0x104   : > { %863 = vmatmul.mubr.bf16.gmra.mrb[28].mxu0 %v582_v48 }
 0x19f   : > { %v794_v55 = vpop.f32.mrb[0].mxu0 }
 0x1a0   : > { %v796_v57 = vpop.f32.mrb[1].mxu0  ;;  %v795_v59 = vadd.f32 %v794_v55, %v6321_v54 }
 0x1a1   : > { %v798_v58 = vpop.f32.mrb[2].mxu0  ;;  %v797_v62 = vadd.f32 %v796_v57, %v6325_v56 }
 0x1a2   : > { %v799_v60 = vadd.f32 %v798_v58, %v6321_v54  ;;  %v800_v61 = vpop.f32.mrb[3].mxu0 }
 0x1a3   : > { %v801_v63 = vadd.f32 %v800_v61, %v6325_v56 }
 0x1a4   : > { %v6331_v1 = vpack.c.bf16 %v799_v60, %v795_v59 }
 0x1a5   : > { %v6333_v2 = vpack.c.bf16 %v801_v63, %v797_v62  ;;  %v4757_v18 = vpop.f32.mrb[0].mxu1 }
 0x1a6   : > { %4787 = vmatprep.mubr.msk.bf16.mxu0 %vm996_vm0, %v6331_v1  ;;  %v916_v21 = vadd.f32 %v4757_v18, %v6352_v15  ;;  %v907_v22 = vpop.f32.mrb[1].mxu1 }
 0x1a7   : > { %v804_v3 = vpop.f32.mrb[4].mxu0  ;;  %1445 = vrot.lane.b32.xlu0 %v6333_v2, %s5972_s20  ;;  %5075 = vmatprep.subr.msk.bf16.mxu0 %vm996_vm0, %v6333_v2  ;;  %v1022_v4 = vsel %vm996_vm0, %v6333_v2, 0  ;;  %v908_v24 = vadd.f32 %v907_v22, %v6352_v15  ;;  %v4758_v25 = vpop.f32.mrb[2].mxu1 }
 0x1a8   : > { %v805_v5 = vadd.f32 %v804_v3, %v6321_v54  ;;  %v806_v6 = vpop.f32.mrb[5].mxu0  ;;  %4772 = vmatpush3.bf16.xpose.msra.mxu0 %v1022_v4  ;;  %v919_v28 = vadd.f32 %v4758_v25, %v6352_v15  ;;  %v910_v29 = vpop.f32.mrb[3].mxu1 }
 0x1a9   : > { %v808_v7 = vpop.f32.mrb[6].mxu0  ;;  %v807_v11 = vadd.f32 %v806_v6, %v6325_v56  ;;  %v911_v32 = vadd.f32 %v910_v29, %v6352_v15 }
 0x1aa   : > { %v809_v9 = vadd.f32 %v808_v7, %v6321_v54  ;;  %v810_v10 = vpop.f32.mrb[7].mxu0  ;;  %v6370_v34 = vpack.c.bf16 %v919_v28, %v916_v21 }
 0x1ab   : > { %v811_v12 = vadd.f32 %v810_v10, %v6325_v56  ;;  %v6374_v36 = vpack.c.bf16 %v911_v32, %v908_v24 }
 0x1ac   : > { %v6348_v13 = vpack.c.bf16 %v809_v9, %v805_v5 }
 0x1ad   : > { %v6350_v14 = vpack.c.bf16 %v811_v12, %v807_v11  ;;  %v4761_v39 = vpop.f32.mrb[4].mxu1  ;;  %4803 = vmatprep.subr.bf16.mxu1 %v6374_v36 }
 0x1ae   : > { %v932_v42 = vadd.f32 %v4761_v39, %v6352_v15  ;;  %v923_v43 = vpop.f32.mrb[5].mxu1  ;;  %4804 = vmatpush3.bf16.msra.mxu1 %v6374_v36 }
 0x1af   : > { %v814_v16 = vpop.f32.mrb[8].mxu0  ;;  %1447 = vrot.lane.b32.xlu1 %v6350_v14, %s5972_s20  ;;  %5076 = vmatprep.subr.msk.bf16.mxu0 %vm996_vm0, %v6350_v14  ;;  %v1025_v17 = vsel %vm996_vm0, %v6350_v14, 0  ;;  %v924_v45 = vadd.f32 %v923_v43, %v6352_v15  ;;  %v4762_v46 = vpop.f32.mrb[6].mxu1 }
 0x1b0   : > { %v815_v19 = vadd.f32 %v814_v16, %v6321_v54  ;;  %v816_v20 = vpop.f32.mrb[9].mxu0  ;;  %4774 = vmatpush3.bf16.xpose.msra.mxu0 %v1025_v17  ;;  %4805 = vmatprep.subr.bf16.mxu1 %v6370_v34  ;;  %v935_v49 = vadd.f32 %v4762_v46, %v6352_v15  ;;  %v926_v52 = vpop.f32.mrb[7].mxu1 }
 0x1b1   : > { %v818_v23 = vpop.f32.mrb[10].mxu0  ;;  %v817_v30 = vadd.f32 %v816_v20, %v6325_v56  ;;  %v927_v58 = vadd.f32 %v926_v52, %v6352_v15 }
 0x1b2   : > { %v819_v26 = vadd.f32 %v818_v23, %v6321_v54  ;;  %v820_v27 = vpop.f32.mrb[11].mxu0  ;;  %v6393_v60 = vpack.c.bf16 %v935_v49, %v932_v42  ;;  %4806 = vmatpush3.bf16.msra.mxu1 %v6370_v34 }
 0x1b3   : > { %v821_v31 = vadd.f32 %v820_v27, %v6325_v56  ;;  %v6398_v62 = vpack.c.bf16 %v927_v58, %v924_v45 }
 0x1b4   : > { %v6368_v33 = vpack.c.bf16 %v819_v26, %v815_v19 }
 0x1b5   : > { %v6372_v35 = vpack.c.bf16 %v821_v31, %v817_v30  ;;  %v4765_v4 = vpop.f32.mrb[8].mxu1  ;;  %4807 = vmatprep.subr.bf16.mxu1 %v6398_v62 }
 0x1b6   : > { %v948_v7 = vadd.f32 %v4765_v4, %v6352_v15  ;;  %v939_v8 = vpop.f32.mrb[9].mxu1  ;;  %4808 = vmatpush3.bf16.msra.mxu1 %v6398_v62 }
 0x1b7   : > { %v824_v37 = vpop.f32.mrb[12].mxu0  ;;  %5077 = vmatprep.subr.msk.bf16.mxu0 %vm996_vm0, %v6372_v35  ;;  %v1028_v38 = vsel %vm996_vm0, %v6372_v35, 0  ;;  %v940_v10 = vadd.f32 %v939_v8, %v6352_v15  ;;  %v4766_v11 = vpop.f32.mrb[10].mxu1  ;;  %4809 = vmatprep.subr.bf16.mxu1 %v6393_v60 }
 0x1b8   : > { %v825_v40 = vadd.f32 %v824_v37, %v6321_v54  ;;  %v826_v41 = vpop.f32.mrb[13].mxu0  ;;  %4776 = vmatpush3.bf16.xpose.msra.mxu0 %v1028_v38  ;;  %v951_v17 = vadd.f32 %v4766_v11, %v6352_v15  ;;  %v942_v18 = vpop.f32.mrb[11].mxu1 }
 0x1b9   : > { %v828_v44 = vpop.f32.mrb[14].mxu0  ;;  %v827_v55 = vadd.f32 %v826_v41, %v6325_v56  ;;  %v943_v21 = vadd.f32 %v942_v18, %v6352_v15 }
 0x1ba   : > { %v829_v47 = vadd.f32 %v828_v44, %v6321_v54  ;;  %v830_v48 = vpop.f32.mrb[15].mxu0  ;;  %v6417_v23 = vpack.c.bf16 %v951_v17, %v948_v7  ;;  %4810 = vmatpush3.bf16.msra.mxu1 %v6393_v60 }
 0x1bb   : > { %v831_v57 = vadd.f32 %v830_v48, %v6325_v56  ;;  %v6422_v25 = vpack.c.bf16 %v943_v21, %v940_v10 }
 0x1bc   : > { %v6391_v59 = vpack.c.bf16 %v829_v47, %v825_v40 }
 0x1bd   : > { %v6396_v61 = vpack.c.bf16 %v831_v57, %v827_v55  ;;  %v4769_v28 = vpop.f32.mrb[12].mxu1  ;;  %4811 = vmatprep.subr.bf16.mxu1 %v6422_v25 }
 0x1be   : > { %v964_v31 = vadd.f32 %v4769_v28, %v6352_v15  ;;  %v955_v32 = vpop.f32.mrb[13].mxu1  ;;  %4812 = vmatpush3.bf16.msra.mxu1 %v6422_v25 }
 0x1bf   : > { %v834_v63 = vpop.f32.mrb[16].mxu0  ;;  %5078 = vmatprep.subr.msk.bf16.mxu0 %vm996_vm0, %v6396_v61  ;;  %v1031_v3 = vsel %vm996_vm0, %v6396_v61, 0  ;;  %v956_v38 = vadd.f32 %v955_v32, %v6352_v15  ;;  %v4770_v39 = vpop.f32.mrb[14].mxu1  ;;  %4813 = vmatprep.subr.bf16.mxu1 %v6417_v23 }
 0x1c0   : > { %v835_v5 = vadd.f32 %v834_v63, %v6321_v54  ;;  %v836_v6 = vpop.f32.mrb[17].mxu0  ;;  %4778 = vmatpush3.bf16.xpose.msra.mxu0 %v1031_v3  ;;  %v967_v42 = vadd.f32 %v4770_v39, %v6352_v15  ;;  %v958_v43 = vpop.f32.mrb[15].mxu1 }
 0x1c1   : > { %v838_v9 = vpop.f32.mrb[18].mxu0  ;;  %v837_v19 = vadd.f32 %v836_v6, %v6325_v56  ;;  %v959_v46 = vadd.f32 %v958_v43, %v6352_v15 }
 0x1c2   : > { %v839_v12 = vadd.f32 %v838_v9, %v6321_v54  ;;  %v840_v16 = vpop.f32.mrb[19].mxu0  ;;  %v6441_v48 = vpack.c.bf16 %v967_v42, %v964_v31  ;;  %4814 = vmatpush3.bf16.msra.mxu1 %v6417_v23 }
 0x1c3   : > { %v841_v20 = vadd.f32 %v840_v16, %v6325_v56  ;;  %v6446_v52 = vpack.c.bf16 %v959_v46, %v956_v38 }
 0x1c4   : > { %v6415_v22 = vpack.c.bf16 %v839_v12, %v835_v5 }
 0x1c5   : > { %v6420_v24 = vpack.c.bf16 %v841_v20, %v837_v19  ;;  %4815 = vmatprep.subr.bf16.mxu1 %v6446_v52 }
 0x1c6   : > { %4816 = vmatpush3.bf16.msra.mxu1 %v6446_v52 }
 0x1c7   : > { %v844_v26 = vpop.f32.mrb[20].mxu0  ;;  %5079 = vmatprep.subr.msk.bf16.mxu0 %vm996_vm0, %v6420_v24  ;;  %v1034_v27 = vsel %vm996_vm0, %v6420_v24, 0  ;;  %4817 = vmatprep.subr.bf16.mxu1 %v6441_v48 }
 0x1c8   : > { %v845_v29 = vadd.f32 %v844_v26, %v6321_v54  ;;  %v846_v30 = vpop.f32.mrb[21].mxu0  ;;  %4780 = vmatpush3.bf16.xpose.msra.mxu0 %v1034_v27 }
 0x1c9   : > { %v848_v37 = vpop.f32.mrb[22].mxu0  ;;  %v847_v44 = vadd.f32 %v846_v30, %v6325_v56 }
 0x1ca   : > { %v849_v40 = vadd.f32 %v848_v37, %v6321_v54  ;;  %v850_v41 = vpop.f32.mrb[23].mxu0  ;;  %4818 = vmatpush3.bf16.msra.mxu1 %v6441_v48 }
 0x1cb   : > { %v851_v45 = vadd.f32 %v850_v41, %v6325_v56 }
 0x1cc   : > { %v6439_v47 = vpack.c.bf16 %v849_v40, %v845_v29 }
 0x1cd   : > { %v6444_v49 = vpack.c.bf16 %v851_v45, %v847_v44 }
 0x1cf   : > { %v854_v55 = vpop.f32.mrb[24].mxu0  ;;  %5080 = vmatprep.subr.msk.bf16.mxu0 %vm996_vm0, %v6444_v49  ;;  %v1037_v57 = vsel %vm996_vm0, %v6444_v49, 0 }
 0x1d0   : > { %v855_v15 = vadd.f32 %v854_v55, %v6321_v54  ;;  %v856_v58 = vpop.f32.mrb[25].mxu0  ;;  %4782 = vmatpush3.bf16.xpose.msra.mxu0 %v1037_v57 }
 0x1d1   : > { %v858_v63 = vpop.f32.mrb[26].mxu0  ;;  %v857_v5 = vadd.f32 %v856_v58, %v6325_v56 }
 0x1d2   : > { %v859_v3 = vadd.f32 %v858_v63, %v6321_v54  ;;  %v860_v4 = vpop.f32.mrb[27].mxu0 }
 0x1d3   : > { %v861_v6 = vadd.f32 %v860_v4, %v6325_v56 }
 0x1d4   : > { %v6459_v7 = vpack.c.bf16 %v859_v3, %v855_v15 }
 0x1d5   : > { %v6462_v8 = vpack.c.bf16 %v861_v6, %v857_v5 }
 0x1d7   : > { %v864_v9 = vpop.f32.mrb[28].mxu0  ;;  %5081 = vmatprep.subr.msk.bf16.mxu0 %vm996_vm0, %v6462_v8  ;;  %v1040_v10 = vsel %vm996_vm0, %v6462_v8, 0 }
 0x1d8   : > { %v865_v11 = vadd.f32 %v864_v9, %v6321_v54  ;;  %v866_v12 = vpop.f32.mrb[29].mxu0  ;;  %4784 = vmatpush3.bf16.xpose.msra.mxu0 %v1040_v10 }
 0x1d9   : > { %v868_v16 = vpop.f32.mrb[30].mxu0  ;;  %v867_v19 = vadd.f32 %v866_v12, %v6325_v56 }
 0x1da   : > { %v869_v17 = vadd.f32 %v868_v16, %v6321_v54  ;;  %v870_v18 = vpop.f32.mrb[31].mxu0 }
 0x1db   : > { %v871_v20 = vadd.f32 %v870_v18, %v6325_v56  ;;  %v970_v56 = vld [vmem:[%s557_s18] sm:$0x1]  ;;  %s8183_s18 = scalar_lea.hbm %s8364_s22, %s4514_s12 }
 0x1dc   : > { %v6472_v21 = vpack.c.bf16 %v869_v17, %v865_v11  ;;  %vm971_vm1 = vcmp.gt.f32.partialorder %v970_v56, 0.0 }
 0x1dd   : > { %v6474_v26 = vpack.c.bf16 %v871_v20, %v867_v19  ;;  %v1142_v28 = vsel %vm971_vm1, 1, %v8256_v0 }
 0x1de   : > { %v1146_v29 = vrot.slane %v1142_v28, %v6314_v51 }
 0x1df   : > { %5082 = vmatprep.subr.msk.bf16.mxu0 %vm996_vm0, %v6474_v26  ;;  %v1043_v27 = vsel %vm996_vm0, %v6474_v26, 0 }
 0x1e0   : > { %4786 = vmatpush3.bf16.xpose.msra.mxu0 %v1043_v27  ;;  %vm6505_vm2 = vcmp.eq.s32.totalorder %v1146_v29, 1 }
 0x1e7   : > { %4788 = vmatmul.mubr.msk.bf16.vlgmr.msra.gmra.mrb[32].mxu0 %vm996_vm0, %v6348_v13 }
 0x1e8   : > { %4791 = vmatprep.mubr.msk.bf16.mxu0 %vm996_vm0, %v6368_v33 }
 0x1ef   : > { %4792 = vmatmul.mubr.msk.bf16.gmra.mrb[36].mxu0 %vm996_vm0, %v6391_v59 }
 0x1f0   : > { %4795 = vmatprep.mubr.msk.bf16.mxu0 %vm996_vm0, %v6415_v22 }
 0x1f7   : > { %4796 = vmatmul.mubr.msk.bf16.gmra.mrb[40].mxu0 %vm996_vm0, %v6439_v47 }
 0x1f8   : > { %4799 = vmatprep.mubr.msk.bf16.mxu0 %vm996_vm0, %v6459_v7 }
 0x1ff   : > { %4800 = vmatmul.mubr.msk.bf16.gmra.mrb[44].mxu0 %vm996_vm0, %v6472_v21 }
 0x219   : > { %v6494_v54 = vpop.permute.xlu0 %1445 }
 0x21a   : > { %5083 = vmatprep.subr.msk.bf16.mxu1 %vm996_vm0, %v6494_v54 }
 0x221   : > { %v6578_v28 = vpop.permute.xlu1 %1447 }
 0x2ba   : > { %v4789_v31 = vpop.f32.mrb[32].mxu0 }
 0x2bb   : > { %v1079_v32 = vpop.f32.mrb[33].mxu0  ;;  %v1150_v37 = vsel %vm6505_vm2, %v4789_v31, -1e+09 }
 0x2bc   : > { %1168 = vmax.xlane.f32.xlu1 %v1150_v37  ;;  %v4790_v38 = vpop.f32.mrb[34].mxu0  ;;  %v1148_v39 = vsel %vm6505_vm2, %v1079_v32, -1e+09 }
 0x2bd   : > { %1164 = vmax.xlane.f32.xlu0 %v1148_v39  ;;  %v1082_v40 = vpop.f32.mrb[35].mxu0  ;;  %v1151_v41 = vsel %vm6505_vm2, %v4790_v38, -1e+09 }
 0x2be   : > { %v1149_v42 = vsel %vm6505_vm2, %v1082_v40, -1e+09 }
 0x2c0   : > { %1170 = vmax.xlane.f32.xlu1 %v1151_v41 }
 0x2c1   : > { %1166 = vmax.xlane.f32.xlu0 %v1149_v42 }
 0x2c2   : > { %v4793_v43 = vpop.f32.mrb[36].mxu0 }
 0x2c3   : > { %v1095_v44 = vpop.f32.mrb[37].mxu0  ;;  %v6519_v45 = vsel %vm6505_vm2, %v4793_v43, -1e+09 }
 0x2c4   : > { %v4794_v46 = vpop.f32.mrb[38].mxu0  ;;  %v6529_v15 = vsel %vm6505_vm2, %v1095_v44, -1e+09 }
 0x2c5   : > { %1176 = vmax.xlane.f32.xlu0 %v6519_v45  ;;  %v1098_v55 = vpop.f32.mrb[39].mxu0  ;;  %v6524_v57 = vsel %vm6505_vm2, %v4794_v46, -1e+09 }
 0x2c6   : > { %1178 = vmax.xlane.f32.xlu1 %v6524_v57  ;;  %v6534_v58 = vsel %vm6505_vm2, %v1098_v55, -1e+09 }
 0x2c9   : > { %1172 = vmax.xlane.f32.xlu0 %v6529_v15 }
 0x2ca   : > { %1174 = vmax.xlane.f32.xlu1 %v6534_v58  ;;  %v4797_v63 = vpop.f32.mrb[40].mxu0 }
 0x2cb   : > { %v1111_v3 = vpop.f32.mrb[41].mxu0  ;;  %v6539_v4 = vsel %vm6505_vm2, %v4797_v63, -1e+09 }
 0x2cc   : > { %v4798_v5 = vpop.f32.mrb[42].mxu0  ;;  %v6549_v10 = vsel %vm6505_vm2, %v1111_v3, -1e+09 }
 0x2cd   : > { %1184 = vmax.xlane.f32.xlu0 %v6539_v4  ;;  %v1114_v6 = vpop.f32.mrb[43].mxu0  ;;  %v6544_v9 = vsel %vm6505_vm2, %v4798_v5, -1e+09 }
 0x2ce   : > { %1186 = vmax.xlane.f32.xlu1 %v6544_v9  ;;  %v6554_v11 = vsel %vm6505_vm2, %v1114_v6, -1e+09 }
 0x2d1   : > { %1180 = vmax.xlane.f32.xlu0 %v6549_v10 }
 0x2d2   : > { %1182 = vmax.xlane.f32.xlu1 %v6554_v11  ;;  %v4801_v12 = vpop.f32.mrb[44].mxu0 }
 0x2d3   : > { %v1127_v16 = vpop.f32.mrb[45].mxu0  ;;  %v1162_v17 = vsel %vm6505_vm2, %v4801_v12, -1e+09 }
 0x2d4   : > { %v4802_v18 = vpop.f32.mrb[46].mxu0  ;;  %v6561_v20 = vsel %vm6505_vm2, %v1127_v16, -1e+09 }
 0x2d5   : > { %1192 = vmax.xlane.f32.xlu0 %v1162_v17  ;;  %v1130_v19 = vpop.f32.mrb[47].mxu0  ;;  %v6570_v27 = vsel %vm6505_vm2, %v4802_v18, -1e+09 }
 0x2d6   : > { %v6575_v56 = vsel %vm6505_vm2, %v1130_v19, -1e+09 }
 0x2d9   : > { %1188 = vmax.xlane.f32.xlu0 %v6561_v20 }
 0x2e3   : > { %1451 = vrot.lane.b32.xlu1 %v6396_v61, %s5972_s20 }
 0x2ef   : > { %1449 = vrot.lane.b32.xlu0 %v6372_v35, %s5972_s20 }
 0x307   : > { %1194 = vmax.xlane.f32.xlu1 %v6570_v27 }
 0x30b   : > { %1190 = vmax.xlane.f32.xlu1 %v6575_v56 }
 0x349   : > { %v1169_v29 = vpop.xlane.xlu1 %1168 }
 0x34a   : > { %v1198_v31 = vsub.f32 %v1150_v37, %v1169_v29  ;;  %v1165_v32 = vpop.xlane.xlu0 %1164 }
 0x34b   : > { %v1196_v38 = vsub.f32 %v1148_v39, %v1165_v32 }
 0x34c   : > { %v1216_v40 = vmul.f32 1.442695, %v1198_v31 }
 0x34d   : > { %v1212_v43 = vmul.f32 1.442695, %v1196_v38  ;;  %v1171_v44 = vpop.xlane.xlu1 %1170 }
 0x34e   : > { %5406 = vpow2.f32 %v1216_v40  ;;  %v1199_v46 = vsub.f32 %v1151_v41, %v1171_v44  ;;  %v1167_v55 = vpop.xlane.xlu0 %1166 }
 0x34f   : > { %v1197_v63 = vsub.f32 %v1149_v42, %v1167_v55  ;;  %5408 = vpow2.f32 %v1212_v43 }
 0x350   : > { %v1218_v3 = vmul.f32 1.442695, %v1199_v46 }
 0x351   : > { %v1214_v5 = vmul.f32 1.442695, %v1197_v63 }
 0x352   : > { %5410 = vpow2.f32 %v1218_v3  ;;  %v1177_v41 = vpop.xlane.xlu0 %1176 }
 0x353   : > { %5412 = vpow2.f32 %v1214_v5  ;;  %v1179_v18 = vpop.xlane.xlu1 %1178  ;;  %v1202_v31 = vsub.f32 %v6519_v45, %v1177_v41 }
 0x354   : > { %v1203_v46 = vsub.f32 %v6524_v57, %v1179_v18 }
 0x355   : > { %v1224_v40 = vmul.f32 1.442695, %v1202_v31 }
 0x356   : > { %v1173_v42 = vpop.xlane.xlu0 %1172  ;;  %v1226_v53 = vmul.f32 1.442695, %v1203_v46 }
 0x357   : > { %v1175_v29 = vpop.xlane.xlu1 %1174  ;;  %v1200_v32 = vsub.f32 %v6529_v15, %v1173_v42  ;;  %5414 = vpow2.f32 %v1224_v40 }
 0x358   : > { %v6580_v6 = vpop.eup %5406  ;;  %v1201_v43 = vsub.f32 %v6534_v58, %v1175_v29 }
 0x359   : > { %1248 = vadd.xlane.f32.xlu0 %v6580_v6  ;;  %v6583_v12 = vpop.eup %5408  ;;  %v1220_v55 = vmul.f32 1.442695, %v1200_v32 }
 0x35a   : > { %v1185_v16 = vpop.xlane.xlu0 %1184  ;;  %v1222_v63 = vmul.f32 1.442695, %v1201_v43 }
 0x35b   : > { %v1187_v44 = vpop.xlane.xlu1 %1186  ;;  %5416 = vpow2.f32 %v1220_v55  ;;  %v1206_v0 = vsub.f32 %v6539_v4, %v1185_v16 }
 0x35c   : > { %v6585_v37 = vpop.eup %5410  ;;  %5418 = vpow2.f32 %v1222_v63  ;;  %v1207_v4 = vsub.f32 %v6544_v9, %v1187_v44 }
 0x35d   : > { %1244 = vadd.xlane.f32.xlu0 %v6583_v12  ;;  %1250 = vadd.xlane.f32.xlu1 %v6585_v37  ;;  %v6589_v39 = vpop.eup %5412  ;;  %5420 = vpow2.f32 %v1226_v53  ;;  %v1232_v41 = vmul.f32 1.442695, %v1206_v0 }
 0x35e   : > { %v1181_v19 = vpop.xlane.xlu0 %1180 }
 0x35f   : > { %v1183_v50 = vpop.xlane.xlu1 %1182  ;;  %v1204_v58 = vsub.f32 %v6549_v10, %v1181_v19  ;;  %v1234_v10 = vmul.f32 1.442695, %v1207_v4 }
 0x360   : > { %v1205_v19 = vsub.f32 %v6554_v11, %v1183_v50 }
 0x361   : > { %1246 = vadd.xlane.f32.xlu1 %v6589_v39  ;;  %v6605_v18 = vpop.eup %5414 }
 0x362   : > { %v1193_v38 = vpop.xlane.xlu0 %1192 }
 0x363   : > { %v1210_v3 = vsub.f32 %v1162_v17, %v1193_v38  ;;  %v6603_v42 = vpop.permute.xlu1 %1451  ;;  %v1228_v17 = vmul.f32 1.442695, %v1204_v58 }
 0x365   : > { %v1240_v45 = vmul.f32 1.442695, %v1210_v3  ;;  %v6609_v16 = vpop.eup %5416 }
 0x366   : > { %v1189_v5 = vpop.xlane.xlu0 %1188  ;;  %v6611_v53 = vpop.eup %5418 }
 0x367   : > { %v1208_v15 = vsub.f32 %v6561_v20, %v1189_v5  ;;  %5422 = vpow2.f32 %v1240_v45  ;;  %v6617_v31 = vpop.eup %5420 }
 0x368   : > { %5424 = vpow2.f32 %v1232_v41 }
 0x369   : > { %v1236_v57 = vmul.f32 1.442695, %v1208_v15 }
 0x36a   : > { %v1450_v63 = vpop.permute.xlu0 %1449 }
 0x36b   : > { %5426 = vpow2.f32 %v1236_v57 }
 0x36c   : > { %5428 = vpow2.f32 %v1228_v17 }
 0x371   : > { %v6619_v32 = vpop.eup %5422 }
 0x372   : > { %1455 = vrot.lane.b32.xlu1 %v6444_v49, %s5972_s20  ;;  %v6624_v40 = vpop.eup %5424 }
 0x373   : > { %1453 = vrot.lane.b32.xlu0 %v6420_v24, %s5972_s20 }
 0x375   : > { %v6626_v43 = vpop.eup %5426 }
 0x376   : > { %v6630_v11 = vpop.eup %5428 }
 0x392   : > { %1256 = vadd.xlane.f32.xlu0 %v6605_v18 }
 0x394   : > { %v1195_v20 = vpop.xlane.xlu1 %1194 }
 0x395   : > { %v1211_v0 = vsub.f32 %v6570_v27, %v1195_v20  ;;  %v1230_v27 = vmul.f32 1.442695, %v1205_v19 }
 0x396   : > { %1254 = vadd.xlane.f32.xlu0 %v6611_v53  ;;  %1252 = vadd.xlane.f32.xlu1 %v6609_v16 }
 0x397   : > { %v1242_v29 = vmul.f32 1.442695, %v1211_v0 }
 0x398   : > { %v1191_v9 = vpop.xlane.xlu1 %1190 }
 0x399   : > { %5430 = vpow2.f32 %v1242_v29  ;;  %v1209_v38 = vsub.f32 %v6575_v56, %v1191_v9  ;;  %v1486_v9 = vsel %vm996_vm0, %v6494_v54, 0 }
 0x39a   : > { %1272 = vadd.xlane.f32.xlu0 %v6619_v32  ;;  %1258 = vadd.xlane.f32.xlu1 %v6617_v31  ;;  %5432 = vpow2.f32 %v1234_v10 }
 0x39b   : > { %5434 = vpow2.f32 %v1230_v27  ;;  %v1238_v50 = vmul.f32 1.442695, %v1209_v38 }
 0x39d   : > { %5436 = vpow2.f32 %v1238_v50 }
 0x39e   : > { %1268 = vadd.xlane.f32.xlu0 %v6626_v43  ;;  %1264 = vadd.xlane.f32.xlu1 %v6624_v40 }
 0x3a2   : > { %1260 = vadd.xlane.f32.xlu1 %v6630_v11 }
 0x3a3   : > { %v6633_v44 = vpop.eup %5430 }
 0x3a4   : > { %1274 = vadd.xlane.f32.xlu0 %v6633_v44  ;;  %v6636_v56 = vpop.eup %5432 }
 0x3a5   : > { %v6639_v46 = vpop.eup %5434 }
 0x3a6   : > { %1266 = vadd.xlane.f32.xlu1 %v6636_v56 }
 0x3a7   : > { %v6642_v55 = vpop.eup %5436 }
 0x3aa   : > { %1262 = vadd.xlane.f32.xlu1 %v6639_v46 }
 0x3ae   : > { %1270 = vadd.xlane.f32.xlu1 %v6642_v55 }
 0x3ba   : > { %1457 = vrot.lane.b32.xlu0 %v6462_v8, %s5972_s20 }
 0x3be   : > { %1421 = vrot.lane.b32.xlu0 %v6331_v1, %s5972_s20 }
 0x3bf   : > { %1459 = vrot.lane.b32.xlu1 %v6474_v26, %s5972_s20 }
 0x3c2   : > { %1425 = vrot.lane.b32.xlu0 %v6368_v33, %s5972_s20 }
 0x3c3   : > { %1423 = vrot.lane.b32.xlu1 %v6348_v13, %s5972_s20 }
 0x3c6   : > { %1429 = vrot.lane.b32.xlu0 %v6415_v22, %s5972_s20 }
 0x3c7   : > { %1427 = vrot.lane.b32.xlu1 %v6391_v59, %s5972_s20 }
 0x3ca   : > { %1433 = vrot.lane.b32.xlu0 %v6459_v7, %s5972_s20 }
 0x3cb   : > { %1431 = vrot.lane.b32.xlu1 %v6439_v47, %s5972_s20 }
 0x3ce   : > { %1782 = vrot.lane.b32.xlu0 %v6374_v36, %s5972_s20 }
 0x3cf   : > { %1435 = vrot.lane.b32.xlu1 %v6472_v21, %s5972_s20 }
 0x3d2   : > { %1786 = vrot.lane.b32.xlu0 %v6398_v62, %s5972_s20 }
 0x3d3   : > { %1784 = vrot.lane.b32.xlu1 %v6370_v34, %s5972_s20 }
 0x3d6   : > { %1790 = vrot.lane.b32.xlu0 %v6422_v25, %s5972_s20 }
 0x3d7   : > { %1788 = vrot.lane.b32.xlu1 %v6393_v60, %s5972_s20 }
 0x3da   : > { %1794 = vrot.lane.b32.xlu0 %v6446_v52, %s5972_s20 }
 0x3db   : > { %1792 = vrot.lane.b32.xlu1 %v6417_v23, %s5972_s20 }
 0x3de   : > { %1919 = vrot.lane.b32.xlu0 %v6333_v2, %s5973_s23 }
 0x3df   : > { %1796 = vrot.lane.b32.xlu1 %v6441_v48, %s5972_s20 }
 0x3e3   : > { %1921 = vrot.lane.b32.xlu1 %v6350_v14, %s5973_s23 }
 0x3e6   : > { %v1249_v3 = vpop.xlane.xlu0 %1248 }
 0x3ea   : > { %v1245_v5 = vpop.xlane.xlu0 %1244  ;;  %v1251_v45 = vpop.xlane.xlu1 %1250 }
 0x3eb   : > { %5438 = vrcp.f32 %v1251_v45 }
 0x3ec   : > { %5440 = vrcp.f32 %v1245_v5 }
 0x3ed   : > { %5442 = vrcp.f32 %v1249_v3 }
 0x3ee   : > { %v1247_v15 = vpop.xlane.xlu1 %1246  ;;  %v1454_v54 = vpop.permute.xlu0 %1453 }
 0x3ef   : > { %5444 = vrcp.f32 %v1247_v15 }
 0x3f5   : > { %v5439_v41 = vpop.eup %5438 }
 0x3f6   : > { %v5441_v58 = vpop.eup %5440  ;;  %v1295_v17 = vmul.f32 %v5439_v41, %v6585_v37  ;;  %v1489_v37 = vsel %vm996_vm0, %v6578_v28, 0 }
 0x3f7   : > { %v5443_v57 = vpop.eup %5442  ;;  %v1292_v20 = vmul.f32 %v5441_v58, %v6583_v12  ;;  %v1492_v12 = vsel %vm996_vm0, %v1450_v63, 0 }
 0x3f8   : > { %v1294_v10 = vmul.f32 %v5443_v57, %v6580_v6  ;;  %v1495_v6 = vsel %vm996_vm0, %v6603_v42, 0 }
 0x3f9   : > { %v5445_v4 = vpop.eup %5444 }
 0x3fa   : > { %v1293_v0 = vmul.f32 %v5445_v4, %v6589_v39  ;;  %v1309_v29 = vpack.c.bf16 %v1295_v17, %v1294_v10  ;;  %v1456_v39 = vpop.permute.xlu1 %1455 }
 0x3fb   : > { %v1501_v3 = vsel %vm996_vm0, %v1456_v39, 0 }
 0x3fc   : > { %v1308_v19 = vpack.c.bf16 %v1293_v0, %v1292_v20 }
 0x3fe   : > { %4819 = vmatprep.mubr.bf16.mxu1 %v1308_v19 }
 0x3ff   : > { %4820 = vmatmul.mubr.bf16.vlgmr.msra.gmra.mrb[16].mxu1 %v1309_v29 }
 0x400   : > { %4836 = vmatpush3.bf16.xpose.msra.mxu1 %v1486_v9 }
 0x401   : > { %5084 = vmatprep.subr.msk.bf16.mxu1 %vm996_vm0, %v6578_v28  ;;  %v1498_v28 = vsel %vm996_vm0, %v1454_v54, 0 }
 0x408   : > { %4838 = vmatpush3.bf16.xpose.msra.mxu1 %v1489_v37 }
 0x409   : > { %5085 = vmatprep.subr.msk.bf16.mxu1 %vm996_vm0, %v1450_v63 }
 0x410   : > { %4840 = vmatpush3.bf16.xpose.msra.mxu1 %v1492_v12 }
 0x411   : > { %5086 = vmatprep.subr.msk.bf16.mxu1 %vm996_vm0, %v6603_v42 }
 0x418   : > { %4842 = vmatpush3.bf16.xpose.msra.mxu1 %v1495_v6 }
 0x419   : > { %5087 = vmatprep.subr.msk.bf16.mxu1 %vm996_vm0, %v1454_v54 }
 0x41f   : > { %v1257_v27 = vpop.xlane.xlu0 %1256 }
 0x420   : > { %4844 = vmatpush3.bf16.xpose.msra.mxu1 %v1498_v28 }
 0x421   : > { %5088 = vmatprep.subr.msk.bf16.mxu1 %vm996_vm0, %v1456_v39 }
 0x423   : > { %v1255_v38 = vpop.xlane.xlu0 %1254  ;;  %v1253_v50 = vpop.xlane.xlu1 %1252 }
 0x424   : > { %5446 = vrcp.f32 %v1255_v38 }
 0x425   : > { %5448 = vrcp.f32 %v1253_v50 }
 0x426   : > { %5450 = vrcp.f32 %v1257_v27 }
 0x427   : > { %v1273_v63 = vpop.xlane.xlu0 %1272  ;;  %v1259_v42 = vpop.xlane.xlu1 %1258 }
 0x428   : > { %4846 = vmatpush3.bf16.xpose.msra.mxu1 %v1501_v3  ;;  %5452 = vrcp.f32 %v1259_v42 }
 0x42b   : > { %v1265_v5 = vpop.xlane.xlu1 %1264  ;;  %v1269_v45 = vpop.xlane.xlu0 %1268 }
 0x42e   : > { %v5447_v15 = vpop.eup %5446 }
 0x42f   : > { %v5449_v41 = vpop.eup %5448  ;;  %v1261_v58 = vpop.xlane.xlu1 %1260  ;;  %v1297_v57 = vmul.f32 %v5447_v15, %v6611_v53 }
 0x430   : > { %v1296_v4 = vmul.f32 %v5449_v41, %v6609_v16  ;;  %v5451_v17 = vpop.eup %5450 }
 0x431   : > { %v1275_v20 = vpop.xlane.xlu0 %1274  ;;  %v1298_v29 = vmul.f32 %v5451_v17, %v6605_v18 }
 0x432   : > { %v1310_v0 = vpack.c.bf16 %v1297_v57, %v1296_v4  ;;  %v5453_v10 = vpop.eup %5452 }
 0x433   : > { %v1267_v19 = vpop.xlane.xlu1 %1266  ;;  %v1299_v9 = vmul.f32 %v5453_v10, %v6617_v31 }
 0x434   : > { %4823 = vmatprep.mubr.bf16.mxu1 %v1310_v0  ;;  %5454 = vrcp.f32 %v1267_v19 }
 0x435   : > { %v1458_v37 = vpop.permute.xlu0 %1457  ;;  %5456 = vrcp.f32 %v1261_v58  ;;  %v1311_v12 = vpack.c.bf16 %v1299_v9, %v1298_v29 }
 0x436   : > { %5089 = vmatprep.subr.msk.bf16.mxu1 %vm996_vm0, %v1458_v37  ;;  %v1504_v53 = vsel %vm996_vm0, %v1458_v37, 0  ;;  %5458 = vrcp.f32 %v1265_v5 }
 0x437   : > { %4848 = vmatpush3.bf16.xpose.msra.mxu1 %v1504_v53  ;;  %v1263_v16 = vpop.xlane.xlu1 %1262 }
 0x438   : > { %4824 = vmatmul.mubr.bf16.gmra.mrb[20].mxu1 %v1311_v12  ;;  %5460 = vrcp.f32 %v1263_v16 }
 0x439   : > { %v1422_v6 = vpop.permute.xlu0 %1421  ;;  %5462 = vrcp.f32 %v1269_v45 }
 0x43b   : > { %v1271_v54 = vpop.xlane.xlu1 %1270 }
 0x43c   : > { %5464 = vrcp.f32 %v1271_v54 }
 0x43d   : > { %5466 = vrcp.f32 %v1275_v20  ;;  %v1426_v18 = vpop.permute.xlu0 %1425 }
 0x43e   : > { %v5455_v31 = vpop.eup %5454  ;;  %5468 = vrcp.f32 %v1273_v63 }
 0x43f   : > { %v1460_v39 = vpop.permute.xlu1 %1459  ;;  %v5457_v27 = vpop.eup %5456  ;;  %v1303_v42 = vmul.f32 %v5455_v31, %v6636_v56 }
 0x440   : > { %5090 = vmatprep.subr.msk.bf16.mxu1 %vm996_vm0, %v1460_v39  ;;  %v1507_v28 = vsel %vm996_vm0, %v1460_v39, 0  ;;  %v5459_v38 = vpop.eup %5458  ;;  %v1300_v45 = vmul.f32 %v5457_v27, %v6630_v11 }
 0x441   : > { %v1430_v50 = vpop.permute.xlu0 %1429  ;;  %4850 = vmatpush3.bf16.xpose.msra.mxu1 %v1507_v28  ;;  %v1302_v63 = vmul.f32 %v5459_v38, %v6624_v40 }
 0x442   : > { %v5461_v3 = vpop.eup %5460 }
 0x443   : > { %v1424_v5 = vpop.permute.xlu1 %1423  ;;  %v1301_v15 = vmul.f32 %v5461_v3, %v6639_v46  ;;  %v5463_v41 = vpop.eup %5462  ;;  %v1313_v17 = vpack.c.bf16 %v1303_v42, %v1302_v63 }
 0x444   : > { %v1304_v10 = vmul.f32 %v5463_v41, %v6626_v43 }
 0x445   : > { %v1434_v58 = vpop.permute.xlu0 %1433  ;;  %v1312_v57 = vpack.c.bf16 %v1301_v15, %v1300_v45 }
 0x446   : > { %v5465_v4 = vpop.eup %5464 }
 0x447   : > { %v5467_v20 = vpop.eup %5466  ;;  %4827 = vmatprep.mubr.bf16.mxu1 %v1312_v57  ;;  %v1428_v0 = vpop.permute.xlu1 %1427  ;;  %v1305_v19 = vmul.f32 %v5465_v4, %v6642_v55 }
 0x448   : > { %4828 = vmatmul.mubr.bf16.gmra.mrb[24].mxu1 %v1313_v17  ;;  %v5469_v56 = vpop.eup %5468  ;;  %v1307_v46 = vmul.f32 %v5467_v20, %v6633_v44 }
 0x449   : > { %v1783_v29 = vpop.permute.xlu0 %1782  ;;  %v1314_v11 = vpack.c.bf16 %v1305_v19, %v1304_v10  ;;  %v1306_v9 = vmul.f32 %v5469_v56, %v6619_v32 }
 0x44a   : > { %4867 = vmatprep.subr.bf16.mxu0 %v1783_v29 }
 0x44b   : > { %4831 = vmatprep.mubr.bf16.mxu1 %v1314_v11  ;;  %v1432_v40 = vpop.permute.xlu1 %1431  ;;  %4868 = vmatpush3.bf16.msra.mxu0 %v1783_v29  ;;  %v1315_v37 = vpack.c.bf16 %v1307_v46, %v1306_v9 }
 0x44d   : > { %v1787_v55 = vpop.permute.xlu0 %1786 }
 0x44f   : > { %v1436_v12 = vpop.permute.xlu1 %1435 }
 0x450   : > { %4832 = vmatmul.mubr.bf16.gmra.mrb[28].mxu1 %v1315_v37 }
 0x451   : > { %4851 = vmatprep.mubr.msk.bf16.mxu1 %vm996_vm0, %v1422_v6  ;;  %v1791_v44 = vpop.permute.xlu0 %1790 }
 0x453   : > { %v1785_v43 = vpop.permute.xlu1 %1784 }
 0x454   : > { %4869 = vmatprep.subr.bf16.mxu0 %v1785_v43 }
 0x455   : > { %4870 = vmatpush3.bf16.msra.mxu0 %v1785_v43  ;;  %v1795_v16 = vpop.permute.xlu0 %1794 }
 0x456   : > { %4871 = vmatprep.subr.bf16.mxu0 %v1787_v55 }
 0x457   : > { %v1789_v53 = vpop.permute.xlu1 %1788 }
 0x458   : > { %4852 = vmatmul.mubr.msk.bf16.vlgmr.msra.gmra.mrb[32].mxu1 %vm996_vm0, %v1424_v5 }
 0x459   : > { %4855 = vmatprep.mubr.msk.bf16.mxu1 %vm996_vm0, %v1426_v18  ;;  %4872 = vmatpush3.bf16.msra.mxu0 %v1787_v55  ;;  %v6728_v54 = vpop.permute.xlu0 %1919 }
 0x45a   : > { %4873 = vmatprep.subr.bf16.mxu0 %v1789_v53 }
 0x45b   : > { %v1793_v32 = vpop.permute.xlu1 %1792 }
 0x45d   : > { %4874 = vmatpush3.bf16.msra.mxu0 %v1789_v53 }
 0x45e   : > { %4875 = vmatprep.subr.bf16.mxu0 %v1791_v44 }
 0x45f   : > { %v1797_v6 = vpop.permute.xlu1 %1796 }
 0x460   : > { %4856 = vmatmul.mubr.msk.bf16.gmra.mrb[36].mxu1 %vm996_vm0, %v1428_v0 }
 0x461   : > { %4859 = vmatprep.mubr.msk.bf16.mxu1 %vm996_vm0, %v1430_v50  ;;  %4876 = vmatpush3.bf16.msra.mxu0 %v1791_v44 }
 0x462   : > { %4877 = vmatprep.subr.bf16.mxu0 %v1793_v32 }
 0x465   : > { %4878 = vmatpush3.bf16.msra.mxu0 %v1793_v32 }
 0x466   : > { %4879 = vmatprep.subr.bf16.mxu0 %v1795_v16 }
 0x468   : > { %4860 = vmatmul.mubr.msk.bf16.gmra.mrb[40].mxu1 %vm996_vm0, %v1432_v40 }
 0x469   : > { %4863 = vmatprep.mubr.msk.bf16.mxu1 %vm996_vm0, %v1434_v58  ;;  %4880 = vmatpush3.bf16.msra.mxu0 %v1795_v16 }
 0x46a   : > { %4881 = vmatprep.subr.bf16.mxu0 %v1797_v6 }
 0x46d   : > { %4882 = vmatpush3.bf16.msra.mxu0 %v1797_v6 }
 0x46e   : > { %5091 = vmatprep.subr.msk.bf16.mxu0 %vm996_vm0, %v6728_v54 }
 0x470   : > { %4864 = vmatmul.mubr.msk.bf16.gmra.mrb[44].mxu1 %vm996_vm0, %v1436_v12 }
 0x4d2   : > { %v6733_v18 = vpop.f32.mrb[16].mxu1 }
 0x4d3   : > { %8296 = vst [vmem:[#allocation20_spill] sm:$0xff] %v6733_v18  ;;  %v6735_v31 = vpop.f32.mrb[17].mxu1 }
 0x4d4   : > { %8297 = vst [vmem:[#allocation21_spill] sm:$0xff] %v6735_v31  ;;  %v6737_v39 = vpop.f32.mrb[18].mxu1 }
 0x4d5   : > { %8298 = vst [vmem:[#allocation22_spill] sm:$0xff] %v6737_v39  ;;  %v6739_v27 = vpop.f32.mrb[19].mxu1 }
 0x4d6   : > { %8299 = vst [vmem:[#allocation23_spill] sm:$0xff] %v6739_v27 }
 0x50b   : > { %v6741_v28 = vpop.f32.mrb[20].mxu1 }
 0x50c   : > { %8300 = vst [vmem:[#allocation24_spill] sm:$0xff] %v6741_v28  ;;  %v6743_v38 = vpop.f32.mrb[21].mxu1 }
 0x50d   : > { %8301 = vst [vmem:[#allocation25_spill] sm:$0xff] %v6743_v38  ;;  %v6745_v50 = vpop.f32.mrb[22].mxu1 }
 0x50e   : > { %8302 = vst [vmem:[#allocation26_spill] sm:$0xff] %v6745_v50  ;;  %v6747_v3 = vpop.f32.mrb[23].mxu1 }
 0x50f   : > { %8303 = vst [vmem:[#allocation27_spill] sm:$0xff] %v6747_v3 }
 0x51b   : > { %v6749_v42 = vpop.f32.mrb[24].mxu1 }
 0x51c   : > { %8304 = vst [vmem:[#allocation28_spill] sm:$0xff] %v6749_v42  ;;  %v6751_v5 = vpop.f32.mrb[25].mxu1 }
 0x51d   : > { %8305 = vst [vmem:[#allocation29_spill] sm:$0xff] %v6751_v5  ;;  %v6753_v45 = vpop.f32.mrb[26].mxu1 }
 0x51e   : > { %8306 = vst [vmem:[#allocation30_spill] sm:$0xff] %v6753_v45  ;;  %v6755_v15 = vpop.f32.mrb[27].mxu1 }
 0x51f   : > { %8307 = vst [vmem:[#allocation31_spill] sm:$0xff] %v6755_v15 }
 0x523   : > { %v6757_v41 = vpop.f32.mrb[28].mxu1 }
 0x524   : > { %8308 = vst [vmem:[#allocation32_spill] sm:$0xff] %v6757_v41  ;;  %v6759_v63 = vpop.f32.mrb[29].mxu1 }
 0x525   : > { %8309 = vst [vmem:[#allocation33_spill] sm:$0xff] %v6759_v63  ;;  %v6761_v58 = vpop.f32.mrb[30].mxu1 }
 0x526   : > { %8310 = vst [vmem:[#allocation34_spill] sm:$0xff] %v6761_v58  ;;  %v6763_v57 = vpop.f32.mrb[31].mxu1 }
 0x527   : > { %8311 = vst [vmem:[#allocation35_spill] sm:$0xff] %v6763_v57 }
 0x52b   : > { %v4853_v4 = vpop.f32.mrb[32].mxu1 }
 0x52c   : > { %v1543_v17 = vpop.f32.mrb[33].mxu1  ;;  %v1608_v20 = vsel %vm6505_vm2, %v4853_v4, -1e+09 }
 0x52d   : > { %1626 = vmax.xlane.f32.xlu0 %v1608_v20  ;;  %v4854_v0 = vpop.f32.mrb[34].mxu1  ;;  %v1606_v56 = vsel %vm6505_vm2, %v1543_v17, -1e+09 }
 0x52e   : > { %v1546_v10 = vpop.f32.mrb[35].mxu1  ;;  %v1609_v46 = vsel %vm6505_vm2, %v4854_v0, -1e+09 }
 0x52f   : > { %v1607_v19 = vsel %vm6505_vm2, %v1546_v10, -1e+09 }
 0x530   : > { %1624 = vmax.xlane.f32.xlu1 %v1607_v19 }
 0x531   : > { %1622 = vmax.xlane.f32.xlu0 %v1606_v56 }
 0x533   : > { %v4857_v29 = vpop.f32.mrb[36].mxu1 }
 0x534   : > { %v1559_v11 = vpop.f32.mrb[37].mxu1  ;;  %v6780_v12 = vsel %vm6505_vm2, %v4857_v29, -1e+09 }
 0x535   : > { %1628 = vmax.xlane.f32.xlu0 %v1609_v46  ;;  %v4858_v40 = vpop.f32.mrb[38].mxu1  ;;  %v6790_v44 = vsel %vm6505_vm2, %v1559_v11, -1e+09 }
 0x536   : > { %v1562_v9 = vpop.f32.mrb[39].mxu1  ;;  %v6775_v37 = vsel %vm6505_vm2, %v4858_v40, -1e+09 }
 0x537   : > { %1636 = vmax.xlane.f32.xlu1 %v6775_v37  ;;  %v6785_v43 = vsel %vm6505_vm2, %v1562_v9, -1e+09 }
 0x539   : > { %1634 = vmax.xlane.f32.xlu0 %v6780_v12 }
 0x53b   : > { %1632 = vmax.xlane.f32.xlu1 %v6785_v43  ;;  %v4861_v55 = vpop.f32.mrb[40].mxu1 }
 0x53c   : > { %v1575_v53 = vpop.f32.mrb[41].mxu1  ;;  %v6800_v4 = vsel %vm6505_vm2, %v4861_v55, -1e+09 }
 0x53d   : > { %1630 = vmax.xlane.f32.xlu0 %v6790_v44  ;;  %v4862_v32 = vpop.f32.mrb[42].mxu1  ;;  %v6810_v29 = vsel %vm6505_vm2, %v1575_v53, -1e+09 }
 0x53e   : > { %v1578_v16 = vpop.f32.mrb[43].mxu1  ;;  %v6795_v6 = vsel %vm6505_vm2, %v4862_v32, -1e+09 }
 0x53f   : > { %1644 = vmax.xlane.f32.xlu1 %v6795_v6  ;;  %v6805_v17 = vsel %vm6505_vm2, %v1578_v16, -1e+09  ;;  %v6837_v16 = vpop.permute.xlu1 %1921 }
 0x541   : > { %1642 = vmax.xlane.f32.xlu0 %v6800_v4 }
 0x543   : > { %1640 = vmax.xlane.f32.xlu1 %v6805_v17  ;;  %v4865_v0 = vpop.f32.mrb[44].mxu1 }
 0x544   : > { %v1591_v10 = vpop.f32.mrb[45].mxu1  ;;  %v6815_v9 = vsel %vm6505_vm2, %v4865_v0, -1e+09 }
 0x545   : > { %1638 = vmax.xlane.f32.xlu0 %v6810_v29  ;;  %v4866_v11 = vpop.f32.mrb[46].mxu1  ;;  %v6820_v55 = vsel %vm6505_vm2, %v1591_v10, -1e+09 }
 0x546   : > { %v1594_v40 = vpop.f32.mrb[47].mxu1  ;;  %v6829_v53 = vsel %vm6505_vm2, %v4866_v11, -1e+09 }
 0x547   : > { %v6834_v32 = vsel %vm6505_vm2, %v1594_v40, -1e+09 }
 0x549   : > { %1650 = vmax.xlane.f32.xlu0 %v6815_v9 }
 0x54d   : > { %1646 = vmax.xlane.f32.xlu0 %v6820_v55 }
 0x554   : > { %1925 = vrot.lane.b32.xlu1 %v6396_v61, %s5973_s23 }
 0x563   : > { %1923 = vrot.lane.b32.xlu0 %v6372_v35, %s5973_s23 }
 0x578   : > { %1652 = vmax.xlane.f32.xlu1 %v6829_v53 }
 0x57c   : > { %1648 = vmax.xlane.f32.xlu1 %v6834_v32 }
 0x5ba   : > { %v1627_v0 = vpop.xlane.xlu0 %1626 }
 0x5bb   : > { %v1656_v10 = vsub.f32 %v1608_v20, %v1627_v0 }
 0x5bd   : > { %v1674_v51 = vmul.f32 1.442695, %v1656_v10  ;;  %v1625_v63 = vpop.xlane.xlu1 %1624 }
 0x5be   : > { %v1655_v57 = vsub.f32 %v1607_v19, %v1625_v63  ;;  %v1623_v41 = vpop.xlane.xlu0 %1622 }
 0x5bf   : > { %5470 = vpow2.f32 %v1674_v51  ;;  %v1654_v58 = vsub.f32 %v1606_v56, %v1623_v41 }
 0x5c0   : > { %v1672_v11 = vmul.f32 1.442695, %v1655_v57 }
 0x5c1   : > { %v1670_v5 = vmul.f32 1.442695, %v1654_v58 }
 0x5c2   : > { %5472 = vpow2.f32 %v1672_v11  ;;  %v1629_v15 = vpop.xlane.xlu0 %1628 }
 0x5c3   : > { %5474 = vpow2.f32 %v1670_v5  ;;  %v1657_v42 = vsub.f32 %v1609_v46, %v1629_v15 }
 0x5c4   : > { %v1637_v15 = vpop.xlane.xlu1 %1636 }
 0x5c5   : > { %v1676_v40 = vmul.f32 1.442695, %v1657_v42  ;;  %v1661_v11 = vsub.f32 %v6775_v37, %v1637_v15 }
 0x5c6   : > { %v1635_v5 = vpop.xlane.xlu0 %1634 }
 0x5c7   : > { %5476 = vpow2.f32 %v1676_v40  ;;  %v1660_v63 = vsub.f32 %v6780_v12, %v1635_v5  ;;  %v1684_v50 = vmul.f32 1.442695, %v1661_v11 }
 0x5c8   : > { %v1633_v58 = vpop.xlane.xlu1 %1632 }
 0x5c9   : > { %v6839_v45 = vpop.eup %5470  ;;  %v1682_v19 = vmul.f32 1.442695, %v1660_v63  ;;  %v1659_v46 = vsub.f32 %v6785_v43, %v1633_v58 }
 0x5ca   : > { %1706 = vadd.xlane.f32.xlu1 %v6839_v45  ;;  %v1631_v42 = vpop.xlane.xlu0 %1630 }
 0x5cb   : > { %v1658_v56 = vsub.f32 %v6790_v44, %v1631_v42  ;;  %5478 = vpow2.f32 %v1682_v19  ;;  %v1680_v3 = vmul.f32 1.442695, %v1659_v46 }
 0x5cc   : > { %v6842_v38 = vpop.eup %5472  ;;  %v1645_v0 = vpop.xlane.xlu1 %1644 }
 0x5cd   : > { %v6844_v20 = vpop.eup %5474  ;;  %1704 = vadd.xlane.f32.xlu0 %v6842_v38  ;;  %v1678_v40 = vmul.f32 1.442695, %v1658_v56  ;;  %v1665_v37 = vsub.f32 %v6795_v6, %v1645_v0 }
 0x5ce   : > { %1702 = vadd.xlane.f32.xlu1 %v6844_v20  ;;  %v1643_v41 = vpop.xlane.xlu0 %1642 }
 0x5cf   : > { %v1664_v28 = vsub.f32 %v6800_v4, %v1643_v41  ;;  %5480 = vpow2.f32 %v1678_v40 }
 0x5d0   : > { %v1641_v18 = vpop.xlane.xlu1 %1640  ;;  %5482 = vpow2.f32 %v1680_v3 }
 0x5d1   : > { %v6848_v51 = vpop.eup %5476  ;;  %v1690_v5 = vmul.f32 1.442695, %v1664_v28  ;;  %5484 = vpow2.f32 %v1684_v50  ;;  %v1692_v28 = vmul.f32 1.442695, %v1665_v37 }
 0x5d2   : > { %1708 = vadd.xlane.f32.xlu1 %v6848_v51  ;;  %v1639_v57 = vpop.xlane.xlu0 %1638 }
 0x5d3   : > { %v1662_v44 = vsub.f32 %v6810_v29, %v1639_v57  ;;  %5486 = vpow2.f32 %v1690_v5  ;;  %v1663_v29 = vsub.f32 %v6805_v17, %v1641_v18 }
 0x5d4   : > { %v6866_v4 = vpop.permute.xlu1 %1925 }
 0x5d5   : > { %v1686_v15 = vmul.f32 1.442695, %v1662_v44  ;;  %v6864_v58 = vpop.eup %5478  ;;  %v1688_v41 = vmul.f32 1.442695, %v1663_v29 }
 0x5d6   : > { %v1651_v10 = vpop.xlane.xlu0 %1650 }
 0x5d7   : > { %v1668_v12 = vsub.f32 %v6815_v9, %v1651_v10 }
 0x5d9   : > { %v1698_v43 = vmul.f32 1.442695, %v1668_v12  ;;  %v6870_v50 = vpop.eup %5480 }
 0x5da   : > { %v1647_v42 = vpop.xlane.xlu0 %1646 }
 0x5db   : > { %v1666_v63 = vsub.f32 %v6820_v55, %v1647_v42  ;;  %5488 = vpow2.f32 %v1698_v43  ;;  %v6872_v55 = vpop.eup %5482 }
 0x5dc   : > { %5490 = vpow2.f32 %v1686_v15  ;;  %v6877_v19 = vpop.eup %5484 }
 0x5dd   : > { %v1694_v3 = vmul.f32 1.442695, %v1666_v63  ;;  %v6879_v18 = vpop.eup %5486 }
 0x5de   : > { %v1924_v5 = vpop.permute.xlu0 %1923 }
 0x5df   : > { %5492 = vpow2.f32 %v1694_v3 }
 0x5e0   : > { %5494 = vpow2.f32 %v1692_v28 }
 0x5e3   : > { %1929 = vrot.lane.b32.xlu1 %v6444_v49, %s5973_s23  ;;  %1927 = vrot.lane.b32.xlu0 %v6420_v24, %s5973_s23 }
 0x5e5   : > { %v6884_v46 = vpop.eup %5488 }
 0x5e6   : > { %v6886_v0 = vpop.eup %5490 }
 0x5e9   : > { %v6890_v10 = vpop.eup %5492 }
 0x5ea   : > { %v6892_v11 = vpop.eup %5494 }
 0x602   : > { %1714 = vadd.xlane.f32.xlu0 %v6864_v58 }
 0x605   : > { %v1653_v9 = vpop.xlane.xlu1 %1652 }
 0x606   : > { %v1669_v6 = vsub.f32 %v6829_v53, %v1653_v9  ;;  %1710 = vadd.xlane.f32.xlu0 %v6870_v50 }
 0x607   : > { %1712 = vadd.xlane.f32.xlu1 %v6872_v55 }
 0x608   : > { %v1700_v57 = vmul.f32 1.442695, %v1669_v6 }
 0x609   : > { %v1649_v56 = vpop.xlane.xlu1 %1648 }
 0x60a   : > { %5496 = vpow2.f32 %v1700_v57  ;;  %v1667_v17 = vsub.f32 %v6834_v32, %v1649_v56  ;;  %1716 = vadd.xlane.f32.xlu0 %v6877_v19  ;;  %v1960_v57 = vsel %vm996_vm0, %v6728_v54, 0 }
 0x60b   : > { %1722 = vadd.xlane.f32.xlu1 %v6879_v18  ;;  %5498 = vpow2.f32 %v1688_v41 }
 0x60c   : > { %v1696_v53 = vmul.f32 1.442695, %v1667_v17 }
 0x60e   : > { %1730 = vadd.xlane.f32.xlu0 %v6884_v46  ;;  %5500 = vpow2.f32 %v1696_v53 }
 0x60f   : > { %1718 = vadd.xlane.f32.xlu1 %v6886_v0 }
 0x612   : > { %1726 = vadd.xlane.f32.xlu0 %v6890_v10 }
 0x613   : > { %1724 = vadd.xlane.f32.xlu1 %v6892_v11 }
 0x614   : > { %v6896_v32 = vpop.eup %5496 }
 0x615   : > { %v6898_v40 = vpop.eup %5498 }
 0x616   : > { %1732 = vadd.xlane.f32.xlu0 %v6896_v32 }
 0x617   : > { %1720 = vadd.xlane.f32.xlu1 %v6898_v40 }
 0x618   : > { %v6902_v12 = vpop.eup %5500 }
 0x61b   : > { %1728 = vadd.xlane.f32.xlu1 %v6902_v12 }
 0x62c   : > { %1931 = vrot.lane.b32.xlu0 %v6462_v8, %s5973_s23  ;;  %1933 = vrot.lane.b32.xlu1 %v6474_v26, %s5973_s23 }
 0x630   : > { %1903 = vrot.lane.b32.xlu0 %v6331_v1, %s5973_s23  ;;  %1905 = vrot.lane.b32.xlu1 %v6348_v13, %s5973_s23 }
 0x634   : > { %1907 = vrot.lane.b32.xlu0 %v6368_v33, %s5973_s23  ;;  %1909 = vrot.lane.b32.xlu1 %v6391_v59, %s5973_s23 }
 0x638   : > { %1911 = vrot.lane.b32.xlu0 %v6415_v22, %s5973_s23  ;;  %1913 = vrot.lane.b32.xlu1 %v6439_v47, %s5973_s23 }
 0x63c   : > { %1915 = vrot.lane.b32.xlu0 %v6459_v7, %s5973_s23  ;;  %1917 = vrot.lane.b32.xlu1 %v6472_v21, %s5973_s23 }
 0x640   : > { %2248 = vrot.lane.b32.xlu0 %v6374_v36, %s5973_s23  ;;  %2250 = vrot.lane.b32.xlu1 %v6370_v34, %s5973_s23 }
 0x644   : > { %2252 = vrot.lane.b32.xlu0 %v6398_v62, %s5973_s23  ;;  %2254 = vrot.lane.b32.xlu1 %v6393_v60, %s5973_s23 }
 0x648   : > { %2256 = vrot.lane.b32.xlu0 %v6422_v25, %s5973_s23  ;;  %2258 = vrot.lane.b32.xlu1 %v6417_v23, %s5973_s23 }
 0x64c   : > { %2260 = vrot.lane.b32.xlu0 %v6446_v52, %s5973_s23  ;;  %2262 = vrot.lane.b32.xlu1 %v6441_v48, %s5973_s23 }
 0x650   : > { %2385 = vrot.lane.b32.xlu0 %v6333_v2, %s5974_s11  ;;  %2387 = vrot.lane.b32.xlu1 %v6350_v14, %s5974_s11 }
 0x657   : > { %v1707_v44 = vpop.xlane.xlu1 %1706 }
 0x65a   : > { %v1705_v42 = vpop.xlane.xlu0 %1704 }
 0x65b   : > { %5502 = vrcp.f32 %v1705_v42  ;;  %v1703_v43 = vpop.xlane.xlu1 %1702 }
 0x65c   : > { %5504 = vrcp.f32 %v1703_v43 }
 0x65d   : > { %5506 = vrcp.f32 %v1707_v44 }
 0x65e   : > { %v1928_v54 = vpop.permute.xlu0 %1927 }
 0x65f   : > { %v1709_v63 = vpop.xlane.xlu1 %1708  ;;  %v1972_v56 = vsel %vm996_vm0, %v1928_v54, 0 }
 0x660   : > { %5508 = vrcp.f32 %v1709_v63 }
 0x665   : > { %v5503_v37 = vpop.eup %5502 }
 0x666   : > { %v5505_v15 = vpop.eup %5504  ;;  %v1751_v3 = vmul.f32 %v5503_v37, %v6842_v38  ;;  %v1963_v38 = vsel %vm996_vm0, %v6837_v16, 0 }
 0x667   : > { %v1750_v28 = vmul.f32 %v5505_v15, %v6844_v20  ;;  %v5507_v29 = vpop.eup %5506  ;;  %v1969_v20 = vsel %vm996_vm0, %v6866_v4, 0 }
 0x668   : > { %v1752_v14 = vmul.f32 %v5507_v29, %v6839_v45  ;;  %v1966_v45 = vsel %vm996_vm0, %v1924_v5, 0 }
 0x669   : > { %v1766_v2 = vpack.c.bf16 %v1751_v3, %v1750_v28 }
 0x66a   : > { %v5509_v9 = vpop.eup %5508 }
 0x66b   : > { %v1753_v6 = vmul.f32 %v5509_v9, %v6848_v51  ;;  %4883 = vmatprep.mubr.bf16.mxu0 %v1766_v2 }
 0x66d   : > { %v1767_v41 = vpack.c.bf16 %v1753_v6, %v1752_v14 }
 0x66f   : > { %4884 = vmatmul.mubr.bf16.vlgmr.msra.gmra.mrb[48].mxu0 %v1767_v41 }
 0x670   : > { %4900 = vmatpush3.bf16.xpose.msra.mxu0 %v1960_v57 }
 0x671   : > { %5092 = vmatprep.subr.msk.bf16.mxu0 %vm996_vm0, %v6837_v16  ;;  %v1930_v16 = vpop.permute.xlu1 %1929 }
 0x672   : > { %v1975_v44 = vsel %vm996_vm0, %v1930_v16, 0 }
 0x678   : > { %4902 = vmatpush3.bf16.xpose.msra.mxu0 %v1963_v38 }
 0x679   : > { %5093 = vmatprep.subr.msk.bf16.mxu0 %vm996_vm0, %v1924_v5 }
 0x680   : > { %4904 = vmatpush3.bf16.xpose.msra.mxu0 %v1966_v45 }
 0x681   : > { %5094 = vmatprep.subr.msk.bf16.mxu0 %vm996_vm0, %v6866_v4 }
 0x688   : > { %4906 = vmatpush3.bf16.xpose.msra.mxu0 %v1969_v20 }
 0x689   : > { %5095 = vmatprep.subr.msk.bf16.mxu0 %vm996_vm0, %v1928_v54 }
 0x68f   : > { %v1715_v51 = vpop.xlane.xlu0 %1714 }
 0x690   : > { %4908 = vmatpush3.bf16.xpose.msra.mxu0 %v1972_v56 }
 0x691   : > { %5096 = vmatprep.subr.msk.bf16.mxu0 %vm996_vm0, %v1930_v16 }
 0x693   : > { %v1711_v17 = vpop.xlane.xlu0 %1710 }
 0x694   : > { %5510 = vrcp.f32 %v1711_v17  ;;  %v1713_v53 = vpop.xlane.xlu1 %1712 }
 0x695   : > { %5512 = vrcp.f32 %v1713_v53 }
 0x696   : > { %5514 = vrcp.f32 %v1715_v51 }
 0x697   : > { %v1717_v5 = vpop.xlane.xlu0 %1716 }
 0x698   : > { %5516 = vrcp.f32 %v1717_v5  ;;  %4910 = vmatpush3.bf16.xpose.msra.mxu0 %v1975_v44  ;;  %v1723_v4 = vpop.xlane.xlu1 %1722 }
 0x69b   : > { %v1731_v42 = vpop.xlane.xlu0 %1730 }
 0x69c   : > { %v1719_v43 = vpop.xlane.xlu1 %1718 }
 0x69e   : > { %v5511_v63 = vpop.eup %5510 }
 0x69f   : > { %v5513_v37 = vpop.eup %5512  ;;  %v1727_v15 = vpop.xlane.xlu0 %1726  ;;  %v1754_v3 = vmul.f32 %v5511_v63, %v6870_v50 }
 0x6a0   : > { %v5515_v28 = vpop.eup %5514  ;;  %v1725_v29 = vpop.xlane.xlu1 %1724  ;;  %v1755_v2 = vmul.f32 %v5513_v37, %v6872_v55 }
 0x6a1   : > { %5518 = vrcp.f32 %v1725_v29  ;;  %v1756_v41 = vmul.f32 %v5515_v28, %v6864_v58 }
 0x6a2   : > { %v5517_v9 = vpop.eup %5516  ;;  %v1768_v14 = vpack.c.bf16 %v1755_v2, %v1754_v3  ;;  %5520 = vrcp.f32 %v1719_v43 }
 0x6a3   : > { %v1733_v6 = vpop.xlane.xlu0 %1732  ;;  %v1757_v57 = vmul.f32 %v5517_v9, %v6877_v19  ;;  %5522 = vrcp.f32 %v1723_v4 }
 0x6a4   : > { %4887 = vmatprep.mubr.bf16.mxu0 %v1768_v14  ;;  %v1721_v38 = vpop.xlane.xlu1 %1720 }
 0x6a5   : > { %5524 = vrcp.f32 %v1721_v38  ;;  %v1769_v45 = vpack.c.bf16 %v1757_v57, %v1756_v41 }
 0x6a6   : > { %5526 = vrcp.f32 %v1727_v15 }
 0x6a7   : > { %v1932_v50 = vpop.permute.xlu0 %1931  ;;  %4888 = vmatmul.mubr.bf16.gmra.mrb[52].mxu0 %v1769_v45 }
 0x6a8   : > { %5097 = vmatprep.subr.msk.bf16.mxu0 %vm996_vm0, %v1932_v50  ;;  %v1729_v55 = vpop.xlane.xlu1 %1728  ;;  %v1978_v20 = vsel %vm996_vm0, %v1932_v50, 0 }
 0x6a9   : > { %5528 = vrcp.f32 %v1729_v55  ;;  %4912 = vmatpush3.bf16.xpose.msra.mxu0 %v1978_v20 }
 0x6aa   : > { %5530 = vrcp.f32 %v1733_v6 }
 0x6ab   : > { %v1904_v54 = vpop.permute.xlu0 %1903  ;;  %v5519_v58 = vpop.eup %5518  ;;  %5532 = vrcp.f32 %v1731_v42 }
 0x6ac   : > { %v1934_v19 = vpop.permute.xlu1 %1933  ;;  %v5521_v51 = vpop.eup %5520  ;;  %v1761_v53 = vmul.f32 %v5519_v58, %v6892_v11 }
 0x6ad   : > { %5098 = vmatprep.subr.msk.bf16.mxu0 %vm996_vm0, %v1934_v19  ;;  %v5523_v56 = vpop.eup %5522  ;;  %v1981_v44 = vsel %vm996_vm0, %v1934_v19, 0  ;;  %v1758_v4 = vmul.f32 %v5521_v51, %v6886_v0 }
 0x6ae   : > { %v1760_v42 = vmul.f32 %v5523_v56, %v6879_v18 }
 0x6af   : > { %v5525_v16 = vpop.eup %5524  ;;  %v1908_v17 = vpop.permute.xlu0 %1907 }
 0x6b0   : > { %v1906_v5 = vpop.permute.xlu1 %1905  ;;  %v1759_v43 = vmul.f32 %v5525_v16, %v6898_v40  ;;  %v5527_v63 = vpop.eup %5526  ;;  %v1771_v28 = vpack.c.bf16 %v1761_v53, %v1760_v42 }
 0x6b1   : > { %4914 = vmatpush3.bf16.xpose.msra.mxu0 %v1981_v44  ;;  %v1762_v11 = vmul.f32 %v5527_v63, %v6890_v10 }
 0x6b2   : > { %v1770_v37 = vpack.c.bf16 %v1759_v43, %v1758_v4 }
 0x6b3   : > { %v5529_v15 = vpop.eup %5528  ;;  %v1912_v3 = vpop.permute.xlu0 %1911 }
 0x6b4   : > { %v5531_v29 = vpop.eup %5530  ;;  %4891 = vmatprep.mubr.bf16.mxu0 %v1770_v37  ;;  %v1910_v2 = vpop.permute.xlu1 %1909  ;;  %v1763_v9 = vmul.f32 %v5529_v15, %v6902_v12 }
 0x6b5   : > { %4892 = vmatmul.mubr.bf16.gmra.mrb[56].mxu0 %v1771_v28  ;;  %v5533_v14 = vpop.eup %5532  ;;  %v1765_v40 = vmul.f32 %v5531_v29, %v6896_v32 }
 0x6b6   : > { %v1772_v0 = vpack.c.bf16 %v1763_v9, %v1762_v11  ;;  %v1764_v18 = vmul.f32 %v5533_v14, %v6884_v46 }
 0x6b7   : > { %v1916_v6 = vpop.permute.xlu0 %1915 }
 0x6b8   : > { %4895 = vmatprep.mubr.bf16.mxu0 %v1772_v0  ;;  %v1914_v41 = vpop.permute.xlu1 %1913  ;;  %v1773_v38 = vpack.c.bf16 %v1765_v40, %v1764_v18 }
 0x6bb   : > { %v2249_v57 = vpop.permute.xlu0 %2248 }
 0x6bc   : > { %4931 = vmatprep.subr.bf16.mxu1 %v2249_v57  ;;  %v1918_v45 = vpop.permute.xlu1 %1917 }
 0x6bd   : > { %4896 = vmatmul.mubr.bf16.gmra.mrb[60].mxu0 %v1773_v38  ;;  %4932 = vmatpush3.bf16.msra.mxu1 %v2249_v57 }
 0x6be   : > { %4915 = vmatprep.mubr.msk.bf16.mxu0 %vm996_vm0, %v1904_v54 }
 0x6bf   : > { %v2253_v12 = vpop.permute.xlu0 %2252 }
 0x6c0   : > { %v2251_v10 = vpop.permute.xlu1 %2250 }
 0x6c1   : > { %4933 = vmatprep.subr.bf16.mxu1 %v2251_v10 }
 0x6c2   : > { %4934 = vmatpush3.bf16.msra.mxu1 %v2251_v10 }
 0x6c3   : > { %4935 = vmatprep.subr.bf16.mxu1 %v2253_v12  ;;  %v2257_v46 = vpop.permute.xlu0 %2256 }
 0x6c4   : > { %v2255_v32 = vpop.permute.xlu1 %2254 }
 0x6c5   : > { %4916 = vmatmul.mubr.msk.bf16.vlgmr.msra.gmra.mrb[64].mxu0 %vm996_vm0, %v1906_v5 }
 0x6c6   : > { %4919 = vmatprep.mubr.msk.bf16.mxu0 %vm996_vm0, %v1908_v17  ;;  %4936 = vmatpush3.bf16.msra.mxu1 %v2253_v12 }
 0x6c7   : > { %4937 = vmatprep.subr.bf16.mxu1 %v2255_v32  ;;  %v2261_v55 = vpop.permute.xlu0 %2260 }
 0x6c8   : > { %v2259_v50 = vpop.permute.xlu1 %2258 }
 0x6ca   : > { %4938 = vmatpush3.bf16.msra.mxu1 %v2255_v32 }
 0x6cb   : > { %4939 = vmatprep.subr.bf16.mxu1 %v2257_v46  ;;  %v6988_v54 = vpop.permute.xlu0 %2385 }
 0x6cc   : > { %v2263_v20 = vpop.permute.xlu1 %2262 }
 0x6cd   : > { %4920 = vmatmul.mubr.msk.bf16.gmra.mrb[68].mxu0 %vm996_vm0, %v1910_v2 }
 0x6ce   : > { %4923 = vmatprep.mubr.msk.bf16.mxu0 %vm996_vm0, %v1912_v3  ;;  %4940 = vmatpush3.bf16.msra.mxu1 %v2257_v46 }
 0x6cf   : > { %4941 = vmatprep.subr.bf16.mxu1 %v2259_v50 }
 0x6d2   : > { %4942 = vmatpush3.bf16.msra.mxu1 %v2259_v50 }
 0x6d3   : > { %4943 = vmatprep.subr.bf16.mxu1 %v2261_v55 }
 0x6d5   : > { %4924 = vmatmul.mubr.msk.bf16.gmra.mrb[72].mxu0 %vm996_vm0, %v1914_v41 }
 0x6d6   : > { %4927 = vmatprep.mubr.msk.bf16.mxu0 %vm996_vm0, %v1916_v6  ;;  %4944 = vmatpush3.bf16.msra.mxu1 %v2261_v55 }
 0x6d7   : > { %4945 = vmatprep.subr.bf16.mxu1 %v2263_v20 }
 0x6da   : > { %4946 = vmatpush3.bf16.msra.mxu1 %v2263_v20 }
 0x6db   : > { %5099 = vmatprep.subr.msk.bf16.mxu1 %vm996_vm0, %v6988_v54 }
 0x6dd   : > { %4928 = vmatmul.mubr.msk.bf16.gmra.mrb[76].mxu0 %vm996_vm0, %v1918_v45 }
 0x742   : > { %v6993_v58 = vpop.f32.mrb[48].mxu0 }
 0x743   : > { %v6995_v19 = vpop.f32.mrb[49].mxu0 }
 0x744   : > { %v6997_v51 = vpop.f32.mrb[50].mxu0 }
 0x745   : > { %v7001_v16 = vpop.f32.mrb[51].mxu0 }
 0x77a   : > { %v7005_v53 = vpop.f32.mrb[52].mxu0 }
 0x77b   : > { %v7007_v5 = vpop.f32.mrb[53].mxu0 }
 0x77c   : > { %v7009_v44 = vpop.f32.mrb[54].mxu0 }
 0x77d   : > { %v7013_v43 = vpop.f32.mrb[55].mxu0 }
 0x788   : > { %v7017_v42 = vpop.f32.mrb[56].mxu0 }
 0x789   : > { %8312 = vst [vmem:[#allocation36_spill] sm:$0xff] %v7017_v42  ;;  %v7019_v37 = vpop.f32.mrb[57].mxu0 }
 0x78a   : > { %8313 = vst [vmem:[#allocation37_spill] sm:$0xff] %v7019_v37  ;;  %v7021_v15 = vpop.f32.mrb[58].mxu0 }
 0x78b   : > { %v7025_v28 = vpop.f32.mrb[59].mxu0 }
 0x78c   : > { %8314 = vst [vmem:[#allocation38_spill] sm:$0xff] %v7025_v28 }
 0x790   : > { %v7029_v2 = vpop.f32.mrb[60].mxu0 }
 0x791   : > { %8315 = vst [vmem:[#allocation39_spill] sm:$0xff] %v7029_v2  ;;  %v7031_v11 = vpop.f32.mrb[61].mxu0 }
 0x792   : > { %8316 = vst [vmem:[#allocation40_spill] sm:$0xff] %v7031_v11  ;;  %v7033_v9 = vpop.f32.mrb[62].mxu0 }
 0x793   : > { %8317 = vst [vmem:[#allocation41_spill] sm:$0xff] %v7033_v9  ;;  %v7037_v0 = vpop.f32.mrb[63].mxu0 }
 0x794   : > { %8318 = vst [vmem:[#allocation42_spill] sm:$0xff] %v7037_v0 }
 0x798   : > { %v4917_v40 = vpop.f32.mrb[64].mxu0 }
 0x799   : > { %v2082_v41 = vsel %vm6505_vm2, %v4917_v40, -1e+09  ;;  %v2017_v18 = vpop.f32.mrb[65].mxu0 }
 0x79a   : > { %2100 = vmax.xlane.f32.xlu0 %v2082_v41  ;;  %v4918_v57 = vpop.f32.mrb[66].mxu0  ;;  %v2080_v10 = vsel %vm6505_vm2, %v2017_v18, -1e+09 }
 0x79b   : > { %v2020_v38 = vpop.f32.mrb[67].mxu0  ;;  %v2083_v32 = vsel %vm6505_vm2, %v4918_v57, -1e+09 }
 0x79c   : > { %v2081_v45 = vsel %vm6505_vm2, %v2020_v38, -1e+09 }
 0x79d   : > { %2098 = vmax.xlane.f32.xlu1 %v2081_v45 }
 0x79e   : > { %2096 = vmax.xlane.f32.xlu0 %v2080_v10 }
 0x7a0   : > { %v4921_v12 = vpop.f32.mrb[68].mxu0 }
 0x7a1   : > { %v2033_v46 = vpop.f32.mrb[69].mxu0  ;;  %v7056_v40 = vsel %vm6505_vm2, %v4921_v12, -1e+09 }
 0x7a2   : > { %2102 = vmax.xlane.f32.xlu0 %v2083_v32  ;;  %v4922_v50 = vpop.f32.mrb[70].mxu0  ;;  %v7066_v38 = vsel %vm6505_vm2, %v2033_v46, -1e+09 }
 0x7a3   : > { %v7051_v55 = vsel %vm6505_vm2, %v4922_v50, -1e+09  ;;  %v2036_v20 = vpop.f32.mrb[71].mxu0 }
 0x7a4   : > { %2110 = vmax.xlane.f32.xlu1 %v7051_v55  ;;  %v7061_v18 = vsel %vm6505_vm2, %v2036_v20, -1e+09 }
 0x7a6   : > { %2108 = vmax.xlane.f32.xlu0 %v7056_v40 }
 0x7a8   : > { %2106 = vmax.xlane.f32.xlu1 %v7061_v18  ;;  %v4925_v57 = vpop.f32.mrb[72].mxu0 }
 0x7a9   : > { %v2049_v50 = vpop.f32.mrb[73].mxu0  ;;  %v7076_v20 = vsel %vm6505_vm2, %v4925_v57, -1e+09 }
 0x7aa   : > { %2104 = vmax.xlane.f32.xlu0 %v7066_v38  ;;  %v4926_v6 = vpop.f32.mrb[74].mxu0 }
 0x7ab   : > { %v7071_v12 = vsel %vm6505_vm2, %v4926_v6, -1e+09  ;;  %v2052_v14 = vpop.f32.mrb[75].mxu0  ;;  %v7086_v6 = vsel %vm6505_vm2, %v2049_v50, -1e+09 }
 0x7ac   : > { %2118 = vmax.xlane.f32.xlu1 %v7071_v12  ;;  %v7081_v46 = vsel %vm6505_vm2, %v2052_v14, -1e+09 }
 0x7ae   : > { %2116 = vmax.xlane.f32.xlu0 %v7076_v20 }
 0x7b0   : > { %2114 = vmax.xlane.f32.xlu1 %v7081_v46  ;;  %v4929_v29 = vpop.f32.mrb[76].mxu0 }
 0x7b1   : > { %v2065_v3 = vpop.f32.mrb[77].mxu0  ;;  %v7091_v57 = vsel %vm6505_vm2, %v4929_v29, -1e+09 }
 0x7b2   : > { %2112 = vmax.xlane.f32.xlu0 %v7086_v6  ;;  %v4930_v63 = vpop.f32.mrb[78].mxu0  ;;  %v7096_v14 = vsel %vm6505_vm2, %v2065_v3, -1e+09  ;;  %v7113_v3 = vpop.permute.xlu1 %2387 }
 0x7b3   : > { %v2068_v4 = vpop.f32.mrb[79].mxu0  ;;  %v7105_v50 = vsel %vm6505_vm2, %v4930_v63, -1e+09 }
 0x7b4   : > { %v7110_v29 = vsel %vm6505_vm2, %v2068_v4, -1e+09 }
 0x7b6   : > { %2124 = vmax.xlane.f32.xlu0 %v7091_v57 }
 0x7ba   : > { %2120 = vmax.xlane.f32.xlu0 %v7096_v14 }
 0x7c1   : > { %2391 = vrot.lane.b32.xlu1 %v6396_v61, %s5974_s11 }
 0x7d0   : > { %2389 = vrot.lane.b32.xlu0 %v6372_v35, %s5974_s11 }
 0x7e5   : > { %2126 = vmax.xlane.f32.xlu1 %v7105_v50 }
 0x7e9   : > { %2122 = vmax.xlane.f32.xlu1 %v7110_v29 }
 0x827   : > { %v2101_v17 = vpop.xlane.xlu0 %2100 }
 0x828   : > { %v2130_v56 = vsub.f32 %v2082_v41, %v2101_v17 }
 0x82a   : > { %v2148_v61 = vmul.f32 1.442695, %v2130_v56  ;;  %v2099_v39 = vpop.xlane.xlu1 %2098 }
 0x82b   : > { %v2129_v31 = vsub.f32 %v2081_v45, %v2099_v39  ;;  %v2097_v35 = vpop.xlane.xlu0 %2096 }
 0x82c   : > { %5534 = vpow2.f32 %v2148_v61  ;;  %v2128_v27 = vsub.f32 %v2080_v10, %v2097_v35 }
 0x82d   : > { %v2146_v63 = vmul.f32 1.442695, %v2129_v31 }
 0x82e   : > { %v2144_v11 = vmul.f32 1.442695, %v2128_v27 }
 0x82f   : > { %5536 = vpow2.f32 %v2146_v63  ;;  %v2103_v0 = vpop.xlane.xlu0 %2102 }
 0x830   : > { %5538 = vpow2.f32 %v2144_v11  ;;  %v2131_v2 = vsub.f32 %v2083_v32, %v2103_v0 }
 0x831   : > { %v2111_v17 = vpop.xlane.xlu1 %2110 }
 0x832   : > { %v2150_v4 = vmul.f32 1.442695, %v2131_v2  ;;  %v2135_v63 = vsub.f32 %v7051_v55, %v2111_v17 }
 0x833   : > { %v2109_v39 = vpop.xlane.xlu0 %2108 }
 0x834   : > { %5540 = vpow2.f32 %v2150_v4  ;;  %v2134_v11 = vsub.f32 %v7056_v40, %v2109_v39  ;;  %v2158_v28 = vmul.f32 1.442695, %v2135_v63 }
 0x835   : > { %v2107_v0 = vpop.xlane.xlu1 %2106 }
 0x836   : > { %v7115_v9 = vpop.eup %5534  ;;  %v2156_v45 = vmul.f32 1.442695, %v2134_v11  ;;  %v2133_v32 = vsub.f32 %v7061_v18, %v2107_v0 }
 0x837   : > { %2180 = vadd.xlane.f32.xlu1 %v7115_v9  ;;  %v2105_v27 = vpop.xlane.xlu0 %2104 }
 0x838   : > { %v2132_v10 = vsub.f32 %v7066_v38, %v2105_v27  ;;  %5542 = vpow2.f32 %v2156_v45  ;;  %v2154_v4 = vmul.f32 1.442695, %v2133_v32 }
 0x839   : > { %v7118_v37 = vpop.eup %5536  ;;  %v2119_v61 = vpop.xlane.xlu1 %2118 }
 0x83a   : > { %v7120_v56 = vpop.eup %5538  ;;  %2178 = vadd.xlane.f32.xlu0 %v7118_v37  ;;  %v2139_v55 = vsub.f32 %v7071_v12, %v2119_v61 }
 0x83b   : > { %2176 = vadd.xlane.f32.xlu1 %v7120_v56  ;;  %v2117_v2 = vpop.xlane.xlu0 %2116 }
 0x83d   : > { %v2115_v42 = vpop.xlane.xlu1 %2114 }
 0x83e   : > { %v7124_v31 = vpop.eup %5540 }
 0x83f   : > { %2182 = vadd.xlane.f32.xlu1 %v7124_v31  ;;  %v2113_v41 = vpop.xlane.xlu0 %2112 }
 0x840   : > { %v2136_v38 = vsub.f32 %v7086_v6, %v2113_v41  ;;  %v2137_v6 = vsub.f32 %v7081_v46, %v2115_v42 }
 0x842   : > { %v2160_v17 = vmul.f32 1.442695, %v2136_v38  ;;  %v7140_v0 = vpop.eup %5542  ;;  %v2162_v45 = vmul.f32 1.442695, %v2137_v6  ;;  %v2426_v38 = vsel %vm996_vm0, %v6988_v54, 0 }
 0x843   : > { %v2125_v35 = vpop.xlane.xlu0 %2124 }
 0x844   : > { %v2142_v40 = vsub.f32 %v7091_v57, %v2125_v35 }
 0x846   : > { %v2172_v18 = vmul.f32 1.442695, %v2142_v40 }
 0x847   : > { %v2121_v27 = vpop.xlane.xlu0 %2120 }
 0x848   : > { %v2140_v11 = vsub.f32 %v7096_v14, %v2121_v27 }
 0x84a   : > { %v2168_v57 = vmul.f32 1.442695, %v2140_v11 }
 0x850   : > { %2395 = vrot.lane.b32.xlu1 %v6444_v49, %s5974_s11  ;;  %2393 = vrot.lane.b32.xlu0 %v6420_v24, %s5974_s11  ;;  %v2152_v49 = vmul.f32 1.442695, %v2132_v10  ;;  %v2138_v24 = vsub.f32 %v7076_v20, %v2117_v2  ;;  %v7142_v20 = vpop.permute.xlu1 %2391  ;;  %v2166_v2 = vmul.f32 1.442695, %v2139_v55 }
 0x852   : > { %5544 = vpow2.f32 %v2152_v49  ;;  %v2164_v39 = vmul.f32 1.442695, %v2138_v24 }
 0x853   : > { %5546 = vpow2.f32 %v2154_v4 }
 0x854   : > { %5548 = vpow2.f32 %v2158_v28 }
 0x855   : > { %5550 = vpow2.f32 %v2164_v39 }
 0x856   : > { %5552 = vpow2.f32 %v2172_v18 }
 0x857   : > { %5554 = vpow2.f32 %v2160_v17 }
 0x858   : > { %5556 = vpow2.f32 %v2168_v57 }
 0x859   : > { %5558 = vpow2.f32 %v2166_v2 }
 0x85c   : > { %v7146_v28 = vpop.eup %5544 }
 0x85d   : > { %v7148_v14 = vpop.eup %5546 }
 0x85e   : > { %v7153_v32 = vpop.eup %5548 }
 0x85f   : > { %v7155_v42 = vpop.eup %5550 }
 0x860   : > { %v7160_v35 = vpop.eup %5552 }
 0x861   : > { %v7162_v63 = vpop.eup %5554 }
 0x862   : > { %v7166_v49 = vpop.eup %5556 }
 0x863   : > { %v7168_v4 = vpop.eup %5558 }
 0x86f   : > { %2188 = vadd.xlane.f32.xlu0 %v7140_v0 }
 0x872   : > { %v2127_v41 = vpop.xlane.xlu1 %2126 }
 0x873   : > { %v2143_v12 = vsub.f32 %v7105_v50, %v2127_v41  ;;  %2184 = vadd.xlane.f32.xlu0 %v7146_v28 }
 0x874   : > { %2186 = vadd.xlane.f32.xlu1 %v7148_v14 }
 0x875   : > { %v2174_v10 = vmul.f32 1.442695, %v2143_v12 }
 0x876   : > { %v2123_v61 = vpop.xlane.xlu1 %2122 }
 0x877   : > { %5560 = vpow2.f32 %v2174_v10  ;;  %v2141_v46 = vsub.f32 %v7110_v29, %v2123_v61  ;;  %2190 = vadd.xlane.f32.xlu0 %v7153_v32 }
 0x878   : > { %2196 = vadd.xlane.f32.xlu1 %v7155_v42  ;;  %5562 = vpow2.f32 %v2162_v45 }
 0x879   : > { %v2170_v50 = vmul.f32 1.442695, %v2141_v46 }
 0x87b   : > { %2204 = vadd.xlane.f32.xlu0 %v7160_v35  ;;  %5564 = vpow2.f32 %v2170_v50 }
 0x87c   : > { %2192 = vadd.xlane.f32.xlu1 %v7162_v63 }
 0x87f   : > { %2200 = vadd.xlane.f32.xlu0 %v7166_v49 }
 0x880   : > { %2198 = vadd.xlane.f32.xlu1 %v7168_v4 }
 0x881   : > { %v7172_v29 = vpop.eup %5560 }
 0x882   : > { %v7174_v24 = vpop.eup %5562 }
 0x883   : > { %2206 = vadd.xlane.f32.xlu0 %v7172_v29 }
 0x884   : > { %2194 = vadd.xlane.f32.xlu1 %v7174_v24 }
 0x885   : > { %v7178_v40 = vpop.eup %5564 }
 0x888   : > { %2202 = vadd.xlane.f32.xlu1 %v7178_v40 }
 0x899   : > { %2397 = vrot.lane.b32.xlu0 %v6462_v8, %s5974_s11  ;;  %2399 = vrot.lane.b32.xlu1 %v6474_v26, %s5974_s11 }
 0x89d   : > { %2369 = vrot.lane.b32.xlu0 %v6331_v1, %s5974_s11  ;;  %2371 = vrot.lane.b32.xlu1 %v6348_v13, %s5974_s11  ;;  %v2390_v1 = vpop.permute.xlu0 %2389 }
 0x8a1   : > { %2373 = vrot.lane.b32.xlu0 %v6368_v33, %s5974_s11  ;;  %2375 = vrot.lane.b32.xlu1 %v6391_v59, %s5974_s11 }
 0x8a5   : > { %2377 = vrot.lane.b32.xlu0 %v6415_v22, %s5974_s11  ;;  %2379 = vrot.lane.b32.xlu1 %v6439_v47, %s5974_s11 }
 0x8a9   : > { %2381 = vrot.lane.b32.xlu0 %v6459_v7, %s5974_s11  ;;  %2383 = vrot.lane.b32.xlu1 %v6472_v21, %s5974_s11 }
 0x8ad   : > { %2714 = vrot.lane.b32.xlu0 %v6374_v36, %s5974_s11  ;;  %2716 = vrot.lane.b32.xlu1 %v6370_v34, %s5974_s11 }
 0x8b1   : > { %2718 = vrot.lane.b32.xlu0 %v6398_v62, %s5974_s11 }
 0x8b5   : > { %2720 = vrot.lane.b32.xlu0 %v6393_v60, %s5974_s11 }
 0x8c4   : > { %v2181_v13 = vpop.xlane.xlu1 %2180 }
 0x8c7   : > { %v2179_v33 = vpop.xlane.xlu0 %2178 }
 0x8c8   : > { %5566 = vrcp.f32 %v2179_v33  ;;  %v2177_v59 = vpop.xlane.xlu1 %2176 }
 0x8c9   : > { %5568 = vrcp.f32 %v2177_v59 }
 0x8ca   : > { %5570 = vrcp.f32 %v2181_v13 }
 0x8cb   : > { %v2394_v54 = vpop.permute.xlu0 %2393 }
 0x8cc   : > { %v2183_v22 = vpop.xlane.xlu1 %2182  ;;  %v2438_v27 = vsel %vm996_vm0, %v2394_v54, 0 }
 0x8cd   : > { %5572 = vrcp.f32 %v2183_v22 }
 0x8d2   : > { %v5567_v47 = vpop.eup %5566 }
 0x8d3   : > { %v5569_v36 = vpop.eup %5568  ;;  %v2225_v7 = vmul.f32 %v5567_v47, %v7118_v37  ;;  %v2429_v37 = vsel %vm996_vm0, %v7113_v3, 0 }
 0x8d4   : > { %v2224_v34 = vmul.f32 %v5569_v36, %v7120_v56  ;;  %v5571_v8 = vpop.eup %5570  ;;  %v2435_v56 = vsel %vm996_vm0, %v7142_v20, 0 }
 0x8d5   : > { %v2226_v60 = vmul.f32 %v5571_v8, %v7115_v9  ;;  %v2432_v9 = vsel %vm996_vm0, %v2390_v1, 0 }
 0x8d6   : > { %v2240_v62 = vpack.c.bf16 %v2225_v7, %v2224_v34 }
 0x8d7   : > { %v5573_v21 = vpop.eup %5572 }
 0x8d8   : > { %v2227_v26 = vmul.f32 %v5573_v21, %v7124_v31  ;;  %4947 = vmatprep.mubr.bf16.mxu1 %v2240_v62 }
 0x8da   : > { %v2241_v39 = vpack.c.bf16 %v2227_v26, %v2226_v60 }
 0x8dc   : > { %4948 = vmatmul.mubr.bf16.vlgmr.msra.gmra.mrb[48].mxu1 %v2241_v39 }
 0x8dd   : > { %4964 = vmatpush3.bf16.xpose.msra.mxu1 %v2426_v38 }
 0x8de   : > { %5100 = vmatprep.subr.msk.bf16.mxu1 %vm996_vm0, %v7113_v3  ;;  %v2396_v3 = vpop.permute.xlu1 %2395 }
 0x8df   : > { %v2441_v17 = vsel %vm996_vm0, %v2396_v3, 0 }
 0x8e5   : > { %4966 = vmatpush3.bf16.xpose.msra.mxu1 %v2429_v37 }
 0x8e6   : > { %5101 = vmatprep.subr.msk.bf16.mxu1 %vm996_vm0, %v2390_v1 }
 0x8ed   : > { %4968 = vmatpush3.bf16.xpose.msra.mxu1 %v2432_v9 }
 0x8ee   : > { %5102 = vmatprep.subr.msk.bf16.mxu1 %vm996_vm0, %v7142_v20 }
 0x8f5   : > { %4970 = vmatpush3.bf16.xpose.msra.mxu1 %v2435_v56 }
 0x8f6   : > { %5103 = vmatprep.subr.msk.bf16.mxu1 %vm996_vm0, %v2394_v54 }
 0x8fc   : > { %v2189_v31 = vpop.xlane.xlu0 %2188 }
 0x8fd   : > { %4972 = vmatpush3.bf16.xpose.msra.mxu1 %v2438_v27 }
 0x8fe   : > { %5104 = vmatprep.subr.msk.bf16.mxu1 %vm996_vm0, %v2396_v3 }
 0x900   : > { %v2185_v18 = vpop.xlane.xlu0 %2184 }
 0x901   : > { %5574 = vrcp.f32 %v2185_v18  ;;  %v2187_v11 = vpop.xlane.xlu1 %2186 }
 0x902   : > { %5576 = vrcp.f32 %v2187_v11 }
 0x903   : > { %5578 = vrcp.f32 %v2189_v31 }
 0x904   : > { %v2191_v55 = vpop.xlane.xlu0 %2190 }
 0x905   : > { %5580 = vrcp.f32 %v2191_v55  ;;  %4974 = vmatpush3.bf16.xpose.msra.mxu1 %v2441_v17  ;;  %v2197_v20 = vpop.xlane.xlu1 %2196 }
 0x908   : > { %v2205_v57 = vpop.xlane.xlu0 %2204 }
 0x909   : > { %v2193_v2 = vpop.xlane.xlu1 %2192 }
 0x90b   : > { %v5575_v6 = vpop.eup %5574 }
 0x90c   : > { %v5577_v41 = vpop.eup %5576  ;;  %v2201_v12 = vpop.xlane.xlu0 %2200  ;;  %v2228_v45 = vmul.f32 %v5575_v6, %v7146_v28 }
 0x90d   : > { %v5579_v10 = vpop.eup %5578  ;;  %v2199_v61 = vpop.xlane.xlu1 %2198  ;;  %v2229_v46 = vmul.f32 %v5577_v41, %v7148_v14 }
 0x90e   : > { %5582 = vrcp.f32 %v2199_v61  ;;  %v2230_v33 = vmul.f32 %v5579_v10, %v7140_v0 }
 0x90f   : > { %v5581_v50 = vpop.eup %5580  ;;  %v2242_v1 = vpack.c.bf16 %v2229_v46, %v2228_v45  ;;  %5584 = vrcp.f32 %v2193_v2 }
 0x910   : > { %v2207_v13 = vpop.xlane.xlu0 %2206  ;;  %v2231_v59 = vmul.f32 %v5581_v50, %v7153_v32  ;;  %5586 = vrcp.f32 %v2197_v20 }
 0x911   : > { %4951 = vmatprep.mubr.bf16.mxu1 %v2242_v1  ;;  %v2195_v22 = vpop.xlane.xlu1 %2194 }
 0x912   : > { %5588 = vrcp.f32 %v2195_v22  ;;  %v2243_v47 = vpack.c.bf16 %v2231_v59, %v2230_v33 }
 0x913   : > { %5590 = vrcp.f32 %v2201_v12 }
 0x914   : > { %v2398_v28 = vpop.permute.xlu0 %2397  ;;  %4952 = vmatmul.mubr.bf16.gmra.mrb[52].mxu1 %v2243_v47 }
 0x915   : > { %5105 = vmatprep.subr.msk.bf16.mxu1 %vm996_vm0, %v2398_v28  ;;  %v2203_v14 = vpop.xlane.xlu1 %2202  ;;  %v2444_v36 = vsel %vm996_vm0, %v2398_v28, 0 }
 0x916   : > { %5592 = vrcp.f32 %v2203_v14  ;;  %4976 = vmatpush3.bf16.xpose.msra.mxu1 %v2444_v36 }
 0x917   : > { %5594 = vrcp.f32 %v2207_v13 }
 0x918   : > { %v2370_v7 = vpop.permute.xlu0 %2369  ;;  %v5583_v0 = vpop.eup %5582  ;;  %5596 = vrcp.f32 %v2205_v57 }
 0x919   : > { %v2400_v32 = vpop.permute.xlu1 %2399  ;;  %v5585_v34 = vpop.eup %5584  ;;  %v2235_v60 = vmul.f32 %v5583_v0, %v7168_v4 }
 0x91a   : > { %5106 = vmatprep.subr.msk.bf16.mxu1 %vm996_vm0, %v2400_v32  ;;  %v5587_v8 = vpop.eup %5586  ;;  %v2447_v39 = vsel %vm996_vm0, %v2400_v32, 0  ;;  %v2232_v38 = vmul.f32 %v5585_v34, %v7162_v63 }
 0x91b   : > { %v2234_v56 = vmul.f32 %v5587_v8, %v7155_v42 }
 0x91c   : > { %v5589_v62 = vpop.eup %5588  ;;  %v2374_v21 = vpop.permute.xlu0 %2373 }
 0x91d   : > { %v2372_v26 = vpop.permute.xlu1 %2371  ;;  %v2233_v37 = vmul.f32 %v5589_v62, %v7174_v24  ;;  %v5591_v9 = vpop.eup %5590  ;;  %v2245_v3 = vpack.c.bf16 %v2235_v60, %v2234_v56 }
 0x91e   : > { %4978 = vmatpush3.bf16.xpose.msra.mxu1 %v2447_v39  ;;  %v2236_v4 = vmul.f32 %v5591_v9, %v7166_v49 }
 0x91f   : > { %v2244_v54 = vpack.c.bf16 %v2233_v37, %v2232_v38 }
 0x920   : > { %v5593_v31 = vpop.eup %5592  ;;  %v2378_v27 = vpop.permute.xlu0 %2377 }
 0x921   : > { %v5595_v18 = vpop.eup %5594  ;;  %4955 = vmatprep.mubr.bf16.mxu1 %v2244_v54  ;;  %v2376_v11 = vpop.permute.xlu1 %2375  ;;  %v2237_v55 = vmul.f32 %v5593_v31, %v7178_v40 }
 0x922   : > { %4956 = vmatmul.mubr.bf16.gmra.mrb[56].mxu1 %v2245_v3  ;;  %v5597_v17 = vpop.eup %5596  ;;  %v2239_v24 = vmul.f32 %v5595_v18, %v7172_v29 }
 0x923   : > { %v2246_v63 = vpack.c.bf16 %v2237_v55, %v2236_v4  ;;  %v2238_v42 = vmul.f32 %v5597_v17, %v7160_v35  ;;  %v8319_v35 = vmov 0  }
 0x924   : > { %v2382_v20 = vpop.permute.xlu0 %2381 }
 0x925   : > { %4959 = vmatprep.mubr.bf16.mxu1 %v2246_v63  ;;  %v2380_v57 = vpop.permute.xlu1 %2379  ;;  %v2247_v6 = vpack.c.bf16 %v2239_v24, %v2238_v42 }
 0x928   : > { %v2715_v2 = vpop.permute.xlu0 %2714 }
 0x929   : > { %4995 = vmatprep.subr.bf16.mxu0 %v2715_v2  ;;  %v2384_v41 = vpop.permute.xlu1 %2383 }
 0x92a   : > { %4960 = vmatmul.mubr.bf16.gmra.mrb[60].mxu1 %v2247_v6  ;;  %4996 = vmatpush3.bf16.msra.mxu0 %v2715_v2 }
 0x92b   : > { %4979 = vmatprep.mubr.msk.bf16.mxu1 %vm996_vm0, %v2370_v7 }
 0x92c   : > { %v2719_v49 = vpop.permute.xlu0 %2718 }
 0x92d   : > { %v2717_v40 = vpop.permute.xlu1 %2716 }
 0x92e   : > { %4997 = vmatprep.subr.bf16.mxu0 %v2717_v40 }
 0x92f   : > { %4998 = vmatpush3.bf16.msra.mxu0 %v2717_v40 }
 0x930   : > { %4999 = vmatprep.subr.bf16.mxu0 %v2719_v49  ;;  %v2721_v29 = vpop.permute.xlu0 %2720 }
 0x932   : > { %4980 = vmatmul.mubr.msk.bf16.vlgmr.msra.gmra.mrb[64].mxu1 %vm996_vm0, %v2372_v26 }
 0x933   : > { %4983 = vmatprep.mubr.msk.bf16.mxu1 %vm996_vm0, %v2374_v21  ;;  %5000 = vmatpush3.bf16.msra.mxu0 %v2719_v49 }
 0x934   : > { %5001 = vmatprep.subr.bf16.mxu0 %v2721_v29 }
 0x937   : > { %5002 = vmatpush3.bf16.msra.mxu0 %v2721_v29 }
 0x93a   : > { %4984 = vmatmul.mubr.msk.bf16.gmra.mrb[68].mxu1 %vm996_vm0, %v2376_v11 }
 0x93b   : > { %4987 = vmatprep.mubr.msk.bf16.mxu1 %vm996_vm0, %v2378_v27 }
 0x942   : > { %4988 = vmatmul.mubr.msk.bf16.gmra.mrb[72].mxu1 %vm996_vm0, %v2380_v57 }
 0x943   : > { %4991 = vmatprep.mubr.msk.bf16.mxu1 %vm996_vm0, %v2382_v20 }
 0x94a   : > { %4992 = vmatmul.mubr.msk.bf16.gmra.mrb[76].mxu1 %vm996_vm0, %v2384_v41 }
 0x94b   : > { %3640 = vmatprep.mubr.bf16.mxu1 %v8319_v35 }
 0x9af   : > { %v7254_v12 = vpop.f32.mrb[48].mxu1 }
 0x9b0   : > { %v7256_v45 = vpop.f32.mrb[49].mxu1 }
 0x9b1   : > { %v7258_v10 = vpop.f32.mrb[50].mxu1 }
 0x9b2   : > { %v5221_v61 = vpack.i.bf16 %v7258_v10, %v7254_v12  ;;  %v7262_v46 = vpop.f32.mrb[51].mxu1 }
 0x9b3   : > { %v5216_v50 = vpack.i.bf16 %v7262_v46, %v7256_v45 }
 0x9e7   : > { %v7266_v1 = vpop.f32.mrb[52].mxu1 }
 0x9e8   : > { %v7268_v13 = vpop.f32.mrb[53].mxu1 }
 0x9e9   : > { %v7270_v33 = vpop.f32.mrb[54].mxu1 }
 0x9ea   : > { %v7274_v22 = vpop.f32.mrb[55].mxu1 }
 0x9f5   : > { %v7278_v28 = vpop.f32.mrb[56].mxu1 }
 0x9f6   : > { %v7280_v14 = vpop.f32.mrb[57].mxu1 }
 0x9f7   : > { %v7282_v36 = vpop.f32.mrb[58].mxu1 }
 0x9f8   : > { %v7286_v0 = vpop.f32.mrb[59].mxu1 }
 0x9fd   : > { %v7290_v34 = vpop.f32.mrb[60].mxu1 }
 0x9fe   : > { %v7292_v8 = vpop.f32.mrb[61].mxu1 }
 0x9ff   : > { %v7294_v62 = vpop.f32.mrb[62].mxu1 }
 0xa00   : > { %v7298_v60 = vpop.f32.mrb[63].mxu1 }
 0xa05   : > { %v4981_v39 = vpop.f32.mrb[64].mxu1 }
 0xa06   : > { %v2548_v38 = vsel %vm6505_vm2, %v4981_v39, -1e+09  ;;  %v2483_v37 = vpop.f32.mrb[65].mxu1 }
 0xa07   : > { %2566 = vmax.xlane.f32.xlu0 %v2548_v38  ;;  %v4982_v9 = vpop.f32.mrb[66].mxu1  ;;  %v2546_v31 = vsel %vm6505_vm2, %v2483_v37, -1e+09 }
 0xa08   : > { %v2486_v56 = vpop.f32.mrb[67].mxu1  ;;  %v2549_v3 = vsel %vm6505_vm2, %v4982_v9, -1e+09 }
 0xa09   : > { %v2547_v54 = vsel %vm6505_vm2, %v2486_v56, -1e+09 }
 0xa0a   : > { %2564 = vmax.xlane.f32.xlu1 %v2547_v54 }
 0xa0b   : > { %2562 = vmax.xlane.f32.xlu0 %v2546_v31 }
 0xa0d   : > { %v4985_v27 = vpop.f32.mrb[68].mxu1 }
 0xa0e   : > { %v2499_v18 = vpop.f32.mrb[69].mxu1  ;;  %v2552_v17 = vsel %vm6505_vm2, %v4985_v27, -1e+09 }
 0xa0f   : > { %2568 = vmax.xlane.f32.xlu0 %v2549_v3  ;;  %v4986_v11 = vpop.f32.mrb[70].mxu1  ;;  %v2550_v24 = vsel %vm6505_vm2, %v2499_v18, -1e+09 }
 0xa10   : > { %v2553_v4 = vsel %vm6505_vm2, %v4986_v11, -1e+09  ;;  %v2502_v55 = vpop.f32.mrb[71].mxu1 }
 0xa11   : > { %2576 = vmax.xlane.f32.xlu1 %v2553_v4  ;;  %v7316_v63 = vsel %vm6505_vm2, %v2502_v55, -1e+09 }
 0xa13   : > { %2574 = vmax.xlane.f32.xlu0 %v2552_v17 }
 0xa15   : > { %2572 = vmax.xlane.f32.xlu1 %v7316_v63  ;;  %v4989_v20 = vpop.f32.mrb[72].mxu1 }
 0xa16   : > { %v2515_v57 = vpop.f32.mrb[73].mxu1  ;;  %v7328_v41 = vsel %vm6505_vm2, %v4989_v20, -1e+09 }
 0xa17   : > { %2570 = vmax.xlane.f32.xlu0 %v2550_v24  ;;  %v4990_v42 = vpop.f32.mrb[74].mxu1  ;;  %v7338_v29 = vsel %vm6505_vm2, %v2515_v57, -1e+09 }
 0xa18   : > { %v7323_v2 = vsel %vm6505_vm2, %v4990_v42, -1e+09  ;;  %v2518_v6 = vpop.f32.mrb[75].mxu1 }
 0xa19   : > { %2584 = vmax.xlane.f32.xlu1 %v7323_v2  ;;  %v7333_v49 = vsel %vm6505_vm2, %v2518_v6, -1e+09 }
 0xa1b   : > { %2582 = vmax.xlane.f32.xlu0 %v7328_v41 }
 0xa1d   : > { %2580 = vmax.xlane.f32.xlu1 %v7333_v49  ;;  %v4993_v40 = vpop.f32.mrb[76].mxu1 }
 0xa1e   : > { %v2531_v39 = vpop.f32.mrb[77].mxu1  ;;  %v7343_v56 = vsel %vm6505_vm2, %v4993_v40, -1e+09 }
 0xa1f   : > { %2578 = vmax.xlane.f32.xlu0 %v7338_v29  ;;  %v4994_v37 = vpop.f32.mrb[78].mxu1  ;;  %v7348_v27 = vsel %vm6505_vm2, %v2531_v39, -1e+09 }
 0xa20   : > { %v2534_v9 = vpop.f32.mrb[79].mxu1  ;;  %v7357_v18 = vsel %vm6505_vm2, %v4994_v37, -1e+09 }
 0xa21   : > { %v7362_v11 = vsel %vm6505_vm2, %v2534_v9, -1e+09 }
 0xa23   : > { %2590 = vmax.xlane.f32.xlu0 %v7343_v56 }
 0xa27   : > { %2586 = vmax.xlane.f32.xlu0 %v7348_v27 }
 0xa2e   : > { %2724 = vrot.lane.b32.xlu1 %v6417_v23, %s5974_s11 }
 0xa3d   : > { %2722 = vrot.lane.b32.xlu0 %v6422_v25, %s5974_s11 }
 0xa52   : > { %2592 = vmax.xlane.f32.xlu1 %v7357_v18 }
 0xa56   : > { %2588 = vmax.xlane.f32.xlu1 %v7362_v11 }
 0xa94   : > { %v2567_v55 = vpop.xlane.xlu0 %2566 }
 0xa95   : > { %v2596_v20 = vsub.f32 %v2548_v38, %v2567_v55 }
 0xa97   : > { %v2614_v57 = vmul.f32 1.442695, %v2596_v20  ;;  %v2565_v23 = vpop.xlane.xlu1 %2564 }
 0xa98   : > { %v2563_v42 = vpop.xlane.xlu0 %2562  ;;  %v2595_v40 = vsub.f32 %v2547_v54, %v2565_v23 }
 0xa99   : > { %5598 = vpow2.f32 %v2614_v57  ;;  %v2594_v6 = vsub.f32 %v2546_v31, %v2563_v42 }
 0xa9a   : > { %v2612_v32 = vmul.f32 1.442695, %v2595_v40 }
 0xa9b   : > { %v2610_v25 = vmul.f32 1.442695, %v2594_v6 }
 0xa9c   : > { %v2569_v39 = vpop.xlane.xlu0 %2568 }
 0xa9d   : > { %5600 = vpow2.f32 %v2610_v25  ;;  %v2597_v37 = vsub.f32 %v2549_v3, %v2569_v39 }
 0xa9e   : > { %v2577_v26 = vpop.xlane.xlu1 %2576 }
 0xa9f   : > { %v2616_v21 = vmul.f32 1.442695, %v2597_v37  ;;  %v2601_v30 = vsub.f32 %v2553_v4, %v2577_v26 }
 0xaa0   : > { %v2575_v9 = vpop.xlane.xlu0 %2574 }
 0xaa1   : > { %5602 = vpow2.f32 %v2616_v21  ;;  %v2600_v7 = vsub.f32 %v2552_v17, %v2575_v9  ;;  %v2624_v55 = vmul.f32 1.442695, %v2601_v30 }
 0xaa2   : > { %v2573_v47 = vpop.xlane.xlu1 %2572  ;;  %5604 = vpow2.f32 %v2612_v32 }
 0xaa3   : > { %v7365_v59 = vpop.eup %5598  ;;  %v2622_v38 = vmul.f32 1.442695, %v2600_v7  ;;  %v2599_v54 = vsub.f32 %v7316_v63, %v2573_v47 }
 0xaa4   : > { %v2571_v20 = vpop.xlane.xlu0 %2570  ;;  %2646 = vadd.xlane.f32.xlu1 %v7365_v59 }
 0xaa5   : > { %5606 = vpow2.f32 %v2622_v38  ;;  %v2598_v31 = vsub.f32 %v2550_v24, %v2571_v20  ;;  %v2620_v21 = vmul.f32 1.442695, %v2599_v54 }
 0xaa6   : > { %5608 = vpow2.f32 %v2624_v55  ;;  %v2585_v17 = vpop.xlane.xlu1 %2584 }
 0xaa7   : > { %v7369_v3 = vpop.eup %5600  ;;  %v2618_v57 = vmul.f32 1.442695, %v2598_v31  ;;  %v2605_v30 = vsub.f32 %v7323_v2, %v2585_v17 }
 0xaa8   : > { %v2583_v26 = vpop.xlane.xlu0 %2582  ;;  %2642 = vadd.xlane.f32.xlu1 %v7369_v3 }
 0xaa9   : > { %5610 = vpow2.f32 %v2618_v57  ;;  %v2632_v55 = vmul.f32 1.442695, %v2605_v30  ;;  %v2604_v20 = vsub.f32 %v7328_v41, %v2583_v26 }
 0xaaa   : > { %5612 = vpow2.f32 %v2620_v21  ;;  %v2581_v23 = vpop.xlane.xlu1 %2580 }
 0xaab   : > { %v7372_v4 = vpop.eup %5602  ;;  %v2603_v9 = vsub.f32 %v7333_v49, %v2581_v23  ;;  %v2630_v57 = vmul.f32 1.442695, %v2604_v20 }
 0xaac   : > { %v2579_v7 = vpop.xlane.xlu0 %2578  ;;  %2648 = vadd.xlane.f32.xlu1 %v7372_v4  ;;  %v7375_v32 = vpop.eup %5604 }
 0xaad   : > { %v2602_v37 = vsub.f32 %v7338_v29, %v2579_v7  ;;  %v2628_v54 = vmul.f32 1.442695, %v2603_v9 }
 0xaae   : > { %v2725_v39 = vpop.permute.xlu1 %2724 }
 0xaaf   : > { %v7377_v47 = vpop.eup %5606  ;;  %v2626_v38 = vmul.f32 1.442695, %v2602_v37 }
 0xab0   : > { %v2591_v63 = vpop.xlane.xlu0 %2590  ;;  %2654 = vadd.xlane.f32.xlu0 %v7377_v47  ;;  %2644 = vadd.xlane.f32.xlu1 %v7375_v32  ;;  %v7381_v24 = vpop.eup %5608 }
 0xab1   : > { %5614 = vpow2.f32 %v2626_v38  ;;  %v2608_v2 = vsub.f32 %v7343_v56, %v2591_v63 }
 0xab2   : > { %5616 = vpow2.f32 %v2632_v55 }
 0xab3   : > { %v7383_v42 = vpop.eup %5610  ;;  %5618 = vpow2.f32 %v2628_v54  ;;  %v2638_v26 = vmul.f32 1.442695, %v2608_v2 }
 0xab4   : > { %v2587_v6 = vpop.xlane.xlu0 %2586  ;;  %2650 = vadd.xlane.f32.xlu1 %v7383_v42  ;;  %2656 = vadd.xlane.f32.xlu0 %v7381_v24  ;;  %v7387_v25 = vpop.eup %5612  ;;  %5620 = vpow2.f32 %v2630_v57 }
 0xab8   : > { %v2723_v40 = vpop.permute.xlu0 %2722  ;;  %2652 = vadd.xlane.f32.xlu0 %v7387_v25 }
 0xab9   : > { %5003 = vmatprep.subr.bf16.mxu0 %v2723_v40 }
 0xaba   : > { %5004 = vmatpush3.bf16.msra.mxu0 %v2723_v40  ;;  %v8320_v40 = vpack.i.bf16 %v6997_v51, %v6993_v58 }
 0xabb   : > { %5005 = vmatprep.subr.bf16.mxu0 %v2725_v39  ;;  %v7402_v17 = vpop.eup %5614 }
 0xabc   : > { %v7405_v23 = vpop.eup %5616 }
 0xabe   : > { %5006 = vmatpush3.bf16.msra.mxu0 %v2725_v39  ;;  %v8321_v39 = vpack.i.bf16 %v7001_v16, %v6995_v19 }
 0xac5   : > { %2728 = vrot.lane.b32.xlu1 %v6441_v48, %s5974_s11  ;;  %v2606_v48 = vsub.f32 %v7348_v27, %v2587_v6  ;;  %v7407_v27 = vpop.eup %5618 }
 0xac6   : > { %v7411_v56 = vpop.eup %5620 }
 0xac7   : > { %v2634_v49 = vmul.f32 1.442695, %v2606_v48 }
 0xace   : > { %2726 = vrot.lane.b32.xlu0 %v6446_v52, %s5974_s11 }
 0xadf   : > { %v2593_v31 = vpop.xlane.xlu1 %2592 }
 0xae0   : > { %v2609_v52 = vsub.f32 %v7357_v18, %v2593_v31 }
 0xae2   : > { %v2640_v41 = vmul.f32 1.442695, %v2609_v52 }
 0xae3   : > { %v2589_v21 = vpop.xlane.xlu1 %2588 }
 0xae4   : > { %v2607_v29 = vsub.f32 %v7362_v11, %v2589_v21 }
 0xae6   : > { %v2636_v7 = vmul.f32 1.442695, %v2607_v29 }
 0xae8   : > { %5622 = vpow2.f32 %v2636_v7 }
 0xae9   : > { %2658 = vadd.xlane.f32.xlu1 %v7402_v17  ;;  %5624 = vpow2.f32 %v2634_v49 }
 0xaea   : > { %5626 = vpow2.f32 %v2640_v41 }
 0xaeb   : > { %5628 = vpow2.f32 %v2638_v26 }
 0xaed   : > { %2664 = vadd.xlane.f32.xlu1 %v7405_v23  ;;  %2660 = vadd.xlane.f32.xlu0 %v7407_v27 }
 0xaf1   : > { %2662 = vadd.xlane.f32.xlu0 %v7411_v56 }
 0xaf2   : > { %v7414_v18 = vpop.eup %5622 }
 0xaf3   : > { %2668 = vadd.xlane.f32.xlu1 %v7414_v18  ;;  %v7417_v11 = vpop.eup %5624 }
 0xaf4   : > { %v7420_v63 = vpop.eup %5626 }
 0xaf5   : > { %2666 = vadd.xlane.f32.xlu0 %v7417_v11  ;;  %v7423_v6 = vpop.eup %5628 }
 0xaf7   : > { %2672 = vadd.xlane.f32.xlu1 %v7420_v63 }
 0xaf9   : > { %2670 = vadd.xlane.f32.xlu0 %v7423_v6 }
 0xb08   : > { %5212 = vrot.lane.b32.xlu1 %v8320_v40, %s5974_s11 }
 0xb0c   : > { %5217 = vrot.lane.b32.xlu1 %v5216_v50, %s5973_s23 }
 0xb0f   : > { %5207 = vrot.lane.b32.xlu0 %v8321_v39, %s5974_s11 }
 0xb10   : > { %5222 = vrot.lane.b32.xlu1 %v5221_v61, %s5973_s23 }
 0xb31   : > { %v2647_v37 = vpop.xlane.xlu1 %2646 }
 0xb35   : > { %v2643_v30 = vpop.xlane.xlu1 %2642 }
 0xb36   : > { %5630 = vrcp.f32 %v2643_v30 }
 0xb39   : > { %v2649_v9 = vpop.xlane.xlu1 %2648 }
 0xb3a   : > { %5632 = vrcp.f32 %v2649_v9 }
 0xb3d   : > { %v2655_v58 = vpop.xlane.xlu0 %2654  ;;  %v2645_v51 = vpop.xlane.xlu1 %2644 }
 0xb3e   : > { %5634 = vrcp.f32 %v2645_v51 }
 0xb3f   : > { %5636 = vrcp.f32 %v2647_v37 }
 0xb40   : > { %v5631_v19 = vpop.eup %5630 }
 0xb41   : > { %v2657_v45 = vpop.xlane.xlu0 %2656  ;;  %v2651_v46 = vpop.xlane.xlu1 %2650  ;;  %v2690_v10 = vmul.f32 %v5631_v19, %v7369_v3 }
 0xb42   : > { %5638 = vrcp.f32 %v2651_v46 }
 0xb44   : > { %v5633_v16 = vpop.eup %5632 }
 0xb45   : > { %v2653_v50 = vpop.xlane.xlu0 %2652  ;;  %v2729_v20 = vpop.permute.xlu1 %2728  ;;  %v2693_v54 = vmul.f32 %v5633_v16, %v7372_v4 }
 0xb46   : > { %5640 = vrcp.f32 %v2653_v50 }
 0xb47   : > { %5642 = vrcp.f32 %v2657_v45 }
 0xb48   : > { %v5635_v38 = vpop.eup %5634  ;;  %5644 = vrcp.f32 %v2655_v58 }
 0xb49   : > { %v2727_v12 = vpop.permute.xlu0 %2726  ;;  %v2691_v61 = vmul.f32 %v5635_v38, %v7375_v32  ;;  %v5637_v55 = vpop.eup %5636 }
 0xb4a   : > { %5007 = vmatprep.subr.bf16.mxu0 %v2727_v12  ;;  %v2692_v48 = vmul.f32 %v5637_v55, %v7365_v59 }
 0xb4b   : > { %5008 = vmatpush3.bf16.msra.mxu0 %v2727_v12  ;;  %v2706_v31 = vpack.c.bf16 %v2691_v61, %v2690_v10 }
 0xb4c   : > { %5009 = vmatprep.subr.bf16.mxu0 %v2729_v20  ;;  %v5639_v57 = vpop.eup %5638  ;;  %v2707_v52 = vpack.c.bf16 %v2693_v54, %v2692_v48  ;;  %v5363_v48 = vld [vmem:[#allocation7 + $0x28] sm:$0xff]  }
 0xb4d   : > { %5011 = vmatprep.mubr.bf16.mxu0 %v2706_v31  ;;  %v2694_v2 = vmul.f32 %v5639_v57, %v7383_v42  ;;  %v5360_v57 = vld [vmem:[#allocation7 + $0x10] sm:$0xff]  }
 0xb4f   : > { %5010 = vmatpush3.bf16.msra.mxu0 %v2729_v20 }
 0xb50   : > { %v5641_v21 = vpop.eup %5640 }
 0xb51   : > { %v5643_v29 = vpop.eup %5642  ;;  %v2695_v3 = vmul.f32 %v5641_v21, %v7387_v25 }
 0xb52   : > { %5012 = vmatmul.mubr.bf16.vlgmr.msra.gmra.mrb[80].mxu0 %v2707_v52  ;;  %v5645_v32 = vpop.eup %5644  ;;  %v2697_v7 = vmul.f32 %v5643_v29, %v7381_v24 }
 0xb53   : > { %v2708_v49 = vpack.c.bf16 %v2695_v3, %v2694_v2  ;;  %v2696_v4 = vmul.f32 %v5645_v32, %v7377_v47 }
 0xb55   : > { %5015 = vmatprep.mubr.bf16.mxu0 %v2708_v49  ;;  %v2709_v41 = vpack.c.bf16 %v2697_v7, %v2696_v4  ;;  %v8322_v7 = vpack.i.bf16 %v7009_v44, %v7005_v53  ;;  %v8325_v53 = vpack.i.bf16 %v7274_v22, %v7268_v13  ;;  %v8332_v13 = vpack.i.bf16 %v7286_v0, %v7280_v14  ;;  %v8336_v14 = vld [vmem:[#allocation42_spill] sm:$0xff]  ;;  %v8337_v0 = vld [vmem:[#allocation40_spill] sm:$0xff] }
 0xb5a   : > { %5016 = vmatmul.mubr.bf16.gmra.mrb[84].mxu0 %v2709_v41  ;;  %v8323_v41 = vpack.i.bf16 %v7013_v43, %v7007_v5  ;;  %v8326_v5 = vld [vmem:[#allocation36_spill] sm:$0xff]  ;;  %v8328_v43 = vld [vmem:[#allocation38_spill] sm:$0xff] }
 0xb5b   : > { %v8327_v44 = vpack.i.bf16 %v7021_v15, %v8326_v5 }
 0xb76   : > { %v2659_v59 = vpop.xlane.xlu1 %2658 }
 0xb77   : > { %5646 = vrcp.f32 %v2659_v59 }
 0xb7a   : > { %v2661_v26 = vpop.xlane.xlu0 %2660  ;;  %v2665_v40 = vpop.xlane.xlu1 %2664 }
 0xb7b   : > { %5648 = vrcp.f32 %v2661_v26 }
 0xb7c   : > { %5650 = vrcp.f32 %v2665_v40 }
 0xb7e   : > { %v2663_v39 = vpop.xlane.xlu0 %2662 }
 0xb7f   : > { %5652 = vrcp.f32 %v2663_v39 }
 0xb80   : > { %v2669_v42 = vpop.xlane.xlu1 %2668 }
 0xb81   : > { %5654 = vrcp.f32 %v2669_v42  ;;  %v5647_v37 = vpop.eup %5646  ;;  %v8324_v42 = vpack.i.bf16 %v7270_v33, %v7266_v1  ;;  %v8331_v1 = vpack.i.bf16 %v7282_v36, %v7278_v28  ;;  %v8334_v28 = vld [vmem:[#allocation39_spill] sm:$0xff] }
 0xb82   : > { %v2667_v25 = vpop.xlane.xlu0 %2666  ;;  %v2698_v47 = vmul.f32 %v5647_v37, %v7402_v17 }
 0xb83   : > { %5656 = vrcp.f32 %v2667_v25  ;;  %v8329_v25 = vld [vmem:[#allocation37_spill] sm:$0xff] }
 0xb84   : > { %v2673_v30 = vpop.xlane.xlu1 %2672  ;;  %v8330_v37 = vpack.i.bf16 %v8328_v43, %v8329_v25 }
 0xb85   : > { %v5649_v24 = vpop.eup %5648  ;;  %5658 = vrcp.f32 %v2673_v30 }
 0xb86   : > { %v2671_v9 = vpop.xlane.xlu0 %2670  ;;  %v2699_v58 = vmul.f32 %v5649_v24, %v7407_v27  ;;  %v5651_v51 = vpop.eup %5650 }
 0xb87   : > { %5660 = vrcp.f32 %v2671_v9  ;;  %v2701_v19 = vmul.f32 %v5651_v51, %v7405_v23  ;;  %v5359_v23 = vld [vmem:[#allocation7 + $0x8] sm:$0xff]  }
 0xb88   : > { %v2710_v45 = vpack.c.bf16 %v2699_v58, %v2698_v47  ;;  %v8333_v58 = vld [vmem:[#allocation41_spill] sm:$0xff] }
 0xb89   : > { %v5653_v46 = vpop.eup %5652  ;;  %v8335_v36 = vpack.i.bf16 %v8333_v58, %v8334_v28  ;;  %v8346_v58 = vld [vmem:[#allocation24_spill] sm:$0xff] }
 0xb8a   : > { %5019 = vmatprep.mubr.bf16.mxu0 %v2710_v45  ;;  %v2700_v50 = vmul.f32 %v5653_v46, %v7411_v56  ;;  %v5358_v56 = vld [vmem:[#allocation7] sm:$0xff]   ;;  %v8338_v45 = vpack.i.bf16 %v8336_v14, %v8337_v0  ;;  %v8348_v0 = vld [vmem:[#allocation25_spill] sm:$0xff] }
 0xb8b   : > { %v5655_v16 = vpop.eup %5654  ;;  %5027 = vmatprep.subr.bf16.mxu0 %v5358_v56 }
 0xb8c   : > { %v2711_v38 = vpack.c.bf16 %v2701_v19, %v2700_v50  ;;  %v2703_v61 = vmul.f32 %v5655_v16, %v7414_v18  ;;  %5028 = vmatpush3.bf16.msra.mxu0 %v5358_v56  ;;  %v5362_v18 = vld [vmem:[#allocation7 + $0x20] sm:$0xff]  }
 0xb8d   : > { %v5657_v12 = vpop.eup %5656  ;;  %5029 = vmatprep.subr.bf16.mxu0 %v5359_v23 }
 0xb8e   : > { %5020 = vmatmul.mubr.bf16.gmra.mrb[88].mxu0 %v2711_v38  ;;  %v2702_v10 = vmul.f32 %v5657_v12, %v7417_v11  ;;  %v5361_v11 = vld [vmem:[#allocation7 + $0x18] sm:$0xff]   ;;  %v8339_v38 = vpack.i.bf16 %v7294_v62, %v7290_v34  ;;  %v8340_v12 = vpack.i.bf16 %v7298_v60, %v7292_v8 }
 0xb8f   : > { %v5659_v17 = vpop.eup %5658  ;;  %v8342_v60 = vld [vmem:[#allocation21_spill] sm:$0xff] }
 0xb90   : > { %v2712_v55 = vpack.c.bf16 %v2703_v61, %v2702_v10  ;;  %v2705_v54 = vmul.f32 %v5659_v17, %v7420_v63  ;;  %5030 = vmatpush3.bf16.msra.mxu0 %v5359_v23  ;;  %v5364_v63 = vld [vmem:[#allocation7 + $0x30] sm:$0xff]   ;;  %v5213_v10 = vpop.permute.xlu1 %5212  ;;  %v5208_v17 = vpop.permute.xlu0 %5207 }
 0xb91   : > { %v5661_v27 = vpop.eup %5660  ;;  %5031 = vmatprep.subr.bf16.mxu0 %v5360_v57 }
 0xb92   : > { %5023 = vmatprep.mubr.bf16.mxu0 %v2712_v55  ;;  %v2704_v20 = vmul.f32 %v5661_v27, %v7423_v6  ;;  %v5365_v6 = vld [vmem:[#allocation7 + $0x38] sm:$0xff]   ;;  %v5210_v27 = vunpack.i.h.bf16 %v5208_v17 }
 0xb94   : > { %v2713_v31 = vpack.c.bf16 %v2705_v54, %v2704_v20  ;;  %5032 = vmatpush3.bf16.msra.mxu0 %v5360_v57  ;;  %v5218_v61 = vpop.permute.xlu1 %5217  ;;  %v5209_v20 = vunpack.i.l.bf16 %v5208_v17  ;;  %v5215_v54 = vunpack.i.h.bf16 %v5213_v10  ;;  %v8341_v57 = vld [vmem:[#allocation23_spill] sm:$0xff] }
 0xb95   : > { %5033 = vmatprep.subr.bf16.mxu0 %v5361_v11  ;;  %v5220_v62 = vunpack.i.h.bf16 %v5218_v61  ;;  %v5219_v23 = vunpack.i.l.bf16 %v5218_v61  ;;  %v3028_v8 = vsel %vm996_vm0, %v8341_v57, %v5210_v27 }
 0xb96   : > { %5024 = vmatmul.mubr.bf16.gmra.mrb[92].mxu0 %v2713_v31  ;;  %v5214_v31 = vunpack.i.l.bf16 %v5213_v10 }
 0xb98   : > { %5034 = vmatpush3.bf16.msra.mxu0 %v5361_v11  ;;  %v5223_v55 = vpop.permute.xlu1 %5222  ;;  %v3027_v11 = vsel %vm996_vm0, %v8342_v60, %v5209_v20 }
 0xb99   : > { %5035 = vmatprep.subr.bf16.mxu0 %v5362_v18  ;;  %v5225_v56 = vunpack.i.h.bf16 %v5223_v55  ;;  %v5224_v34 = vunpack.i.l.bf16 %v5223_v55 }
 0xb9c   : > { %5036 = vmatpush3.bf16.msra.mxu0 %v5362_v18 }
 0xb9d   : > { %5037 = vmatprep.subr.bf16.mxu0 %v5363_v48 }
 0xba0   : > { %5038 = vmatpush3.bf16.msra.mxu0 %v5363_v48  ;;  %v8343_v48 = vld [vmem:[#allocation22_spill] sm:$0xff] }
 0xba1   : > { %5039 = vmatprep.subr.bf16.mxu0 %v5364_v63 }
 0xba4   : > { %5040 = vmatpush3.bf16.msra.mxu0 %v5364_v63  ;;  %v3030_v63 = vsel %vm996_vm0, %v8343_v48, %v5215_v54 }
 0xba5   : > { %5041 = vmatprep.subr.bf16.mxu0 %v5365_v6 }
 0xba8   : > { %5042 = vmatpush3.bf16.msra.mxu0 %v5365_v6  ;;  %v8344_v6 = vld [vmem:[#allocation20_spill] sm:$0xff] }
 0xc25   : > { %v5013_v21 = vpop.f32.mrb[80].mxu0 }
 0xc26   : > { %v2772_v52 = vpop.f32.mrb[81].mxu0 }
 0xc27   : > { %v5014_v29 = vpop.f32.mrb[82].mxu0 }
 0xc28   : > { %v5231_v2 = vpack.i.bf16 %v5014_v29, %v5013_v21  ;;  %v2775_v3 = vpop.f32.mrb[83].mxu0  ;;  %v3029_v21 = vsel %vm996_vm0, %v8344_v6, %v5214_v31 }
 0xc29   : > { %v5226_v32 = vpack.i.bf16 %v2775_v3, %v2772_v52  ;;  %v3046_v3 = vsel %vm3043_vm3, %v3029_v21, %v5224_v34 }
 0xc2a   : > { %5232 = vrot.lane.b32.xlu1 %v5231_v2, %s5972_s20 }
 0xc2b   : > { %5227 = vrot.lane.b32.xlu0 %v5226_v32, %s5972_s20  ;;  %v3047_v32 = vsel %vm3043_vm3, %v3030_v63, %v5225_v56 }
 0xc2d   : > { %v5017_v49 = vpop.f32.mrb[84].mxu0 }
 0xc2e   : > { %5242 = vrot.lane.b32.xlu1 %v8322_v7, %s5974_s11  ;;  %v2788_v4 = vpop.f32.mrb[85].mxu0 }
 0xc2f   : > { %5237 = vrot.lane.b32.xlu0 %v8323_v41, %s5974_s11  ;;  %v5018_v59 = vpop.f32.mrb[86].mxu0  ;;  %v3044_v41 = vsel %vm3043_vm3, %v3027_v11, %v5219_v23 }
 0xc30   : > { %v5261_v26 = vpack.i.bf16 %v5018_v59, %v5017_v49  ;;  %v2791_v40 = vpop.f32.mrb[87].mxu0 }
 0xc31   : > { %v5256_v39 = vpack.i.bf16 %v2791_v40, %v2788_v4  ;;  %v3045_v4 = vsel %vm3043_vm3, %v3028_v8, %v5220_v62 }
 0xc32   : > { %5252 = vrot.lane.b32.xlu1 %v8324_v42, %s5973_s23 }
 0xc33   : > { %5247 = vrot.lane.b32.xlu0 %v8325_v53, %s5973_s23 }
 0xc36   : > { %5262 = vrot.lane.b32.xlu1 %v5261_v26, %s5972_s20 }
 0xc37   : > { %5257 = vrot.lane.b32.xlu0 %v5256_v39, %s5972_s20 }
 0xc3a   : > { %5272 = vrot.lane.b32.xlu1 %v8327_v44, %s5974_s11 }
 0xc3b   : > { %5267 = vrot.lane.b32.xlu0 %v8330_v37, %s5974_s11 }
 0xc3e   : > { %5282 = vrot.lane.b32.xlu1 %v8331_v1, %s5973_s23 }
 0xc3f   : > { %5277 = vrot.lane.b32.xlu0 %v8332_v13, %s5973_s23 }
 0xc61   : > { %v5021_v33 = vpop.f32.mrb[88].mxu0 }
 0xc62   : > { %v2804_v22 = vpop.f32.mrb[89].mxu0 }
 0xc63   : > { %v5022_v30 = vpop.f32.mrb[90].mxu0 }
 0xc64   : > { %v5291_v15 = vpack.i.bf16 %v5022_v30, %v5021_v33  ;;  %v2807_v24 = vpop.f32.mrb[91].mxu0 }
 0xc65   : > { %v5286_v9 = vpack.i.bf16 %v2807_v24, %v2804_v22 }
 0xc66   : > { %5292 = vrot.lane.b32.xlu1 %v5291_v15, %s5972_s20 }
 0xc67   : > { %5287 = vrot.lane.b32.xlu0 %v5286_v9, %s5972_s20  ;;  %v8345_v9 = vld [vmem:[#allocation26_spill] sm:$0xff] }
 0xc69   : > { %v5025_v47 = vpop.f32.mrb[92].mxu0 }
 0xc6a   : > { %5302 = vrot.lane.b32.xlu1 %v8335_v36, %s5974_s11  ;;  %v2820_v51 = vpop.f32.mrb[93].mxu0 }
 0xc6b   : > { %5297 = vrot.lane.b32.xlu0 %v8338_v45, %s5974_s11  ;;  %v5026_v46 = vpop.f32.mrb[94].mxu0  ;;  %s5975_s11 = smov [#allocation11]  }
 0xc6c   : > { %v5321_v50 = vpack.i.bf16 %v5026_v46, %v5025_v47  ;;  %v2823_v19 = vpop.f32.mrb[95].mxu0  ;;  %s5888_s27 = sshll.u32 %s5975_s11, 4  ;;  %s5889_s27 = int_to_ptr.vmem [resolvable:$false] %s5888_s27 }
 0xc6d   : > { %v5316_v16 = vpack.i.bf16 %v2823_v19, %v2820_v51  ;;  %v8347_v51 = vld [vmem:[#allocation27_spill] sm:$0xff] }
 0xc6e   : > { %5312 = vrot.lane.b32.xlu1 %v8339_v38, %s5973_s23 }
 0xc6f   : > { %5307 = vrot.lane.b32.xlu0 %v8340_v12, %s5973_s23  ;;  %s8361_s23 = sld [smem:[#allocation45_spill]] }
 0xc72   : > { %5322 = vrot.lane.b32.xlu1 %v5321_v50, %s5972_s20 }
 0xc73   : > { %5317 = vrot.lane.b32.xlu0 %v5316_v16, %s5972_s20  ;;  %s4269_s20 = sshll.u32 %s8120_s21, 4  ;;  %s8185_s20 = int_to_ptr.vmem [resolvable:$true] %s4269_s20 }
 0xc74   : > { %p5891_p2 = scmp.lt.s32.totalorder %s8185_s20, %s5889_s27 }
 0xc9c   : > { %v5233_v18 = vpop.permute.xlu1 %5232 }
 0xc9d   : > { %v5235_v52 = vunpack.i.h.bf16 %v5233_v18  ;;  %v5234_v29 = vunpack.i.l.bf16 %v5233_v18  ;;  %v5228_v2 = vpop.permute.xlu0 %5227 }
 0xc9e   : > { %v5230_v49 = vunpack.i.h.bf16 %v5228_v2  ;;  %v5229_v7 = vunpack.i.l.bf16 %v5228_v2  ;;  %v8350_v2 = vld [vmem:[#allocation28_spill] sm:$0xff] }
 0xc9f   : > { %v3063_v59 = vsel %vm3060_vm4, %v3046_v3, %v5234_v29  ;;  %v3064_v26 = vsel %vm3060_vm4, %v3047_v32, %v5235_v52  ;;  %v8349_v52 = vld [vmem:[#allocation30_spill] sm:$0xff] }
 0xca0   : > { %v3078_v40 = vpack.c.bf16 %v3064_v26, %v3063_v59  ;;  %v5243_v39 = vpop.permute.xlu1 %5242  ;;  %v3061_v42 = vsel %vm3060_vm4, %v3044_v41, %v5229_v7  ;;  %v3062_v53 = vsel %vm3060_vm4, %v3045_v4, %v5230_v49  ;;  %v8351_v49 = vld [vmem:[#allocation31_spill] sm:$0xff]  ;;  %v8352_v4 = vld [vmem:[#allocation29_spill] sm:$0xff] }
 0xca1   : > { %v5238_v5 = vpop.permute.xlu0 %5237  ;;  %v3077_v44 = vpack.c.bf16 %v3062_v53, %v3061_v42  ;;  %v5245_v43 = vunpack.i.h.bf16 %v5243_v39  ;;  %v5244_v25 = vunpack.i.l.bf16 %v5243_v39 }
 0xca2   : > { %v5240_v1 = vunpack.i.h.bf16 %v5238_v5  ;;  %v5239_v13 = vunpack.i.l.bf16 %v5238_v5 }
 0xca3   : > { %5043 = vmatprep.mubr.bf16.mxu0 %v3077_v44  ;;  %v3034_v47 = vsel %vm996_vm0, %v8345_v9, %v5245_v43  ;;  %v3033_v28 = vsel %vm996_vm0, %v8346_v58, %v5244_v25 }
 0xca4   : > { %v5253_v37 = vpop.permute.xlu1 %5252  ;;  %5044 = vmatmul.mubr.bf16.vlgmr.msra.gmra.mrb[96].mxu0 %v3078_v40  ;;  %v3032_v14 = vsel %vm996_vm0, %v8347_v51, %v5240_v1  ;;  %v3031_v45 = vsel %vm996_vm0, %v8348_v0, %v5239_v13 }
 0xca5   : > { %v5248_v33 = vpop.permute.xlu0 %5247  ;;  %v5255_v22 = vunpack.i.h.bf16 %v5253_v37  ;;  %v5254_v30 = vunpack.i.l.bf16 %v5253_v37 }
 0xca6   : > { %v5250_v15 = vunpack.i.h.bf16 %v5248_v33  ;;  %v5249_v24 = vunpack.i.l.bf16 %v5248_v33 }
 0xca7   : > { %v3050_v16 = vsel %vm3043_vm3, %v3033_v28, %v5254_v30  ;;  %v3051_v38 = vsel %vm3043_vm3, %v3034_v47, %v5255_v22 }
 0xca8   : > { %v5263_v36 = vpop.permute.xlu1 %5262  ;;  %v3048_v61 = vsel %vm3043_vm3, %v3031_v45, %v5249_v24  ;;  %v3049_v17 = vsel %vm3043_vm3, %v3032_v14, %v5250_v15 }
 0xca9   : > { %v5265_v46 = vunpack.i.h.bf16 %v5263_v36  ;;  %v5264_v50 = vunpack.i.l.bf16 %v5263_v36  ;;  %v5258_v19 = vpop.permute.xlu0 %5257 }
 0xcaa   : > { %v5260_v12 = vunpack.i.h.bf16 %v5258_v19  ;;  %v5259_v10 = vunpack.i.l.bf16 %v5258_v19  ;;  %v8354_v19 = vld [vmem:[#allocation32_spill] sm:$0xff] }
 0xcab   : > { %v3067_v55 = vsel %vm3060_vm4, %v3050_v16, %v5264_v50  ;;  %v3068_v27 = vsel %vm3060_vm4, %v3051_v38, %v5265_v46  ;;  %v8353_v46 = vld [vmem:[#allocation34_spill] sm:$0xff] }
 0xcac   : > { %v3065_v20 = vsel %vm3060_vm4, %v3048_v61, %v5259_v10  ;;  %v3066_v54 = vsel %vm3060_vm4, %v3049_v17, %v5260_v12  ;;  %v3080_v31 = vpack.c.bf16 %v3068_v27, %v3067_v55  ;;  %v5273_v34 = vpop.permute.xlu1 %5272  ;;  %v8355_v12 = vld [vmem:[#allocation35_spill] sm:$0xff]  ;;  %v8356_v61 = vld [vmem:[#allocation33_spill] sm:$0xff] }
 0xcad   : > { %v3079_v56 = vpack.c.bf16 %v3066_v54, %v3065_v20  ;;  %v5268_v62 = vpop.permute.xlu0 %5267  ;;  %v5275_v57 = vunpack.i.h.bf16 %v5273_v34  ;;  %v5274_v8 = vunpack.i.l.bf16 %v5273_v34 }
 0xcae   : > { %v5270_v11 = vunpack.i.h.bf16 %v5268_v62  ;;  %v5269_v18 = vunpack.i.l.bf16 %v5268_v62 }
 0xcaf   : > { %5047 = vmatprep.mubr.bf16.mxu0 %v3079_v56  ;;  %v3038_v29 = vsel %vm996_vm0, %v8349_v52, %v5275_v57  ;;  %v3037_v3 = vsel %vm996_vm0, %v8350_v2, %v5274_v8 }
 0xcb0   : > { %5048 = vmatmul.mubr.bf16.gmra.mrb[100].mxu0 %v3080_v31  ;;  %v5283_v23 = vpop.permute.xlu1 %5282  ;;  %v3036_v7 = vsel %vm996_vm0, %v8351_v49, %v5270_v11  ;;  %v3035_v41 = vsel %vm996_vm0, %v8352_v4, %v5269_v18  ;;  %v5727_v4 = vld [vmem:[%s6273_s14 + $0x8] sm:$0xff] }
 0xcb1   : > { %v5278_v60 = vpop.permute.xlu0 %5277  ;;  %v5285_v48 = vunpack.i.h.bf16 %v5283_v23  ;;  %v5284_v63 = vunpack.i.l.bf16 %v5283_v23 }
 0xcb2   : > { %v5280_v6 = vunpack.i.h.bf16 %v5278_v60  ;;  %v5279_v21 = vunpack.i.l.bf16 %v5278_v60 }
 0xcb3   : > { %v3054_v39 = vsel %vm3043_vm3, %v3037_v3, %v5284_v63  ;;  %v3055_v42 = vsel %vm3043_vm3, %v3038_v29, %v5285_v48  ;;  %v7581_v63 = vld [vmem:[%s8237_s5] ss:$0 sm:$0xff] }
 0xcb4   : > { %v3052_v44 = vsel %vm3043_vm3, %v3035_v41, %v5279_v21  ;;  %v3053_v43 = vsel %vm3043_vm3, %v3036_v7, %v5280_v6 }
 0xcd8   : > { %v5293_v32 = vpop.permute.xlu1 %5292 }
 0xcd9   : > { %v5295_v59 = vunpack.i.h.bf16 %v5293_v32  ;;  %v5294_v26 = vunpack.i.l.bf16 %v5293_v32  ;;  %v5288_v40 = vpop.permute.xlu0 %5287  ;;  %v5726_v32 = vld [vmem:[%s6273_s14] sm:$0xff] }
 0xcda   : > { %v5290_v53 = vunpack.i.h.bf16 %v5288_v40  ;;  %v5289_v5 = vunpack.i.l.bf16 %v5288_v40 }
 0xcdb   : > { %v3071_v25 = vsel %vm3060_vm4, %v3054_v39, %v5294_v26  ;;  %v3072_v37 = vsel %vm3060_vm4, %v3055_v42, %v5295_v59  ;;  %v5728_v59 = vld [vmem:[%s6273_s14 + $0x10] sm:$0xff]  ;;  %v5729_v39 = vld [vmem:[%s6273_s14 + $0x18] sm:$0xff] }
 0xcdc   : > { %v5303_v1 = vpop.permute.xlu1 %5302  ;;  %v3069_v13 = vsel %vm3060_vm4, %v3052_v44, %v5289_v5  ;;  %v3070_v33 = vsel %vm3060_vm4, %v3053_v43, %v5290_v53  ;;  %v3082_v22 = vpack.c.bf16 %v3072_v37, %v3071_v25 }
 0xcdd   : > { %v5298_v30 = vpop.permute.xlu0 %5297  ;;  %v3081_v15 = vpack.c.bf16 %v3070_v33, %v3069_v13  ;;  %v5305_v24 = vunpack.i.h.bf16 %v5303_v1  ;;  %v5304_v9 = vunpack.i.l.bf16 %v5303_v1  ;;  %v5730_v1 = vld [vmem:[%s6273_s14 + $0x20] sm:$0xff] }
 0xcde   : > { %v5300_v58 = vunpack.i.h.bf16 %v5298_v30  ;;  %v5299_v28 = vunpack.i.l.bf16 %v5298_v30  ;;  %v5731_v30 = vld [vmem:[%s6273_s14 + $0x28] sm:$0xff] }
 0xcdf   : > { %5051 = vmatprep.mubr.bf16.mxu0 %v3081_v15  ;;  %v3042_v50 = vsel %vm996_vm0, %v8353_v46, %v5305_v24  ;;  %v3041_v16 = vsel %vm996_vm0, %v8354_v19, %v5304_v9  ;;  %v5732_v24 = vld [vmem:[%s6273_s14 + $0x30] sm:$0xff]  ;;  %v5734_v46 = vld [vmem:[%s6273_s14 + $0x40] sm:$0xff] }
 0xce0   : > { %v5313_v47 = vpop.permute.xlu1 %5312  ;;  %5052 = vmatmul.mubr.bf16.gmra.mrb[104].mxu0 %v3082_v22  ;;  %v3040_v10 = vsel %vm996_vm0, %v8355_v12, %v5300_v58  ;;  %v3039_v17 = vsel %vm996_vm0, %v8356_v61, %v5299_v28 }
 0xce1   : > { %v5308_v36 = vpop.permute.xlu0 %5307  ;;  %v5315_v51 = vunpack.i.h.bf16 %v5313_v47  ;;  %v5314_v14 = vunpack.i.l.bf16 %v5313_v47  ;;  %v5733_v47 = vld [vmem:[%s6273_s14 + $0x38] sm:$0xff] }
 0xce2   : > { %v5310_v0 = vunpack.i.h.bf16 %v5308_v36  ;;  %v5309_v45 = vunpack.i.l.bf16 %v5308_v36 }
 0xce3   : > { %v3058_v54 = vsel %vm3043_vm3, %v3041_v16, %v5314_v14  ;;  %v3059_v31 = vsel %vm3043_vm3, %v3042_v50, %v5315_v51 }
 0xce4   : > { %v5323_v38 = vpop.permute.xlu1 %5322  ;;  %v3056_v62 = vsel %vm3043_vm3, %v3039_v17, %v5309_v45  ;;  %v3057_v23 = vsel %vm3043_vm3, %v3040_v10, %v5310_v0  ;;  %v5736_v10 = vld [vmem:[%s6273_s14 + $0x50] sm:$0xff]  ;;  %v5737_v17 = vld [vmem:[%s6273_s14 + $0x58] sm:$0xff] }
 0xce5   : > { %v5325_v55 = vunpack.i.h.bf16 %v5323_v38  ;;  %v5324_v27 = vunpack.i.l.bf16 %v5323_v38  ;;  %v5318_v20 = vpop.permute.xlu0 %5317  ;;  %v5735_v38 = vld [vmem:[%s6273_s14 + $0x48] sm:$0xff] }
 0xce6   : > { %v5320_v56 = vunpack.i.h.bf16 %v5318_v20  ;;  %v5319_v34 = vunpack.i.l.bf16 %v5318_v20 }
 0xce7   : > { %v3075_v57 = vsel %vm3060_vm4, %v3058_v54, %v5324_v27  ;;  %v3076_v8 = vsel %vm3060_vm4, %v3059_v31, %v5325_v55 }
 0xce8   : > { %v3073_v60 = vsel %vm3060_vm4, %v3056_v62, %v5319_v34  ;;  %v3074_v11 = vsel %vm3060_vm4, %v3057_v23, %v5320_v56  ;;  %v3084_v18 = vpack.c.bf16 %v3076_v8, %v3075_v57  ;;  %v5738_v62 = vld [vmem:[%s6273_s14 + $0x60] sm:$0xff] }
 0xce9   : > { %v3083_v48 = vpack.c.bf16 %v3074_v11, %v3073_v60  ;;  %v5739_v60 = vld [vmem:[%s6273_s14 + $0x68] sm:$0xff] }
 0xceb   : > { %5055 = vmatprep.mubr.bf16.mxu0 %v3083_v48 }
 0xcec   : > { %5056 = vmatmul.mubr.bf16.gmra.mrb[108].mxu0 %v3084_v18  ;;  %v5740_v18 = vld [vmem:[%s6273_s14 + $0x70] sm:$0xff] }
 0xd77   : > { %v5045_v6 = vpop.f32.mrb[96].mxu0 }
 0xd78   : > { %v3190_v21 = vpop.f32.mrb[97].mxu0  ;;  %v3199_v3 = vadd.f32 %v5045_v6, %v7581_v63  ;;  %v5741_v6 = vld [vmem:[%s6273_s14 + $0x78] sm:$0xff] }
 0xd79   : > { %v3191_v52 = vadd.f32 %v7581_v63, %v3190_v21  ;;  %v5046_v29 = vpop.f32.mrb[98].mxu0 }
 0xd7a   : > { %v3193_v2 = vpop.f32.mrb[99].mxu0  ;;  %v7594_v26 = vadd.f32 %v5728_v59, %v3199_v3  ;;  %v3202_v40 = vadd.f32 %v5046_v29, %v7581_v63  ;;  %v5368_v29 = vld [vmem:[#allocation8 + $0x4] ss:$8 sps:$4 sm:$0xff]  }
 0xd7b   : > { %v7586_v49 = vadd.f32 %v5726_v32, %v3191_v52  ;;  %v3194_v7 = vadd.f32 %v7581_v63, %v3193_v2  ;;  %v5366_v52 = vld [vmem:[#allocation8] ss:$8 sps:$4 sm:$0xff]   ;;  %3608 = vmatprep.subr.bf16.mxu1 %v5368_v29  ;;  %v5369_v2 = vld [vmem:[#allocation8 + $0x10] ss:$8 sps:$4 sm:$0xff]  }
 0xd7c   : > { %v7600_v42 = vadd.f32 %v5729_v39, %v3202_v40  ;;  %3609 = vmatpush1.bf16.msra.mxu1 %v5366_v52 }
 0xd7d   : > { %v7590_v41 = vadd.f32 %v5727_v4, %v3194_v7  ;;  %3269 = vadd.xlane.f32.xlu0 %v7586_v49 }
 0xd7f   : > { %3271 = vadd.xlane.f32.xlu1 %v7590_v41 }
 0xd81   : > { %3273 = vadd.xlane.f32.xlu0 %v7594_v26 }
 0xd83   : > { %v5049_v53 = vpop.f32.mrb[100].mxu0 }
 0xd84   : > { %v3206_v5 = vpop.f32.mrb[101].mxu0  ;;  %v3215_v37 = vadd.f32 %v5049_v53, %v7581_v63 }
 0xd85   : > { %v3207_v44 = vadd.f32 %v7581_v63, %v3206_v5  ;;  %v5050_v43 = vpop.f32.mrb[102].mxu0  ;;  %3275 = vadd.xlane.f32.xlu0 %v7600_v42 }
 0xd86   : > { %v3209_v25 = vpop.f32.mrb[103].mxu0  ;;  %v3218_v22 = vadd.f32 %v5050_v43, %v7581_v63  ;;  %v7615_v9 = vadd.f32 %v5732_v24, %v3215_v37 }
 0xd87   : > { %v7606_v13 = vadd.f32 %v5730_v1, %v3207_v44  ;;  %v3210_v33 = vadd.f32 %v7581_v63, %v3209_v25 }
 0xd88   : > { %v7619_v58 = vadd.f32 %v5733_v47, %v3218_v22 }
 0xd89   : > { %v7611_v15 = vadd.f32 %v5731_v30, %v3210_v33  ;;  %3277 = vadd.xlane.f32.xlu0 %v7606_v13 }
 0xd8b   : > { %3279 = vadd.xlane.f32.xlu1 %v7611_v15 }
 0xd8d   : > { %3281 = vadd.xlane.f32.xlu0 %v7615_v9 }
 0xd8f   : > { %3283 = vadd.xlane.f32.xlu1 %v7619_v58 }
 0xdb3   : > { %v5053_v28 = vpop.f32.mrb[104].mxu0 }
 0xdb4   : > { %v3222_v36 = vpop.f32.mrb[105].mxu0  ;;  %v3231_v45 = vadd.f32 %v5053_v28, %v7581_v63 }
 0xdb5   : > { %v3223_v51 = vadd.f32 %v7581_v63, %v3222_v36  ;;  %v5054_v14 = vpop.f32.mrb[106].mxu0 }
 0xdb6   : > { %v3225_v0 = vpop.f32.mrb[107].mxu0  ;;  %v3234_v16 = vadd.f32 %v5054_v14, %v7581_v63  ;;  %v7635_v61 = vadd.f32 %v5736_v10, %v3231_v45  ;;  %v5380_v10 = vld [vmem:[#allocation8 + $0x44] ss:$8 sps:$4 sm:$0xff]  }
 0xdb7   : > { %v7626_v50 = vadd.f32 %v5734_v46, %v3223_v51  ;;  %v3226_v19 = vadd.f32 %v7581_v63, %v3225_v0  ;;  %v5374_v46 = vld [vmem:[#allocation8 + $0x24] ss:$8 sps:$4 sm:$0xff]  }
 0xdb8   : > { %v7639_v55 = vadd.f32 %v5737_v17, %v3234_v16  ;;  %v5383_v17 = vld [vmem:[#allocation8 + $0x54] ss:$8 sps:$4 sm:$0xff]  }
 0xdb9   : > { %v7631_v12 = vadd.f32 %v5735_v38, %v3226_v19  ;;  %3285 = vadd.xlane.f32.xlu0 %v7626_v50  ;;  %v5372_v19 = vld [vmem:[#allocation8 + $0x20] ss:$8 sps:$4 sm:$0xff]   ;;  %v5375_v38 = vld [vmem:[#allocation8 + $0x30] ss:$8 sps:$4 sm:$0xff]  }
 0xdbb   : > { %3287 = vadd.xlane.f32.xlu1 %v7631_v12 }
 0xdbd   : > { %3289 = vadd.xlane.f32.xlu0 %v7635_v61 }
 0xdbf   : > { %v5057_v27 = vpop.f32.mrb[108].mxu0  ;;  %3291 = vadd.xlane.f32.xlu1 %v7639_v55 }
 0xdc0   : > { %v3238_v20 = vpop.f32.mrb[109].mxu0  ;;  %v3247_v34 = vadd.f32 %v5057_v27, %v7581_v63  ;;  %v5381_v27 = vld [vmem:[#allocation8 + $0x50] ss:$8 sps:$4 sm:$0xff]  }
 0xdc1   : > { %v3239_v54 = vadd.f32 %v7581_v63, %v3238_v20  ;;  %v5058_v31 = vpop.f32.mrb[110].mxu0  ;;  %v5386_v20 = vld [vmem:[#allocation8 + $0x64] ss:$8 sps:$4 sm:$0xff]  }
 0xdc2   : > { %v3241_v56 = vpop.f32.mrb[111].mxu0  ;;  %v3250_v8 = vadd.f32 %v5058_v31, %v7581_v63  ;;  %v7655_v48 = vadd.f32 %v5740_v18, %v3247_v34  ;;  %v5389_v31 = vld [vmem:[#allocation8 + $0x74] ss:$8 sps:$4 sm:$0xff]  }
 0xdc3   : > { %v7646_v23 = vadd.f32 %v5738_v62, %v3239_v54  ;;  %v3242_v57 = vadd.f32 %v7581_v63, %v3241_v56  ;;  %v5371_v63 = vld [vmem:[#allocation8 + $0x14] ss:$8 sps:$4 sm:$0xff]   ;;  %v5384_v54 = vld [vmem:[#allocation8 + $0x60] ss:$8 sps:$4 sm:$0xff]   ;;  %v5387_v56 = vld [vmem:[#allocation8 + $0x70] ss:$8 sps:$4 sm:$0xff]  }
 0xdc4   : > { %v7659_v21 = vadd.f32 %v5741_v6, %v3250_v8  ;;  %3610 = vmatprep.subr.bf16.mxu1 %v5371_v63 }
 0xdc5   : > { %v7651_v11 = vadd.f32 %v5739_v60, %v3242_v57  ;;  %3293 = vadd.xlane.f32.xlu0 %v7646_v23  ;;  %3611 = vmatpush1.bf16.msra.mxu1 %v5369_v2 }
 0xdc6   : > { %3612 = vmatprep.subr.bf16.mxu1 %v5374_v46  ;;  %v7769_v46 = vld [vmem:[#allocation10 + $0x68] sm:$0xff]  }
 0xdc7   : > { %3295 = vadd.xlane.f32.xlu1 %v7651_v11 }
 0xdc9   : > { %3297 = vadd.xlane.f32.xlu0 %v7655_v48  ;;  %3613 = vmatpush1.bf16.msra.mxu1 %v5372_v19 }
 0xdcb   : > { %3299 = vadd.xlane.f32.xlu1 %v7659_v21 }
 0xe0a   : > { %v3270_v3 = vpop.xlane.xlu0 %3269 }
 0xe0b   : > { %v3302_v32 = vmul.f32 0.0078125, %v3270_v3 }
 0xe0c   : > { %v3272_v7 = vpop.xlane.xlu1 %3271 }
 0xe0d   : > { %v7664_v4 = vsub.f32 %v7586_v49, %v3302_v32  ;;  %v3303_v59 = vmul.f32 0.0078125, %v3272_v7 }
 0xe0e   : > { %v3274_v40 = vpop.xlane.xlu0 %3273 }
 0xe0f   : > { %v7667_v39 = vsub.f32 %v7590_v41, %v3303_v59  ;;  %v3304_v53 = vmul.f32 0.0078125, %v3274_v40  ;;  %v3334_v5 = vmul.f32 %v7664_v4, %v7664_v4 }
 0xe11   : > { %v7672_v44 = vsub.f32 %v7594_v26, %v3304_v53  ;;  %3350 = vadd.xlane.f32.xlu0 %v3334_v5  ;;  %v3335_v43 = vmul.f32 %v7667_v39, %v7667_v39 }
 0xe12   : > { %v3276_v25 = vpop.xlane.xlu0 %3275 }
 0xe13   : > { %v3305_v37 = vmul.f32 0.0078125, %v3276_v25  ;;  %3352 = vadd.xlane.f32.xlu1 %v3335_v43  ;;  %v3336_v49 = vmul.f32 %v7672_v44, %v7672_v44 }
 0xe15   : > { %v7679_v41 = vsub.f32 %v7600_v42, %v3305_v37  ;;  %3354 = vadd.xlane.f32.xlu0 %v3336_v49 }
 0xe16   : > { %v3278_v1 = vpop.xlane.xlu0 %3277 }
 0xe17   : > { %v3306_v33 = vmul.f32 0.0078125, %v3278_v1  ;;  %v3337_v26 = vmul.f32 %v7679_v41, %v7679_v41 }
 0xe18   : > { %v3280_v22 = vpop.xlane.xlu1 %3279 }
 0xe19   : > { %v7684_v30 = vsub.f32 %v7606_v13, %v3306_v33  ;;  %v3307_v24 = vmul.f32 0.0078125, %v3280_v22  ;;  %3356 = vadd.xlane.f32.xlu1 %v3337_v26 }
 0xe1a   : > { %v3282_v47 = vpop.xlane.xlu0 %3281 }
 0xe1b   : > { %v7687_v28 = vsub.f32 %v7611_v15, %v3307_v24  ;;  %v3308_v36 = vmul.f32 0.0078125, %v3282_v47  ;;  %v3338_v42 = vmul.f32 %v7684_v30, %v7684_v30  ;;  %v5390_v24 = vld [vmem:[#allocation10 + $0x40] sm:$0xff]   ;;  %v7745_v47 = vld [vmem:[#allocation10 + $0x48] sm:$0xff]  }
 0xe1c   : > { %v3284_v51 = vpop.xlane.xlu1 %3283  ;;  %4675 = vmatprep.subr.bf16.mxu0 %v5390_v24 }
 0xe1d   : > { %v7692_v14 = vsub.f32 %v7615_v9, %v3308_v36  ;;  %v3309_v0 = vmul.f32 0.0078125, %v3284_v51  ;;  %3358 = vadd.xlane.f32.xlu0 %v3338_v42  ;;  %v3339_v13 = vmul.f32 %v7687_v28, %v7687_v28  ;;  %v5377_v9 = vld [vmem:[#allocation8 + $0x34] ss:$8 sps:$4 sm:$0xff]  }
 0xe1e   : > { %3614 = vmatprep.subr.bf16.mxu1 %v5377_v9  ;;  %v7751_v36 = vld [vmem:[#allocation10 + $0x50] sm:$0xff]   ;;  %v7757_v51 = vld [vmem:[#allocation10 + $0x58] sm:$0xff]  }
 0xe1f   : > { %v7697_v45 = vsub.f32 %v7619_v58, %v3309_v0  ;;  %3360 = vadd.xlane.f32.xlu1 %v3339_v13  ;;  %v3340_v15 = vmul.f32 %v7692_v14, %v7692_v14  ;;  %3615 = vmatpush1.bf16.msra.mxu1 %v5375_v38  ;;  %v5378_v58 = vld [vmem:[#allocation8 + $0x40] ss:$8 sps:$4 sm:$0xff]   ;;  %v7754_v42 = vld [vmem:[#allocation10 + $0x10] sm:$0xff]   ;;  %v7760_v0 = vld [vmem:[#allocation10 + $0x18] sm:$0xff]  }
 0xe20   : > { %3616 = vmatprep.subr.bf16.mxu1 %v5380_v10  ;;  %v7763_v13 = vld [vmem:[#allocation10 + $0x60] sm:$0xff]  }
 0xe21   : > { %3362 = vadd.xlane.f32.xlu0 %v3340_v15  ;;  %v3341_v16 = vmul.f32 %v7697_v45, %v7697_v45  ;;  %v7766_v15 = vld [vmem:[#allocation10 + $0x20] sm:$0xff]  }
 0xe23   : > { %3364 = vadd.xlane.f32.xlu1 %v3341_v16  ;;  %3617 = vmatpush1.bf16.msra.mxu1 %v5378_v58 }
 0xe24   : > { %3618 = vmatprep.subr.bf16.mxu1 %v5383_v17 }
 0xe27   : > { %3619 = vmatpush1.bf16.msra.mxu1 %v5381_v27 }
 0xe28   : > { %3620 = vmatprep.subr.bf16.mxu1 %v5386_v20 }
 0xe2b   : > { %3621 = vmatpush1.bf16.msra.mxu1 %v5384_v54 }
 0xe2c   : > { %3622 = vmatprep.subr.bf16.mxu1 %v5389_v31 }
 0xe2f   : > { %3623 = vmatpush1.bf16.msra.mxu1 %v5387_v56 }
 0xe30   : > { %5059 = vmatprep.subr.bf16.mxu1 %v5390_v24 }
 0xe46   : > { %v3286_v34 = vpop.xlane.xlu0 %3285 }
 0xe47   : > { %v3310_v62 = vmul.f32 0.0078125, %v3286_v34 }
 0xe48   : > { %v3288_v57 = vpop.xlane.xlu1 %3287 }
 0xe49   : > { %v7704_v8 = vsub.f32 %v7626_v50, %v3310_v62  ;;  %v3311_v60 = vmul.f32 0.0078125, %v3288_v57 }
 0xe4a   : > { %v3290_v18 = vpop.xlane.xlu0 %3289 }
 0xe4b   : > { %v7707_v6 = vsub.f32 %v7631_v12, %v3311_v60  ;;  %v3312_v52 = vmul.f32 0.0078125, %v3290_v18  ;;  %v3342_v29 = vmul.f32 %v7704_v8, %v7704_v8  ;;  %v7776_v18 = vld [vmem:[%s8238_s6] ss:$0 sm:$0xff] }
 0xe4c   : > { %v3292_v63 = vpop.xlane.xlu1 %3291 }
 0xe4d   : > { %v7712_v2 = vsub.f32 %v7635_v61, %v3312_v52  ;;  %v3313_v3 = vmul.f32 0.0078125, %v3292_v63  ;;  %3366 = vadd.xlane.f32.xlu0 %v3342_v29  ;;  %v3343_v32 = vmul.f32 %v7707_v6, %v7707_v6 }
 0xe4f   : > { %v7717_v50 = vsub.f32 %v7639_v55, %v3313_v3  ;;  %3368 = vadd.xlane.f32.xlu1 %v3343_v32  ;;  %v3344_v12 = vmul.f32 %v7712_v2, %v7712_v2 }
 0xe51   : > { %3370 = vadd.xlane.f32.xlu0 %v3344_v12  ;;  %v3345_v7 = vmul.f32 %v7717_v50, %v7717_v50 }
 0xe52   : > { %v3294_v59 = vpop.xlane.xlu0 %3293 }
 0xe53   : > { %v3314_v40 = vmul.f32 0.0078125, %v3294_v59  ;;  %3372 = vadd.xlane.f32.xlu1 %v3345_v7 }
 0xe54   : > { %v3296_v61 = vpop.xlane.xlu1 %3295 }
 0xe55   : > { %v7724_v53 = vsub.f32 %v7646_v23, %v3314_v40  ;;  %v3315_v5 = vmul.f32 0.0078125, %v3296_v61 }
 0xe56   : > { %v3298_v43 = vpop.xlane.xlu0 %3297 }
 0xe57   : > { %v7727_v55 = vsub.f32 %v7651_v11, %v3315_v5  ;;  %v3316_v25 = vmul.f32 0.0078125, %v3298_v43  ;;  %v3346_v37 = vmul.f32 %v7724_v53, %v7724_v53 }
 0xe58   : > { %v3300_v49 = vpop.xlane.xlu1 %3299 }
 0xe59   : > { %v7732_v1 = vsub.f32 %v7655_v48, %v3316_v25  ;;  %v3317_v33 = vmul.f32 0.0078125, %v3300_v49  ;;  %3374 = vadd.xlane.f32.xlu0 %v3346_v37  ;;  %v3347_v26 = vmul.f32 %v7727_v55, %v7727_v55  ;;  %v7743_v48 = vld [vmem:[#allocation10] sm:$0xff]  }
 0xe5a   : > { %4676 = vmatpush3.bf16.msra.mxu0 %v7743_v48  ;;  %v7784_v25 = vld [vmem:[%s8239_s7] ss:$0 sm:$0xff] }
 0xe5b   : > { %v7737_v23 = vsub.f32 %v7659_v21, %v3317_v33  ;;  %3376 = vadd.xlane.f32.xlu1 %v3347_v26  ;;  %v3348_v11 = vmul.f32 %v7732_v1, %v7732_v1  ;;  %v7748_v21 = vld [vmem:[#allocation10 + $0x8] sm:$0xff]   ;;  %4677 = vmatprep.subr.bf16.mxu0 %v7745_v47 }
 0xe5d   : > { %3378 = vadd.xlane.f32.xlu0 %v3348_v11  ;;  %v3349_v22 = vmul.f32 %v7737_v23, %v7737_v23 }
 0xe5e   : > { %4678 = vmatpush3.bf16.msra.mxu0 %v7748_v21 }
 0xe5f   : > { %3380 = vadd.xlane.f32.xlu1 %v3349_v22  ;;  %4679 = vmatprep.subr.bf16.mxu0 %v7751_v36 }
 0xe62   : > { %4680 = vmatpush3.bf16.msra.mxu0 %v7754_v42 }
 0xe63   : > { %4681 = vmatprep.subr.bf16.mxu0 %v7757_v51 }
 0xe66   : > { %4682 = vmatpush3.bf16.msra.mxu0 %v7760_v0 }
 0xe67   : > { %4683 = vmatprep.subr.bf16.mxu0 %v7763_v13 }
 0xe6a   : > { %4684 = vmatpush3.bf16.msra.mxu0 %v7766_v15 }
 0xe6b   : > { %4685 = vmatprep.subr.bf16.mxu0 %v7769_v46 }
 0xe9e   : > { %v3351_v19 = vpop.xlane.xlu0 %3350 }
 0xe9f   : > { %v3382_v16 = vmul.f32 0.0078125, %v3351_v19 }
 0xea0   : > { %v3353_v9 = vpop.xlane.xlu1 %3352 }
 0xea1   : > { %v3398_v38 = vadd.f32 1e-05, %v3382_v16  ;;  %v3383_v10 = vmul.f32 0.0078125, %v3353_v9 }
 0xea2   : > { %v3355_v58 = vpop.xlane.xlu0 %3354 }
 0xea3   : > { %5662 = vrsqrt.f32 %v3398_v38  ;;  %v3399_v17 = vadd.f32 1e-05, %v3383_v10  ;;  %v3384_v27 = vmul.f32 0.0078125, %v3355_v58 }
 0xea5   : > { %5664 = vrsqrt.f32 %v3399_v17  ;;  %v3400_v20 = vadd.f32 1e-05, %v3384_v27 }
 0xea6   : > { %v3357_v54 = vpop.xlane.xlu1 %3356 }
 0xea7   : > { %5666 = vrsqrt.f32 %v3400_v20  ;;  %v3385_v31 = vmul.f32 0.0078125, %v3357_v54 }
 0xea9   : > { %v3401_v56 = vadd.f32 1e-05, %v3385_v31 }
 0xeaa   : > { %v3359_v34 = vpop.xlane.xlu0 %3358 }
 0xeab   : > { %5668 = vrsqrt.f32 %v3401_v56  ;;  %v3386_v62 = vmul.f32 0.0078125, %v3359_v34 }
 0xeac   : > { %v3361_v57 = vpop.xlane.xlu1 %3360 }
 0xead   : > { %v5663_v60 = vpop.eup %5662  ;;  %v3402_v52 = vadd.f32 1e-05, %v3386_v62  ;;  %v3387_v29 = vmul.f32 0.0078125, %v3361_v57 }
 0xeae   : > { %v3430_v63 = vmul.f32 %v5663_v60, %v7664_v4  ;;  %v3363_v3 = vpop.xlane.xlu0 %3362 }
 0xeaf   : > { %v5665_v32 = vpop.eup %5664  ;;  %5670 = vrsqrt.f32 %v3402_v52  ;;  %v3403_v12 = vadd.f32 1e-05, %v3387_v29  ;;  %v3388_v7 = vmul.f32 0.0078125, %v3363_v3 }
 0xeb0   : > { %v3453_v59 = vmul.f32 %v7776_v18, %v3430_v63  ;;  %v3431_v40 = vmul.f32 %v5665_v32, %v7667_v39  ;;  %v3365_v61 = vpop.xlane.xlu1 %3364 }
 0xeb1   : > { %v5667_v5 = vpop.eup %5666  ;;  %5672 = vrsqrt.f32 %v3403_v12  ;;  %v3389_v43 = vmul.f32 0.0078125, %v3365_v61  ;;  %v3404_v37 = vadd.f32 1e-05, %v3388_v7 }
 0xeb2   : > { %v3454_v4 = vmul.f32 %v7776_v18, %v3431_v40  ;;  %v7788_v33 = vadd.f32 %v7784_v25, %v3453_v59  ;;  %v3432_v39 = vmul.f32 %v5667_v5, %v7672_v44 }
 0xeb3   : > { %v3405_v49 = vadd.f32 1e-05, %v3389_v43 }
 0xeb4   : > { %v7791_v26 = vadd.f32 %v7784_v25, %v3454_v4  ;;  %v3455_v19 = vmul.f32 %v7776_v18, %v3432_v39 }
 0xeb5   : > { %v5669_v11 = vpop.eup %5668  ;;  %5674 = vrsqrt.f32 %v3405_v49 }
 0xeb6   : > { %v3492_v22 = vpack.c.bf16 %v7791_v26, %v7788_v33  ;;  %v3433_v24 = vmul.f32 %v5669_v11, %v7679_v41  ;;  %5676 = vrsqrt.f32 %v3404_v37  ;;  %v7806_v10 = vadd.f32 %v7784_v25, %v3455_v19 }
 0xeb8   : > { %3641 = vmatmul.mubr.bf16.vlgmr.msra.gmra.mrb[80].mxu1 %v3492_v22  ;;  %v3456_v16 = vmul.f32 %v7776_v18, %v3433_v24 }
 0xeb9   : > { %v5671_v9 = vpop.eup %5670  ;;  %3650 = vmatprep.mubr.bf16.mxu1 %v8319_v35  ;;  %5067 = vmatpush3.bf16.msra.mxu1 %v7743_v48 }
 0xeba   : > { %v7802_v44 = vadd.f32 %v7784_v25, %v3456_v16  ;;  %5060 = vmatprep.subr.bf16.mxu1 %v7745_v47  ;;  %v3434_v41 = vmul.f32 %v5671_v9, %v7684_v30 }
 0xebb   : > { %v5673_v38 = vpop.eup %5672 }
 0xebc   : > { %v3435_v58 = vmul.f32 %v5673_v38, %v7687_v28  ;;  %v3493_v17 = vpack.c.bf16 %v7802_v44, %v7806_v10  ;;  %v3457_v47 = vmul.f32 %v7776_v18, %v3434_v41 }
 0xebd   : > { %5068 = vmatpush3.bf16.msra.mxu1 %v7748_v21 }
 0xebe   : > { %v3458_v48 = vmul.f32 %v7776_v18, %v3435_v58  ;;  %5061 = vmatprep.subr.bf16.mxu1 %v7751_v36  ;;  %v7824_v21 = vadd.f32 %v7784_v25, %v3457_v47 }
 0xebf   : > { %v5675_v27 = vpop.eup %5674 }
 0xec0   : > { %3651 = vmatmul.mubr.bf16.gmra.mrb[84].mxu1 %v3493_v17  ;;  %v5677_v20 = vpop.eup %5676  ;;  %v7819_v30 = vadd.f32 %v7784_v25, %v3458_v48  ;;  %v3437_v28 = vmul.f32 %v5675_v27, %v7697_v45 }
 0xec1   : > { %3660 = vmatprep.mubr.bf16.mxu1 %v8319_v35  ;;  %5069 = vmatpush3.bf16.msra.mxu1 %v7754_v42  ;;  %v3436_v36 = vmul.f32 %v5677_v20, %v7692_v14 }
 0xec2   : > { %5062 = vmatprep.subr.bf16.mxu1 %v7757_v51  ;;  %v3494_v54 = vpack.c.bf16 %v7819_v30, %v7824_v21  ;;  %v3460_v31 = vmul.f32 %v7776_v18, %v3437_v28 }
 0xec3   : > { %v3459_v42 = vmul.f32 %v7776_v18, %v3436_v36 }
 0xec4   : > { %v7836_v45 = vadd.f32 %v7784_v25, %v3460_v31 }
 0xec5   : > { %5070 = vmatpush3.bf16.msra.mxu1 %v7760_v0  ;;  %v7840_v14 = vadd.f32 %v7784_v25, %v3459_v42 }
 0xec6   : > { %5063 = vmatprep.subr.bf16.mxu1 %v7763_v13 }
 0xec7   : > { %v3495_v51 = vpack.c.bf16 %v7836_v45, %v7840_v14 }
 0xec8   : > { %3661 = vmatmul.mubr.bf16.gmra.mrb[88].mxu1 %v3494_v54 }
 0xec9   : > { %3670 = vmatprep.mubr.bf16.mxu1 %v8319_v35  ;;  %5071 = vmatpush3.bf16.msra.mxu1 %v7766_v15 }
 0xeca   : > { %5064 = vmatprep.subr.bf16.mxu1 %v7769_v46 }
 0xed0   : > { %3671 = vmatmul.mubr.bf16.gmra.mrb[92].mxu1 %v3495_v51 }
 0xed1   : > { %3680 = vmatprep.mubr.bf16.mxu1 %v8319_v35 }
 0xeda   : > { %v3367_v0 = vpop.xlane.xlu0 %3366 }
 0xedb   : > { %v3390_v13 = vmul.f32 0.0078125, %v3367_v0 }
 0xedc   : > { %v3369_v56 = vpop.xlane.xlu1 %3368 }
 0xedd   : > { %v3406_v34 = vadd.f32 1e-05, %v3390_v13  ;;  %v3391_v62 = vmul.f32 0.0078125, %v3369_v56 }
 0xede   : > { %v3371_v15 = vpop.xlane.xlu0 %3370 }
 0xedf   : > { %5678 = vrsqrt.f32 %v3406_v34  ;;  %v3407_v57 = vadd.f32 1e-05, %v3391_v62  ;;  %v3392_v60 = vmul.f32 0.0078125, %v3371_v15 }
 0xee0   : > { %v3373_v52 = vpop.xlane.xlu1 %3372 }
 0xee1   : > { %5680 = vrsqrt.f32 %v3407_v57  ;;  %v3408_v46 = vadd.f32 1e-05, %v3392_v60  ;;  %v3393_v29 = vmul.f32 0.0078125, %v3373_v52  ;;  %v5402_v52 = vld [vmem:[#allocation10 + $0x70] sm:$0xff]  }
 0xee3   : > { %5682 = vrsqrt.f32 %v3408_v46  ;;  %v3409_v63 = vadd.f32 1e-05, %v3393_v29  ;;  %v5403_v46 = vld [vmem:[#allocation10 + $0x30] sm:$0xff]   ;;  %v8358_v29 = vld [vmem:[#allocation19_spill] sm:$0xff] }
 0xee5   : > { %5684 = vrsqrt.f32 %v3409_v63 }
 0xee6   : > { %v3375_v3 = vpop.xlane.xlu0 %3374 }
 0xee7   : > { %v3394_v32 = vmul.f32 0.0078125, %v3375_v3  ;;  %v8359_v3 = vld [vmem:[#allocation18_spill] sm:$0xff] }
 0xee8   : > { %v3377_v12 = vpop.xlane.xlu1 %3376 }
 0xee9   : > { %v5679_v7 = vpop.eup %5678  ;;  %v3410_v59 = vadd.f32 1e-05, %v3394_v32  ;;  %v3395_v40 = vmul.f32 0.0078125, %v3377_v12  ;;  %v8360_v32 = vsub.s32 1, %v8359_v3 }
 0xeea   : > { %v3379_v61 = vpop.xlane.xlu0 %3378  ;;  %v3438_v5 = vmul.f32 %v5679_v7, %v7704_v8 }
 0xeeb   : > { %v5681_v43 = vpop.eup %5680  ;;  %5686 = vrsqrt.f32 %v3410_v59  ;;  %v3411_v4 = vadd.f32 1e-05, %v3395_v40  ;;  %v3396_v37 = vmul.f32 0.0078125, %v3379_v61 }
 0xeec   : > { %v3381_v49 = vpop.xlane.xlu1 %3380  ;;  %v3439_v39 = vmul.f32 %v5681_v43, %v7707_v6  ;;  %v3461_v11 = vmul.f32 %v7776_v18, %v3438_v5 }
 0xeed   : > { %v5683_v22 = vpop.eup %5682  ;;  %5688 = vrsqrt.f32 %v3411_v4  ;;  %v3397_v24 = vmul.f32 0.0078125, %v3381_v49  ;;  %v3412_v9 = vadd.f32 1e-05, %v3396_v37 }
 0xeee   : > { %v3462_v19 = vmul.f32 %v7776_v18, %v3439_v39  ;;  %v7850_v41 = vadd.f32 %v7784_v25, %v3461_v11  ;;  %v3440_v58 = vmul.f32 %v5683_v22, %v7712_v2 }
 0xeef   : > { %v5685_v16 = vpop.eup %5684  ;;  %v3413_v38 = vadd.f32 1e-05, %v3397_v24 }
 0xef0   : > { %v7853_v8 = vadd.f32 %v7784_v25, %v3462_v19  ;;  %v3441_v6 = vmul.f32 %v5685_v16, %v7717_v50  ;;  %v3463_v27 = vmul.f32 %v7776_v18, %v3440_v58 }
 0xef1   : > { %5690 = vrsqrt.f32 %v3413_v38 }
 0xef2   : > { %v3496_v17 = vpack.c.bf16 %v7853_v8, %v7850_v41  ;;  %v3464_v48 = vmul.f32 %v7776_v18, %v3441_v6  ;;  %5692 = vrsqrt.f32 %v3412_v9  ;;  %v7866_v2 = vadd.f32 %v7784_v25, %v3463_v27 }
 0xef4   : > { %3681 = vmatmul.mubr.bf16.gmra.mrb[96].mxu1 %v3496_v17  ;;  %v7863_v20 = vadd.f32 %v7784_v25, %v3464_v48 }
 0xef5   : > { %v5687_v47 = vpop.eup %5686  ;;  %3690 = vmatprep.mubr.bf16.mxu1 %v8319_v35 }
 0xef6   : > { %v3442_v50 = vmul.f32 %v5687_v47, %v7724_v53  ;;  %v3497_v54 = vpack.c.bf16 %v7863_v20, %v7866_v2 }
 0xef7   : > { %v5689_v28 = vpop.eup %5688 }
 0xef8   : > { %v3443_v36 = vmul.f32 %v5689_v28, %v7727_v55  ;;  %v3465_v51 = vmul.f32 %v7776_v18, %v3442_v50 }
 0xefa   : > { %v3466_v31 = vmul.f32 %v7776_v18, %v3443_v36  ;;  %v7880_v53 = vadd.f32 %v7784_v25, %v3465_v51 }
 0xefb   : > { %v5691_v42 = vpop.eup %5690 }
 0xefc   : > { %3691 = vmatmul.mubr.bf16.gmra.mrb[100].mxu1 %v3497_v54  ;;  %v5693_v0 = vpop.eup %5692  ;;  %v7876_v13 = vadd.f32 %v7784_v25, %v3466_v31  ;;  %v3445_v56 = vmul.f32 %v5691_v42, %v7737_v23 }
 0xefd   : > { %3700 = vmatprep.mubr.bf16.mxu1 %v8319_v35  ;;  %v3444_v55 = vmul.f32 %v5693_v0, %v7732_v1  ;;  %v5401_v1 = vld [vmem:[#allocation10 + $0x28] sm:$0xff]  }
 0xefe   : > { %v3498_v34 = vpack.c.bf16 %v7876_v13, %v7880_v53  ;;  %v3468_v62 = vmul.f32 %v7776_v18, %v3445_v56  ;;  %4686 = vmatpush3.bf16.msra.mxu0 %v5401_v1  ;;  %5072 = vmatpush3.bf16.msra.mxu1 %v5401_v1 }
 0xeff   : > { %v3467_v15 = vmul.f32 %v7776_v18, %v3444_v55  ;;  %4687 = vmatprep.subr.bf16.mxu0 %v5402_v52  ;;  %5065 = vmatprep.subr.bf16.mxu1 %v5402_v52  ;;  %v5404_v18 = vld [vmem:[#allocation10 + $0x78] sm:$0xff]  }
 0xf00   : > { %v7889_v57 = vadd.f32 %v7784_v25, %v3468_v62 }
 0xf01   : > { %v7892_v23 = vadd.f32 %v7784_v25, %v3467_v15  ;;  %v3516_v25 = vld [vmem:[%s8357_s2] sm:$0x3] }
 0xf02   : > { %4688 = vmatpush3.bf16.msra.mxu0 %v5403_v46  ;;  %5073 = vmatpush3.bf16.msra.mxu1 %v5403_v46  ;;  %v7900_v63 = vrot.slane %v3516_v25, %v8358_v29  ;;  %v7904_v12 = vrot.slane %v3516_v25, %v8360_v32 }
 0xf03   : > { %v3499_v60 = vpack.c.bf16 %v7889_v57, %v7892_v23  ;;  %4689 = vmatprep.subr.bf16.mxu0 %v5404_v18  ;;  %5066 = vmatprep.subr.bf16.mxu1 %v5404_v18 }
 0xf04   : > { %3701 = vmatmul.mubr.bf16.gmra.mrb[104].mxu1 %v3498_v34 }
 0xf05   : > { %3710 = vmatprep.mubr.bf16.mxu1 %v8319_v35  ;;  %v5405_v35 = vld [vmem:[#allocation10 + $0x38] sm:$0xff]  }
 0xf06   : > { %4690 = vmatpush3.bf16.msra.mxu0 %v5405_v35  ;;  %5074 = vmatpush3.bf16.msra.mxu1 %v5405_v35 }
 0xf0c   : > { %3711 = vmatmul.mubr.bf16.gmra.mrb[108].mxu1 %v3499_v60 }
 0xf8b   : > { %v3642_v7 = vpop.f32.mrb[80].mxu1 }
 0xf8c   : > { %v3643_v59 = vadd.f32 %v3642_v7, %v7900_v63  ;;  %v3644_v40 = vpop.f32.mrb[81].mxu1 }
 0xf8d   : > { %v3645_v61 = vadd.f32 %v3644_v40, %v7904_v12  ;;  %v3646_v5 = vpop.f32.mrb[82].mxu1 }
 0xf8e   : > { %v3647_v43 = vadd.f32 %v3646_v5, %v7900_v63  ;;  %v3648_v4 = vpop.f32.mrb[83].mxu1  ;;  %v3721_v49 = vmax.f32 %v3643_v59, 0.0 }
 0xf8f   : > { %v3649_v37 = vadd.f32 %v3648_v4, %v7904_v12  ;;  %v3722_v11 = vmax.f32 %v3645_v61, 0.0 }
 0xf90   : > { %v3723_v39 = vmax.f32 %v3647_v43, 0.0 }
 0xf91   : > { %v3724_v22 = vmax.f32 %v3649_v37, 0.0 }
 0xf92   : > { %v3753_v24 = vpack.c.bf16 %v3723_v39, %v3721_v49 }
 0xf93   : > { %v3754_v19 = vpack.c.bf16 %v3724_v22, %v3722_v11  ;;  %v3652_v16 = vpop.f32.mrb[84].mxu1 }
 0xf94   : > { %v3653_v9 = vadd.f32 %v3652_v16, %v7900_v63  ;;  %v3654_v38 = vpop.f32.mrb[85].mxu1 }
 0xf95   : > { %v3655_v58 = vadd.f32 %v3654_v38, %v7904_v12  ;;  %v3656_v6 = vpop.f32.mrb[86].mxu1  ;;  %3936 = vmatprep.mubr.bf16.mxu0 %v3754_v19 }
 0xf96   : > { %v3657_v17 = vadd.f32 %v3656_v6, %v7900_v63  ;;  %v3658_v48 = vpop.f32.mrb[87].mxu1  ;;  %3937 = vmatmul.mubr.bf16.vlgmr.msra.gmra.mrb[112].mxu0 %v3753_v24  ;;  %v3725_v47 = vmax.f32 %v3653_v9, 0.0 }
 0xf97   : > { %v3659_v27 = vadd.f32 %v3658_v48, %v7904_v12  ;;  %v3726_v50 = vmax.f32 %v3655_v58, 0.0 }
 0xf98   : > { %v3727_v28 = vmax.f32 %v3657_v17, 0.0 }
 0xf99   : > { %v3728_v36 = vmax.f32 %v3659_v27, 0.0 }
 0xf9a   : > { %v3755_v54 = vpack.c.bf16 %v3727_v28, %v3725_v47 }
 0xf9b   : > { %v3756_v31 = vpack.c.bf16 %v3728_v36, %v3726_v50  ;;  %v3662_v42 = vpop.f32.mrb[88].mxu1 }
 0xf9c   : > { %v3663_v51 = vadd.f32 %v3662_v42, %v7900_v63  ;;  %v3664_v0 = vpop.f32.mrb[89].mxu1 }
 0xf9d   : > { %v3665_v56 = vadd.f32 %v3664_v0, %v7904_v12  ;;  %v3666_v55 = vpop.f32.mrb[90].mxu1  ;;  %3944 = vmatprep.mubr.bf16.mxu0 %v3756_v31 }
 0xf9e   : > { %v3667_v34 = vadd.f32 %v3666_v55, %v7900_v63  ;;  %v3668_v62 = vpop.f32.mrb[91].mxu1  ;;  %3945 = vmatmul.mubr.bf16.gmra.mrb[116].mxu0 %v3755_v54  ;;  %v3729_v60 = vmax.f32 %v3663_v51, 0.0 }
 0xf9f   : > { %v3669_v15 = vadd.f32 %v3668_v62, %v7904_v12  ;;  %v3730_v52 = vmax.f32 %v3665_v56, 0.0 }
 0xfa0   : > { %v3731_v1 = vmax.f32 %v3667_v34, 0.0 }
 0xfa1   : > { %v3732_v46 = vmax.f32 %v3669_v15, 0.0 }
 0xfa2   : > { %v3757_v18 = vpack.c.bf16 %v3731_v1, %v3729_v60 }
 0xfa3   : > { %v3758_v35 = vpack.c.bf16 %v3732_v46, %v3730_v52  ;;  %v3672_v25 = vpop.f32.mrb[92].mxu1 }
 0xfa4   : > { %v3673_v29 = vadd.f32 %v3672_v25, %v7900_v63  ;;  %v3674_v3 = vpop.f32.mrb[93].mxu1 }
 0xfa5   : > { %v3675_v32 = vadd.f32 %v3674_v3, %v7904_v12  ;;  %v3676_v7 = vpop.f32.mrb[94].mxu1  ;;  %3952 = vmatprep.mubr.bf16.mxu0 %v3758_v35 }
 0xfa6   : > { %v3677_v59 = vadd.f32 %v3676_v7, %v7900_v63  ;;  %v3678_v40 = vpop.f32.mrb[95].mxu1  ;;  %3953 = vmatmul.mubr.bf16.gmra.mrb[120].mxu0 %v3757_v18  ;;  %v3733_v5 = vmax.f32 %v3673_v29, 0.0 }
 0xfa7   : > { %v3679_v61 = vadd.f32 %v3678_v40, %v7904_v12  ;;  %v3734_v4 = vmax.f32 %v3675_v32, 0.0 }
 0xfa8   : > { %v3735_v43 = vmax.f32 %v3677_v59, 0.0 }
 0xfa9   : > { %v3736_v37 = vmax.f32 %v3679_v61, 0.0 }
 0xfaa   : > { %v3759_v49 = vpack.c.bf16 %v3735_v43, %v3733_v5 }
 0xfab   : > { %v3760_v39 = vpack.c.bf16 %v3736_v37, %v3734_v4 }
 0xfad   : > { %3960 = vmatprep.mubr.bf16.mxu0 %v3760_v39 }
 0xfae   : > { %3961 = vmatmul.mubr.bf16.gmra.mrb[124].mxu0 %v3759_v49 }
 0xfc7   : > { %v3682_v11 = vpop.f32.mrb[96].mxu1 }
 0xfc8   : > { %v3683_v22 = vadd.f32 %v3682_v11, %v7900_v63  ;;  %v3684_v24 = vpop.f32.mrb[97].mxu1 }
 0xfc9   : > { %v3685_v19 = vadd.f32 %v3684_v24, %v7904_v12  ;;  %v3686_v16 = vpop.f32.mrb[98].mxu1 }
 0xfca   : > { %v3687_v9 = vadd.f32 %v3686_v16, %v7900_v63  ;;  %v3688_v38 = vpop.f32.mrb[99].mxu1  ;;  %v3737_v6 = vmax.f32 %v3683_v22, 0.0 }
 0xfcb   : > { %v3689_v58 = vadd.f32 %v3688_v38, %v7904_v12  ;;  %v3738_v48 = vmax.f32 %v3685_v19, 0.0 }
 0xfcc   : > { %v3739_v17 = vmax.f32 %v3687_v9, 0.0 }
 0xfcd   : > { %v3740_v27 = vmax.f32 %v3689_v58, 0.0 }
 0xfce   : > { %v3761_v47 = vpack.c.bf16 %v3739_v17, %v3737_v6 }
 0xfcf   : > { %v3762_v28 = vpack.c.bf16 %v3740_v27, %v3738_v48  ;;  %v3692_v50 = vpop.f32.mrb[100].mxu1  ;;  %v7941_v27 = vld [vmem:[%s8361_s23] ss:$0 sm:$0xff]  ;;  %s5884_s23 = scalar_lea.vmem %s8185_s20, 2048 }
 0xfd0   : > { %v3693_v36 = vadd.f32 %v3692_v50, %v7900_v63  ;;  %v3694_v54 = vpop.f32.mrb[101].mxu1  ;;  %p5885_p5 = scmp.ne.s32.totalorder %s8185_s20, %s5884_s23 }
 0xfd1   : > { %v3695_v31 = vadd.f32 %v3694_v54, %v7904_v12  ;;  %v3696_v42 = vpop.f32.mrb[102].mxu1  ;;  %3968 = vmatprep.mubr.bf16.mxu0 %v3762_v28 }
 0xfd2   : > { %v3697_v51 = vadd.f32 %v3696_v42, %v7900_v63  ;;  %v3698_v0 = vpop.f32.mrb[103].mxu1  ;;  %3969 = vmatmul.mubr.bf16.gmra.mrb[128].mxu0 %v3761_v47  ;;  %v3741_v55 = vmax.f32 %v3693_v36, 0.0  ;;  %p5886_p7 = pnand %p5885_p5, %p6212_p10 }
 0xfd3   : > { %v3699_v56 = vadd.f32 %v3698_v0, %v7904_v12  ;;  %v3742_v62 = vmax.f32 %v3695_v31, 0.0 }
 0xfd4   : > { %v3743_v34 = vmax.f32 %v3697_v51, 0.0  ;;  %p5887_p12 = pneg %p5886_p7 }
 0xfd5   : > { %v3744_v15 = vmax.f32 %v3699_v56, 0.0 }
 0xfd6   : > { %v3763_v60 = vpack.c.bf16 %v3743_v34, %v3741_v55 }
 0xfd7   : > { %v3764_v1 = vpack.c.bf16 %v3744_v15, %v3742_v62  ;;  %v3702_v52 = vpop.f32.mrb[104].mxu1 }
 0xfd8   : > { %v3703_v46 = vadd.f32 %v3702_v52, %v7900_v63  ;;  %v3704_v18 = vpop.f32.mrb[105].mxu1 }
 0xfd9   : > { %v3705_v35 = vadd.f32 %v3704_v18, %v7904_v12  ;;  %v3706_v25 = vpop.f32.mrb[106].mxu1  ;;  %3976 = vmatprep.mubr.bf16.mxu0 %v3764_v1 }
 0xfda   : > { %v3707_v29 = vadd.f32 %v3706_v25, %v7900_v63  ;;  %v3708_v3 = vpop.f32.mrb[107].mxu1  ;;  %3977 = vmatmul.mubr.bf16.gmra.mrb[132].mxu0 %v3763_v60  ;;  %v3745_v7 = vmax.f32 %v3703_v46, 0.0 }
 0xfdb   : > { %v3709_v32 = vadd.f32 %v3708_v3, %v7904_v12  ;;  %v3746_v40 = vmax.f32 %v3705_v35, 0.0 }
 0xfdc   : > { %v3747_v59 = vmax.f32 %v3707_v29, 0.0 }
 0xfdd   : > { %v3748_v61 = vmax.f32 %v3709_v32, 0.0 }
 0xfde   : > { %v3765_v5 = vpack.c.bf16 %v3747_v59, %v3745_v7 }
 0xfdf   : > { %v3766_v43 = vpack.c.bf16 %v3748_v61, %v3746_v40  ;;  %v3712_v4 = vpop.f32.mrb[108].mxu1 }
 0xfe0   : > { %v3713_v37 = vadd.f32 %v3712_v4, %v7900_v63  ;;  %v3714_v49 = vpop.f32.mrb[109].mxu1 }
 0xfe1   : > { %v3715_v39 = vadd.f32 %v3714_v49, %v7904_v12  ;;  %v3716_v11 = vpop.f32.mrb[110].mxu1  ;;  %3984 = vmatprep.mubr.bf16.mxu1 %v3766_v43 }
 0xfe2   : > { %v3717_v22 = vadd.f32 %v3716_v11, %v7900_v63  ;;  %v3718_v24 = vpop.f32.mrb[111].mxu1  ;;  %3985 = vmatmul.mubr.bf16.vlgmr.msra.gmra.mrb[112].mxu1 %v3765_v5  ;;  %v3749_v16 = vmax.f32 %v3713_v37, 0.0 }
 0xfe3   : > { %v3719_v19 = vadd.f32 %v3718_v24, %v7904_v12  ;;  %v3750_v38 = vmax.f32 %v3715_v39, 0.0 }
 0xfe4   : > { %v3751_v9 = vmax.f32 %v3717_v22, 0.0 }
 0xfe5   : > { %v3752_v58 = vmax.f32 %v3719_v19, 0.0 }
 0xfe6   : > { %v3767_v6 = vpack.c.bf16 %v3751_v9, %v3749_v16 }
 0xfe7   : > { %v3768_v17 = vpack.c.bf16 %v3752_v58, %v3750_v38 }
 0xfe9   : > { %3992 = vmatprep.mubr.bf16.mxu1 %v3768_v17 }
 0xfea   : > { %3993 = vmatmul.mubr.bf16.gmra.mrb[116].mxu1 %v3767_v6 }
0x1069   : > { %v4691_v48 = vpop.f32.mrb[112].mxu0 }
0x106a   : > { %v4692_v47 = vpop.f32.mrb[113].mxu0 }
0x106b   : > { %v4693_v63 = vadd.f32 %v4692_v47, %v4691_v48  ;;  %v4694_v28 = vpop.f32.mrb[114].mxu0 }
0x106c   : > { %v4695_v50 = vpop.f32.mrb[115].mxu0 }
0x106d   : > { %v3939_v12 = vadd.f32 %v4693_v63, %v7941_v27  ;;  %v4696_v36 = vadd.f32 %v4695_v50, %v4694_v28 }
0x106f   : > { %v3942_v54 = vadd.f32 %v4696_v36, %v7941_v27  ;;  %v7946_v31 = vadd.f32 %v3939_v12, %v7788_v33 }
0x1071   : > { %4017 = vadd.xlane.f32.xlu0 %v7946_v31  ;;  %v4697_v42 = vpop.f32.mrb[116].mxu0  ;;  %v7950_v51 = vadd.f32 %v3942_v54, %v7791_v26 }
0x1072   : > { %v4698_v0 = vpop.f32.mrb[117].mxu0 }
0x1073   : > { %v4699_v56 = vadd.f32 %v4698_v0, %v4697_v42  ;;  %4019 = vadd.xlane.f32.xlu1 %v7950_v51  ;;  %v4700_v55 = vpop.f32.mrb[118].mxu0 }
0x1074   : > { %v4701_v34 = vpop.f32.mrb[119].mxu0 }
0x1075   : > { %v3947_v62 = vadd.f32 %v4699_v56, %v7941_v27  ;;  %v4702_v15 = vadd.f32 %v4701_v34, %v4700_v55 }
0x1077   : > { %v3950_v60 = vadd.f32 %v4702_v15, %v7941_v27  ;;  %v7956_v33 = vadd.f32 %v3947_v62, %v7806_v10 }
0x1079   : > { %4021 = vadd.xlane.f32.xlu0 %v7956_v33  ;;  %v4703_v1 = vpop.f32.mrb[120].mxu0  ;;  %v7960_v26 = vadd.f32 %v3950_v60, %v7802_v44 }
0x107a   : > { %v4704_v52 = vpop.f32.mrb[121].mxu0 }
0x107b   : > { %v4705_v46 = vadd.f32 %v4704_v52, %v4703_v1  ;;  %4023 = vadd.xlane.f32.xlu1 %v7960_v26  ;;  %v4706_v18 = vpop.f32.mrb[122].mxu0 }
0x107c   : > { %v4707_v35 = vpop.f32.mrb[123].mxu0 }
0x107d   : > { %v3955_v25 = vadd.f32 %v4705_v46, %v7941_v27  ;;  %v4708_v29 = vadd.f32 %v4707_v35, %v4706_v18 }
0x107f   : > { %v3958_v3 = vadd.f32 %v4708_v29, %v7941_v27  ;;  %v7966_v10 = vadd.f32 %v3955_v25, %v7824_v21 }
0x1081   : > { %4025 = vadd.xlane.f32.xlu0 %v7966_v10  ;;  %v4709_v32 = vpop.f32.mrb[124].mxu0  ;;  %v7970_v44 = vadd.f32 %v3958_v3, %v7819_v30 }
0x1082   : > { %v4710_v7 = vpop.f32.mrb[125].mxu0 }
0x1083   : > { %v4711_v59 = vadd.f32 %v4710_v7, %v4709_v32  ;;  %4027 = vadd.xlane.f32.xlu1 %v7970_v44  ;;  %v4712_v40 = vpop.f32.mrb[126].mxu0 }
0x1084   : > { %v4713_v61 = vpop.f32.mrb[127].mxu0 }
0x1085   : > { %v3963_v5 = vadd.f32 %v4711_v59, %v7941_v27  ;;  %v4714_v43 = vadd.f32 %v4713_v61, %v4712_v40 }
0x1087   : > { %v3966_v4 = vadd.f32 %v4714_v43, %v7941_v27  ;;  %v7976_v21 = vadd.f32 %v3963_v5, %v7840_v14 }
0x1089   : > { %4029 = vadd.xlane.f32.xlu0 %v7976_v21  ;;  %v7980_v37 = vadd.f32 %v3966_v4, %v7836_v45 }
0x108b   : > { %4031 = vadd.xlane.f32.xlu1 %v7980_v37 }
0x10a5   : > { %v4715_v30 = vpop.f32.mrb[128].mxu0 }
0x10a6   : > { %v4716_v49 = vpop.f32.mrb[129].mxu0 }
0x10a7   : > { %v4717_v39 = vadd.f32 %v4716_v49, %v4715_v30  ;;  %v4718_v11 = vpop.f32.mrb[130].mxu0 }
0x10a8   : > { %v4719_v22 = vpop.f32.mrb[131].mxu0 }
0x10a9   : > { %v3971_v24 = vadd.f32 %v4717_v39, %v7941_v27  ;;  %v4720_v19 = vadd.f32 %v4719_v22, %v4718_v11 }
0x10ab   : > { %v3974_v16 = vadd.f32 %v4720_v19, %v7941_v27  ;;  %v7986_v14 = vadd.f32 %v3971_v24, %v7850_v41 }
0x10ad   : > { %4033 = vadd.xlane.f32.xlu0 %v7986_v14  ;;  %v4721_v9 = vpop.f32.mrb[132].mxu0  ;;  %v7990_v45 = vadd.f32 %v3974_v16, %v7853_v8 }
0x10ae   : > { %v4722_v38 = vpop.f32.mrb[133].mxu0 }
0x10af   : > { %v4723_v58 = vadd.f32 %v4722_v38, %v4721_v9  ;;  %4035 = vadd.xlane.f32.xlu1 %v7990_v45  ;;  %v4724_v6 = vpop.f32.mrb[134].mxu0 }
0x10b0   : > { %v4725_v17 = vpop.f32.mrb[135].mxu0 }
0x10b1   : > { %v3979_v48 = vadd.f32 %v4723_v58, %v7941_v27  ;;  %v4726_v47 = vadd.f32 %v4725_v17, %v4724_v6 }
0x10b3   : > { %v3982_v63 = vadd.f32 %v4726_v47, %v7941_v27  ;;  %v7996_v41 = vadd.f32 %v3979_v48, %v7866_v2 }
0x10b5   : > { %4037 = vadd.xlane.f32.xlu0 %v7996_v41  ;;  %v4727_v28 = vpop.f32.mrb[112].mxu1  ;;  %v8000_v8 = vadd.f32 %v3982_v63, %v7863_v20 }
0x10b6   : > { %v4728_v50 = vpop.f32.mrb[113].mxu1 }
0x10b7   : > { %v4729_v12 = vadd.f32 %v4728_v50, %v4727_v28  ;;  %4039 = vadd.xlane.f32.xlu1 %v8000_v8  ;;  %v4730_v36 = vpop.f32.mrb[114].mxu1 }
0x10b8   : > { %v4731_v54 = vpop.f32.mrb[115].mxu1 }
0x10b9   : > { %v3987_v42 = vadd.f32 %v4729_v12, %v7941_v27  ;;  %v4732_v0 = vadd.f32 %v4731_v54, %v4730_v36 }
0x10bb   : > { %v3990_v56 = vadd.f32 %v4732_v0, %v7941_v27  ;;  %v8006_v2 = vadd.f32 %v3987_v42, %v7880_v53 }
0x10bd   : > { %4041 = vadd.xlane.f32.xlu0 %v8006_v2  ;;  %v4733_v55 = vpop.f32.mrb[116].mxu1  ;;  %v8010_v20 = vadd.f32 %v3990_v56, %v7876_v13 }
0x10be   : > { %v4734_v34 = vpop.f32.mrb[117].mxu1 }
0x10bf   : > { %v4735_v62 = vadd.f32 %v4734_v34, %v4733_v55  ;;  %4043 = vadd.xlane.f32.xlu1 %v8010_v20  ;;  %v4736_v15 = vpop.f32.mrb[118].mxu1 }
0x10c0   : > { %v4737_v60 = vpop.f32.mrb[119].mxu1 }
0x10c1   : > { %v3995_v1 = vadd.f32 %v4735_v62, %v7941_v27  ;;  %v4738_v52 = vadd.f32 %v4737_v60, %v4736_v15 }
0x10c3   : > { %v3998_v46 = vadd.f32 %v4738_v52, %v7941_v27  ;;  %v8016_v53 = vadd.f32 %v3995_v1, %v7892_v23 }
0x10c5   : > { %4045 = vadd.xlane.f32.xlu0 %v8016_v53  ;;  %v8020_v18 = vadd.f32 %v3998_v46, %v7889_v57 }
0x10c7   : > { %4047 = vadd.xlane.f32.xlu1 %v8020_v18 }
0x10fe   : > { %v4018_v13 = vpop.xlane.xlu0 %4017 }
0x10ff   : > { %v4049_v35 = vmul.f32 0.0078125, %v4018_v13 }
0x1100   : > { %v4020_v25 = vpop.xlane.xlu1 %4019 }
0x1101   : > { %v8024_v29 = vsub.f32 %v7946_v31, %v4049_v35  ;;  %v4050_v3 = vmul.f32 0.0078125, %v4020_v25 }
0x1103   : > { %v8027_v32 = vsub.f32 %v7950_v51, %v4050_v3  ;;  %v4081_v23 = vmul.f32 %v8024_v29, %v8024_v29 }
0x1105   : > { %4097 = vadd.xlane.f32.xlu0 %v4081_v23  ;;  %v4082_v57 = vmul.f32 %v8027_v32, %v8027_v32 }
0x1106   : > { %v4022_v27 = vpop.xlane.xlu0 %4021 }
0x1107   : > { %v4051_v7 = vmul.f32 0.0078125, %v4022_v27  ;;  %4099 = vadd.xlane.f32.xlu1 %v4082_v57 }
0x1108   : > { %v4024_v59 = vpop.xlane.xlu1 %4023 }
0x1109   : > { %v8034_v40 = vsub.f32 %v7956_v33, %v4051_v7  ;;  %v4052_v31 = vmul.f32 0.0078125, %v4024_v59 }
0x110b   : > { %v8037_v61 = vsub.f32 %v7960_v26, %v4052_v31  ;;  %v4083_v51 = vmul.f32 %v8034_v40, %v8034_v40 }
0x110d   : > { %4101 = vadd.xlane.f32.xlu0 %v4083_v51  ;;  %v4084_v5 = vmul.f32 %v8037_v61, %v8037_v61 }
0x110e   : > { %v4026_v43 = vpop.xlane.xlu0 %4025 }
0x110f   : > { %v4053_v4 = vmul.f32 0.0078125, %v4026_v43  ;;  %4103 = vadd.xlane.f32.xlu1 %v4084_v5 }
0x1110   : > { %v4028_v30 = vpop.xlane.xlu1 %4027 }
0x1111   : > { %v8044_v49 = vsub.f32 %v7966_v10, %v4053_v4  ;;  %v4054_v33 = vmul.f32 0.0078125, %v4028_v30  ;;  %v8106_v4 = vld [vmem:[%s8362_s24] ss:$0 sm:$0xff]  ;;  %s5890_s24 = scalar_lea.vmem %s5889_s27, 4096 }
0x1112   : > { %p5892_p1 = scmp.lt.s32.totalorder %s5890_s24, %s5884_s23 }
0x1113   : > { %v8047_v39 = vsub.f32 %v7970_v44, %v4054_v33  ;;  %v4085_v26 = vmul.f32 %v8044_v49, %v8044_v49 }
0x1114   : > { %p5893_p13 = por %p5892_p1, %p5891_p2 }
0x1115   : > { %4105 = vadd.xlane.f32.xlu0 %v4085_v26  ;;  %v4086_v11 = vmul.f32 %v8047_v39, %v8047_v39 }
0x1116   : > { %v4030_v22 = vpop.xlane.xlu0 %4029  ;;  %p5894_p9 = pnand %p5893_p13, %p5887_p12 }
0x1117   : > { %v4055_v24 = vmul.f32 0.0078125, %v4030_v22  ;;  %4107 = vadd.xlane.f32.xlu1 %v4086_v11  ;;  %v8112_v11 = vld [vmem:[%s8363_s19] ss:$0 sm:$0xff] }
0x1118   : > { %v4032_v19 = vpop.xlane.xlu1 %4031 }
0x1119   : > { %v8054_v16 = vsub.f32 %v7976_v21, %v4055_v24  ;;  %v4056_v10 = vmul.f32 0.0078125, %v4032_v19 }
0x111b   : > { %v8057_v9 = vsub.f32 %v7980_v37, %v4056_v10  ;;  %v4087_v44 = vmul.f32 %v8054_v16, %v8054_v16 }
0x111d   : > { %4109 = vadd.xlane.f32.xlu0 %v4087_v44  ;;  %v4088_v38 = vmul.f32 %v8057_v9, %v8057_v9 }
0x111f   : > { %4111 = vadd.xlane.f32.xlu1 %v4088_v38 }
0x113a   : > { %v4034_v58 = vpop.xlane.xlu0 %4033 }
0x113b   : > { %v4057_v6 = vmul.f32 0.0078125, %v4034_v58 }
0x113c   : > { %v4036_v17 = vpop.xlane.xlu1 %4035 }
0x113d   : > { %v8064_v48 = vsub.f32 %v7986_v14, %v4057_v6  ;;  %v4058_v21 = vmul.f32 0.0078125, %v4036_v17 }
0x113f   : > { %v8067_v47 = vsub.f32 %v7990_v45, %v4058_v21  ;;  %v4089_v37 = vmul.f32 %v8064_v48, %v8064_v48 }
0x1141   : > { %4113 = vadd.xlane.f32.xlu0 %v4089_v37  ;;  %v4090_v63 = vmul.f32 %v8067_v47, %v8067_v47 }
0x1142   : > { %v4038_v28 = vpop.xlane.xlu0 %4037 }
0x1143   : > { %v4059_v50 = vmul.f32 0.0078125, %v4038_v28  ;;  %4115 = vadd.xlane.f32.xlu1 %v4090_v63 }
0x1144   : > { %v4040_v12 = vpop.xlane.xlu1 %4039 }
0x1145   : > { %v8074_v36 = vsub.f32 %v7996_v41, %v4059_v50  ;;  %v4060_v14 = vmul.f32 0.0078125, %v4040_v12 }
0x1147   : > { %v8077_v54 = vsub.f32 %v8000_v8, %v4060_v14  ;;  %v4091_v45 = vmul.f32 %v8074_v36, %v8074_v36 }
0x1149   : > { %4117 = vadd.xlane.f32.xlu0 %v4091_v45  ;;  %v4092_v42 = vmul.f32 %v8077_v54, %v8077_v54 }
0x114a   : > { %v4042_v0 = vpop.xlane.xlu0 %4041 }
0x114b   : > { %v4061_v56 = vmul.f32 0.0078125, %v4042_v0  ;;  %4119 = vadd.xlane.f32.xlu1 %v4092_v42 }
0x114c   : > { %v4044_v55 = vpop.xlane.xlu1 %4043 }
0x114d   : > { %v8084_v34 = vsub.f32 %v8006_v2, %v4061_v56  ;;  %v4062_v41 = vmul.f32 0.0078125, %v4044_v55 }
0x114f   : > { %v8087_v62 = vsub.f32 %v8010_v20, %v4062_v41  ;;  %v4093_v8 = vmul.f32 %v8084_v34, %v8084_v34 }
0x1151   : > { %4121 = vadd.xlane.f32.xlu0 %v4093_v8  ;;  %v4094_v15 = vmul.f32 %v8087_v62, %v8087_v62 }
0x1152   : > { %v4046_v60 = vpop.xlane.xlu0 %4045 }
0x1153   : > { %v4063_v1 = vmul.f32 0.0078125, %v4046_v60  ;;  %4123 = vadd.xlane.f32.xlu1 %v4094_v15 }
0x1154   : > { %v4048_v52 = vpop.xlane.xlu1 %4047 }
0x1155   : > { %v8094_v46 = vsub.f32 %v8016_v53, %v4063_v1  ;;  %v4064_v2 = vmul.f32 0.0078125, %v4048_v52 }
0x1157   : > { %v8097_v13 = vsub.f32 %v8020_v18, %v4064_v2  ;;  %v4095_v20 = vmul.f32 %v8094_v46, %v8094_v46 }
0x1159   : > { %4125 = vadd.xlane.f32.xlu0 %v4095_v20  ;;  %v4096_v35 = vmul.f32 %v8097_v13, %v8097_v13 }
0x115b   : > { %4127 = vadd.xlane.f32.xlu1 %v4096_v35 }
0x1192   : > { %v4098_v25 = vpop.xlane.xlu0 %4097 }
0x1193   : > { %v4129_v3 = vmul.f32 0.0078125, %v4098_v25 }
0x1194   : > { %v4100_v23 = vpop.xlane.xlu1 %4099 }
0x1195   : > { %v4145_v57 = vadd.f32 1e-05, %v4129_v3  ;;  %v4130_v27 = vmul.f32 0.0078125, %v4100_v23 }
0x1197   : > { %5694 = vrsqrt.f32 %v4145_v57  ;;  %v4146_v53 = vadd.f32 1e-05, %v4130_v27 }
0x1199   : > { %5696 = vrsqrt.f32 %v4146_v53 }
0x119a   : > { %v4102_v7 = vpop.xlane.xlu0 %4101 }
0x119b   : > { %v4131_v59 = vmul.f32 0.0078125, %v4102_v7 }
0x119c   : > { %v4104_v18 = vpop.xlane.xlu1 %4103 }
0x119d   : > { %v4147_v31 = vadd.f32 1e-05, %v4131_v59  ;;  %v4132_v51 = vmul.f32 0.0078125, %v4104_v18 }
0x119f   : > { %5698 = vrsqrt.f32 %v4147_v31  ;;  %v4148_v5 = vadd.f32 1e-05, %v4132_v51 }
0x11a1   : > { %v5695_v43 = vpop.eup %5694  ;;  %5700 = vrsqrt.f32 %v4148_v5 }
0x11a2   : > { %v4177_v30 = vmul.f32 %v5695_v43, %v8024_v29  ;;  %v4106_v33 = vpop.xlane.xlu0 %4105 }
0x11a3   : > { %v5697_v26 = vpop.eup %5696  ;;  %v4133_v22 = vmul.f32 0.0078125, %v4106_v33 }
0x11a4   : > { %v4200_v24 = vmul.f32 %v8106_v4, %v4177_v30  ;;  %v4178_v19 = vmul.f32 %v5697_v26, %v8027_v32  ;;  %v4108_v10 = vpop.xlane.xlu1 %4107 }
0x11a5   : > { %v4149_v44 = vadd.f32 1e-05, %v4133_v22  ;;  %v4134_v38 = vmul.f32 0.0078125, %v4108_v10 }
0x11a6   : > { %v4223_v58 = vadd.f32 %v8112_v11, %v4200_v24  ;;  %v4201_v6 = vmul.f32 %v8106_v4, %v4178_v19 }
0x11a7   : > { %5702 = vrsqrt.f32 %v4149_v44  ;;  %v4150_v29 = vadd.f32 1e-05, %v4134_v38 }
0x11a8   : > { %4239 = vst [vmem:[%s8120_s21] sm:$0xff] %v4223_v58  ;;  %v4224_v17 = vadd.f32 %v8112_v11, %v4201_v6 }
0x11a9   : > { %v5699_v21 = vpop.eup %5698  ;;  %5704 = vrsqrt.f32 %v4150_v29 }
0x11aa   : > { %4240 = vst [vmem:[%s8120_s21 + $0x8] sm:$0xff] %v4224_v17  ;;  %v4179_v32 = vmul.f32 %v5699_v21, %v8034_v40  ;;  %v4110_v37 = vpop.xlane.xlu0 %4109 }
0x11ab   : > { %v5701_v63 = vpop.eup %5700  ;;  %v4135_v28 = vmul.f32 0.0078125, %v4110_v37 }
0x11ac   : > { %v4202_v50 = vmul.f32 %v8106_v4, %v4179_v32  ;;  %v4180_v12 = vmul.f32 %v5701_v63, %v8037_v61  ;;  %v4112_v14 = vpop.xlane.xlu1 %4111 }
0x11ad   : > { %v4151_v45 = vadd.f32 1e-05, %v4135_v28  ;;  %v4136_v42 = vmul.f32 0.0078125, %v4112_v14 }
0x11ae   : > { %v4225_v0 = vadd.f32 %v8112_v11, %v4202_v50  ;;  %v4203_v56 = vmul.f32 %v8106_v4, %v4180_v12 }
0x11af   : > { %5706 = vrsqrt.f32 %v4151_v45  ;;  %v4152_v55 = vadd.f32 1e-05, %v4136_v42 }
0x11b0   : > { %4241 = vst [vmem:[%s8120_s21 + $0x10] sm:$0xff] %v4225_v0  ;;  %v4226_v40 = vadd.f32 %v8112_v11, %v4203_v56 }
0x11b1   : > { %v5703_v41 = vpop.eup %5702  ;;  %5708 = vrsqrt.f32 %v4152_v55 }
0x11b2   : > { %4242 = vst [vmem:[%s8120_s21 + $0x18] sm:$0xff] %v4226_v40  ;;  %v4181_v8 = vmul.f32 %v5703_v41, %v8044_v49 }
0x11b3   : > { %v5705_v61 = vpop.eup %5704 }
0x11b4   : > { %v4204_v15 = vmul.f32 %v8106_v4, %v4181_v8  ;;  %v4182_v60 = vmul.f32 %v5705_v61, %v8047_v39 }
0x11b6   : > { %v4227_v1 = vadd.f32 %v8112_v11, %v4204_v15  ;;  %v4205_v52 = vmul.f32 %v8106_v4, %v4182_v60 }
0x11b8   : > { %4243 = vst [vmem:[%s8120_s21 + $0x20] sm:$0xff] %v4227_v1  ;;  %v4228_v2 = vadd.f32 %v8112_v11, %v4205_v52 }
0x11b9   : > { %v5707_v20 = vpop.eup %5706 }
0x11ba   : > { %4244 = vst [vmem:[%s8120_s21 + $0x28] sm:$0xff] %v4228_v2  ;;  %v4183_v35 = vmul.f32 %v5707_v20, %v8054_v16 }
0x11bb   : > { %v5709_v25 = vpop.eup %5708 }
0x11bc   : > { %v4206_v49 = vmul.f32 %v8106_v4, %v4183_v35  ;;  %v4184_v3 = vmul.f32 %v5709_v25, %v8057_v9 }
0x11be   : > { %v4229_v23 = vadd.f32 %v8112_v11, %v4206_v49  ;;  %v4207_v39 = vmul.f32 %v8106_v4, %v4184_v3 }
0x11c0   : > { %4245 = vst [vmem:[%s8120_s21 + $0x30] sm:$0xff] %v4229_v23  ;;  %v4230_v57 = vadd.f32 %v8112_v11, %v4207_v39 }
0x11c2   : > { %4246 = vst [vmem:[%s8120_s21 + $0x38] sm:$0xff] %v4230_v57 }
0x11ce   : > { %v4114_v27 = vpop.xlane.xlu0 %4113 }
0x11cf   : > { %v4137_v53 = vmul.f32 0.0078125, %v4114_v27 }
0x11d0   : > { %v4116_v7 = vpop.xlane.xlu1 %4115 }
0x11d1   : > { %v4153_v59 = vadd.f32 1e-05, %v4137_v53  ;;  %v4138_v18 = vmul.f32 0.0078125, %v4116_v7 }
0x11d3   : > { %5710 = vrsqrt.f32 %v4153_v59  ;;  %v4154_v16 = vadd.f32 1e-05, %v4138_v18 }
0x11d5   : > { %5712 = vrsqrt.f32 %v4154_v16 }
0x11d6   : > { %v4118_v31 = vpop.xlane.xlu0 %4117 }
0x11d7   : > { %v4139_v51 = vmul.f32 0.0078125, %v4118_v31 }
0x11d8   : > { %v4120_v5 = vpop.xlane.xlu1 %4119 }
0x11d9   : > { %v4155_v9 = vadd.f32 1e-05, %v4139_v51  ;;  %v4140_v43 = vmul.f32 0.0078125, %v4120_v5 }
0x11db   : > { %5714 = vrsqrt.f32 %v4155_v9  ;;  %v4156_v30 = vadd.f32 1e-05, %v4140_v43 }
0x11dd   : > { %v5711_v33 = vpop.eup %5710  ;;  %5716 = vrsqrt.f32 %v4156_v30 }
0x11de   : > { %v4185_v26 = vmul.f32 %v5711_v33, %v8064_v48  ;;  %v4122_v22 = vpop.xlane.xlu0 %4121 }
0x11df   : > { %v5713_v24 = vpop.eup %5712  ;;  %v4141_v19 = vmul.f32 0.0078125, %v4122_v22 }
0x11e0   : > { %v4208_v10 = vmul.f32 %v8106_v4, %v4185_v26  ;;  %v4186_v44 = vmul.f32 %v5713_v24, %v8067_v47  ;;  %v4124_v38 = vpop.xlane.xlu1 %4123 }
0x11e1   : > { %v4157_v58 = vadd.f32 1e-05, %v4141_v19  ;;  %v4142_v6 = vmul.f32 0.0078125, %v4124_v38 }
0x11e2   : > { %v4231_v29 = vadd.f32 %v8112_v11, %v4208_v10  ;;  %v4209_v17 = vmul.f32 %v8106_v4, %v4186_v44 }
0x11e3   : > { %5718 = vrsqrt.f32 %v4157_v58  ;;  %v4158_v21 = vadd.f32 1e-05, %v4142_v6 }
0x11e4   : > { %4247 = vst [vmem:[%s8120_s21 + $0x40] sm:$0xff] %v4231_v29  ;;  %v4232_v48 = vadd.f32 %v8112_v11, %v4209_v17 }
0x11e5   : > { %v5715_v32 = vpop.eup %5714  ;;  %5720 = vrsqrt.f32 %v4158_v21 }
0x11e6   : > { %4248 = vst [vmem:[%s8120_s21 + $0x48] sm:$0xff] %v4232_v48  ;;  %v4187_v37 = vmul.f32 %v5715_v32, %v8074_v36  ;;  %v4126_v63 = vpop.xlane.xlu0 %4125 }
0x11e7   : > { %v5717_v47 = vpop.eup %5716  ;;  %v4143_v28 = vmul.f32 0.0078125, %v4126_v63 }
0x11e8   : > { %v4210_v50 = vmul.f32 %v8106_v4, %v4187_v37  ;;  %v4188_v12 = vmul.f32 %v5717_v47, %v8077_v54  ;;  %v4128_v14 = vpop.xlane.xlu1 %4127 }
0x11e9   : > { %v4159_v45 = vadd.f32 1e-05, %v4143_v28  ;;  %v4144_v42 = vmul.f32 0.0078125, %v4128_v14 }
0x11ea   : > { %v4233_v0 = vadd.f32 %v8112_v11, %v4210_v50  ;;  %v4211_v56 = vmul.f32 %v8106_v4, %v4188_v12 }
0x11eb   : > { %5722 = vrsqrt.f32 %v4159_v45  ;;  %v4160_v55 = vadd.f32 1e-05, %v4144_v42 }
0x11ec   : > { %4249 = vst [vmem:[%s8120_s21 + $0x50] sm:$0xff] %v4233_v0  ;;  %v4234_v36 = vadd.f32 %v8112_v11, %v4211_v56 }
0x11ed   : > { %v5719_v40 = vpop.eup %5718  ;;  %5724 = vrsqrt.f32 %v4160_v55 }
0x11ee   : > { %4250 = vst [vmem:[%s8120_s21 + $0x58] sm:$0xff] %v4234_v36  ;;  %v4189_v54 = vmul.f32 %v5719_v40, %v8084_v34 }
0x11ef   : > { %v5721_v41 = vpop.eup %5720 }
0x11f0   : > { %v4212_v8 = vmul.f32 %v8106_v4, %v4189_v54  ;;  %v4190_v61 = vmul.f32 %v5721_v41, %v8087_v62 }
0x11f2   : > { %v4235_v15 = vadd.f32 %v8112_v11, %v4212_v8  ;;  %v4213_v60 = vmul.f32 %v8106_v4, %v4190_v61 }
0x11f4   : > { %4251 = vst [vmem:[%s8120_s21 + $0x60] sm:$0xff] %v4235_v15  ;;  %v4236_v1 = vadd.f32 %v8112_v11, %v4213_v60 }
0x11f5   : > { %v5723_v52 = vpop.eup %5722 }
0x11f6   : > { %4252 = vst [vmem:[%s8120_s21 + $0x68] sm:$0xff] %v4236_v1  ;;  %v4191_v2 = vmul.f32 %v5723_v52, %v8094_v46 }
0x11f7   : > { %v5725_v34 = vpop.eup %5724 }
0x11f8   : > { %v4214_v20 = vmul.f32 %v8106_v4, %v4191_v2  ;;  %v4192_v62 = vmul.f32 %v5725_v34, %v8097_v13 }
0x11fa   : > { %v4237_v35 = vadd.f32 %v8112_v11, %v4214_v20  ;;  %v4215_v25 = vmul.f32 %v8106_v4, %v4192_v62 }
0x11fc   : > { %4253 = vst [vmem:[%s8120_s21 + $0x70] sm:$0xff] %v4237_v35  ;;  %v4238_v46 = vadd.f32 %v8112_v11, %v4215_v25 }
0x11fe   : > { %4254 = vst [vmem:[%s8120_s21 + $0x78] sm:$0xff] %v4238_v46 }
0x11ff   : > { %5897 = shalt.err (!%p5894_p9)
}
0x1200   : > { %s5898_s13 = scalar_lea.hbm %s8183_s18, 2048  ;;  %s5902_s21 = scalar_lea.hbm %s8364_s22, 4096 }
0x1201   : > { %p5899_p0 = scmp.ne.s32.totalorder %s8183_s18, %s5898_s13  ;;  %p5903_p8 = scmp.lt.u32.totalorder %s8183_s18, %s8364_s22 }
0x1202   : > { %p5904_p6 = scmp.lt.u32.totalorder %s5902_s21, %s5898_s13  ;;  %p5906_p5 = scmp.lt.u32.totalorder %s5898_s13, %s8183_s18 }
0x1203   : > { %p5900_p11 = pnand %p5899_p0, %p6212_p10 }
0x1204   : > { %p5905_p3 = por %p5904_p6, %p5903_p8 }
0x1205   : > { %p5901_p4 = pneg %p5900_p11 }
0x1206   : > { %p5907_p7 = por %p5906_p5, %p5905_p3 }
0x1208   : > { %p5908_p12 = pnand %p5907_p7, %p5901_p4 }
0x120a   : > { %5911 = shalt.err (!%p5908_p12)
}
0x120b   : > { %s5976_s2 = smov 128   ;;  %s5977_s23 = smov 8  }
0x120c   : > { %5125 = dma.vmem_to_hbm [thread:$0]  (%p6212_p10), %s8185_s20, 2048, %s8183_s18, %s4256_s17, %s5976_s2, %s5976_s2, %s5977_s23  }
0x120d PF: > { %s8365_s11 = sld [smem:[#allocation16_spill]]  ;;  %s8366_s27 = sld [smem:[#allocation17_spill]] }
0x120e   : > { %p8368_p1 = scmp.ge.s32.totalorder %s5958_s16, 2 }
0x1213   : > { %s4284_s24 = sand.u32 1, %s8365_s11   ;;  %p8367_p2 = scmp.ne.s32.totalorder %s8366_s27, 0 }
0x1214   : > { %s4285_s13 = scalar_lea.sflag [#allocation4], %s4284_s24 }
0x1215   : > { %p5145_p13 = pnand %p8368_p1, %p8367_p2 }
0x1217   : > { %5941 = dma.done.wait (!%p5145_p13), %s4285_s13, 2048  }
0x1218   : > { %5943 = vsyncadd (!%p5145_p13), %s4285_s13, 4294965248  ;;  %s8369_s14 = smov %s6202_s29  ;;  %p29_p9 = scmp.ge.s32.totalorder %s6202_s29, 4  }
0x1219   : > { %s8370_s29 = smov %s5950_s30  ;;  %s8371_s30 = smov %s5954_s15 }
0x121a   : > { %s8372_s15 = smov %s6218_s28  ;;  %s8373_s16 = smov %s8369_s14 }
0x121b   :  { %31 = sbr.rel (!%p29_p9) target bundleno = 14 (0xe), region = 140 }
0x1222   :  { %4290 = vsyncpa [#allocation3], 1 }
0x1223   :  { %4292 = vsyncpa [#allocation3 + $0x1], 1 }
0x1224   :  { %4293 = vsyncpa [#allocation6], 1 }
0x1225   :  { %4294 = vsyncpa [#allocation9], 1 }
0x1226   :  { %4295 = vsyncpa [#allocation4], 1 }
0x1227   :  { %4297 = vsyncpa [#allocation4 + $0x1], 1 }

</bundles_post_ra>
